<compile_context>
chip_gen: v5e
topology: v5e:2x2
jax: 0.10.0
libtpu: 0.0.40
codegen_flags: <defaults>
</compile_context>

<pallas_src>
import math

import jax
import jax.numpy as jnp
from jax.experimental import pallas as pl
from jax.experimental.pallas import tpu as pltpu

IN_DIM = 28 * 28           # 784  (logical feature width, matches PyTorch)
INTER_DIM = IN_DIM         # 784
LATENT_DIM = IN_DIM // 4   # 196  (logical latent width, matches PyTorch)

PAD_DIM = 896              # zero-padded feature width  (7 * 128, lane-aligned)
LATENT_PAD = 256           # zero-padded latent width   (2 * 128, lane-aligned)


def autoencoder_kernel(x_ref,
                       w1_ref, b1_ref,
                       w2_ref, b2_ref,
                       w3_ref, b3_ref,
                       w4_ref, b4_ref,
                       o_ref):
    """One batch tile: 4 fused matmuls + activations, all operands in VMEM."""
    # bf16 operands on the MXU, f32 accumulation; elementwise math stays f32.
    x = x_ref[...].astype(w1_ref.dtype)

    # encoder
    h = jnp.dot(x, w1_ref[...], preferred_element_type=jnp.float32) + b1_ref[...]
    h = jnp.maximum(h, 0.0)                                          # ReLU
    h = jnp.dot(h.astype(w2_ref.dtype), w2_ref[...],
                preferred_element_type=jnp.float32) + b2_ref[...]
    h = jnp.maximum(h, 0.0)                                          # ReLU

    # decoder
    h = jnp.dot(h.astype(w3_ref.dtype), w3_ref[...],
                preferred_element_type=jnp.float32) + b3_ref[...]
    h = jnp.maximum(h, 0.0)                                          # ReLU
    z = jnp.dot(h.astype(w4_ref.dtype), w4_ref[...],
                preferred_element_type=jnp.float32) + b4_ref[...]
    # Sigmoid = 1 / (1 + exp(-z)): exp + approx reciprocal both run on the EUP
    # slot, keeping the elementwise tail off the VPU.
    o_ref[...] = pl.reciprocal(1.0 + jnp.exp(-z), approx=True).astype(o_ref.dtype)


def _round_up(n, m):
    return ((n + m - 1) // m) * m


def _tiling_config():
    """(max batch tile, scoped VMEM limit) per generation."""
    try:
        vmem_bytes = getattr(pltpu.get_tpu_info(), "vmem_capacity_bytes",
                             64 << 20)
    except Exception:
        vmem_bytes = 64 << 20
    if vmem_bytes >= (96 << 20):       # v5e / v6e: 128 MiB VMEM
        return 1024, 64 << 20
    return 512, 32 << 20               # v7x: 64 MiB VMEM per TensorCore


def _choose_block_batch(batch, max_tb):
    """Smallest 8-row-aligned tile covering the batch, capped at max_tb."""
    tb = min(max_tb, _round_up(batch, 8))
    # If one tile would cover the whole batch but the batch is non-trivial,
    # split into >= 2 grid blocks so the "parallel" axis can be sharded across
    # v7x's two TensorCores (harmless on single-TC v5e/v6e).
    if tb >= batch and batch > 8:
        tb = min(tb, _round_up(pl.cdiv(batch, 2), 8))
    return max(tb, 8)


def autoencoder_forward(x, params, *, block_batch=None):
    """x: any shape whose trailing dims flatten to 784 (e.g. (B, 1, 28, 28))."""
    shape = x.shape
    batch = shape[0]
    x2d = x.reshape(batch, -1)
    assert x2d.shape[1] == IN_DIM, (
        f"expected flattened dim {IN_DIM}, got {x2d.shape[1]}")

    # Zero-pad features 784 -> 896 so every vreg column / store is lane-dense.
    x2d = jnp.pad(x2d, ((0, 0), (0, PAD_DIM - IN_DIM)))

    max_tb, vmem_limit = _tiling_config()
    tb = block_batch if block_batch is not None else _choose_block_batch(batch, max_tb)
    n_blocks = pl.cdiv(batch, tb)
    padded_batch = n_blocks * tb
    if padded_batch != batch:
        # Pad M up to a whole number of tiles (adaptive: tracks the real batch).
        x2d = jnp.pad(x2d, ((0, padded_batch - batch), (0, 0)))

    # Single-buffer the VMEM-resident operands: constant block index => fetched
    # once, never re-fetched, so the default second pipeline buffer is dead VMEM.
    single_buf = getattr(pl, "Buffered", None)

    def resident(block_shape):
        if single_buf is not None:
            return pl.BlockSpec(block_shape, lambda i: (0, 0),
                                pipeline_mode=single_buf(1))
        return pl.BlockSpec(block_shape, lambda i: (0, 0))

    in_specs = [
        pl.BlockSpec((tb, PAD_DIM), lambda i: (i, 0)),     # x tile (pipelined)
        resident((PAD_DIM, PAD_DIM)),                      # W1
        resident((1, PAD_DIM)),                            # b1
        resident((PAD_DIM, LATENT_PAD)),                   # W2 (latent-padded)
        resident((1, LATENT_PAD)),                         # b2
        resident((LATENT_PAD, PAD_DIM)),                   # W3 (latent-padded)
        resident((1, PAD_DIM)),                            # b3
        resident((PAD_DIM, PAD_DIM)),                      # W4
        resident((1, PAD_DIM)),                            # b4
    ]
    out_spec = pl.BlockSpec((tb, PAD_DIM), lambda i: (i, 0))

    out = pl.pallas_call(
        autoencoder_kernel,
        out_shape=jax.ShapeDtypeStruct((padded_batch, PAD_DIM), x.dtype),
        grid=(n_blocks,),
        in_specs=in_specs,
        out_specs=out_spec,
        compiler_params=pltpu.CompilerParams(
            dimension_semantics=("parallel",),   # shard blocks over v7x's 2 TCs
            vmem_limit_bytes=vmem_limit,
        ),
    )(x2d, *params)

    # Slice off batch padding and the 784 -> 896 feature padding.
    return out[:batch, :IN_DIM].reshape(shape)


def _xavier_uniform(key, fan_in, fan_out, gain):
    # torch.nn.init.xavier_uniform_(W, gain) on W of shape (out, in); we store (in, out).
    bound = gain * math.sqrt(6.0 / (fan_in + fan_out))
    return jax.random.uniform(key, (fan_in, fan_out), jnp.float32, -bound, bound)


def _default_bias(key, fan_in, fan_out):
    # torch Linear default bias init: U(-1/sqrt(fan_in), 1/sqrt(fan_in))
    bound = 1.0 / math.sqrt(fan_in)
    return jax.random.uniform(key, (1, fan_out), jnp.float32, -bound, bound)


def init_params(key, weight_dtype=jnp.bfloat16):
    # ReLU activation => gain = calculate_gain('relu') = sqrt(2)
    gain = math.sqrt(2.0)
    keys = jax.random.split(key, 8)

    w1 = _xavier_uniform(keys[0], IN_DIM, INTER_DIM, gain)
    b1 = _default_bias(keys[1], IN_DIM, INTER_DIM)
    w2 = _xavier_uniform(keys[2], INTER_DIM, LATENT_DIM, gain)
    b2 = _default_bias(keys[3], INTER_DIM, LATENT_DIM)
    w3 = _xavier_uniform(keys[4], LATENT_DIM, INTER_DIM, gain)
    b3 = _default_bias(keys[5], LATENT_DIM, INTER_DIM)
    w4 = _xavier_uniform(keys[6], INTER_DIM, IN_DIM, gain)
    b4 = _default_bias(keys[7], INTER_DIM, IN_DIM)

    dpad = PAD_DIM - IN_DIM          # 784 -> 896
    lpad = LATENT_PAD - LATENT_DIM   # 196 -> 256

    # Zero-pads keep the math identical (padded activations are ReLU(0+0)=0 and
    # padded weight rows only ever multiply those zeros).
    w1 = jnp.pad(w1, ((0, dpad), (0, dpad)))
    b1 = jnp.pad(b1, ((0, 0), (0, dpad)))
    w2 = jnp.pad(w2, ((0, dpad), (0, lpad)))
    b2 = jnp.pad(b2, ((0, 0), (0, lpad)))
    w3 = jnp.pad(w3, ((0, lpad), (0, dpad)))
    b3 = jnp.pad(b3, ((0, 0), (0, dpad)))
    w4 = jnp.pad(w4, ((0, dpad), (0, dpad)))
    b4 = jnp.pad(b4, ((0, 0), (0, dpad)))

    # Weights bf16 (MXU operands), biases f32 (f32 bias-add/activation path).
    # TODO(synk): int8 weight quantization would further help v5e/v6e (not v7x).
    return (w1.astype(weight_dtype), b1,
            w2.astype(weight_dtype), b2,
            w3.astype(weight_dtype), b3,
            w4.astype(weight_dtype), b4)


def _reference_forward(x, params):
    """Pure-JAX f32 reference using the same (padded, bf16-rounded) weights."""
    w1, b1, w2, b2, w3, b3, w4, b4 = [p.astype(jnp.float32) for p in params]
    shape = x.shape
    h = x.reshape(shape[0], -1)
    h = jnp.maximum(h @ w1[:IN_DIM, :IN_DIM] + b1[:, :IN_DIM], 0.0)
    h = jnp.maximum(h @ w2[:IN_DIM, :LATENT_DIM] + b2[:, :LATENT_DIM], 0.0)
    h = jnp.maximum(h @ w3[:LATENT_DIM, :IN_DIM] + b3[:, :IN_DIM], 0.0)
    z = h @ w4[:IN_DIM, :IN_DIM] + b4[:, :IN_DIM]
    return jax.nn.sigmoid(z).reshape(shape)


if __name__ == "__main__":
    key = jax.random.PRNGKey(0)
    k_param, k_x = jax.random.split(key)

    params = init_params(k_param)
    # MNIST-like small batch, NCHW: (batch=2, channels=1, 28, 28)
    x = jax.random.uniform(k_x, (2, 1, 28, 28), jnp.float32)

    # jit once so repeated calls reuse the same compiled kernel.
    fwd = jax.jit(autoencoder_forward)
    y = fwd(x, params)
    y = jax.block_until_ready(y)

    assert y.shape == x.shape, (y.shape, x.shape)
    assert bool(jnp.all(jnp.isfinite(y)))
    # sigmoid output range sanity check
    assert bool(jnp.all((y >= 0.0) & (y <= 1.0)))

    # Loose tolerance: kernel casts activations to bf16 for the MXU (f32 acc),
    # the reference keeps them in f32 — expect ~1e-2 absolute error post-sigmoid.
    y_ref = _reference_forward(x, params)
    max_err = float(jnp.max(jnp.abs(y.astype(jnp.float32) - y_ref)))
    assert max_err < 0.1, f"max abs error vs reference: {max_err}"

    print("KERNEL_OK")
</pallas_src>

<mosaic_0001>
module attributes {stable_mosaic.version = 11 : i64} {
  func.func @autoencoder_kernel(%arg0: i32, %arg1: memref<8x896xf32, #tpu.memory_space<vmem>>, %arg2: memref<896x896xbf16, #tpu.memory_space<vmem>>, %arg3: memref<1x896xf32, #tpu.memory_space<vmem>>, %arg4: memref<896x256xbf16, #tpu.memory_space<vmem>>, %arg5: memref<1x256xf32, #tpu.memory_space<vmem>>, %arg6: memref<256x896xbf16, #tpu.memory_space<vmem>>, %arg7: memref<1x896xf32, #tpu.memory_space<vmem>>, %arg8: memref<896x896xbf16, #tpu.memory_space<vmem>>, %arg9: memref<1x896xf32, #tpu.memory_space<vmem>>, %arg10: memref<8x896xf32, #tpu.memory_space<vmem>>) attributes {dimension_semantics = [#tpu.dimension_semantics<parallel>], iteration_bounds = array<i64: 1>, scalar_prefetch = 0 : i64, scratch_operands = 0 : i64, tpu.core_type = #tpu.core_type<tc>, window_params = [{transform_indices = @transform_0, window_bounds = array<i64: 8, 896>}, {pipeline_mode = #tpu.pipeline_mode<synchronous>, transform_indices = @transform_1, window_bounds = array<i64: 896, 896>}, {pipeline_mode = #tpu.pipeline_mode<synchronous>, transform_indices = @transform_2, window_bounds = array<i64: 1, 896>}, {pipeline_mode = #tpu.pipeline_mode<synchronous>, transform_indices = @transform_3, window_bounds = array<i64: 896, 256>}, {pipeline_mode = #tpu.pipeline_mode<synchronous>, transform_indices = @transform_4, window_bounds = array<i64: 1, 256>}, {pipeline_mode = #tpu.pipeline_mode<synchronous>, transform_indices = @transform_5, window_bounds = array<i64: 256, 896>}, {pipeline_mode = #tpu.pipeline_mode<synchronous>, transform_indices = @transform_6, window_bounds = array<i64: 1, 896>}, {pipeline_mode = #tpu.pipeline_mode<synchronous>, transform_indices = @transform_7, window_bounds = array<i64: 896, 896>}, {pipeline_mode = #tpu.pipeline_mode<synchronous>, transform_indices = @transform_8, window_bounds = array<i64: 1, 896>}, {transform_indices = @transform_9, window_bounds = array<i64: 8, 896>}]} {
    %c0 = arith.constant 0 : index
    %c0_0 = arith.constant 0 : index
    %0 = vector.load %arg1[%c0, %c0_0] : memref<8x896xf32, #tpu.memory_space<vmem>>, vector<8x896xf32>
    %1 = arith.truncf %0 : vector<8x896xf32> to vector<8x896xbf16>
    %c0_1 = arith.constant 0 : index
    %c0_2 = arith.constant 0 : index
    %2 = vector.load %arg2[%c0_1, %c0_2] : memref<896x896xbf16, #tpu.memory_space<vmem>>, vector<896x896xbf16>
    %cst = arith.constant dense<0.000000e+00> : vector<8x896xf32>
    %3 = tpu.matmul %1, %2, %cst {dimension_numbers = #tpu.dot_dimension_numbers<[1], [0], [0], [1], [0, 0, 1, 1], [], []>} : vector<8x896xbf16>, vector<896x896xbf16>, vector<8x896xf32> -> vector<8x896xf32>
    %c0_3 = arith.constant 0 : index
    %c0_4 = arith.constant 0 : index
    %4 = vector.load %arg3[%c0_3, %c0_4] : memref<1x896xf32, #tpu.memory_space<vmem>>, vector<1x896xf32>
    %5 = vector.broadcast %4 : vector<1x896xf32> to vector<8x896xf32>
    %6 = arith.addf %3, %5 : vector<8x896xf32>
    %cst_5 = arith.constant 0.000000e+00 : f32
    %7 = vector.broadcast %cst_5 : f32 to vector<8x896xf32>
    %8 = arith.maximumf %6, %7 : vector<8x896xf32>
    %9 = arith.truncf %8 : vector<8x896xf32> to vector<8x896xbf16>
    %c0_6 = arith.constant 0 : index
    %c0_7 = arith.constant 0 : index
    %10 = vector.load %arg4[%c0_6, %c0_7] : memref<896x256xbf16, #tpu.memory_space<vmem>>, vector<896x256xbf16>
    %cst_8 = arith.constant dense<0.000000e+00> : vector<8x256xf32>
    %11 = tpu.matmul %9, %10, %cst_8 {dimension_numbers = #tpu.dot_dimension_numbers<[1], [0], [0], [1], [0, 0, 1, 1], [], []>} : vector<8x896xbf16>, vector<896x256xbf16>, vector<8x256xf32> -> vector<8x256xf32>
    %c0_9 = arith.constant 0 : index
    %c0_10 = arith.constant 0 : index
    %12 = vector.load %arg5[%c0_9, %c0_10] : memref<1x256xf32, #tpu.memory_space<vmem>>, vector<1x256xf32>
    %13 = vector.broadcast %12 : vector<1x256xf32> to vector<8x256xf32>
    %14 = arith.addf %11, %13 : vector<8x256xf32>
    %cst_11 = arith.constant 0.000000e+00 : f32
    %15 = vector.broadcast %cst_11 : f32 to vector<8x256xf32>
    %16 = arith.maximumf %14, %15 : vector<8x256xf32>
    %17 = arith.truncf %16 : vector<8x256xf32> to vector<8x256xbf16>
    %c0_12 = arith.constant 0 : index
    %c0_13 = arith.constant 0 : index
    %18 = vector.load %arg6[%c0_12, %c0_13] : memref<256x896xbf16, #tpu.memory_space<vmem>>, vector<256x896xbf16>
    %cst_14 = arith.constant dense<0.000000e+00> : vector<8x896xf32>
    %19 = tpu.matmul %17, %18, %cst_14 {dimension_numbers = #tpu.dot_dimension_numbers<[1], [0], [0], [1], [0, 0, 1, 1], [], []>} : vector<8x256xbf16>, vector<256x896xbf16>, vector<8x896xf32> -> vector<8x896xf32>
    %c0_15 = arith.constant 0 : index
    %c0_16 = arith.constant 0 : index
    %20 = vector.load %arg7[%c0_15, %c0_16] : memref<1x896xf32, #tpu.memory_space<vmem>>, vector<1x896xf32>
    %21 = vector.broadcast %20 : vector<1x896xf32> to vector<8x896xf32>
    %22 = arith.addf %19, %21 : vector<8x896xf32>
    %cst_17 = arith.constant 0.000000e+00 : f32
    %23 = vector.broadcast %cst_17 : f32 to vector<8x896xf32>
    %24 = arith.maximumf %22, %23 : vector<8x896xf32>
    %25 = arith.truncf %24 : vector<8x896xf32> to vector<8x896xbf16>
    %c0_18 = arith.constant 0 : index
    %c0_19 = arith.constant 0 : index
    %26 = vector.load %arg8[%c0_18, %c0_19] : memref<896x896xbf16, #tpu.memory_space<vmem>>, vector<896x896xbf16>
    %cst_20 = arith.constant dense<0.000000e+00> : vector<8x896xf32>
    %27 = tpu.matmul %25, %26, %cst_20 {dimension_numbers = #tpu.dot_dimension_numbers<[1], [0], [0], [1], [0, 0, 1, 1], [], []>} : vector<8x896xbf16>, vector<896x896xbf16>, vector<8x896xf32> -> vector<8x896xf32>
    %c0_21 = arith.constant 0 : index
    %c0_22 = arith.constant 0 : index
    %28 = vector.load %arg9[%c0_21, %c0_22] : memref<1x896xf32, #tpu.memory_space<vmem>>, vector<1x896xf32>
    %29 = vector.broadcast %28 : vector<1x896xf32> to vector<8x896xf32>
    %30 = arith.addf %27, %29 : vector<8x896xf32>
    %cst_23 = arith.constant 0.000000e+00 : f32
    %31 = vector.broadcast %cst_23 : f32 to vector<8x896xf32>
    %32 = arith.subf %31, %30 : vector<8x896xf32>
    %33 = math.exp %32 : vector<8x896xf32>
    %cst_24 = arith.constant 1.000000e+00 : f32
    %34 = vector.broadcast %cst_24 : f32 to vector<8x896xf32>
    %35 = arith.addf %34, %33 : vector<8x896xf32>
    %36 = tpu.reciprocal %35 {approx = true} : vector<8x896xf32> -> vector<8x896xf32>
    %c0_25 = arith.constant 0 : index
    %c0_26 = arith.constant 0 : index
    %37 = vector.load %arg10[%c0_25, %c0_26] : memref<8x896xf32, #tpu.memory_space<vmem>>, vector<8x896xf32>
    tpu.vector_store %arg10[%c0_25, %c0_26], %36 {strides = array<i32>} : memref<8x896xf32, #tpu.memory_space<vmem>>, vector<8x896xf32>,
    return
  }
  func.func @transform_0(%arg0: i32) -> (i32, i32) {
    %c0_i32 = arith.constant 0 : i32
    %c0_i32_0 = arith.constant 0 : i32
    return %arg0, %c0_i32 : i32, i32
  }
  func.func @transform_1(%arg0: i32) -> (i32, i32) {
    %c0_i32 = arith.constant 0 : i32
    %c0_i32_0 = arith.constant 0 : i32
    %c0_i32_1 = arith.constant 0 : i32
    return %c0_i32, %c0_i32_0 : i32, i32
  }
  func.func @transform_2(%arg0: i32) -> (i32, i32) {
    %c0_i32 = arith.constant 0 : i32
    %c0_i32_0 = arith.constant 0 : i32
    %c0_i32_1 = arith.constant 0 : i32
    return %c0_i32, %c0_i32_0 : i32, i32
  }
  func.func @transform_3(%arg0: i32) -> (i32, i32) {
    %c0_i32 = arith.constant 0 : i32
    %c0_i32_0 = arith.constant 0 : i32
    %c0_i32_1 = arith.constant 0 : i32
    return %c0_i32, %c0_i32_0 : i32, i32
  }
  func.func @transform_4(%arg0: i32) -> (i32, i32) {
    %c0_i32 = arith.constant 0 : i32
    %c0_i32_0 = arith.constant 0 : i32
    %c0_i32_1 = arith.constant 0 : i32
    return %c0_i32, %c0_i32_0 : i32, i32
  }
  func.func @transform_5(%arg0: i32) -> (i32, i32) {
    %c0_i32 = arith.constant 0 : i32
    %c0_i32_0 = arith.constant 0 : i32
    %c0_i32_1 = arith.constant 0 : i32
    return %c0_i32, %c0_i32_0 : i32, i32
  }
  func.func @transform_6(%arg0: i32) -> (i32, i32) {
    %c0_i32 = arith.constant 0 : i32
    %c0_i32_0 = arith.constant 0 : i32
    %c0_i32_1 = arith.constant 0 : i32
    return %c0_i32, %c0_i32_0 : i32, i32
  }
  func.func @transform_7(%arg0: i32) -> (i32, i32) {
    %c0_i32 = arith.constant 0 : i32
    %c0_i32_0 = arith.constant 0 : i32
    %c0_i32_1 = arith.constant 0 : i32
    return %c0_i32, %c0_i32_0 : i32, i32
  }
  func.func @transform_8(%arg0: i32) -> (i32, i32) {
    %c0_i32 = arith.constant 0 : i32
    %c0_i32_0 = arith.constant 0 : i32
    %c0_i32_1 = arith.constant 0 : i32
    return %c0_i32, %c0_i32_0 : i32, i32
  }
  func.func @transform_9(%arg0: i32) -> (i32, i32) {
    %c0_i32 = arith.constant 0 : i32
    %c0_i32_0 = arith.constant 0 : i32
    return %arg0, %c0_i32 : i32, i32
  }
}

</mosaic_0001>

<bundles_post_ra>
// kernel: autoencoder_forward.1
= control target key start
LH: loop header
LB: loop body
LE: loop exit
PB: predicated region body
PF: predicated region fallthrough
CT: control target
= control target key end

     0   :  { %14 = vsyncpa [#allocation3], 0  ;;  %s14006_s0 = inlined_call_operand.vmem [shape: f32[8,896], index: 0, kind: input, shape index: {}]   ;;  %s14007_s1 = inlined_call_operand.hbm [shape: bf16[896,896], index: 1, kind: input, shape index: {}]   ;;  %s14008_s2 = inlined_call_operand.hbm [shape: f32[1,896], index: 2, kind: input, shape index: {}]   ;;  %s14009_s3 = inlined_call_operand.hbm [shape: bf16[896,256], index: 3, kind: input, shape index: {}]   ;;  %s14010_s4 = inlined_call_operand.hbm [shape: f32[1,256], index: 4, kind: input, shape index: {}]   ;;  %s14011_s5 = inlined_call_operand.hbm [shape: bf16[256,896], index: 5, kind: input, shape index: {}]   ;;  %s14012_s6 = inlined_call_operand.hbm [shape: f32[1,896], index: 6, kind: input, shape index: {}]   ;;  %s14013_s7 = inlined_call_operand.hbm [shape: bf16[896,896], index: 7, kind: input, shape index: {}]   ;;  %s14014_s8 = inlined_call_operand.hbm [shape: f32[1,896], index: 8, kind: input, shape index: {}]   ;;  %s14015_s9 = inlined_call_operand.vmem [shape: f32[8,896], index: 9, kind: output, shape index: {}]  }
   0x1   :  { %15 = vsyncpa [#allocation5], 0 }
   0x2   :  { %16 = vsyncpa [#allocation8], 0 }
   0x3   :  { %17 = vsyncpa [#allocation11], 0  ;;  %s39_s11 = sshll.u32 %s14008_s2, 4  ;;  %s40_s11 = int_to_ptr.hbm [resolvable:$true] %s39_s11 }
   0x4   :  { %18 = vsyncpa [#allocation14], 0  ;;  %s13527_s12 = smov [#allocation4]   ;;  %s63_s16 = sshll.u32 %s14010_s4, 4  ;;  %s64_s16 = int_to_ptr.hbm [resolvable:$true] %s63_s16 }
   0x5   :  { %s41_s13 = sshll.u32 %s13527_s12, 4  ;;  %s13528_s17 = smov [#allocation7]   ;;  %s42_s13 = int_to_ptr.vmem [resolvable:$true] %s41_s13 }
   0x6   :  { %44 = dma.hbm_to_vmem [thread:$0]  %s40_s11, 112, %s42_s13, [#allocation5]  }
   0x7   :  { %s65_s18 = sshll.u32 %s13528_s17, 4  ;;  %s87_s21 = sshll.u32 %s14012_s6, 4  ;;  %s66_s18 = int_to_ptr.vmem [resolvable:$true] %s65_s18  ;;  %s88_s21 = int_to_ptr.hbm [resolvable:$true] %s87_s21 }
   0x8   :  { %68 = dma.hbm_to_vmem [thread:$0]  %s64_s16, 32, %s66_s18, [#allocation8]  }
   0x9   :  { %s25_s23 = sshll.u32 %s14007_s1, 4  ;;  %s13529_s24 = smov [#allocation10]   ;;  %s26_s23 = int_to_ptr.hbm [resolvable:$true] %s25_s23 }
   0xa   :  { %s89_s25 = sshll.u32 %s13529_s24, 4  ;;  %s13530_s4 = smov [#allocation2]   ;;  %s90_s25 = int_to_ptr.vmem [resolvable:$true] %s89_s25 }
   0xb   :  { %92 = dma.hbm_to_vmem [thread:$0]  %s88_s21, 112, %s90_s25, [#allocation11]  }
   0xc   :  { %s27_s26 = sshll.u32 %s13530_s4, 4  ;;  %s13531_s27 = smov 448   ;;  %s28_s26 = int_to_ptr.vmem [resolvable:$true] %s27_s26 }
   0xd   :  { %s13532_s28 = smov 28   ;;  %s49_s30 = sshll.u32 %s14009_s3, 4  ;;  %s50_s30 = int_to_ptr.hbm [resolvable:$true] %s49_s30 }
   0xe   :  { %33 = dma.hbm_to_vmem [thread:$0]  %s26_s23, 50176, %s28_s26, [#allocation3], %s13531_s27, %s13531_s27, %s13532_s28  }
   0xf   :  { %s13533_s10 = smov [#allocation6]   ;;  %s73_s13 = sshll.u32 %s14011_s5, 4  ;;  %s74_s13 = int_to_ptr.hbm [resolvable:$true] %s73_s13 }
  0x10   :  { %s51_s11 = sshll.u32 %s13533_s10, 4  ;;  %s13534_s14 = smov 128   ;;  %s52_s11 = int_to_ptr.vmem [resolvable:$true] %s51_s11 }
  0x11   :  { %s13535_s15 = smov 8   ;;  %s13536_s16 = smov [#allocation9]  }
  0x12   :  { %57 = dma.hbm_to_vmem [thread:$0]  %s50_s30, 14336, %s52_s11, [#allocation5], %s13534_s14, %s13534_s14, %s13535_s15  }
  0x13   :  { %s75_s17 = sshll.u32 %s13536_s16, 4  ;;  %s97_s20 = sshll.u32 %s14013_s7, 4  ;;  %s76_s17 = int_to_ptr.vmem [resolvable:$true] %s75_s17  ;;  %s98_s20 = int_to_ptr.hbm [resolvable:$true] %s97_s20 }
  0x14   :  { %81 = dma.hbm_to_vmem [thread:$0]  %s74_s13, 14336, %s76_s17, [#allocation8], %s13531_s27, %s13531_s27, %s13532_s28  }
  0x15   :  { %s111_s2 = sshll.u32 %s14014_s8, 4  ;;  %s13537_s22 = smov [#allocation12]   ;;  %s112_s2 = int_to_ptr.hbm [resolvable:$true] %s111_s2 }
  0x16   :  { %s99_s23 = sshll.u32 %s13537_s22, 4  ;;  %s13538_s5 = smov [#allocation13]   ;;  %s100_s23 = int_to_ptr.vmem [resolvable:$true] %s99_s23 }
  0x17   :  { %105 = dma.hbm_to_vmem [thread:$0]  %s98_s20, 50176, %s100_s23, [#allocation11], %s13531_s27, %s13531_s27, %s13532_s28  }
  0x18   :  { %s113_s24 = sshll.u32 %s13538_s5, 4  ;;  %s114_s24 = int_to_ptr.vmem [resolvable:$true] %s113_s24 }
  0x19   :  { %116 = dma.hbm_to_vmem [thread:$0]  %s112_s2, 112, %s114_s24, [#allocation14]  }
  0x1a   :  { %13517 = dma.done.wait [#allocation3], 50176  }
  0x1b   :  { %13518 = vsyncadd [#allocation3], 4294917120 }
  0x1c   :  { %13519 = dma.done.wait [#allocation5], 14448  }
  0x1d   :  { %13520 = vsyncadd [#allocation5], 4294952848 }
  0x1e   :  { %13521 = dma.done.wait [#allocation8], 14368  }
  0x1f   :  { %13522 = vsyncadd [#allocation8], 4294952928 }
  0x20   :  { %13523 = dma.done.wait [#allocation11], 50288  }
  0x21   :  { %13524 = vsyncadd [#allocation11], 4294917008 }
  0x22   :  { %13525 = dma.done.wait [#allocation14], 112  }
  0x23   :  { %13526 = vsyncadd [#allocation14], 4294967184  ;;  %v8440_v0 = vld [vmem:[#allocation2 + $0x188] sm:$0xf]  ;;  %v12326_v1 = vld [vmem:[#allocation2 + $0x1a0] sm:$0xf0] }
  0x24   :  { %v8664_v2 = vld [vmem:[#allocation2 + $0x348] sm:$0xf]  ;;  %v8441_v3 = vor.u32 %v12326_v1, %v8440_v0  ;;  %v12382_v4 = vld [vmem:[#allocation2 + $0x360] sm:$0xf0]  ;;  %v8412_v11 = vld [vmem:[#allocation2 + $0x150] sm:$0xf] }
  0x25   :  { %v8888_v5 = vld [vmem:[#allocation2 + $0x508] sm:$0xf]  ;;  %v12438_v6 = vld [vmem:[#allocation2 + $0x520] sm:$0xf0]  ;;  %v8665_v7 = vor.u32 %v12382_v4, %v8664_v2  ;;  %v12319_v13 = vld [vmem:[#allocation2 + $0x168] sm:$0xf0] }
  0x26   :  { %v8889_v8 = vor.u32 %v12438_v6, %v8888_v5  ;;  %v9112_v9 = vld [vmem:[#allocation2 + $0x6c8] sm:$0xf]  ;;  %v12494_v10 = vld [vmem:[#allocation2 + $0x6e0] sm:$0xf0]  ;;  %2643 = vmatpush.bf16.msra.mxu0 %v8441_v3  ;;  %v8636_v14 = vld [vmem:[#allocation2 + $0x310] sm:$0xf]  ;;  %v8413_v16 = vor.u32 %v12319_v13, %v8412_v11 }
  0x27   :  { %v9113_v12 = vor.u32 %v12494_v10, %v9112_v9  ;;  %v12375_v15 = vld [vmem:[#allocation2 + $0x328] sm:$0xf0]  ;;  %2656 = vmatpush.bf16.msra.mxu1 %v8665_v7  ;;  %v8860_v18 = vld [vmem:[#allocation2 + $0x4d0] sm:$0xf]  ;;  %v8384_v23 = vld [vmem:[#allocation2 + $0x118] sm:$0xf] }
  0x28   :  { %2669 = vmatpush.bf16.msra.mxu2 %v8889_v8  ;;  %v8637_v17 = vor.u32 %v12375_v15, %v8636_v14  ;;  %v12431_v19 = vld [vmem:[#allocation2 + $0x4e8] sm:$0xf0]  ;;  %v9084_v20 = vld [vmem:[#allocation2 + $0x690] sm:$0xf]  ;;  %v12312_v24 = vld [vmem:[#allocation2 + $0x130] sm:$0xf0] }
  0x29   :  { %2682 = vmatpush.bf16.msra.mxu3 %v9113_v12  ;;  %v8861_v21 = vor.u32 %v12431_v19, %v8860_v18  ;;  %v12487_v22 = vld [vmem:[#allocation2 + $0x6a8] sm:$0xf0]  ;;  %v8608_v26 = vld [vmem:[#allocation2 + $0x2d8] sm:$0xf]  ;;  %v12368_v27 = vld [vmem:[#allocation2 + $0x2f0] sm:$0xf0]  ;;  %v8385_v29 = vor.u32 %v12312_v24, %v8384_v23 }
  0x2a   :  { %v9085_v25 = vor.u32 %v12487_v22, %v9084_v20  ;;  %v8832_v28 = vld [vmem:[#allocation2 + $0x498] sm:$0xf]  ;;  %2644 = vmatpush.bf16.msra.mxu0 %v8413_v16  ;;  %v12424_v30 = vld [vmem:[#allocation2 + $0x4b0] sm:$0xf0]  ;;  %v8609_v33 = vor.u32 %v12368_v27, %v8608_v26  ;;  %v8356_v35 = vld [vmem:[#allocation2 + $0xe0] sm:$0xf] }
  0x2b   :  { %v9056_v31 = vld [vmem:[#allocation2 + $0x658] sm:$0xf]  ;;  %v12480_v32 = vld [vmem:[#allocation2 + $0x670] sm:$0xf0]  ;;  %2657 = vmatpush.bf16.msra.mxu1 %v8637_v17  ;;  %v8833_v34 = vor.u32 %v12424_v30, %v8832_v28  ;;  %v12305_v36 = vld [vmem:[#allocation2 + $0xf8] sm:$0xf0] }
  0x2c   :  { %2670 = vmatpush.bf16.msra.mxu2 %v8861_v21  ;;  %v8580_v37 = vld [vmem:[#allocation2 + $0x2a0] sm:$0xf]  ;;  %v9057_v38 = vor.u32 %v12480_v32, %v9056_v31  ;;  %v12361_v39 = vld [vmem:[#allocation2 + $0x2b8] sm:$0xf0]  ;;  %v8357_v44 = vor.u32 %v12305_v36, %v8356_v35  ;;  %v8328_v47 = vld [vmem:[#allocation2 + $0xa8] sm:$0xf] }
  0x2d   :  { %2683 = vmatpush.bf16.msra.mxu3 %v9085_v25  ;;  %v8804_v40 = vld [vmem:[#allocation2 + $0x460] sm:$0xf]  ;;  %v12417_v41 = vld [vmem:[#allocation2 + $0x478] sm:$0xf0]  ;;  %v8581_v45 = vor.u32 %v12361_v39, %v8580_v37  ;;  %v12298_v48 = vld [vmem:[#allocation2 + $0xc0] sm:$0xf0] }
  0x2e   :  { %v9028_v42 = vld [vmem:[#allocation2 + $0x620] sm:$0xf]  ;;  %v12473_v43 = vld [vmem:[#allocation2 + $0x638] sm:$0xf0]  ;;  %2645 = vmatpush.bf16.msra.mxu0 %v8385_v29  ;;  %v8805_v46 = vor.u32 %v12417_v41, %v8804_v40  ;;  %v8552_v49 = vld [vmem:[#allocation2 + $0x268] sm:$0xf]  ;;  %v8329_v56 = vor.u32 %v12298_v48, %v8328_v47 }
  0x2f   :  { %2658 = vmatpush.bf16.msra.mxu1 %v8609_v33  ;;  %v9029_v50 = vor.u32 %v12473_v43, %v9028_v42  ;;  %v12354_v51 = vld [vmem:[#allocation2 + $0x280] sm:$0xf0]  ;;  %v8776_v52 = vld [vmem:[#allocation2 + $0x428] sm:$0xf]  ;;  %v8300_v59 = vld [vmem:[#allocation2 + $0x70] sm:$0xf] }
  0x30   :  { %2671 = vmatpush.bf16.msra.mxu2 %v8833_v34  ;;  %v12410_v53 = vld [vmem:[#allocation2 + $0x440] sm:$0xf0]  ;;  %v9000_v54 = vld [vmem:[#allocation2 + $0x5e8] sm:$0xf]  ;;  %v8553_v57 = vor.u32 %v12354_v51, %v8552_v49  ;;  %v12291_v60 = vld [vmem:[#allocation2 + $0x88] sm:$0xf0] }
  0x31   :  { %2684 = vmatpush.bf16.msra.mxu3 %v9057_v38  ;;  %v12466_v55 = vld [vmem:[#allocation2 + $0x600] sm:$0xf0]  ;;  %v8777_v58 = vor.u32 %v12410_v53, %v8776_v52  ;;  %v8524_v61 = vld [vmem:[#allocation2 + $0x230] sm:$0xf]  ;;  %v12347_v63 = vld [vmem:[#allocation2 + $0x248] sm:$0xf0]  ;;  %v8301_v4 = vor.u32 %v12291_v60, %v8300_v59 }
  0x32   :  { %2646 = vmatpush.bf16.msra.mxu0 %v8357_v44  ;;  %v9001_v62 = vor.u32 %v12466_v55, %v9000_v54  ;;  %v8748_v0 = vld [vmem:[#allocation2 + $0x3f0] sm:$0xf]  ;;  %v12403_v1 = vld [vmem:[#allocation2 + $0x408] sm:$0xf0]  ;;  %v8525_v5 = vor.u32 %v12347_v63, %v8524_v61  ;;  %v8272_v7 = vld [vmem:[#allocation2 + $0x38] sm:$0xf] }
  0x33   :  { %2659 = vmatpush.bf16.msra.mxu1 %v8581_v45  ;;  %v8972_v2 = vld [vmem:[#allocation2 + $0x5b0] sm:$0xf]  ;;  %v12459_v3 = vld [vmem:[#allocation2 + $0x5c8] sm:$0xf0]  ;;  %v8749_v6 = vor.u32 %v12403_v1, %v8748_v0  ;;  %v12284_v8 = vld [vmem:[#allocation2 + $0x50] sm:$0xf0] }
  0x34   :  { %2672 = vmatpush.bf16.msra.mxu2 %v8805_v46  ;;  %v8496_v9 = vld [vmem:[#allocation2 + $0x1f8] sm:$0xf]  ;;  %v8973_v10 = vor.u32 %v12459_v3, %v8972_v2  ;;  %v12340_v11 = vld [vmem:[#allocation2 + $0x210] sm:$0xf0]  ;;  %v8273_v16 = vor.u32 %v12284_v8, %v8272_v7  ;;  %v8244_v17 = vld [vmem:[#allocation2] sm:$0xf] }
  0x35   :  { %2685 = vmatpush.bf16.msra.mxu3 %v9029_v50  ;;  %v8720_v12 = vld [vmem:[#allocation2 + $0x3b8] sm:$0xf]  ;;  %v12396_v13 = vld [vmem:[#allocation2 + $0x3d0] sm:$0xf0]  ;;  %v12277_v18 = vld [vmem:[#allocation2 + $0x18] sm:$0xf0]  ;;  %v8497_v19 = vor.u32 %v12340_v11, %v8496_v9 }
  0x36   :  { %2647 = vmatpush.bf16.msra.mxu0 %v8329_v56  ;;  %v8944_v14 = vld [vmem:[#allocation2 + $0x578] sm:$0xf]  ;;  %v12452_v15 = vld [vmem:[#allocation2 + $0x590] sm:$0xf0]  ;;  %v8721_v20 = vor.u32 %v12396_v13, %v8720_v12  ;;  %v8468_v21 = vld [vmem:[#allocation2 + $0x1c0] sm:$0xf]  ;;  %v8245_v31 = vor.u32 %v12277_v18, %v8244_v17 }
  0x37   :  { %2660 = vmatpush.bf16.msra.mxu1 %v8553_v57  ;;  %v12333_v22 = vld [vmem:[#allocation2 + $0x1d8] sm:$0xf0]  ;;  %v8692_v23 = vld [vmem:[#allocation2 + $0x380] sm:$0xf]  ;;  %v8945_v24 = vor.u32 %v12452_v15, %v8944_v14  ;;  %v9336_v28 = vld [vmem:[#allocation2 + $0x888] sm:$0xf] }
  0x38   :  { %2673 = vmatpush.bf16.msra.mxu2 %v8777_v58  ;;  %v12389_v25 = vld [vmem:[#allocation2 + $0x398] sm:$0xf0]  ;;  %v8916_v26 = vld [vmem:[#allocation2 + $0x540] sm:$0xf]  ;;  %v12550_v29 = vld [vmem:[#allocation2 + $0x8a0] sm:$0xf0]  ;;  %v8469_v35 = vor.u32 %v12333_v22, %v8468_v21 }
  0x39   :  { %2686 = vmatpush.bf16.msra.mxu3 %v9001_v62  ;;  %v12445_v27 = vld [vmem:[#allocation2 + $0x558] sm:$0xf0]  ;;  %v9560_v30 = vld [vmem:[#allocation2 + $0xa48] sm:$0xf]  ;;  %v12606_v32 = vld [vmem:[#allocation2 + $0xa60] sm:$0xf0]  ;;  %v8693_v36 = vor.u32 %v12389_v25, %v8692_v23  ;;  %v9337_v40 = vor.u32 %v12550_v29, %v9336_v28 }
  0x3a   :  { %2648 = vmatpush.bf16.msra.mxu0 %v8301_v4  ;;  %v9784_v33 = vld [vmem:[#allocation2 + $0xc08] sm:$0xf]  ;;  %v12662_v34 = vld [vmem:[#allocation2 + $0xc20] sm:$0xf0]  ;;  %v12323_v37 = vld [vmem:[#allocation2 + $0x18c] sm:$0xf]  ;;  %v8917_v39 = vor.u32 %v12445_v27, %v8916_v26  ;;  %v9561_v41 = vor.u32 %v12606_v32, %v9560_v30 }
  0x3b   :  { %2661 = vmatpush.bf16.msra.mxu1 %v8525_v5  ;;  %v8442_v38 = vld [vmem:[#allocation2 + $0x1a4] sm:$0xf0]  ;;  %v9785_v42 = vor.u32 %v12662_v34, %v9784_v33  ;;  %v9308_v43 = vld [vmem:[#allocation2 + $0x850] sm:$0xf]  ;;  %v12543_v44 = vld [vmem:[#allocation2 + $0x868] sm:$0xf0] }
  0x3c   :  { %2674 = vmatpush.bf16.msra.mxu2 %v8749_v6  ;;  %v9532_v45 = vld [vmem:[#allocation2 + $0xa10] sm:$0xf]  ;;  %v8445_v46 = vor.u32 %v12323_v37, %v8442_v38  ;;  %v12599_v47 = vld [vmem:[#allocation2 + $0xa28] sm:$0xf0]  ;;  %v12316_v50 = vld [vmem:[#allocation2 + $0x154] sm:$0xf]  ;;  %v9309_v52 = vor.u32 %v12543_v44, %v9308_v43 }
  0x3d   :  { %2687 = vmatpush.bf16.msra.mxu3 %v8973_v10  ;;  %v9756_v48 = vld [vmem:[#allocation2 + $0xbd0] sm:$0xf]  ;;  %v12655_v49 = vld [vmem:[#allocation2 + $0xbe8] sm:$0xf0]  ;;  %v9280_v53 = vld [vmem:[#allocation2 + $0x818] sm:$0xf]  ;;  %v9533_v54 = vor.u32 %v12599_v47, %v9532_v45 }
  0x3e   :  { %2649 = vmatpush.bf16.msra.mxu0 %v8273_v16  ;;  %v8414_v51 = vld [vmem:[#allocation2 + $0x16c] sm:$0xf0]  ;;  %v9757_v55 = vor.u32 %v12655_v49, %v9756_v48  ;;  %v12536_v56 = vld [vmem:[#allocation2 + $0x830] sm:$0xf0]  ;;  %v9504_v57 = vld [vmem:[#allocation2 + $0x9d8] sm:$0xf] }
  0x3f   :  { %2662 = vmatpush.bf16.msra.mxu1 %v8497_v19  ;;  %v151_v58 = vld [vmem:[%s14006_s0 + $0x10] sm:$0xff]  ;;  %v8417_v59 = vor.u32 %v12316_v50, %v8414_v51  ;;  %v9728_v61 = vld [vmem:[#allocation2 + $0xb98] sm:$0xf]  ;;  %v12309_v0 = vld [vmem:[#allocation2 + $0x11c] sm:$0xf]  ;;  %v9281_v2 = vor.u32 %v12536_v56, %v9280_v53 }
  0x40   :  { %2675 = vmatpush.bf16.msra.mxu2 %v8721_v20  ;;  %v12592_v60 = vld [vmem:[#allocation2 + $0x9f0] sm:$0xf0]  ;;  %v13616_v63 = vpack.c.bf16 %v151_v58, %v151_v58  ;;  %v8386_v1 = vld [vmem:[#allocation2 + $0x134] sm:$0xf0]  ;;  %v9252_v3 = vld [vmem:[#allocation2 + $0x7e0] sm:$0xf] }
  0x41   :  { %2688 = vmatpush.bf16.msra.mxu3 %v8945_v24  ;;  %v12648_v62 = vld [vmem:[#allocation2 + $0xbb0] sm:$0xf0]  ;;  %v149_v4 = vld [vmem:[%s14006_s0] sm:$0xff]  ;;  %v9505_v5 = vor.u32 %v12592_v60, %v9504_v57  ;;  %v12529_v7 = vld [vmem:[#allocation2 + $0x7f8] sm:$0xf0]  ;;  %v8389_v11 = vor.u32 %v12309_v0, %v8386_v1 }
  0x42   :  { %2650 = vmatpush.bf16.msra.mxu0 %v8245_v31  ;;  %v9729_v6 = vor.u32 %v12648_v62, %v9728_v61  ;;  %v9476_v8 = vld [vmem:[#allocation2 + $0x9a0] sm:$0xf]  ;;  %v13622_v9 = vpack.c.bf16 %v149_v4, %v149_v4  ;;  %v150_v10 = vld [vmem:[%s14006_s0 + $0x8] sm:$0xff]  ;;  %v12585_v12 = vld [vmem:[#allocation2 + $0x9b8] sm:$0xf0]  ;;  %v9253_v18 = vor.u32 %v12529_v7, %v9252_v3 }
  0x43   :  { %2663 = vmatpush.bf16.msra.mxu1 %v8469_v35  ;;  %v9700_v13 = vld [vmem:[#allocation2 + $0xb60] sm:$0xf]  ;;  %v12641_v14 = vld [vmem:[#allocation2 + $0xb78] sm:$0xf0]  ;;  %v13627_v15 = vpack.c.bf16 %v150_v10, %v150_v10  ;;  %v12302_v16 = vld [vmem:[#allocation2 + $0xe4] sm:$0xf]  ;;  %v9477_v20 = vor.u32 %v12585_v12, %v9476_v8 }
  0x44   :  { %2676 = vmatpush.bf16.msra.mxu2 %v8693_v36  ;;  %v8358_v17 = vld [vmem:[#allocation2 + $0xfc] sm:$0xf0]  ;;  %v9224_v19 = vld [vmem:[#allocation2 + $0x7a8] sm:$0xf]  ;;  %v9701_v21 = vor.u32 %v12641_v14, %v9700_v13  ;;  %v12522_v22 = vld [vmem:[#allocation2 + $0x7c0] sm:$0xf0] }
  0x45   :  { %2689 = vmatpush.bf16.msra.mxu3 %v8917_v39  ;;  %2651 = vmatmul.bf16.vlgmr.msra.gmra.mxu0 %v13622_v9  ;;  %v9448_v23 = vld [vmem:[#allocation2 + $0x968] sm:$0xf]  ;;  %v12578_v24 = vld [vmem:[#allocation2 + $0x980] sm:$0xf0]  ;;  %v8361_v25 = vor.u32 %v12302_v16, %v8358_v17  ;;  %v152_v28 = vld [vmem:[%s14006_s0 + $0x18] sm:$0xff]  ;;  %v9225_v32 = vor.u32 %v12522_v22, %v9224_v19 }
  0x46   :  { %2695 = vmatpush.bf16.msrb.mxu0 %v9337_v40  ;;  %2664 = vmatmul.bf16.vlgmr.msra.gmra.mxu1 %v13627_v15  ;;  %v9672_v26 = vld [vmem:[#allocation2 + $0xb28] sm:$0xf]  ;;  %v12634_v27 = vld [vmem:[#allocation2 + $0xb40] sm:$0xf0]  ;;  %v12295_v29 = vld [vmem:[#allocation2 + $0xac] sm:$0xf]  ;;  %v13634_v31 = vpack.c.bf16 %v152_v28, %v152_v28  ;;  %v9449_v33 = vor.u32 %v12578_v24, %v9448_v23 }
  0x47   :  { %2708 = vmatpush.bf16.msrb.mxu1 %v9561_v41  ;;  %2677 = vmatmul.bf16.vlgmr.msra.gmra.mxu2 %v13616_v63  ;;  %v8330_v30 = vld [vmem:[#allocation2 + $0xc4] sm:$0xf0]  ;;  %v9673_v34 = vor.u32 %v12634_v27, %v9672_v26  ;;  %v9196_v35 = vld [vmem:[#allocation2 + $0x770] sm:$0xf]  ;;  %v12515_v36 = vld [vmem:[#allocation2 + $0x788] sm:$0xf0] }
  0x48   :  { %2721 = vmatpush.bf16.msrb.mxu2 %v9785_v42  ;;  %v9420_v37 = vld [vmem:[#allocation2 + $0x930] sm:$0xf]  ;;  %v8333_v38 = vor.u32 %v12295_v29, %v8330_v30  ;;  %v12571_v39 = vld [vmem:[#allocation2 + $0x948] sm:$0xf0]  ;;  %v12288_v42 = vld [vmem:[#allocation2 + $0x74] sm:$0xf]  ;;  %2690 = vmatmul.bf16.vlgmr.msra.gmra.mxu3 %v13634_v31  ;;  %v9197_v44 = vor.u32 %v12515_v36, %v9196_v35 }
  0x49   :  { %2734 = vmatpush.bf16.msrb.mxu3 %v8445_v46  ;;  %v9644_v40 = vld [vmem:[#allocation2 + $0xaf0] sm:$0xf]  ;;  %v12627_v41 = vld [vmem:[#allocation2 + $0xb08] sm:$0xf0]  ;;  %v9421_v45 = vor.u32 %v12571_v39, %v9420_v37  ;;  %v9168_v47 = vld [vmem:[#allocation2 + $0x738] sm:$0xf] }
  0x4a   :  { %2696 = vmatpush.bf16.msrb.mxu0 %v9309_v52  ;;  %v8302_v43 = vld [vmem:[#allocation2 + $0x8c] sm:$0xf0]  ;;  %v9645_v46 = vor.u32 %v12627_v41, %v9644_v40  ;;  %v12508_v48 = vld [vmem:[#allocation2 + $0x750] sm:$0xf0]  ;;  %v9392_v49 = vld [vmem:[#allocation2 + $0x8f8] sm:$0xf] }
  0x4b   :  { %2709 = vmatpush.bf16.msrb.mxu1 %v9533_v54  ;;  %v8305_v50 = vor.u32 %v12288_v42, %v8302_v43  ;;  %v12564_v51 = vld [vmem:[#allocation2 + $0x910] sm:$0xf0]  ;;  %v9616_v52 = vld [vmem:[#allocation2 + $0xab8] sm:$0xf]  ;;  %v12281_v54 = vld [vmem:[#allocation2 + $0x3c] sm:$0xf]  ;;  %v9169_v56 = vor.u32 %v12508_v48, %v9168_v47 }
  0x4c   :  { %2722 = vmatpush.bf16.msrb.mxu2 %v9757_v55  ;;  %v12620_v53 = vld [vmem:[#allocation2 + $0xad0] sm:$0xf0]  ;;  %v8274_v55 = vld [vmem:[#allocation2 + $0x54] sm:$0xf0]  ;;  %v9140_v57 = vld [vmem:[#allocation2 + $0x700] sm:$0xf] }
  0x4d   :  { %2735 = vmatpush.bf16.msrb.mxu3 %v8417_v59  ;;  %v12501_v58 = vld [vmem:[#allocation2 + $0x718] sm:$0xf0]  ;;  %v9393_v59 = vor.u32 %v12564_v51, %v9392_v49  ;;  %v9617_v60 = vor.u32 %v12620_v53, %v9616_v52  ;;  %v9364_v61 = vld [vmem:[#allocation2 + $0x8c0] sm:$0xf]  ;;  %v8277_v1 = vor.u32 %v12281_v54, %v8274_v55  ;;  %v12274_v3 = vld [vmem:[#allocation2 + $0x4] sm:$0xf] }
  0x4e   :  { %2697 = vmatpush.bf16.msrb.mxu0 %v9281_v2  ;;  %v12557_v62 = vld [vmem:[#allocation2 + $0x8d8] sm:$0xf0]  ;;  %v9588_v0 = vld [vmem:[#allocation2 + $0xa80] sm:$0xf]  ;;  %v12435_v7 = vld [vmem:[#allocation2 + $0x50c] sm:$0xf]  ;;  %v9141_v8 = vor.u32 %v12501_v58, %v9140_v57 }
  0x4f   :  { %2710 = vmatpush.bf16.msrb.mxu1 %v9505_v5  ;;  %v12613_v2 = vld [vmem:[#allocation2 + $0xa98] sm:$0xf0]  ;;  %v8246_v4 = vld [vmem:[#allocation2 + $0x1c] sm:$0xf0]  ;;  %v12379_v5 = vld [vmem:[#allocation2 + $0x34c] sm:$0xf]  ;;  %v9365_v13 = vor.u32 %v12557_v62, %v9364_v61 }
  0x50   :  { %2723 = vmatpush.bf16.msrb.mxu2 %v9729_v6  ;;  %v8666_v6 = vld [vmem:[#allocation2 + $0x364] sm:$0xf0]  ;;  %v9589_v14 = vor.u32 %v12613_v2, %v9588_v0  ;;  %v12547_v16 = vld [vmem:[#allocation2 + $0x88c] sm:$0xf]  ;;  %v8249_v19 = vor.u32 %v12274_v3, %v8246_v4  ;;  %v8638_v26 = vld [vmem:[#allocation2 + $0x32c] sm:$0xf0] }
  0x51   :  { %2736 = vmatpush.bf16.msrb.mxu3 %v8389_v11  ;;  %v8890_v10 = vld [vmem:[#allocation2 + $0x524] sm:$0xf0]  ;;  %v12491_v11 = vld [vmem:[#allocation2 + $0x6cc] sm:$0xf]  ;;  %v12428_v27 = vld [vmem:[#allocation2 + $0x4d4] sm:$0xf] }
  0x52   :  { %2698 = vmatpush.bf16.msrb.mxu0 %v9253_v18  ;;  %v9114_v12 = vld [vmem:[#allocation2 + $0x6e4] sm:$0xf0]  ;;  %v155_v18 = vld [vmem:[%s14006_s0 + $0x30] sm:$0xff]  ;;  %v8893_v23 = vor.u32 %v12435_v7, %v8890_v10  ;;  %v12365_v41 = vld [vmem:[#allocation2 + $0x2dc] sm:$0xf] }
  0x53   :  { %2711 = vmatpush.bf16.msrb.mxu1 %v9477_v20  ;;  %v9338_v17 = vld [vmem:[#allocation2 + $0x8a4] sm:$0xf0]  ;;  %v8669_v20 = vor.u32 %v12379_v5, %v8666_v6  ;;  %v9117_v24 = vor.u32 %v12491_v11, %v9114_v12  ;;  %v8862_v29 = vld [vmem:[#allocation2 + $0x4ec] sm:$0xf0]  ;;  %v12484_v30 = vld [vmem:[#allocation2 + $0x694] sm:$0xf] }
  0x54   :  { %2724 = vmatpush.bf16.msrb.mxu2 %v9701_v21  ;;  %v153_v21 = vld [vmem:[%s14006_s0 + $0x20] sm:$0xff]  ;;  %v154_v22 = vld [vmem:[%s14006_s0 + $0x28] sm:$0xff]  ;;  %v9341_v28 = vor.u32 %v12547_v16, %v9338_v17  ;;  %v9310_v35 = vld [vmem:[#allocation2 + $0x86c] sm:$0xf0]  ;;  %v8865_v39 = vor.u32 %v12428_v27, %v8862_v29 }
  0x55   :  { %2737 = vmatpush.bf16.msrb.mxu3 %v8361_v25  ;;  %v12372_v25 = vld [vmem:[#allocation2 + $0x314] sm:$0xf]  ;;  %v13648_v36 = vpack.c.bf16 %v153_v21, %v153_v21  ;;  %v13650_v37 = vpack.c.bf16 %v154_v22, %v154_v22  ;;  %v8610_v42 = vld [vmem:[#allocation2 + $0x2f4] sm:$0xf0]  ;;  %v12421_v43 = vld [vmem:[#allocation2 + $0x49c] sm:$0xf] }
  0x56   :  { %2699 = vmatpush.bf16.msrb.mxu0 %v9225_v32  ;;  %v9086_v32 = vld [vmem:[#allocation2 + $0x6ac] sm:$0xf0]  ;;  %v9058_v47 = vld [vmem:[#allocation2 + $0x674] sm:$0xf0]  ;;  %v12533_v48 = vld [vmem:[#allocation2 + $0x81c] sm:$0xf] }
  0x57   :  { %2712 = vmatpush.bf16.msrb.mxu1 %v9449_v33  ;;  %v13646_v33 = vpack.c.bf16 %v155_v18, %v155_v18  ;;  %v9089_v40 = vor.u32 %v12484_v30, %v9086_v32  ;;  %v9282_v49 = vld [vmem:[#allocation2 + $0x834] sm:$0xf0]  ;;  %v12358_v53 = vld [vmem:[#allocation2 + $0x2a4] sm:$0xf]  ;;  %v8582_v54 = vld [vmem:[#allocation2 + $0x2bc] sm:$0xf0] }
  0x58   :  { %2725 = vmatpush.bf16.msrb.mxu2 %v9673_v34  ;;  %v12540_v34 = vld [vmem:[#allocation2 + $0x854] sm:$0xf]  ;;  %v12414_v55 = vld [vmem:[#allocation2 + $0x464] sm:$0xf]  ;;  %v8806_v57 = vld [vmem:[#allocation2 + $0x47c] sm:$0xf0]  ;;  %v8585_v62 = vor.u32 %v12358_v53, %v8582_v54 }
  0x59   :  { %2738 = vmatpush.bf16.msrb.mxu3 %v8333_v38  ;;  %v8641_v38 = vor.u32 %v12372_v25, %v8638_v26  ;;  %v12470_v58 = vld [vmem:[#allocation2 + $0x624] sm:$0xf]  ;;  %v9254_v61 = vld [vmem:[#allocation2 + $0x7fc] sm:$0xf0]  ;;  %v8809_v0 = vor.u32 %v12414_v55, %v8806_v57  ;;  %v12351_v2 = vld [vmem:[#allocation2 + $0x26c] sm:$0xf] }
  0x5a   :  { %2700 = vmatpush.bf16.msrb.mxu0 %v9197_v44  ;;  %v9313_v44 = vor.u32 %v12540_v34, %v9310_v35  ;;  %v8554_v3 = vld [vmem:[#allocation2 + $0x284] sm:$0xf0]  ;;  %v12407_v4 = vld [vmem:[#allocation2 + $0x42c] sm:$0xf]  ;;  %v12344_v16 = vld [vmem:[#allocation2 + $0x234] sm:$0xf] }
  0x5b   :  { %2713 = vmatpush.bf16.msrb.mxu1 %v9421_v45  ;;  %v8834_v45 = vld [vmem:[#allocation2 + $0x4b4] sm:$0xf0]  ;;  %v8778_v6 = vld [vmem:[#allocation2 + $0x444] sm:$0xf0]  ;;  %v12463_v7 = vld [vmem:[#allocation2 + $0x5ec] sm:$0xf]  ;;  %v8557_v12 = vor.u32 %v12351_v2, %v8554_v3 }
  0x5c   :  { %2726 = vmatpush.bf16.msrb.mxu2 %v9645_v46  ;;  %v12477_v46 = vld [vmem:[#allocation2 + $0x65c] sm:$0xf]  ;;  %v8837_v51 = vor.u32 %v12421_v43, %v8834_v45  ;;  %v12519_v10 = vld [vmem:[#allocation2 + $0x7ac] sm:$0xf]  ;;  %v9226_v11 = vld [vmem:[#allocation2 + $0x7c4] sm:$0xf0] }
  0x5d   :  { %2739 = vmatpush.bf16.msrb.mxu3 %v8305_v50  ;;  %v8613_v50 = vor.u32 %v12365_v41, %v8610_v42  ;;  %v9061_v52 = vor.u32 %v12477_v46, %v9058_v47  ;;  %v8526_v17 = vld [vmem:[#allocation2 + $0x24c] sm:$0xf0]  ;;  %v12400_v18 = vld [vmem:[#allocation2 + $0x3f4] sm:$0xf]  ;;  %v8498_v29 = vld [vmem:[#allocation2 + $0x214] sm:$0xf0] }
  0x5e   :  { %2701 = vmatpush.bf16.msrb.mxu0 %v9169_v56  ;;  %v9285_v56 = vor.u32 %v12533_v48, %v9282_v49  ;;  %v12456_v21 = vld [vmem:[#allocation2 + $0x5b4] sm:$0xf]  ;;  %v8974_v22 = vld [vmem:[#allocation2 + $0x5cc] sm:$0xf0]  ;;  %v8529_v25 = vor.u32 %v12344_v16, %v8526_v17  ;;  %v12393_v30 = vld [vmem:[#allocation2 + $0x3bc] sm:$0xf] }
  0x5f   :  { %2714 = vmatpush.bf16.msrb.mxu1 %v9393_v59  ;;  %v9030_v59 = vld [vmem:[#allocation2 + $0x63c] sm:$0xf0]  ;;  %v8977_v27 = vor.u32 %v12456_v21, %v8974_v22  ;;  %v8722_v34 = vld [vmem:[#allocation2 + $0x3d4] sm:$0xf0]  ;;  %v12449_v35 = vld [vmem:[#allocation2 + $0x57c] sm:$0xf] }
  0x60   :  { %2727 = vmatpush.bf16.msrb.mxu2 %v9617_v60  ;;  %v12526_v60 = vld [vmem:[#allocation2 + $0x7e4] sm:$0xf]  ;;  %v8470_v43 = vld [vmem:[#allocation2 + $0x1dc] sm:$0xf0]  ;;  %v12603_v53 = vld [vmem:[#allocation2 + $0xa4c] sm:$0xf] }
  0x61   :  { %2740 = vmatpush.bf16.msrb.mxu3 %v8277_v1  ;;  %v9033_v1 = vor.u32 %v12470_v58, %v9030_v59  ;;  %v9257_v5 = vor.u32 %v12526_v60, %v9254_v61  ;;  %v12330_v42 = vld [vmem:[#allocation2 + $0x1c4] sm:$0xf]  ;;  %v8694_v47 = vld [vmem:[#allocation2 + $0x39c] sm:$0xf0]  ;;  %v9562_v54 = vld [vmem:[#allocation2 + $0xa64] sm:$0xf0] }
  0x62   :  { %2702 = vmatpush.bf16.msrb.mxu0 %v9141_v8  ;;  %v9002_v8 = vld [vmem:[#allocation2 + $0x604] sm:$0xf0]  ;;  %v12386_v46 = vld [vmem:[#allocation2 + $0x384] sm:$0xf]  ;;  %v12659_v55 = vld [vmem:[#allocation2 + $0xc0c] sm:$0xf]  ;;  %v9565_v2 = vor.u32 %v12603_v53, %v9562_v54 }
  0x63   :  { %2715 = vmatpush.bf16.msrb.mxu1 %v9365_v13  ;;  %v8781_v13 = vor.u32 %v12407_v4, %v8778_v6  ;;  %v12442_v48 = vld [vmem:[#allocation2 + $0x544] sm:$0xf]  ;;  %v9786_v57 = vld [vmem:[#allocation2 + $0xc24] sm:$0xf0]  ;;  %v8448_v58 = vld [vmem:[#allocation2 + $0x190] sm:$0xf]  ;;  %v8697_v60 = vor.u32 %v12386_v46, %v8694_v47 }
  0x64   :  { %2728 = vmatpush.bf16.msrb.mxu2 %v9589_v14  ;;  %v9005_v14 = vor.u32 %v12463_v7, %v9002_v8  ;;  %v12327_v59 = vld [vmem:[#allocation2 + $0x1a8] sm:$0xf0]  ;;  %v9789_v3 = vor.u32 %v12659_v55, %v9786_v57  ;;  %v9534_v6 = vld [vmem:[#allocation2 + $0xa2c] sm:$0xf0]  ;;  %v12652_v7 = vld [vmem:[#allocation2 + $0xbd4] sm:$0xf] }
  0x65   :  { %2741 = vmatpush.bf16.msrb.mxu3 %v8249_v19  ;;  %2703 = vmatmul.bf16.vlgmr.msrb.gmra.mxu0 %v13648_v36  ;;  %v9229_v19 = vor.u32 %v12519_v10, %v9226_v11  ;;  %v8449_v4 = vor.u32 %v12327_v59, %v8448_v58  ;;  %v9758_v10 = vld [vmem:[#allocation2 + $0xbec] sm:$0xf0]  ;;  %v8420_v11 = vld [vmem:[#allocation2 + $0x158] sm:$0xf]  ;;  %v12645_v21 = vld [vmem:[#allocation2 + $0xb9c] sm:$0xf] }
  0x66   :  { %2747 = vmatpush.bf16.msra.mxu0 %v8669_v20  ;;  %2716 = vmatmul.bf16.vlgmr.msrb.gmra.mxu1 %v13650_v37  ;;  %v8750_v20 = vld [vmem:[#allocation2 + $0x40c] sm:$0xf0]  ;;  %v9761_v17 = vor.u32 %v12652_v7, %v9758_v10  ;;  %v12575_v47 = vld [vmem:[#allocation2 + $0x96c] sm:$0xf]  ;;  %v12568_v59 = vld [vmem:[#allocation2 + $0x934] sm:$0xf] }
  0x67   :  { %2760 = vmatpush.bf16.msra.mxu1 %v8893_v23  ;;  %2729 = vmatmul.bf16.vlgmr.msrb.gmra.mxu2 %v13646_v33  ;;  %v12512_v23 = vld [vmem:[#allocation2 + $0x774] sm:$0xf]  ;;  %v8753_v26 = vor.u32 %v12400_v18, %v8750_v20  ;;  %v9506_v20 = vld [vmem:[#allocation2 + $0x9f4] sm:$0xf0]  ;;  %v12299_v53 = vld [vmem:[#allocation2 + $0xc8] sm:$0xf0] }
  0x68   :  { %2773 = vmatpush.bf16.msra.mxu2 %v9117_v24  ;;  %2742 = vmatmul.bf16.vlgmr.msrb.gmra.mxu3 %v13622_v9  ;;  %v9198_v24 = vld [vmem:[#allocation2 + $0x78c] sm:$0xf0]  ;;  %v12355_v55 = vld [vmem:[#allocation2 + $0x288] sm:$0xf0]  ;;  %v9394_v10 = vld [vmem:[#allocation2 + $0x914] sm:$0xf0] }
  0x69   :  { %2786 = vmatpush.bf16.msra.mxu3 %v9341_v28  ;;  %v12337_v28 = vld [vmem:[#allocation2 + $0x1fc] sm:$0xf]  ;;  %v9201_v32 = vor.u32 %v12512_v23, %v9198_v24  ;;  %v9730_v23 = vld [vmem:[#allocation2 + $0xbb4] sm:$0xf0]  ;;  %v8392_v24 = vld [vmem:[#allocation2 + $0x120] sm:$0xf] }
  0x6a   :  { %2748 = vmatpush.bf16.msra.mxu0 %v8641_v38  ;;  %v8946_v38 = vld [vmem:[#allocation2 + $0x594] sm:$0xf0]  ;;  %v8501_v41 = vor.u32 %v12337_v28, %v8498_v29  ;;  %v9733_v29 = vor.u32 %v12645_v21, %v9730_v23  ;;  %v8560_v54 = vld [vmem:[#allocation2 + $0x270] sm:$0xf]  ;;  %v9366_v21 = vld [vmem:[#allocation2 + $0x8dc] sm:$0xf0] }
  0x6b   :  { %2761 = vmatpush.bf16.msra.mxu1 %v8865_v39  ;;  %v12505_v39 = vld [vmem:[#allocation2 + $0x73c] sm:$0xf]  ;;  %v8949_v45 = vor.u32 %v12449_v35, %v8946_v38  ;;  %v12638_v35 = vld [vmem:[#allocation2 + $0xb64] sm:$0xf] }
  0x6c   :  { %2774 = vmatpush.bf16.msra.mxu2 %v9089_v40  ;;  %v9170_v40 = vld [vmem:[#allocation2 + $0x754] sm:$0xf0] }
  0x6d   :  { %2787 = vmatpush.bf16.msra.mxu3 %v9313_v44  ;;  %v8725_v44 = vor.u32 %v12393_v30, %v8722_v34  ;;  %v9173_v49 = vor.u32 %v12505_v39, %v9170_v40  ;;  %v9478_v34 = vld [vmem:[#allocation2 + $0x9bc] sm:$0xf0]  ;;  %v8364_v40 = vld [vmem:[#allocation2 + $0xe8] sm:$0xf] }
  0x6e   :  { %2749 = vmatpush.bf16.msra.mxu0 %v8613_v50  ;;  %v8918_v50 = vld [vmem:[#allocation2 + $0x55c] sm:$0xf0] }
  0x6f   :  { %2762 = vmatpush.bf16.msra.mxu1 %v8837_v51  ;;  %v12498_v51 = vld [vmem:[#allocation2 + $0x704] sm:$0xf]  ;;  %v8921_v61 = vor.u32 %v12442_v48, %v8918_v50  ;;  %v9702_v39 = vld [vmem:[#allocation2 + $0xb7c] sm:$0xf0]  ;;  %v9450_v48 = vld [vmem:[#allocation2 + $0x984] sm:$0xf0] }
  0x70   :  { %2775 = vmatpush.bf16.msra.mxu2 %v9061_v52  ;;  %v9142_v52 = vld [vmem:[#allocation2 + $0x71c] sm:$0xf0] }
  0x71   :  { %2788 = vmatpush.bf16.msra.mxu3 %v9285_v56  ;;  %v8473_v56 = vor.u32 %v12330_v42, %v8470_v43  ;;  %v8588_v42 = vld [vmem:[#allocation2 + $0x2a8] sm:$0xf]  ;;  %v12362_v43 = vld [vmem:[#allocation2 + $0x2c0] sm:$0xf0] }
  0x72   :  { %2750 = vmatpush.bf16.msra.mxu0 %v8585_v62  ;;  %v8672_v62 = vld [vmem:[#allocation2 + $0x350] sm:$0xf]  ;;  %v8589_v50 = vor.u32 %v12362_v43, %v8588_v42 }
  0x73   :  { %2763 = vmatpush.bf16.msra.mxu1 %v8809_v0  ;;  %v12383_v0 = vld [vmem:[#allocation2 + $0x368] sm:$0xf0] }
  0x74   :  { %2776 = vmatpush.bf16.msra.mxu2 %v9033_v1  ;;  %v9145_v1 = vor.u32 %v12498_v51, %v9142_v52  ;;  %v8673_v8 = vor.u32 %v12383_v0, %v8672_v62  ;;  %v9674_v51 = vld [vmem:[#allocation2 + $0xb44] sm:$0xf0]  ;;  %v8336_v52 = vld [vmem:[#allocation2 + $0xb0] sm:$0xf]  ;;  %v8561_v62 = vor.u32 %v12355_v55, %v8560_v54  ;;  %v12488_v54 = vld [vmem:[#allocation2 + $0x6b0] sm:$0xf0] }
  0x75   :  { %2789 = vmatpush.bf16.msra.mxu3 %v9257_v5  ;;  %v12596_v5 = vld [vmem:[#allocation2 + $0xa14] sm:$0xf]  ;;  %v8337_v58 = vor.u32 %v12299_v53, %v8336_v52  ;;  %v9646_v0 = vld [vmem:[#allocation2 + $0xb0c] sm:$0xf0]  ;;  %v9092_v52 = vld [vmem:[#allocation2 + $0x698] sm:$0xf] }
  0x76   :  { %2751 = vmatpush.bf16.msra.mxu0 %v8557_v12  ;;  %v12320_v12 = vld [vmem:[#allocation2 + $0x170] sm:$0xf0]  ;;  %v9537_v16 = vor.u32 %v12596_v5, %v9534_v6  ;;  %v9316_v55 = vld [vmem:[#allocation2 + $0x858] sm:$0xf] }
  0x77   :  { %2764 = vmatpush.bf16.msra.mxu1 %v8781_v13  ;;  %v8644_v13 = vld [vmem:[#allocation2 + $0x318] sm:$0xf]  ;;  %v8421_v18 = vor.u32 %v12320_v12, %v8420_v11  ;;  %v12617_v11 = vld [vmem:[#allocation2 + $0xabc] sm:$0xf] }
  0x78   :  { %2777 = vmatpush.bf16.msra.mxu2 %v9005_v14  ;;  %v12376_v14 = vld [vmem:[#allocation2 + $0x330] sm:$0xf0] }
  0x79   :  { %2790 = vmatpush.bf16.msra.mxu3 %v9229_v19  ;;  %v12589_v19 = vld [vmem:[#allocation2 + $0x9dc] sm:$0xf]  ;;  %v8645_v22 = vor.u32 %v12376_v14, %v8644_v13  ;;  %v9618_v13 = vld [vmem:[#allocation2 + $0xad4] sm:$0xf0]  ;;  %v8280_v14 = vld [vmem:[#allocation2 + $0x40] sm:$0xf] }
  0x7a   :  { %2752 = vmatpush.bf16.msra.mxu0 %v8529_v25  ;;  %v12313_v25 = vld [vmem:[#allocation2 + $0x138] sm:$0xf0]  ;;  %v9509_v28 = vor.u32 %v12589_v19, %v9506_v20  ;;  %v12554_v20 = vld [vmem:[#allocation2 + $0x8c4] sm:$0xf] }
  0x7b   :  { %2765 = vmatpush.bf16.msra.mxu1 %v8753_v26  ;;  %v8616_v26 = vld [vmem:[#allocation2 + $0x2e0] sm:$0xf]  ;;  %v8393_v30 = vor.u32 %v12313_v25, %v8392_v24  ;;  %v12610_v24 = vld [vmem:[#allocation2 + $0xa84] sm:$0xf] }
  0x7c   :  { %2778 = vmatpush.bf16.msra.mxu2 %v8977_v27  ;;  %v12369_v27 = vld [vmem:[#allocation2 + $0x2f8] sm:$0xf0]  ;;  %v9590_v25 = vld [vmem:[#allocation2 + $0xa9c] sm:$0xf0] }
  0x7d   :  { %2791 = vmatpush.bf16.msra.mxu3 %v9201_v32  ;;  %v12582_v32 = vld [vmem:[#allocation2 + $0x9a4] sm:$0xf]  ;;  %v8617_v38 = vor.u32 %v12369_v27, %v8616_v26  ;;  %v8252_v26 = vld [vmem:[#allocation2 + $0x8] sm:$0xf]  ;;  %v9593_v42 = vor.u32 %v12610_v24, %v9590_v25  ;;  %v8784_v25 = vld [vmem:[#allocation2 + $0x430] sm:$0xf] }
  0x7e   :  { %2753 = vmatpush.bf16.msra.mxu0 %v8501_v41  ;;  %v12306_v41 = vld [vmem:[#allocation2 + $0x100] sm:$0xf0] }
  0x7f   :  { %2766 = vmatpush.bf16.msra.mxu1 %v8725_v44  ;;  %v9481_v44 = vor.u32 %v12582_v32, %v9478_v34  ;;  %v8365_v46 = vor.u32 %v12306_v41, %v8364_v40  ;;  %v8896_v32 = vld [vmem:[#allocation2 + $0x510] sm:$0xf]  ;;  %v12439_v34 = vld [vmem:[#allocation2 + $0x528] sm:$0xf0] }
  0x80   :  { %2779 = vmatpush.bf16.msra.mxu2 %v8949_v45  ;;  %v9705_v45 = vor.u32 %v12638_v35, %v9702_v39  ;;  %v9120_v35 = vld [vmem:[#allocation2 + $0x6d0] sm:$0xf]  ;;  %v12495_v39 = vld [vmem:[#allocation2 + $0x6e8] sm:$0xf0] }
  0x81   :  { %2792 = vmatpush.bf16.msra.mxu3 %v9173_v49  ;;  %v12631_v49 = vld [vmem:[#allocation2 + $0xb2c] sm:$0xf]  ;;  %v9344_v40 = vld [vmem:[#allocation2 + $0x890] sm:$0xf] }
  0x82   :  { %2754 = vmatpush.bf16.msra.mxu0 %v8473_v56  ;;  %v9453_v56 = vor.u32 %v12575_v47, %v9450_v48  ;;  %v9677_v57 = vor.u32 %v12631_v49, %v9674_v51  ;;  %v12551_v41 = vld [vmem:[#allocation2 + $0x8a8] sm:$0xf0]  ;;  %v8897_v47 = vor.u32 %v12439_v34, %v8896_v32  ;;  %v9121_v48 = vor.u32 %v12495_v39, %v9120_v35  ;;  %v12432_v51 = vld [vmem:[#allocation2 + $0x4f0] sm:$0xf0]  ;;  %v9456_v34 = vld [vmem:[#allocation2 + $0x970] sm:$0xf] }
  0x83   :  { %2767 = vmatpush.bf16.msra.mxu1 %v8697_v60  ;;  %v9422_v60 = vld [vmem:[#allocation2 + $0x94c] sm:$0xf0]  ;;  %v9345_v49 = vor.u32 %v12551_v41, %v9344_v40  ;;  %v12523_v32 = vld [vmem:[#allocation2 + $0x7c8] sm:$0xf0]  ;;  %v8756_v41 = vld [vmem:[#allocation2 + $0x3f8] sm:$0xf] }
  0x84   :  { %2780 = vmatpush.bf16.msra.mxu2 %v8921_v61  ;;  %v12624_v61 = vld [vmem:[#allocation2 + $0xaf4] sm:$0xf]  ;;  %v9425_v5 = vor.u32 %v12568_v59, %v9422_v60  ;;  %v9093_v60 = vor.u32 %v12488_v54, %v9092_v52  ;;  %v12579_v35 = vld [vmem:[#allocation2 + $0x988] sm:$0xf0]  ;;  %v12397_v54 = vld [vmem:[#allocation2 + $0x3d8] sm:$0xf0] }
  0x85   :  { %2793 = vmatpush.bf16.msra.mxu3 %v9145_v1  ;;  %2755 = vmatmul.bf16.vlgmr.msra.gmra.mxu0 %v13627_v15  ;;  %v8308_v1 = vld [vmem:[#allocation2 + $0x78] sm:$0xf]  ;;  %v9649_v6 = vor.u32 %v12624_v61, %v9646_v0  ;;  %v12425_v0 = vld [vmem:[#allocation2 + $0x4b8] sm:$0xf0] }
  0x86   :  { %2799 = vmatpush.bf16.msrb.mxu0 %v9565_v2  ;;  %2768 = vmatmul.bf16.vlgmr.msra.gmra.mxu1 %v13616_v63  ;;  %v12292_v2 = vld [vmem:[#allocation2 + $0x90] sm:$0xf0] }
  0x87   :  { %2812 = vmatpush.bf16.msrb.mxu1 %v9789_v3  ;;  %2781 = vmatmul.bf16.vlgmr.msra.gmra.mxu2 %v13634_v31  ;;  %v8532_v3 = vld [vmem:[#allocation2 + $0x238] sm:$0xf]  ;;  %v8309_v7 = vor.u32 %v12292_v2, %v8308_v1  ;;  %v9064_v1 = vld [vmem:[#allocation2 + $0x660] sm:$0xf] }
  0x88   :  { %2825 = vmatpush.bf16.msrb.mxu2 %v8449_v4  ;;  %2794 = vmatmul.bf16.vlgmr.msra.gmra.mxu3 %v13648_v36  ;;  %v12348_v4 = vld [vmem:[#allocation2 + $0x250] sm:$0xf0] }
  0x89   :  { %2838 = vmatpush.bf16.msrb.mxu3 %v8673_v8  ;;  %v12561_v8 = vld [vmem:[#allocation2 + $0x8fc] sm:$0xf]  ;;  %v8533_v12 = vor.u32 %v12348_v4, %v8532_v3  ;;  %v9288_v4 = vld [vmem:[#allocation2 + $0x820] sm:$0xf] }
  0x8a   :  { %2800 = vmatpush.bf16.msrb.mxu0 %v9537_v16  ;;  %v12285_v16 = vld [vmem:[#allocation2 + $0x58] sm:$0xf0]  ;;  %v9397_v19 = vor.u32 %v12561_v8, %v9394_v10 }
  0x8b   :  { %2813 = vmatpush.bf16.msrb.mxu1 %v9761_v17  ;;  %v8504_v17 = vld [vmem:[#allocation2 + $0x200] sm:$0xf]  ;;  %v8281_v23 = vor.u32 %v12285_v16, %v8280_v14  ;;  %v12481_v3 = vld [vmem:[#allocation2 + $0x678] sm:$0xf0]  ;;  %v9036_v14 = vld [vmem:[#allocation2 + $0x628] sm:$0xf] }
  0x8c   :  { %2826 = vmatpush.bf16.msrb.mxu2 %v8421_v18  ;;  %v12341_v18 = vld [vmem:[#allocation2 + $0x218] sm:$0xf0]  ;;  %v9065_v10 = vor.u32 %v12481_v3, %v9064_v1  ;;  %v12390_v1 = vld [vmem:[#allocation2 + $0x3a0] sm:$0xf0] }
  0x8d   :  { %2839 = vmatpush.bf16.msrb.mxu3 %v8645_v22  ;;  %v9621_v22 = vor.u32 %v12617_v11, %v9618_v13  ;;  %v8505_v27 = vor.u32 %v12341_v18, %v8504_v17  ;;  %v12418_v13 = vld [vmem:[#allocation2 + $0x480] sm:$0xf0]  ;;  %v9260_v18 = vld [vmem:[#allocation2 + $0x7e8] sm:$0xf] }
  0x8e   :  { %2801 = vmatpush.bf16.msrb.mxu0 %v9509_v28  ;;  %v12278_v28 = vld [vmem:[#allocation2 + $0x20] sm:$0xf0] }
  0x8f   :  { %2814 = vmatpush.bf16.msrb.mxu1 %v9733_v29  ;;  %v8476_v29 = vld [vmem:[#allocation2 + $0x1c8] sm:$0xf]  ;;  %v8253_v43 = vor.u32 %v12278_v28, %v8252_v26  ;;  %v12474_v17 = vld [vmem:[#allocation2 + $0x640] sm:$0xf0]  ;;  %v12411_v26 = vld [vmem:[#allocation2 + $0x448] sm:$0xf0] }
  0x90   :  { %2827 = vmatpush.bf16.msrb.mxu2 %v8393_v30  ;;  %v12334_v30 = vld [vmem:[#allocation2 + $0x1e0] sm:$0xf0] }
  0x91   :  { %2840 = vmatpush.bf16.msrb.mxu3 %v8617_v38  ;;  %v9369_v38 = vor.u32 %v12554_v20, %v9366_v21  ;;  %v9484_v20 = vld [vmem:[#allocation2 + $0x9a8] sm:$0xf]  ;;  %v12586_v21 = vld [vmem:[#allocation2 + $0x9c0] sm:$0xf0] }
  0x92   :  { %2802 = vmatpush.bf16.msrb.mxu0 %v9481_v44  ;;  %v9568_v44 = vld [vmem:[#allocation2 + $0xa50] sm:$0xf]  ;;  %v9485_v28 = vor.u32 %v12586_v21, %v9484_v20 }
  0x93   :  { %2815 = vmatpush.bf16.msrb.mxu1 %v9705_v45  ;;  %v12607_v45 = vld [vmem:[#allocation2 + $0xa68] sm:$0xf0] }
  0x94   :  { %2828 = vmatpush.bf16.msrb.mxu2 %v8365_v46  ;;  %v8477_v46 = vor.u32 %v12334_v30, %v8476_v29  ;;  %v9569_v53 = vor.u32 %v12607_v45, %v9568_v44  ;;  %v12467_v29 = vld [vmem:[#allocation2 + $0x608] sm:$0xf0]  ;;  %v9232_v30 = vld [vmem:[#allocation2 + $0x7b0] sm:$0xf]  ;;  %v9457_v44 = vor.u32 %v12579_v35, %v9456_v34  ;;  %v12460_v45 = vld [vmem:[#allocation2 + $0x5d0] sm:$0xf0] }
  0x95   :  { %2841 = vmatpush.bf16.msrb.mxu3 %v8589_v50  ;;  %v8868_v50 = vld [vmem:[#allocation2 + $0x4d8] sm:$0xf]  ;;  %v9233_v40 = vor.u32 %v12523_v32, %v9232_v30  ;;  %v12317_v30 = vld [vmem:[#allocation2 + $0x15c] sm:$0xf] }
  0x96   :  { %2803 = vmatpush.bf16.msrb.mxu0 %v9453_v56  ;;  %v12544_v56 = vld [vmem:[#allocation2 + $0x870] sm:$0xf0]  ;;  %v8869_v59 = vor.u32 %v12432_v51, %v8868_v50  ;;  %v8422_v34 = vld [vmem:[#allocation2 + $0x174] sm:$0xf0]  ;;  %v12373_v35 = vld [vmem:[#allocation2 + $0x31c] sm:$0xf] }
  0x97   :  { %2816 = vmatpush.bf16.msrb.mxu1 %v9677_v57  ;;  %v9540_v57 = vld [vmem:[#allocation2 + $0xa18] sm:$0xf]  ;;  %v9317_v61 = vor.u32 %v12544_v56, %v9316_v55  ;;  %v8952_v55 = vld [vmem:[#allocation2 + $0x580] sm:$0xf] }
  0x98   :  { %2829 = vmatpush.bf16.msrb.mxu2 %v8337_v58  ;;  %v12600_v58 = vld [vmem:[#allocation2 + $0xa30] sm:$0xf0] }
  0x99   :  { %2842 = vmatpush.bf16.msrb.mxu3 %v8561_v62  ;;  %v8840_v62 = vld [vmem:[#allocation2 + $0x4a0] sm:$0xf]  ;;  %v9541_v2 = vor.u32 %v12600_v58, %v9540_v57  ;;  %v12453_v57 = vld [vmem:[#allocation2 + $0x598] sm:$0xf0] }
  0x9a   :  { %2804 = vmatpush.bf16.msrb.mxu0 %v9425_v5  ;;  %v12537_v5 = vld [vmem:[#allocation2 + $0x838] sm:$0xf0]  ;;  %v8841_v8 = vor.u32 %v12425_v0, %v8840_v62  ;;  %v9176_v58 = vld [vmem:[#allocation2 + $0x740] sm:$0xf]  ;;  %v8700_v0 = vld [vmem:[#allocation2 + $0x388] sm:$0xf] }
  0x9b   :  { %2817 = vmatpush.bf16.msrb.mxu1 %v9649_v6  ;;  %v9512_v6 = vld [vmem:[#allocation2 + $0x9e0] sm:$0xf]  ;;  %v9289_v11 = vor.u32 %v12537_v5, %v9288_v4  ;;  %v8924_v4 = vld [vmem:[#allocation2 + $0x548] sm:$0xf]  ;;  %v12446_v5 = vld [vmem:[#allocation2 + $0x560] sm:$0xf0] }
  0x9c   :  { %2830 = vmatpush.bf16.msrb.mxu2 %v8309_v7  ;;  %v12593_v7 = vld [vmem:[#allocation2 + $0x9f8] sm:$0xf0]  ;;  %v8925_v20 = vor.u32 %v12446_v5, %v8924_v4  ;;  %v9680_v4 = vld [vmem:[#allocation2 + $0xb30] sm:$0xf] }
  0x9d   :  { %2843 = vmatpush.bf16.msrb.mxu3 %v8533_v12  ;;  %v8812_v12 = vld [vmem:[#allocation2 + $0x468] sm:$0xf]  ;;  %v9513_v16 = vor.u32 %v12593_v7, %v9512_v6 }
  0x9e   :  { %2805 = vmatpush.bf16.msrb.mxu0 %v9397_v19  ;;  %v12530_v19 = vld [vmem:[#allocation2 + $0x800] sm:$0xf0]  ;;  %v9148_v6 = vld [vmem:[#allocation2 + $0x708] sm:$0xf] }
  0x9f   :  { %2818 = vmatpush.bf16.msrb.mxu1 %v9621_v22  ;;  %v8813_v22 = vor.u32 %v12418_v13, %v8812_v12  ;;  %v9261_v24 = vor.u32 %v12530_v19, %v9260_v18  ;;  %v9792_v12 = vld [vmem:[#allocation2 + $0xc10] sm:$0xf]  ;;  %v12663_v13 = vld [vmem:[#allocation2 + $0xc28] sm:$0xf0]  ;;  %v12380_v18 = vld [vmem:[#allocation2 + $0x354] sm:$0xf] }
  0xa0   :  { %2831 = vmatpush.bf16.msrb.mxu2 %v8281_v23  ;;  %v9037_v23 = vor.u32 %v12474_v17, %v9036_v14  ;;  %v12324_v14 = vld [vmem:[#allocation2 + $0x194] sm:$0xf]  ;;  %v8450_v17 = vld [vmem:[#allocation2 + $0x1ac] sm:$0xf0] }
  0xa1   :  { %2844 = vmatpush.bf16.msrb.mxu3 %v8505_v27  ;;  %v9008_v27 = vld [vmem:[#allocation2 + $0x5f0] sm:$0xf] }
  0xa2   :  { %2806 = vmatpush.bf16.msrb.mxu0 %v9369_v38  ;;  %v8785_v38 = vor.u32 %v12411_v26, %v8784_v25  ;;  %v9009_v39 = vor.u32 %v12467_v29, %v9008_v27  ;;  %v8674_v19 = vld [vmem:[#allocation2 + $0x36c] sm:$0xf0]  ;;  %v9793_v25 = vor.u32 %v12663_v13, %v9792_v12  ;;  %v8453_v26 = vor.u32 %v12324_v14, %v8450_v17  ;;  %v12656_v29 = vld [vmem:[#allocation2 + $0xbf0] sm:$0xf0] }
  0xa3   :  { %2819 = vmatpush.bf16.msrb.mxu1 %v9593_v42  ;;  %v12404_v42 = vld [vmem:[#allocation2 + $0x410] sm:$0xf0]  ;;  %v8677_v27 = vor.u32 %v12380_v18, %v8674_v19  ;;  %v8338_v12 = vld [vmem:[#allocation2 + $0xcc] sm:$0xf0] }
  0xa4   :  { %2832 = vmatpush.bf16.msrb.mxu2 %v8253_v43  ;;  %v8980_v43 = vld [vmem:[#allocation2 + $0x5b8] sm:$0xf]  ;;  %v8757_v50 = vor.u32 %v12404_v42, %v8756_v41  ;;  %v8425_v42 = vor.u32 %v12317_v30, %v8422_v34  ;;  %v12352_v13 = vld [vmem:[#allocation2 + $0x274] sm:$0xf]  ;;  %v8562_v14 = vld [vmem:[#allocation2 + $0x28c] sm:$0xf0] }
  0xa5   :  { %2845 = vmatpush.bf16.msrb.mxu3 %v8477_v46  ;;  %2807 = vmatmul.bf16.vlgmr.msrb.gmra.mxu0 %v13650_v37  ;;  %v9204_v46 = vld [vmem:[#allocation2 + $0x778] sm:$0xf]  ;;  %v8981_v51 = vor.u32 %v12460_v45, %v8980_v43  ;;  %v12649_v45 = vld [vmem:[#allocation2 + $0xbb8] sm:$0xf0]  ;;  %v8786_v17 = vld [vmem:[#allocation2 + $0x44c] sm:$0xf0] }
  0xa6   :  { %2851 = vmatpush.bf16.msra.mxu0 %v8897_v47  ;;  %2820 = vmatmul.bf16.vlgmr.msrb.gmra.mxu1 %v13646_v33  ;;  %v12516_v47 = vld [vmem:[#allocation2 + $0x790] sm:$0xf0]  ;;  %v8534_v30 = vld [vmem:[#allocation2 + $0x254] sm:$0xf0] }
  0xa7   :  { %2864 = vmatpush.bf16.msra.mxu1 %v9121_v48  ;;  %2833 = vmatmul.bf16.vlgmr.msrb.gmra.mxu2 %v13622_v9  ;;  %v9428_v48 = vld [vmem:[#allocation2 + $0x938] sm:$0xf]  ;;  %v9205_v52 = vor.u32 %v12516_v47, %v9204_v46  ;;  %v12310_v46 = vld [vmem:[#allocation2 + $0x124] sm:$0xf] }
  0xa8   :  { %2877 = vmatpush.bf16.msra.mxu2 %v9345_v49  ;;  %2846 = vmatmul.bf16.vlgmr.msrb.gmra.mxu3 %v13627_v15  ;;  %v12572_v49 = vld [vmem:[#allocation2 + $0x950] sm:$0xf0]  ;;  %v8758_v34 = vld [vmem:[#allocation2 + $0x414] sm:$0xf0] }
  0xa9   :  { %2890 = vmatpush.bf16.msra.mxu3 %v9569_v53  ;;  %v8728_v53 = vld [vmem:[#allocation2 + $0x3c0] sm:$0xf]  ;;  %v9429_v56 = vor.u32 %v12572_v49, %v9428_v48  ;;  %v12366_v49 = vld [vmem:[#allocation2 + $0x2e4] sm:$0xf] }
  0xaa   :  { %2852 = vmatpush.bf16.msra.mxu0 %v8869_v59  ;;  %v12509_v59 = vld [vmem:[#allocation2 + $0x758] sm:$0xf0]  ;;  %v8729_v62 = vor.u32 %v12397_v54, %v8728_v53  ;;  %v8394_v48 = vld [vmem:[#allocation2 + $0x13c] sm:$0xf0]  ;;  %v9708_v54 = vld [vmem:[#allocation2 + $0xb68] sm:$0xf] }
  0xab   :  { %2865 = vmatpush.bf16.msra.mxu1 %v9093_v60  ;;  %v9400_v60 = vld [vmem:[#allocation2 + $0x900] sm:$0xf]  ;;  %v9177_v3 = vor.u32 %v12509_v59, %v9176_v58  ;;  %v12303_v58 = vld [vmem:[#allocation2 + $0xec] sm:$0xf]  ;;  %v8366_v59 = vld [vmem:[#allocation2 + $0x104] sm:$0xf0] }
  0xac   :  { %2878 = vmatpush.bf16.msra.mxu2 %v9317_v61  ;;  %v12565_v61 = vld [vmem:[#allocation2 + $0x918] sm:$0xf0]  ;;  %v8369_v5 = vor.u32 %v12303_v58, %v8366_v59  ;;  %v12275_v58 = vld [vmem:[#allocation2 + $0xc] sm:$0xf]  ;;  %v8254_v59 = vld [vmem:[#allocation2 + $0x24] sm:$0xf0] }
  0xad   :  { %2891 = vmatpush.bf16.msra.mxu3 %v9541_v2  ;;  %v8953_v2 = vor.u32 %v12453_v57, %v8952_v55  ;;  %v9401_v7 = vor.u32 %v12565_v61, %v9400_v60  ;;  %v8397_v55 = vor.u32 %v12310_v46, %v8394_v48  ;;  %v12642_v57 = vld [vmem:[#allocation2 + $0xb80] sm:$0xf0]  ;;  %v12359_v61 = vld [vmem:[#allocation2 + $0x2ac] sm:$0xf] }
  0xae   :  { %2853 = vmatpush.bf16.msra.mxu0 %v8841_v8  ;;  %v12502_v8 = vld [vmem:[#allocation2 + $0x720] sm:$0xf0] }
  0xaf   :  { %2866 = vmatpush.bf16.msra.mxu1 %v9065_v10  ;;  %v9372_v10 = vld [vmem:[#allocation2 + $0x8c8] sm:$0xf]  ;;  %v9149_v21 = vor.u32 %v12502_v8, %v9148_v6  ;;  %v12296_v8 = vld [vmem:[#allocation2 + $0xb4] sm:$0xf]  ;;  %v12338_v48 = vld [vmem:[#allocation2 + $0x204] sm:$0xf] }
  0xb0   :  { %2879 = vmatpush.bf16.msra.mxu2 %v9289_v11  ;;  %v12558_v11 = vld [vmem:[#allocation2 + $0x8e0] sm:$0xf0] }
  0xb1   :  { %2892 = vmatpush.bf16.msra.mxu3 %v9513_v16  ;;  %v8701_v16 = vor.u32 %v12390_v1, %v8700_v0  ;;  %v13668_v0 = vld [vmem:[#allocation4] sm:$0xff]  ;;  %v12415_v1 = vld [vmem:[#allocation2 + $0x46c] sm:$0xf] }
  0xb2   :  { %2854 = vmatpush.bf16.msra.mxu0 %v8813_v22  ;;  %v12436_v22 = vld [vmem:[#allocation2 + $0x514] sm:$0xf] }
  0xb3   :  { %2867 = vmatpush.bf16.msra.mxu1 %v9037_v23  ;;  %v8898_v23 = vld [vmem:[#allocation2 + $0x52c] sm:$0xf0] }
  0xb4   :  { %2880 = vmatpush.bf16.msra.mxu2 %v9261_v24  ;;  %v9373_v24 = vor.u32 %v12558_v11, %v9372_v10  ;;  %v8901_v32 = vor.u32 %v12436_v22, %v8898_v23  ;;  %v613_v10 = vperm.slane %v13668_v0, 0  ;;  %v9652_v22 = vld [vmem:[#allocation2 + $0xaf8] sm:$0xf]  ;;  %v12628_v23 = vld [vmem:[#allocation2 + $0xb10] sm:$0xf0] }
  0xb5   :  { %2893 = vmatpush.bf16.msra.mxu3 %v9485_v28  ;;  %v9764_v28 = vld [vmem:[#allocation2 + $0xbd8] sm:$0xf] }
  0xb6   :  { %2855 = vmatpush.bf16.msra.mxu0 %v8785_v38  ;;  %v8646_v38 = vld [vmem:[#allocation2 + $0x334] sm:$0xf0]  ;;  %v9765_v41 = vor.u32 %v12656_v29, %v9764_v28  ;;  %v12345_v29 = vld [vmem:[#allocation2 + $0x23c] sm:$0xf] }
  0xb7   :  { %2868 = vmatpush.bf16.msra.mxu1 %v9009_v39  ;;  %v12429_v39 = vld [vmem:[#allocation2 + $0x4dc] sm:$0xf]  ;;  %v8649_v43 = vor.u32 %v12373_v35, %v8646_v38  ;;  %v8310_v28 = vld [vmem:[#allocation2 + $0x94] sm:$0xf0] }
  0xb8   :  { %2881 = vmatpush.bf16.msra.mxu2 %v9233_v40  ;;  %v8870_v40 = vld [vmem:[#allocation2 + $0x4f4] sm:$0xf0] }
  0xb9   :  { %2894 = vmatpush.bf16.msra.mxu3 %v9457_v44  ;;  %v9736_v44 = vld [vmem:[#allocation2 + $0xba0] sm:$0xf]  ;;  %v8873_v47 = vor.u32 %v12429_v39, %v8870_v40  ;;  %v9653_v39 = vor.u32 %v12628_v23, %v9652_v22  ;;  %v12485_v23 = vld [vmem:[#allocation2 + $0x69c] sm:$0xf] }
  0xba   :  { %2856 = vmatpush.bf16.msra.mxu0 %v8757_v50  ;;  %v8618_v50 = vld [vmem:[#allocation2 + $0x2fc] sm:$0xf0]  ;;  %v9737_v53 = vor.u32 %v12649_v45, %v9736_v44  ;;  %v12282_v44 = vld [vmem:[#allocation2 + $0x44] sm:$0xf] }
  0xbb   :  { %2869 = vmatpush.bf16.msra.mxu1 %v8981_v51  ;;  %v12422_v51 = vld [vmem:[#allocation2 + $0x4a4] sm:$0xf] }
  0xbc   :  { %2882 = vmatpush.bf16.msra.mxu2 %v9205_v52  ;;  %v8842_v52 = vld [vmem:[#allocation2 + $0x4bc] sm:$0xf0] }
  0xbd   :  { %2895 = vmatpush.bf16.msra.mxu3 %v9429_v56  ;;  %v8621_v56 = vor.u32 %v12366_v49, %v8618_v50  ;;  %v8845_v60 = vor.u32 %v12422_v51, %v8842_v52  ;;  %v8506_v49 = vld [vmem:[#allocation2 + $0x21c] sm:$0xf0]  ;;  %v12394_v50 = vld [vmem:[#allocation2 + $0x3c4] sm:$0xf] }
  0xbe   :  { %2857 = vmatpush.bf16.msra.mxu0 %v8729_v62  ;;  %v8590_v62 = vld [vmem:[#allocation2 + $0x2c4] sm:$0xf0]  ;;  %v8730_v51 = vld [vmem:[#allocation2 + $0x3dc] sm:$0xf0] }
  0xbf   :  { %2870 = vmatpush.bf16.msra.mxu1 %v8953_v2  ;;  %v8814_v2 = vld [vmem:[#allocation2 + $0x484] sm:$0xf0]  ;;  %v8593_v6 = vor.u32 %v12359_v61, %v8590_v62  ;;  %v8733_v62 = vor.u32 %v12394_v50, %v8730_v51 }
  0xc0   :  { %2883 = vmatpush.bf16.msra.mxu2 %v9177_v3  ;;  %v9709_v3 = vor.u32 %v12642_v57, %v9708_v54  ;;  %v8817_v11 = vor.u32 %v12415_v1, %v8814_v2  ;;  %v12614_v54 = vld [vmem:[#allocation2 + $0xaa0] sm:$0xf0]  ;;  %v8509_v57 = vor.u32 %v12338_v48, %v8506_v49  ;;  %v8478_v1 = vld [vmem:[#allocation2 + $0x1e4] sm:$0xf0]  ;;  %v12387_v2 = vld [vmem:[#allocation2 + $0x38c] sm:$0xf] }
  0xc1   :  { %2896 = vmatpush.bf16.msra.mxu3 %v9401_v7  ;;  %v12635_v7 = vld [vmem:[#allocation2 + $0xb48] sm:$0xf0]  ;;  %v9738_v48 = vld [vmem:[#allocation2 + $0xbbc] sm:$0xf0] }
  0xc2   :  { %2858 = vmatpush.bf16.msra.mxu0 %v8701_v16  ;;  %v12408_v16 = vld [vmem:[#allocation2 + $0x434] sm:$0xf]  ;;  %v9681_v18 = vor.u32 %v12635_v7, %v9680_v4  ;;  %v2652_v19 = vpop.f32.mrf.mxu0 }
  0xc3   :  { %2871 = vmatpush.bf16.msra.mxu1 %v8925_v20  ;;  %v8341_v20 = vor.u32 %v12296_v8, %v8338_v12  ;;  %v12492_v4 = vld [vmem:[#allocation2 + $0x6d4] sm:$0xf]  ;;  %v9570_v12 = vld [vmem:[#allocation2 + $0xa6c] sm:$0xf0] }
  0xc4   :  { %2884 = vmatpush.bf16.msra.mxu2 %v9149_v21  ;;  %v8565_v21 = vor.u32 %v12352_v13, %v8562_v14  ;;  %v8257_v13 = vor.u32 %v12275_v58, %v8254_v59  ;;  %v12583_v58 = vld [vmem:[#allocation2 + $0x9ac] sm:$0xf]  ;;  %v9486_v59 = vld [vmem:[#allocation2 + $0x9c4] sm:$0xf0] }
  0xc5   :  { %2897 = vmatpush.bf16.msra.mxu3 %v9373_v24  ;;  %2859 = vmatmul.bf16.vlgmr.msra.gmra.mxu0 %v13616_v63  ;;  %v12289_v24 = vld [vmem:[#allocation2 + $0x7c] sm:$0xf] }
  0xc6   :  { %2903 = vmatpush.bf16.msrb.mxu0 %v9793_v25  ;;  %2872 = vmatmul.bf16.vlgmr.msra.gmra.mxu1 %v13634_v31  ;;  %v2653_v25 = vadd.f32 %v2652_v19, %v613_v10  ;;  %v8313_v40 = vor.u32 %v12289_v24, %v8310_v28  ;;  %v9346_v10 = vld [vmem:[#allocation2 + $0x8ac] sm:$0xf0]  ;;  %v9094_v24 = vld [vmem:[#allocation2 + $0x6b4] sm:$0xf0] }
  0xc7   :  { %2916 = vmatpush.bf16.msrb.mxu1 %v8453_v26  ;;  %2885 = vmatmul.bf16.vlgmr.msra.gmra.mxu2 %v13648_v36  ;;  %v2665_v26 = vpop.f32.mrf.mxu1  ;;  %v9318_v28 = vld [vmem:[#allocation2 + $0x874] sm:$0xf0] }
  0xc8   :  { %2929 = vmatpush.bf16.msrb.mxu2 %v8677_v27  ;;  %2898 = vmatmul.bf16.vlgmr.msra.gmra.mxu3 %v13650_v37  ;;  %v8789_v27 = vor.u32 %v12408_v16, %v8786_v17  ;;  %v2666_v35 = vadd.f32 %v2665_v26, %v2653_v25  ;;  %v12660_v16 = vld [vmem:[#allocation2 + $0xc14] sm:$0xf]  ;;  %v9794_v17 = vld [vmem:[#allocation2 + $0xc2c] sm:$0xf0]  ;;  %v12541_v25 = vld [vmem:[#allocation2 + $0x85c] sm:$0xf] }
  0xc9   :  { %2942 = vmatpush.bf16.msrb.mxu3 %v8901_v32  ;;  %v12401_v32 = vld [vmem:[#allocation2 + $0x3fc] sm:$0xf] }
  0xca   :  { %2904 = vmatpush.bf16.msrb.mxu0 %v9765_v41  ;;  %v2678_v38 = vpop.f32.mrf.mxu2  ;;  %v8537_v41 = vor.u32 %v12345_v29, %v8534_v30  ;;  %v8761_v46 = vor.u32 %v12401_v32, %v8758_v34  ;;  %v12597_v29 = vld [vmem:[#allocation2 + $0xa1c] sm:$0xf]  ;;  %v9542_v30 = vld [vmem:[#allocation2 + $0xa34] sm:$0xf0] }
  0xcb   :  { %2917 = vmatpush.bf16.msrb.mxu1 %v8425_v42  ;;  %v9624_v42 = vld [vmem:[#allocation2 + $0xac0] sm:$0xf]  ;;  %v2679_v45 = vadd.f32 %v2678_v38, %v2666_v35  ;;  %v12653_v32 = vld [vmem:[#allocation2 + $0xbdc] sm:$0xf]  ;;  %v9766_v34 = vld [vmem:[#allocation2 + $0xbf4] sm:$0xf0]  ;;  %v9097_v35 = vor.u32 %v12485_v23, %v9094_v24  ;;  %v9321_v38 = vor.u32 %v12541_v25, %v9318_v28 }
  0xcc   :  { %2930 = vmatpush.bf16.msrb.mxu2 %v8649_v43  ;;  %v12621_v43 = vld [vmem:[#allocation2 + $0xad8] sm:$0xf0]  ;;  %v9430_v28 = vld [vmem:[#allocation2 + $0x954] sm:$0xf0] }
  0xcd   :  { %2943 = vmatpush.bf16.msrb.mxu3 %v8873_v47  ;;  %v8282_v47 = vld [vmem:[#allocation2 + $0x5c] sm:$0xf0]  ;;  %v9625_v52 = vor.u32 %v12621_v43, %v9624_v42  ;;  %v12534_v42 = vld [vmem:[#allocation2 + $0x824] sm:$0xf]  ;;  %v9769_v43 = vor.u32 %v12653_v32, %v9766_v34  ;;  %v12513_v23 = vld [vmem:[#allocation2 + $0x77c] sm:$0xf] }
  0xce   :  { %2905 = vmatpush.bf16.msrb.mxu0 %v9737_v53  ;;  %v9596_v53 = vld [vmem:[#allocation2 + $0xa88] sm:$0xf]  ;;  %v9654_v32 = vld [vmem:[#allocation2 + $0xb14] sm:$0xf0] }
  0xcf   :  { %2918 = vmatpush.bf16.msrb.mxu1 %v8397_v55  ;;  %v2654_v55 = vpop.f32.mrf.mxu0  ;;  %v2667_v61 = vpop.f32.mrf.mxu1  ;;  %v9597_v8 = vor.u32 %v12614_v54, %v9596_v53  ;;  %v12471_v53 = vld [vmem:[#allocation2 + $0x62c] sm:$0xf]  ;;  %v9038_v54 = vld [vmem:[#allocation2 + $0x644] sm:$0xf0] }
  0xd0   :  { %2931 = vmatpush.bf16.msrb.mxu2 %v8621_v56  ;;  %v8285_v56 = vor.u32 %v12282_v44, %v8282_v47  ;;  %v9290_v44 = vld [vmem:[#allocation2 + $0x83c] sm:$0xf0]  ;;  %v12646_v47 = vld [vmem:[#allocation2 + $0xba4] sm:$0xf]  ;;  %v12527_v55 = vld [vmem:[#allocation2 + $0x7ec] sm:$0xf] }
  0xd1   :  { %2944 = vmatpush.bf16.msrb.mxu3 %v8845_v60  ;;  %v12331_v60 = vld [vmem:[#allocation2 + $0x1cc] sm:$0xf]  ;;  %v9293_v51 = vor.u32 %v12534_v42, %v9290_v44  ;;  %v9710_v61 = vld [vmem:[#allocation2 + $0xb84] sm:$0xf0]  ;;  %v8954_v42 = vld [vmem:[#allocation2 + $0x59c] sm:$0xf0] }
  0xd2   :  { %2906 = vmatpush.bf16.msrb.mxu0 %v9709_v3  ;;  %v8702_v3 = vld [vmem:[#allocation2 + $0x3a4] sm:$0xf0]  ;;  %v2680_v7 = vpop.f32.mrf.mxu2  ;;  %v8481_v14 = vor.u32 %v12331_v60, %v8478_v1  ;;  %v12639_v60 = vld [vmem:[#allocation2 + $0xb6c] sm:$0xf] }
  0xd3   :  { %2919 = vmatpush.bf16.msrb.mxu1 %v8369_v5  ;;  %v9122_v5 = vld [vmem:[#allocation2 + $0x6ec] sm:$0xf0]  ;;  %v12520_v7 = vld [vmem:[#allocation2 + $0x7b4] sm:$0xf] }
  0xd4   :  { %2932 = vmatpush.bf16.msrb.mxu2 %v8593_v6  ;;  %v12548_v6 = vld [vmem:[#allocation2 + $0x894] sm:$0xf]  ;;  %v9125_v19 = vor.u32 %v12492_v4, %v9122_v5  ;;  %v9489_v4 = vor.u32 %v12583_v58, %v9486_v59 }
  0xd5   :  { %2945 = vmatpush.bf16.msrb.mxu3 %v8817_v11  ;;  %v12604_v11 = vld [vmem:[#allocation2 + $0xa54] sm:$0xf] }
  0xd6   :  { %2907 = vmatpush.bf16.msrb.mxu0 %v9681_v18  ;;  %v8705_v18 = vor.u32 %v12387_v2, %v8702_v3  ;;  %v9573_v22 = vor.u32 %v12604_v11, %v9570_v12  ;;  %v12464_v5 = vld [vmem:[#allocation2 + $0x5f4] sm:$0xf]  ;;  %v9234_v11 = vld [vmem:[#allocation2 + $0x7cc] sm:$0xf0] }
  0xd7   :  { %2920 = vmatpush.bf16.msrb.mxu1 %v8341_v20  ;;  %v2691_v20 = vpop.f32.mrf.mxu3  ;;  %v12576_v12 = vld [vmem:[#allocation2 + $0x974] sm:$0xf] }
  0xd8   :  { %2933 = vmatpush.bf16.msrb.mxu2 %v8565_v21  ;;  %v9349_v21 = vor.u32 %v12548_v6, %v9346_v10  ;;  %v2692_v26 = vadd.f32 %v2691_v20, %v2679_v45  ;;  %v12590_v45 = vld [vmem:[#allocation2 + $0x9e4] sm:$0xf]  ;;  %v9010_v6 = vld [vmem:[#allocation2 + $0x60c] sm:$0xf0]  ;;  %v9713_v10 = vor.u32 %v12639_v60, %v9710_v61  ;;  %v9374_v60 = vld [vmem:[#allocation2 + $0x8e4] sm:$0xf0] }
  0xd9   :  { %2946 = vmatpush.bf16.msrb.mxu3 %v8789_v27  ;;  %v9797_v27 = vor.u32 %v12660_v16, %v9794_v17  ;;  %v9682_v16 = vld [vmem:[#allocation2 + $0xb4c] sm:$0xf0]  ;;  %v12611_v61 = vld [vmem:[#allocation2 + $0xa8c] sm:$0xf] }
  0xda   :  { %2908 = vmatpush.bf16.msrb.mxu0 %v9653_v39  ;;  %v9545_v39 = vor.u32 %v12597_v29, %v9542_v30  ;;  %v12625_v30 = vld [vmem:[#allocation2 + $0xafc] sm:$0xf] }
  0xdb   :  { %2921 = vmatpush.bf16.msrb.mxu1 %v8313_v40  ;;  %v12478_v40 = vld [vmem:[#allocation2 + $0x664] sm:$0xf]  ;;  %v9657_v44 = vor.u32 %v12625_v30, %v9654_v32  ;;  %v614_v30 = vperm.slane %v13668_v0, 1 }
  0xdc   :  { %2934 = vmatpush.bf16.msrb.mxu2 %v8537_v41  ;;  %v9066_v41 = vld [vmem:[#allocation2 + $0x67c] sm:$0xf0] }
  0xdd   :  { %2947 = vmatpush.bf16.msrb.mxu3 %v8761_v46  ;;  %v9514_v46 = vld [vmem:[#allocation2 + $0x9fc] sm:$0xf0]  ;;  %v9069_v49 = vor.u32 %v12478_v40, %v9066_v41  ;;  %v12450_v41 = vld [vmem:[#allocation2 + $0x584] sm:$0xf] }
  0xde   :  { %2909 = vmatpush.bf16.msrb.mxu0 %v9625_v52  ;;  %v9517_v52 = vor.u32 %v12590_v45, %v9514_v46  ;;  %v9178_v45 = vld [vmem:[#allocation2 + $0x75c] sm:$0xf0]  ;;  %v12562_v46 = vld [vmem:[#allocation2 + $0x904] sm:$0xf] }
  0xdf   :  { %2922 = vmatpush.bf16.msrb.mxu1 %v8285_v56  ;;  %v2693_v50 = vpop.f32.mrf.mxu3  ;;  %v9741_v56 = vor.u32 %v12646_v47, %v9738_v48  ;;  %v9402_v47 = vld [vmem:[#allocation2 + $0x91c] sm:$0xf0]  ;;  %v12618_v48 = vld [vmem:[#allocation2 + $0xac4] sm:$0xf] }
  0xe0   :  { %2935 = vmatpush.bf16.msrb.mxu2 %v8509_v57  ;;  %v9262_v57 = vld [vmem:[#allocation2 + $0x804] sm:$0xf0]  ;;  %v8957_v50 = vor.u32 %v12450_v41, %v8954_v42  ;;  %v12370_v41 = vld [vmem:[#allocation2 + $0x300] sm:$0xf0] }
  0xe1   :  { %2948 = vmatpush.bf16.msrb.mxu3 %v8733_v62  ;;  %v9041_v62 = vor.u32 %v12471_v53, %v9038_v54  ;;  %v9265_v3 = vor.u32 %v12527_v55, %v9262_v57  ;;  %v9405_v54 = vor.u32 %v12562_v46, %v9402_v47  ;;  %v12499_v55 = vld [vmem:[#allocation2 + $0x70c] sm:$0xf]  ;;  %v8848_v42 = vld [vmem:[#allocation2 + $0x4a8] sm:$0xf]  ;;  %v12482_v46 = vld [vmem:[#allocation2 + $0x680] sm:$0xf0] }
  0xe2   :  { %2910 = vmatpush.bf16.msrb.mxu0 %v9597_v8  ;;  %v2704_v1 = vpop.f32.mrf.mxu0  ;;  %v12555_v57 = vld [vmem:[#allocation2 + $0x8cc] sm:$0xf] }
  0xe3   :  { %2923 = vmatpush.bf16.msrb.mxu1 %v8257_v13  ;;  %v2717_v2 = vpop.f32.mrf.mxu1  ;;  %v2705_v8 = vadd.f32 %v2704_v1, %v2692_v26  ;;  %v9458_v13 = vld [vmem:[#allocation2 + $0x98c] sm:$0xf0]  ;;  %v9206_v26 = vld [vmem:[#allocation2 + $0x794] sm:$0xf0] }
  0xe4   :  { %2936 = vmatpush.bf16.msrb.mxu2 %v8481_v14  ;;  %v12632_v14 = vld [vmem:[#allocation2 + $0xb34] sm:$0xf]  ;;  %v9461_v20 = vor.u32 %v12576_v12, %v9458_v13  ;;  %v8456_v1 = vld [vmem:[#allocation2 + $0x198] sm:$0xf] }
  0xe5   :  { %2949 = vmatpush.bf16.msrb.mxu3 %v8705_v18  ;;  %2911 = vmatmul.bf16.vlgmr.msrb.gmra.mxu0 %v13646_v33  ;;  %v2718_v17 = vadd.f32 %v2717_v2, %v2705_v8  ;;  %v9013_v18 = vor.u32 %v12464_v5, %v9010_v6  ;;  %v9685_v25 = vor.u32 %v12632_v14, %v9682_v16  ;;  %v12328_v2 = vld [vmem:[#allocation2 + $0x1b0] sm:$0xf0]  ;;  %v8904_v6 = vld [vmem:[#allocation2 + $0x518] sm:$0xf] }
  0xe6   :  { %2955 = vmatpush.bf16.msra.mxu0 %v9125_v19  ;;  %2924 = vmatmul.bf16.vlgmr.msrb.gmra.mxu1 %v13622_v9  ;;  %v9237_v19 = vor.u32 %v12520_v7, %v9234_v11  ;;  %v12384_v5 = vld [vmem:[#allocation2 + $0x370] sm:$0xf0]  ;;  %v9377_v11 = vor.u32 %v12555_v57, %v9374_v60  ;;  %v9128_v12 = vld [vmem:[#allocation2 + $0x6d8] sm:$0xf]  ;;  %v8457_v16 = vor.u32 %v12328_v2, %v8456_v1  ;;  %v9044_v57 = vld [vmem:[#allocation2 + $0x630] sm:$0xf] }
  0xe7   :  { %2968 = vmatpush.bf16.msra.mxu1 %v9349_v21  ;;  %2937 = vmatmul.bf16.vlgmr.msrb.gmra.mxu2 %v13627_v15  ;;  %v12457_v21 = vld [vmem:[#allocation2 + $0x5bc] sm:$0xf]  ;;  %v12440_v7 = vld [vmem:[#allocation2 + $0x530] sm:$0xf0] }
  0xe8   :  { %2981 = vmatpush.bf16.msra.mxu2 %v9573_v22  ;;  %2950 = vmatmul.bf16.vlgmr.msrb.gmra.mxu3 %v13616_v63  ;;  %v8982_v22 = vld [vmem:[#allocation2 + $0x5d4] sm:$0xf0]  ;;  %v12496_v13 = vld [vmem:[#allocation2 + $0x6f0] sm:$0xf0] }
  0xe9   :  { %2994 = vmatpush.bf16.msra.mxu3 %v9797_v27  ;;  %v12569_v27 = vld [vmem:[#allocation2 + $0x93c] sm:$0xf]  ;;  %v8985_v34 = vor.u32 %v12457_v21, %v8982_v22  ;;  %v8652_v21 = vld [vmem:[#allocation2 + $0x320] sm:$0xf]  ;;  %v9129_v22 = vor.u32 %v12496_v13, %v9128_v12  ;;  %v9016_v12 = vld [vmem:[#allocation2 + $0x5f8] sm:$0xf] }
  0xea   :  { %2956 = vmatpush.bf16.msra.mxu0 %v9097_v35  ;;  %v2730_v24 = vpop.f32.mrf.mxu2  ;;  %v2706_v35 = vpop.f32.mrf.mxu0  ;;  %v9433_v40 = vor.u32 %v12569_v27, %v9430_v28  ;;  %v12489_v27 = vld [vmem:[#allocation2 + $0x6b8] sm:$0xf0]  ;;  %v12468_v13 = vld [vmem:[#allocation2 + $0x610] sm:$0xf0] }
  0xeb   :  { %2969 = vmatpush.bf16.msra.mxu1 %v9321_v38  ;;  %v13675_v29 = vadd.f32 %v2730_v24, %v2718_v17  ;;  %v2719_v38 = vpop.f32.mrf.mxu1  ;;  %v2743_v8 = vpop.f32.mrf.mxu3  ;;  %v8876_v24 = vld [vmem:[#allocation2 + $0x4e0] sm:$0xf]  ;;  %v8400_v35 = vld [vmem:[#allocation2 + $0x128] sm:$0xf] }
  0xec   :  { %2982 = vmatpush.bf16.msra.mxu2 %v9545_v39  ;;  %v9209_v39 = vor.u32 %v12513_v23, %v9206_v26  ;;  %v12377_v23 = vld [vmem:[#allocation2 + $0x338] sm:$0xf0]  ;;  %v9100_v26 = vld [vmem:[#allocation2 + $0x6a0] sm:$0xf]  ;;  %v12314_v38 = vld [vmem:[#allocation2 + $0x140] sm:$0xf0]  ;;  %v2744_v47 = vadd.f32 %v2743_v8, %v614_v30 }
  0xed   :  { %2995 = vmatpush.bf16.msra.mxu3 %v9769_v43  ;;  %v12506_v43 = vld [vmem:[#allocation2 + $0x744] sm:$0xf]  ;;  %v8653_v32 = vor.u32 %v12377_v23, %v8652_v21  ;;  %v8401_v0 = vor.u32 %v12314_v38, %v8400_v35  ;;  %v8792_v8 = vld [vmem:[#allocation2 + $0x438] sm:$0xf]  ;;  %v9017_v21 = vor.u32 %v12468_v13, %v9016_v12  ;;  %v8764_v23 = vld [vmem:[#allocation2 + $0x400] sm:$0xf] }
  0xee   :  { %2957 = vmatpush.bf16.msra.mxu0 %v9069_v49  ;;  %v9626_v49 = vld [vmem:[#allocation2 + $0xadc] sm:$0xf0]  ;;  %v9181_v53 = vor.u32 %v12506_v43, %v9178_v45  ;;  %v12426_v43 = vld [vmem:[#allocation2 + $0x4c0] sm:$0xf0]  ;;  %v9072_v45 = vld [vmem:[#allocation2 + $0x668] sm:$0xf] }
  0xef   :  { %2970 = vmatpush.bf16.msra.mxu1 %v9293_v51  ;;  %v12443_v51 = vld [vmem:[#allocation2 + $0x54c] sm:$0xf]  ;;  %v9629_v59 = vor.u32 %v12618_v48, %v9626_v49  ;;  %v8849_v49 = vor.u32 %v12426_v43, %v8848_v42  ;;  %v8512_v42 = vld [vmem:[#allocation2 + $0x208] sm:$0xf]  ;;  %v8458_v12 = vld [vmem:[#allocation2 + $0x1b4] sm:$0xf0] }
  0xf0   :  { %2983 = vmatpush.bf16.msra.mxu2 %v9517_v52  ;;  %v8926_v52 = vld [vmem:[#allocation2 + $0x564] sm:$0xf0] }
  0xf1   :  { %2996 = vmatpush.bf16.msra.mxu3 %v9741_v56  ;;  %v9150_v56 = vld [vmem:[#allocation2 + $0x724] sm:$0xf0] }
  0xf2   :  { %2958 = vmatpush.bf16.msra.mxu0 %v9041_v62  ;;  %v2732_v58 = vpop.f32.mrf.mxu2  ;;  %v9598_v62 = vld [vmem:[#allocation2 + $0xaa4] sm:$0xf0] }
  0xf3   :  { %2971 = vmatpush.bf16.msra.mxu1 %v9265_v3  ;;  %v8680_v3 = vld [vmem:[#allocation2 + $0x358] sm:$0xf]  ;;  %v9601_v14 = vor.u32 %v12611_v61, %v9598_v62  ;;  %v12475_v58 = vld [vmem:[#allocation2 + $0x648] sm:$0xf0] }
  0xf4   :  { %2984 = vmatpush.bf16.msra.mxu2 %v9489_v4  ;;  %v8929_v4 = vor.u32 %v12443_v51, %v8926_v52  ;;  %v8681_v17 = vor.u32 %v12384_v5, %v8680_v3  ;;  %v12307_v51 = vld [vmem:[#allocation2 + $0x108] sm:$0xf0]  ;;  %v8596_v52 = vld [vmem:[#allocation2 + $0x2b0] sm:$0xf]  ;;  %v8344_v3 = vld [vmem:[#allocation2 + $0xb8] sm:$0xf] }
  0xf5   :  { %2997 = vmatpush.bf16.msra.mxu3 %v9713_v10  ;;  %v9153_v10 = vor.u32 %v12499_v55, %v9150_v56  ;;  %v8820_v55 = vld [vmem:[#allocation2 + $0x470] sm:$0xf]  ;;  %v12419_v56 = vld [vmem:[#allocation2 + $0x488] sm:$0xf0]  ;;  %v8568_v5 = vld [vmem:[#allocation2 + $0x278] sm:$0xf] }
  0xf6   :  { %2959 = vmatpush.bf16.msra.mxu0 %v9013_v18  ;;  %v8905_v18 = vor.u32 %v12440_v7, %v8904_v6  ;;  %v8821_v2 = vor.u32 %v12419_v56, %v8820_v55  ;;  %v9045_v6 = vor.u32 %v12475_v58, %v9044_v57  ;;  %v12356_v7 = vld [vmem:[#allocation2 + $0x290] sm:$0xf0]  ;;  %v12335_v55 = vld [vmem:[#allocation2 + $0x1e8] sm:$0xf0]  ;;  %v8708_v56 = vld [vmem:[#allocation2 + $0x390] sm:$0xf] }
  0xf7   :  { %2972 = vmatpush.bf16.msra.mxu1 %v9237_v19  ;;  %v8428_v19 = vld [vmem:[#allocation2 + $0x160] sm:$0xf]  ;;  %v12391_v58 = vld [vmem:[#allocation2 + $0x3a8] sm:$0xf0] }
  0xf8   :  { %2985 = vmatpush.bf16.msra.mxu2 %v9461_v20  ;;  %v12321_v20 = vld [vmem:[#allocation2 + $0x178] sm:$0xf0] }
  0xf9   :  { %2998 = vmatpush.bf16.msra.mxu3 %v9685_v25  ;;  %v12433_v25 = vld [vmem:[#allocation2 + $0x4f8] sm:$0xf0]  ;;  %v8429_v28 = vor.u32 %v12321_v20, %v8428_v19  ;;  %v8540_v20 = vld [vmem:[#allocation2 + $0x240] sm:$0xf] }
  0xfa   :  { %2960 = vmatpush.bf16.msra.mxu0 %v8985_v34  ;;  %v8877_v34 = vor.u32 %v12433_v25, %v8876_v24  ;;  %v12293_v19 = vld [vmem:[#allocation2 + $0x98] sm:$0xf0] }
  0xfb   :  { %2973 = vmatpush.bf16.msra.mxu1 %v9209_v39  ;;  %v8624_v39 = vld [vmem:[#allocation2 + $0x2e8] sm:$0xf]  ;;  %v12405_v24 = vld [vmem:[#allocation2 + $0x418] sm:$0xf0] }
  0xfc   :  { %2986 = vmatpush.bf16.msra.mxu2 %v9433_v40  ;;  %v9101_v40 = vor.u32 %v12489_v27, %v9100_v26  ;;  %v8625_v48 = vor.u32 %v12370_v41, %v8624_v39  ;;  %v8988_v26 = vld [vmem:[#allocation2 + $0x5c0] sm:$0xf]  ;;  %v12461_v27 = vld [vmem:[#allocation2 + $0x5d8] sm:$0xf0]  ;;  %v8765_v39 = vor.u32 %v12405_v24, %v8764_v23  ;;  %v12286_v41 = vld [vmem:[#allocation2 + $0x60] sm:$0xf0] }
  0xfd   :  { %2999 = vmatpush.bf16.msra.mxu3 %v9657_v44  ;;  %v2745_v44 = vpop.f32.mrf.mxu3  ;;  %v9772_v23 = vld [vmem:[#allocation2 + $0xbe0] sm:$0xf]  ;;  %v12657_v24 = vld [vmem:[#allocation2 + $0xbf8] sm:$0xf0] }
  0xfe   :  { %2961 = vmatpush.bf16.msra.mxu0 %v8957_v50  ;;  %v8372_v50 = vld [vmem:[#allocation2 + $0xf0] sm:$0xf]  ;;  %v8989_v44 = vor.u32 %v12461_v27, %v8988_v26  ;;  %v8430_v26 = vld [vmem:[#allocation2 + $0x17c] sm:$0xf0] }
  0xff   :  { %2974 = vmatpush.bf16.msra.mxu1 %v9181_v53  ;;  %v9073_v53 = vor.u32 %v12482_v46, %v9072_v45  ;;  %v8373_v60 = vor.u32 %v12307_v51, %v8372_v50  ;;  %v12342_v45 = vld [vmem:[#allocation2 + $0x220] sm:$0xf0]  ;;  %v8736_v46 = vld [vmem:[#allocation2 + $0x3c8] sm:$0xf]  ;;  %v8260_v50 = vld [vmem:[#allocation2 + $0x10] sm:$0xf] }
 0x100   :  { %2987 = vmatpush.bf16.msra.mxu2 %v9405_v54  ;;  %v12363_v54 = vld [vmem:[#allocation2 + $0x2c8] sm:$0xf0] }
 0x101   :  { %3000 = vmatpush.bf16.msra.mxu3 %v9629_v59  ;;  %v8597_v1 = vor.u32 %v12363_v54, %v8596_v52  ;;  %v12279_v51 = vld [vmem:[#allocation2 + $0x28] sm:$0xf0]  ;;  %v8513_v52 = vor.u32 %v12342_v45, %v8512_v42  ;;  %v8484_v54 = vld [vmem:[#allocation2 + $0x1d0] sm:$0xf] }
 0x102   :  { %2962 = vmatpush.bf16.msra.mxu0 %v8929_v4  ;;  %v2756_v59 = vpop.f32.mrf.mxu0  ;;  %v12300_v4 = vld [vmem:[#allocation2 + $0xd0] sm:$0xf0]  ;;  %v12311_v42 = vld [vmem:[#allocation2 + $0x12c] sm:$0xf] }
 0x103   :  { %2975 = vmatpush.bf16.msra.mxu1 %v9153_v10  ;;  %v2757_v61 = vadd.f32 %v2756_v59, %v2744_v47  ;;  %v2769_v62 = vpop.f32.mrf.mxu1  ;;  %v12412_v10 = vld [vmem:[#allocation2 + $0x450] sm:$0xf0]  ;;  %v8960_v47 = vld [vmem:[#allocation2 + $0x588] sm:$0xf]  ;;  %v8932_v59 = vld [vmem:[#allocation2 + $0x550] sm:$0xf] }
 0x104   :  { %2988 = vmatpush.bf16.msra.mxu2 %v9377_v11 }
 0x105   :  { %3001 = vmatpush.bf16.msra.mxu3 %v9601_v14  ;;  %2963 = vmatmul.bf16.vlgmr.msra.gmra.mxu0 %v13634_v31  ;;  %v2770_v11 = vadd.f32 %v2769_v62, %v2757_v61  ;;  %v8345_v14 = vor.u32 %v12300_v4, %v8344_v3  ;;  %v9352_v62 = vld [vmem:[#allocation2 + $0x898] sm:$0xf]  ;;  %v8261_v4 = vor.u32 %v12279_v51, %v8260_v50  ;;  %v12587_v51 = vld [vmem:[#allocation2 + $0x9c8] sm:$0xf0] }
 0x106   :  { %3007 = vmatpush.bf16.msrb.mxu0 %v8457_v16  ;;  %2976 = vmatmul.bf16.vlgmr.msra.gmra.mxu1 %v13648_v36  ;;  %v8569_v16 = vor.u32 %v12356_v7, %v8568_v5  ;;  %v12608_v5 = vld [vmem:[#allocation2 + $0xa70] sm:$0xf0] }
 0x107   :  { %3020 = vmatpush.bf16.msrb.mxu1 %v8681_v17  ;;  %2989 = vmatmul.bf16.vlgmr.msra.gmra.mxu2 %v13650_v37  ;;  %v8793_v17 = vor.u32 %v12412_v10, %v8792_v8  ;;  %v12664_v7 = vld [vmem:[#allocation2 + $0xc30] sm:$0xf0]  ;;  %v8485_v8 = vor.u32 %v12335_v55, %v8484_v54  ;;  %v8709_v10 = vor.u32 %v12391_v58, %v8708_v56  ;;  %v8374_v55 = vld [vmem:[#allocation2 + $0x10c] sm:$0xf0] }
 0x108   :  { %3033 = vmatpush.bf16.msrb.mxu2 %v8905_v18  ;;  %3002 = vmatmul.bf16.vlgmr.msra.gmra.mxu3 %v13646_v33  ;;  %v8316_v18 = vld [vmem:[#allocation2 + $0x80] sm:$0xf]  ;;  %v12304_v54 = vld [vmem:[#allocation2 + $0xf4] sm:$0xf] }
 0x109   :  { %3046 = vmatpush.bf16.msrb.mxu3 %v9129_v22  ;;  %v12349_v22 = vld [vmem:[#allocation2 + $0x258] sm:$0xf0] }
 0x10a   :  { %3008 = vmatpush.bf16.msrb.mxu0 %v8429_v28  ;;  %v2782_v25 = vpop.f32.mrf.mxu2  ;;  %v2758_v28 = vpop.f32.mrf.mxu0  ;;  %v8541_v38 = vor.u32 %v12349_v22, %v8540_v20  ;;  %v9548_v20 = vld [vmem:[#allocation2 + $0xa20] sm:$0xf]  ;;  %v12601_v22 = vld [vmem:[#allocation2 + $0xa38] sm:$0xf0] }
 0x10b   :  { %3021 = vmatpush.bf16.msrb.mxu1 %v8653_v32  ;;  %v2783_v30 = vadd.f32 %v2782_v25, %v2770_v11  ;;  %v2795_v32 = vpop.f32.mrf.mxu3  ;;  %v2771_v35 = vpop.f32.mrf.mxu1  ;;  %v12325_v11 = vld [vmem:[#allocation2 + $0x19c] sm:$0xf]  ;;  %v12318_v25 = vld [vmem:[#allocation2 + $0x164] sm:$0xf]  ;;  %v9549_v28 = vor.u32 %v12601_v22, %v9548_v20  ;;  %v8318_v22 = vld [vmem:[#allocation2 + $0x9c] sm:$0xf0] }
 0x10c   :  { %3034 = vmatpush.bf16.msrb.mxu2 %v8877_v34  ;;  %v8317_v34 = vor.u32 %v12293_v19, %v8316_v18  ;;  %v9324_v18 = vld [vmem:[#allocation2 + $0x860] sm:$0xf]  ;;  %v12545_v19 = vld [vmem:[#allocation2 + $0x878] sm:$0xf0]  ;;  %v9520_v35 = vld [vmem:[#allocation2 + $0x9e8] sm:$0xf] }
 0x10d   :  { %3047 = vmatpush.bf16.msrb.mxu3 %v9101_v40  ;;  %v8288_v40 = vld [vmem:[#allocation2 + $0x48] sm:$0xf]  ;;  %v13682_v43 = vadd.f32 %v2795_v32, %v2783_v30  ;;  %v9325_v27 = vor.u32 %v12545_v19, %v9324_v18  ;;  %v9773_v30 = vor.u32 %v12657_v24, %v9772_v23  ;;  %v12573_v18 = vld [vmem:[#allocation2 + $0x958] sm:$0xf0]  ;;  %v9660_v19 = vld [vmem:[#allocation2 + $0xb00] sm:$0xf] }
 0x10e   :  { %3009 = vmatpush.bf16.msrb.mxu0 %v8401_v0  ;;  %v12398_v0 = vld [vmem:[#allocation2 + $0x3e0] sm:$0xf0]  ;;  %v9296_v32 = vld [vmem:[#allocation2 + $0x828] sm:$0xf]  ;;  %v12629_v20 = vld [vmem:[#allocation2 + $0xb18] sm:$0xf0] }
 0x10f   :  { %3022 = vmatpush.bf16.msrb.mxu1 %v8625_v48  ;;  %v12454_v48 = vld [vmem:[#allocation2 + $0x5a0] sm:$0xf0] }
 0x110   :  { %3035 = vmatpush.bf16.msrb.mxu2 %v8849_v49  ;;  %v8289_v49 = vor.u32 %v12286_v41, %v8288_v40  ;;  %v8961_v57 = vor.u32 %v12454_v48, %v8960_v47  ;;  %v9744_v40 = vld [vmem:[#allocation2 + $0xba8] sm:$0xf]  ;;  %v12650_v41 = vld [vmem:[#allocation2 + $0xbc0] sm:$0xf0]  ;;  %v9268_v47 = vld [vmem:[#allocation2 + $0x7f0] sm:$0xf] }
 0x111   :  { %3048 = vmatpush.bf16.msrb.mxu3 %v9073_v53  ;;  %v8737_v53 = vor.u32 %v12398_v0, %v8736_v46  ;;  %v9745_v0 = vor.u32 %v12650_v41, %v9744_v40  ;;  %v12531_v48 = vld [vmem:[#allocation2 + $0x808] sm:$0xf0]  ;;  %v8290_v41 = vld [vmem:[#allocation2 + $0x64] sm:$0xf0] }
 0x112   :  { %3010 = vmatpush.bf16.msrb.mxu0 %v8373_v60  ;;  %v12447_v60 = vld [vmem:[#allocation2 + $0x568] sm:$0xf0]  ;;  %v2784_v61 = vpop.f32.mrf.mxu2 }
 0x113   :  { %3023 = vmatpush.bf16.msrb.mxu1 %v8597_v1  ;;  %v12552_v1 = vld [vmem:[#allocation2 + $0x8b0] sm:$0xf0]  ;;  %v2797_v3 = vpop.f32.mrf.mxu3  ;;  %v8933_v13 = vor.u32 %v12447_v60, %v8932_v59  ;;  %v12283_v40 = vld [vmem:[#allocation2 + $0x4c] sm:$0xf] }
 0x114   :  { %3036 = vmatpush.bf16.msrb.mxu2 %v8821_v2  ;;  %v9576_v2 = vld [vmem:[#allocation2 + $0xa58] sm:$0xf]  ;;  %v8377_v3 = vor.u32 %v12304_v54, %v8374_v55  ;;  %v12381_v54 = vld [vmem:[#allocation2 + $0x35c] sm:$0xf] }
 0x115   :  { %3049 = vmatpush.bf16.msrb.mxu3 %v9045_v6  ;;  %v9800_v6 = vld [vmem:[#allocation2 + $0xc18] sm:$0xf] }
 0x116   :  { %3011 = vmatpush.bf16.msrb.mxu0 %v8345_v14  ;;  %v9353_v14 = vor.u32 %v12552_v1, %v9352_v62  ;;  %v9240_v62 = vld [vmem:[#allocation2 + $0x7b8] sm:$0xf]  ;;  %v12524_v1 = vld [vmem:[#allocation2 + $0x7d0] sm:$0xf0] }
 0x117   :  { %3024 = vmatpush.bf16.msrb.mxu1 %v8569_v16  ;;  %v9577_v16 = vor.u32 %v12608_v5, %v9576_v2  ;;  %v9464_v2 = vld [vmem:[#allocation2 + $0x978] sm:$0xf] }
 0x118   :  { %3037 = vmatpush.bf16.msrb.mxu2 %v8793_v17  ;;  %v9801_v17 = vor.u32 %v12664_v7, %v9800_v6  ;;  %v9688_v5 = vld [vmem:[#allocation2 + $0xb38] sm:$0xf]  ;;  %v12636_v6 = vld [vmem:[#allocation2 + $0xb50] sm:$0xf0] }
 0x119   :  { %3050 = vmatpush.bf16.msrb.mxu3 %v9017_v21  ;;  %v8461_v21 = vor.u32 %v12325_v11, %v8458_v12  ;;  %v9241_v11 = vor.u32 %v12524_v1, %v9240_v62  ;;  %v9689_v12 = vor.u32 %v12636_v6, %v9688_v5  ;;  %v8682_v55 = vld [vmem:[#allocation2 + $0x374] sm:$0xf0]  ;;  %v12549_v5 = vld [vmem:[#allocation2 + $0x89c] sm:$0xf] }
 0x11a   :  { %3012 = vmatpush.bf16.msrb.mxu0 %v8317_v34  ;;  %v12538_v34 = vld [vmem:[#allocation2 + $0x840] sm:$0xf0]  ;;  %v9354_v6 = vld [vmem:[#allocation2 + $0x8b4] sm:$0xf0] }
 0x11b   :  { %3025 = vmatpush.bf16.msrb.mxu1 %v8541_v38  ;;  %v8433_v38 = vor.u32 %v12318_v25, %v8430_v26  ;;  %v9297_v45 = vor.u32 %v12538_v34, %v9296_v32  ;;  %v9408_v32 = vld [vmem:[#allocation2 + $0x908] sm:$0xf] }
 0x11c   :  { %3038 = vmatpush.bf16.msrb.mxu2 %v8765_v39  ;;  %v12594_v39 = vld [vmem:[#allocation2 + $0xa00] sm:$0xf0] }
 0x11d   :  { %3051 = vmatpush.bf16.msrb.mxu3 %v8989_v44  ;;  %v8402_v44 = vld [vmem:[#allocation2 + $0x144] sm:$0xf0]  ;;  %v9521_v46 = vor.u32 %v12594_v39, %v9520_v35  ;;  %v12566_v35 = vld [vmem:[#allocation2 + $0x920] sm:$0xf0] }
 0x11e   :  { %3013 = vmatpush.bf16.msrb.mxu0 %v8289_v49  ;;  %v9492_v49 = vld [vmem:[#allocation2 + $0x9b0] sm:$0xf]  ;;  %v8405_v50 = vor.u32 %v12311_v42, %v8402_v44  ;;  %v12622_v39 = vld [vmem:[#allocation2 + $0xae0] sm:$0xf0] }
 0x11f   :  { %3026 = vmatpush.bf16.msrb.mxu1 %v8513_v52  ;;  %v9716_v52 = vld [vmem:[#allocation2 + $0xb70] sm:$0xf]  ;;  %v9493_v60 = vor.u32 %v12587_v51, %v9492_v49  ;;  %v8293_v51 = vor.u32 %v12283_v40, %v8290_v41  ;;  %v12535_v41 = vld [vmem:[#allocation2 + $0x82c] sm:$0xf] }
 0x120   :  { %3039 = vmatpush.bf16.msrb.mxu2 %v8737_v53  ;;  %v12643_v53 = vld [vmem:[#allocation2 + $0xb88] sm:$0xf0]  ;;  %v9156_v44 = vld [vmem:[#allocation2 + $0x710] sm:$0xf] }
 0x121   :  { %3052 = vmatpush.bf16.msrb.mxu3 %v8961_v57  ;;  %v9269_v57 = vor.u32 %v12531_v48, %v9268_v47  ;;  %v9717_v61 = vor.u32 %v12643_v53, %v9716_v52  ;;  %v12559_v48 = vld [vmem:[#allocation2 + $0x8e8] sm:$0xf0]  ;;  %v9604_v49 = vld [vmem:[#allocation2 + $0xa90] sm:$0xf]  ;;  %v12276_v52 = vld [vmem:[#allocation2 + $0x14] sm:$0xf] }
 0x122   :  { %3014 = vmatpush.bf16.msrb.mxu0 %v8261_v4  ;;  %v2808_v56 = vpop.f32.mrf.mxu0  ;;  %v12580_v4 = vld [vmem:[#allocation2 + $0x990] sm:$0xf0]  ;;  %v8262_v53 = vld [vmem:[#allocation2 + $0x2c] sm:$0xf0] }
 0x123   :  { %3027 = vmatpush.bf16.msrb.mxu1 %v8485_v8  ;;  %v2809_v58 = vadd.f32 %v2808_v56, %v13682_v43  ;;  %v2821_v59 = vpop.f32.mrf.mxu1  ;;  %v12297_v8 = vld [vmem:[#allocation2 + $0xbc] sm:$0xf]  ;;  %v9465_v43 = vor.u32 %v12580_v4, %v9464_v2 }
 0x124   :  { %3040 = vmatpush.bf16.msrb.mxu2 %v8709_v10  ;;  %v8346_v10 = vld [vmem:[#allocation2 + $0xd4] sm:$0xf0]  ;;  %v12437_v56 = vld [vmem:[#allocation2 + $0x51c] sm:$0xf] }
 0x125   :  { %3053 = vmatpush.bf16.msrb.mxu3 %v8933_v13  ;;  %3015 = vmatmul.bf16.vlgmr.msrb.gmra.mxu0 %v13622_v9  ;;  %v13689_v7 = vadd.f32 %v2821_v59, %v2809_v58  ;;  %v9212_v13 = vld [vmem:[#allocation2 + $0x780] sm:$0xf]  ;;  %v12493_v59 = vld [vmem:[#allocation2 + $0x6dc] sm:$0xf] }
 0x126   :  { %3059 = vmatpush.bf16.msra.mxu0 %v9353_v14  ;;  %3028 = vmatmul.bf16.vlgmr.msrb.gmra.mxu1 %v13627_v15  ;;  %v12517_v14 = vld [vmem:[#allocation2 + $0x798] sm:$0xf0] }
 0x127   :  { %3072 = vmatpush.bf16.msra.mxu1 %v9577_v16  ;;  %3041 = vmatmul.bf16.vlgmr.msrb.gmra.mxu2 %v13616_v63  ;;  %v9436_v16 = vld [vmem:[#allocation2 + $0x940] sm:$0xf]  ;;  %v9213_v24 = vor.u32 %v12517_v14, %v9212_v13  ;;  %v12374_v13 = vld [vmem:[#allocation2 + $0x324] sm:$0xf] }
 0x128   :  { %3085 = vmatpush.bf16.msra.mxu2 %v9801_v17  ;;  %3054 = vmatmul.bf16.vlgmr.msrb.gmra.mxu3 %v13634_v31  ;;  %v8349_v17 = vor.u32 %v12297_v8, %v8346_v10  ;;  %v9437_v26 = vor.u32 %v12573_v18, %v9436_v16  ;;  %v8265_v8 = vor.u32 %v12276_v52, %v8262_v53  ;;  %v8654_v14 = vld [vmem:[#allocation2 + $0x33c] sm:$0xf0]  ;;  %v12430_v16 = vld [vmem:[#allocation2 + $0x4e4] sm:$0xf]  ;;  %v9046_v52 = vld [vmem:[#allocation2 + $0x64c] sm:$0xf0] }
 0x129   :  { %3098 = vmatpush.bf16.msra.mxu3 %v8461_v21  ;;  %v12290_v21 = vld [vmem:[#allocation2 + $0x84] sm:$0xf]  ;;  %v8685_v10 = vor.u32 %v12381_v54, %v8682_v55  ;;  %v8878_v18 = vld [vmem:[#allocation2 + $0x4fc] sm:$0xf0]  ;;  %v12528_v53 = vld [vmem:[#allocation2 + $0x7f4] sm:$0xf] }
 0x12a   :  { %3060 = vmatpush.bf16.msra.mxu0 %v9325_v27  ;;  %v2810_v23 = vpop.f32.mrf.mxu0  ;;  %v9661_v27 = vor.u32 %v12629_v20, %v9660_v19  ;;  %v8321_v34 = vor.u32 %v12290_v21, %v8318_v22  ;;  %v2834_v1 = vpop.f32.mrf.mxu2  ;;  %v12486_v19 = vld [vmem:[#allocation2 + $0x6a4] sm:$0xf]  ;;  %v9102_v20 = vld [vmem:[#allocation2 + $0x6bc] sm:$0xf0]  ;;  %v9270_v54 = vld [vmem:[#allocation2 + $0x80c] sm:$0xf0] }
 0x12b   :  { %3073 = vmatpush.bf16.msra.mxu1 %v9549_v28  ;;  %v2823_v25 = vpop.f32.mrf.mxu1  ;;  %v9184_v28 = vld [vmem:[#allocation2 + $0x748] sm:$0xf]  ;;  %v2847_v2 = vpop.f32.mrf.mxu3  ;;  %v12542_v22 = vld [vmem:[#allocation2 + $0x864] sm:$0xf]  ;;  %v9326_v23 = vld [vmem:[#allocation2 + $0x87c] sm:$0xf0] }
 0x12c   :  { %3086 = vmatpush.bf16.msra.mxu2 %v9773_v30  ;;  %v12510_v30 = vld [vmem:[#allocation2 + $0x760] sm:$0xf0]  ;;  %v8881_v25 = vor.u32 %v12430_v16, %v8878_v18  ;;  %v8542_v16 = vld [vmem:[#allocation2 + $0x25c] sm:$0xf0] }
 0x12d   :  { %3099 = vmatpush.bf16.msra.mxu3 %v8433_v38  ;;  %v9632_v38 = vld [vmem:[#allocation2 + $0xac8] sm:$0xf]  ;;  %v9185_v42 = vor.u32 %v12510_v30, %v9184_v28  ;;  %v12423_v30 = vld [vmem:[#allocation2 + $0x4ac] sm:$0xf] }
 0x12e   :  { %3061 = vmatpush.bf16.msra.mxu0 %v9297_v45  ;;  %v12503_v45 = vld [vmem:[#allocation2 + $0x728] sm:$0xf0]  ;;  %v9633_v47 = vor.u32 %v12622_v39, %v9632_v38  ;;  %v8626_v28 = vld [vmem:[#allocation2 + $0x304] sm:$0xf0] }
 0x12f   :  { %3074 = vmatpush.bf16.msra.mxu1 %v9521_v46  ;;  %v9380_v46 = vld [vmem:[#allocation2 + $0x8d0] sm:$0xf]  ;;  %v9157_v58 = vor.u32 %v12503_v45, %v9156_v44  ;;  %v9074_v38 = vld [vmem:[#allocation2 + $0x684] sm:$0xf0] }
 0x130   :  { %3087 = vmatpush.bf16.msra.mxu2 %v9745_v0  ;;  %v9409_v0 = vor.u32 %v12566_v35, %v9408_v32  ;;  %v9329_v32 = vor.u32 %v12542_v22, %v9326_v23  ;;  %v12479_v35 = vld [vmem:[#allocation2 + $0x66c] sm:$0xf]  ;;  %v12514_v23 = vld [vmem:[#allocation2 + $0x784] sm:$0xf] }
 0x131   :  { %3100 = vmatpush.bf16.msra.mxu3 %v8405_v50  ;;  %v12615_v50 = vld [vmem:[#allocation2 + $0xaa8] sm:$0xf0] }
 0x132   :  { %3062 = vmatpush.bf16.msra.mxu0 %v9269_v57  ;;  %v8906_v57 = vld [vmem:[#allocation2 + $0x534] sm:$0xf0]  ;;  %v9605_v4 = vor.u32 %v12615_v50, %v9604_v49  ;;  %v2836_v39 = vpop.f32.mrf.mxu2  ;;  %v8822_v50 = vld [vmem:[#allocation2 + $0x48c] sm:$0xf0] }
 0x133   :  { %3075 = vmatpush.bf16.msra.mxu1 %v9493_v60  ;;  %v9130_v60 = vld [vmem:[#allocation2 + $0x6f4] sm:$0xf0]  ;;  %v2849_v40 = vpop.f32.mrf.mxu3  ;;  %v12395_v39 = vld [vmem:[#allocation2 + $0x3cc] sm:$0xf] }
 0x134   :  { %3088 = vmatpush.bf16.msra.mxu2 %v9717_v61  ;;  %v13691_v61 = vld [vmem:[#allocation4] sm:$0xff] }
 0x135   :  { %3101 = vmatpush.bf16.msra.mxu3 %v8377_v3  ;;  %v615_v62 = vperm.slane %v13691_v61, 2  ;;  %v9381_v3 = vor.u32 %v12559_v48, %v9380_v46  ;;  %v9077_v46 = vor.u32 %v12479_v35, %v9074_v38  ;;  %v12416_v48 = vld [vmem:[#allocation2 + $0x474] sm:$0xf]  ;;  %v12339_v35 = vld [vmem:[#allocation2 + $0x20c] sm:$0xf] }
 0x136   :  { %3063 = vmatpush.bf16.msra.mxu0 %v9241_v11  ;;  %v8514_v38 = vld [vmem:[#allocation2 + $0x224] sm:$0xf0] }
 0x137   :  { %3076 = vmatpush.bf16.msra.mxu1 %v9465_v43  ;;  %v2835_v11 = vadd.f32 %v2834_v1, %v615_v62  ;;  %v8909_v43 = vor.u32 %v12437_v56, %v8906_v57  ;;  %v12353_v62 = vld [vmem:[#allocation2 + $0x27c] sm:$0xf]  ;;  %v8570_v1 = vld [vmem:[#allocation2 + $0x294] sm:$0xf0] }
 0x138   :  { %3089 = vmatpush.bf16.msra.mxu2 %v9689_v12  ;;  %v9133_v12 = vor.u32 %v12493_v59, %v9130_v60  ;;  %v8825_v59 = vor.u32 %v12416_v48, %v8822_v50  ;;  %v12332_v48 = vld [vmem:[#allocation2 + $0x1d4] sm:$0xf] }
 0x139   :  { %3102 = vmatpush.bf16.msra.mxu3 %v8349_v17  ;;  %v9357_v17 = vor.u32 %v12549_v5, %v9354_v6  ;;  %v2848_v21 = vadd.f32 %v2847_v2, %v2835_v11  ;;  %v12409_v2 = vld [vmem:[#allocation2 + $0x43c] sm:$0xf]  ;;  %v9018_v6 = vld [vmem:[#allocation2 + $0x614] sm:$0xf0] }
 0x13a   :  { %3064 = vmatpush.bf16.msra.mxu0 %v9213_v24  ;;  %v8657_v24 = vor.u32 %v12374_v13, %v8654_v14  ;;  %v12465_v5 = vld [vmem:[#allocation2 + $0x5fc] sm:$0xf]  ;;  %v9242_v11 = vld [vmem:[#allocation2 + $0x7d4] sm:$0xf0]  ;;  %v12346_v14 = vld [vmem:[#allocation2 + $0x244] sm:$0xf] }
 0x13b   :  { %3077 = vmatpush.bf16.msra.mxu1 %v9437_v26  ;;  %v9105_v26 = vor.u32 %v12486_v19, %v9102_v20  ;;  %v9021_v13 = vor.u32 %v12465_v5, %v9018_v6  ;;  %v8766_v19 = vld [vmem:[#allocation2 + $0x41c] sm:$0xf0]  ;;  %v12458_v20 = vld [vmem:[#allocation2 + $0x5c4] sm:$0xf]  ;;  %v12329_v6 = vld [vmem:[#allocation2 + $0x1b8] sm:$0xf0] }
 0x13c   :  { %3090 = vmatpush.bf16.msra.mxu2 %v9661_v27  ;;  %v12367_v27 = vld [vmem:[#allocation2 + $0x2ec] sm:$0xf]  ;;  %v8464_v5 = vld [vmem:[#allocation2 + $0x1a0] sm:$0xf] }
 0x13d   :  { %3103 = vmatpush.bf16.msra.mxu3 %v8321_v34  ;;  %v8850_v34 = vld [vmem:[#allocation2 + $0x4c4] sm:$0xf0]  ;;  %v8629_v44 = vor.u32 %v12367_v27, %v8626_v28  ;;  %v8545_v28 = vor.u32 %v12346_v14, %v8542_v16  ;;  %v8465_v16 = vor.u32 %v12329_v6, %v8464_v5  ;;  %v8352_v5 = vld [vmem:[#allocation2 + $0xc0] sm:$0xf]  ;;  %v12301_v6 = vld [vmem:[#allocation2 + $0xd8] sm:$0xf0] }
 0x13e   :  { %3065 = vmatpush.bf16.msra.mxu0 %v9185_v42  ;;  %v9298_v42 = vld [vmem:[#allocation2 + $0x844] sm:$0xf0]  ;;  %v8853_v45 = vor.u32 %v12423_v30, %v8850_v34 }
 0x13f   :  { %3078 = vmatpush.bf16.msra.mxu1 %v9409_v0  ;;  %v12360_v0 = vld [vmem:[#allocation2 + $0x2b4] sm:$0xf]  ;;  %v9301_v49 = vor.u32 %v12535_v41, %v9298_v42  ;;  %v8738_v42 = vld [vmem:[#allocation2 + $0x3e4] sm:$0xf0] }
 0x140   :  { %3091 = vmatpush.bf16.msra.mxu2 %v9633_v47  ;;  %v8598_v47 = vld [vmem:[#allocation2 + $0x2cc] sm:$0xf0]  ;;  %v8741_v50 = vor.u32 %v12395_v39, %v8738_v42 }
 0x141   :  { %3104 = vmatpush.bf16.msra.mxu3 %v8293_v51  ;;  %v12472_v51 = vld [vmem:[#allocation2 + $0x634] sm:$0xf]  ;;  %v8601_v56 = vor.u32 %v12360_v0, %v8598_v47  ;;  %v9186_v0 = vld [vmem:[#allocation2 + $0x764] sm:$0xf0]  ;;  %v8517_v47 = vor.u32 %v12339_v35, %v8514_v38  ;;  %v8408_v39 = vld [vmem:[#allocation2 + $0x130] sm:$0xf] }
 0x142   :  { %3066 = vmatpush.bf16.msra.mxu0 %v9157_v58  ;;  %v2860_v55 = vpop.f32.mrf.mxu0  ;;  %v9049_v60 = vor.u32 %v12472_v51, %v9046_v52  ;;  %v12388_v52 = vld [vmem:[#allocation2 + $0x394] sm:$0xf]  ;;  %v9746_v38 = vld [vmem:[#allocation2 + $0xbc4] sm:$0xf0]  ;;  %v8632_v42 = vld [vmem:[#allocation2 + $0x2f0] sm:$0xf] }
 0x143   :  { %3079 = vmatpush.bf16.msra.mxu1 %v9381_v3  ;;  %v2861_v57 = vadd.f32 %v2860_v55, %v2848_v21  ;;  %v2873_v58 = vpop.f32.mrf.mxu1  ;;  %v9273_v3 = vor.u32 %v12528_v53, %v9270_v54  ;;  %v8990_v21 = vld [vmem:[#allocation2 + $0x5dc] sm:$0xf0]  ;;  %v8710_v53 = vld [vmem:[#allocation2 + $0x3ac] sm:$0xf0]  ;;  %v12444_v54 = vld [vmem:[#allocation2 + $0x554] sm:$0xf] }
 0x144   :  { %3092 = vmatpush.bf16.msra.mxu2 %v9605_v4  ;;  %v8794_v4 = vld [vmem:[#allocation2 + $0x454] sm:$0xf0]  ;;  %v8993_v34 = vor.u32 %v12458_v20, %v8990_v21  ;;  %v9774_v21 = vld [vmem:[#allocation2 + $0xbfc] sm:$0xf0] }
 0x145   :  { %3105 = vmatpush.bf16.msra.mxu3 %v8265_v8  ;;  %3067 = vmatmul.bf16.vlgmr.msra.gmra.mxu0 %v13648_v36  ;;  %v2874_v8 = vadd.f32 %v2873_v58, %v2861_v57  ;;  %v12500_v57 = vld [vmem:[#allocation2 + $0x714] sm:$0xf]  ;;  %v9158_v58 = vld [vmem:[#allocation2 + $0x72c] sm:$0xf0] }
 0x146   :  { %3111 = vmatpush.bf16.msrb.mxu0 %v8685_v10  ;;  %3080 = vmatmul.bf16.vlgmr.msra.gmra.mxu1 %v13650_v37  ;;  %v12521_v10 = vld [vmem:[#allocation2 + $0x7bc] sm:$0xf] }
 0x147   :  { %3124 = vmatpush.bf16.msrb.mxu1 %v8909_v43  ;;  %3093 = vmatmul.bf16.vlgmr.msra.gmra.mxu2 %v13646_v33  ;;  %v8573_v43 = vor.u32 %v12353_v62, %v8570_v1  ;;  %v9245_v18 = vor.u32 %v12521_v10, %v9242_v11  ;;  %v9578_v62 = vld [vmem:[#allocation2 + $0xa74] sm:$0xf0]  ;;  %v12661_v1 = vld [vmem:[#allocation2 + $0xc1c] sm:$0xf]  ;;  %v8688_v11 = vld [vmem:[#allocation2 + $0x360] sm:$0xf] }
 0x148   :  { %3137 = vmatpush.bf16.msrb.mxu2 %v9133_v12  ;;  %3106 = vmatmul.bf16.vlgmr.msra.gmra.mxu3 %v13622_v9  ;;  %v8797_v12 = vor.u32 %v12409_v2, %v8794_v4  ;;  %v9802_v4 = vld [vmem:[#allocation2 + $0xc34] sm:$0xf0] }
 0x149   :  { %3150 = vmatpush.bf16.msrb.mxu3 %v9357_v17  ;;  %v12402_v17 = vld [vmem:[#allocation2 + $0x404] sm:$0xf]  ;;  %v9805_v14 = vor.u32 %v12661_v1, %v9802_v4  ;;  %v9466_v1 = vld [vmem:[#allocation2 + $0x994] sm:$0xf0] }
 0x14a   :  { %3112 = vmatpush.bf16.msrb.mxu0 %v8657_v24  ;;  %v2886_v22 = vpop.f32.mrf.mxu2  ;;  %v9214_v24 = vld [vmem:[#allocation2 + $0x79c] sm:$0xf0]  ;;  %v9690_v4 = vld [vmem:[#allocation2 + $0xb54] sm:$0xf0] }
 0x14b   :  { %3125 = vmatpush.bf16.msrb.mxu1 %v8881_v25  ;;  %v2862_v25 = vpop.f32.mrf.mxu0  ;;  %v2899_v27 = vpop.f32.mrf.mxu3  ;;  %v9217_v41 = vor.u32 %v12514_v23, %v9214_v24  ;;  %v12322_v23 = vld [vmem:[#allocation2 + $0x180] sm:$0xf0]  ;;  %v8660_v24 = vld [vmem:[#allocation2 + $0x328] sm:$0xf] }
 0x14c   :  { %3138 = vmatpush.bf16.msrb.mxu2 %v9105_v26  ;;  %v2887_v26 = vadd.f32 %v2886_v22, %v2874_v8  ;;  %v2875_v30 = vpop.f32.mrf.mxu1  ;;  %v8713_v8 = vor.u32 %v12388_v52, %v8710_v53  ;;  %v8436_v22 = vld [vmem:[#allocation2 + $0x168] sm:$0xf]  ;;  %v12378_v25 = vld [vmem:[#allocation2 + $0x340] sm:$0xf0]  ;;  %v8380_v52 = vld [vmem:[#allocation2 + $0xf8] sm:$0xf] }
 0x14d   :  { %3151 = vmatpush.bf16.msrb.mxu3 %v9329_v32  ;;  %v8769_v32 = vor.u32 %v12402_v17, %v8766_v19  ;;  %v12598_v17 = vld [vmem:[#allocation2 + $0xa24] sm:$0xf]  ;;  %v12591_v30 = vld [vmem:[#allocation2 + $0x9ec] sm:$0xf]  ;;  %v8661_v35 = vor.u32 %v12378_v25, %v8660_v24  ;;  %v12308_v53 = vld [vmem:[#allocation2 + $0x110] sm:$0xf0] }
 0x14e   :  { %3113 = vmatpush.bf16.msrb.mxu0 %v8629_v44  ;;  %v13698_v40 = vadd.f32 %v2899_v27, %v2887_v26  ;;  %v12451_v44 = vld [vmem:[#allocation2 + $0x58c] sm:$0xf]  ;;  %v12654_v19 = vld [vmem:[#allocation2 + $0xbe4] sm:$0xf] }
 0x14f   :  { %3126 = vmatpush.bf16.msrb.mxu1 %v8853_v45  ;;  %v8962_v45 = vld [vmem:[#allocation2 + $0x5a4] sm:$0xf0]  ;;  %v9777_v27 = vor.u32 %v12654_v19, %v9774_v21  ;;  %v12294_v19 = vld [vmem:[#allocation2 + $0xa0] sm:$0xf0] }
 0x150   :  { %3139 = vmatpush.bf16.msrb.mxu2 %v9077_v46  ;;  %v12507_v46 = vld [vmem:[#allocation2 + $0x74c] sm:$0xf]  ;;  %v8965_v51 = vor.u32 %v12451_v44, %v8962_v45  ;;  %v12350_v21 = vld [vmem:[#allocation2 + $0x260] sm:$0xf0] }
 0x151   :  { %3152 = vmatpush.bf16.msrb.mxu3 %v9301_v49  ;;  %v8486_v49 = vld [vmem:[#allocation2 + $0x1ec] sm:$0xf0]  ;;  %v9189_v55 = vor.u32 %v12507_v46, %v9186_v0  ;;  %v12371_v44 = vld [vmem:[#allocation2 + $0x308] sm:$0xf0] }
 0x152   :  { %3114 = vmatpush.bf16.msrb.mxu0 %v8601_v56  ;;  %v8934_v56 = vld [vmem:[#allocation2 + $0x56c] sm:$0xf0] }
 0x153   :  { %3127 = vmatpush.bf16.msrb.mxu1 %v8825_v59  ;;  %v2888_v59 = vpop.f32.mrf.mxu2  ;;  %v2901_v2 = vpop.f32.mrf.mxu3  ;;  %v8937_v10 = vor.u32 %v12444_v54, %v8934_v56  ;;  %v8604_v54 = vld [vmem:[#allocation2 + $0x2b8] sm:$0xf] }
 0x154   :  { %3140 = vmatpush.bf16.msrb.mxu2 %v9049_v60  ;;  %v12605_v60 = vld [vmem:[#allocation2 + $0xa5c] sm:$0xf] }
 0x155   :  { %3153 = vmatpush.bf16.msrb.mxu3 %v9273_v3  ;;  %v8489_v3 = vor.u32 %v12332_v48, %v8486_v49  ;;  %v9494_v48 = vld [vmem:[#allocation2 + $0x9cc] sm:$0xf0]  ;;  %v12640_v49 = vld [vmem:[#allocation2 + $0xb74] sm:$0xf]  ;;  %v12633_v2 = vld [vmem:[#allocation2 + $0xb3c] sm:$0xf] }
 0x156   :  { %3115 = vmatpush.bf16.msrb.mxu0 %v8573_v43  ;;  %v12385_v43 = vld [vmem:[#allocation2 + $0x378] sm:$0xf0] }
 0x157   :  { %3128 = vmatpush.bf16.msrb.mxu1 %v8797_v12  ;;  %v9161_v12 = vor.u32 %v12500_v57, %v9158_v58  ;;  %v8689_v20 = vor.u32 %v12385_v43, %v8688_v11  ;;  %v8353_v43 = vor.u32 %v12301_v6, %v8352_v5  ;;  %v9584_v6 = vld [vmem:[#allocation2 + $0xa60] sm:$0xf] }
 0x158   :  { %3141 = vmatpush.bf16.msrb.mxu2 %v9021_v13  ;;  %v9581_v13 = vor.u32 %v12605_v60, %v9578_v62  ;;  %v8381_v60 = vor.u32 %v12308_v53, %v8380_v52  ;;  %v12577_v62 = vld [vmem:[#allocation2 + $0x97c] sm:$0xf]  ;;  %v12280_v52 = vld [vmem:[#allocation2 + $0x30] sm:$0xf0]  ;;  %v8492_v53 = vld [vmem:[#allocation2 + $0x1d8] sm:$0xf] }
 0x159   :  { %3154 = vmatpush.bf16.msrb.mxu3 %v9245_v18  ;;  %v9550_v18 = vld [vmem:[#allocation2 + $0xa3c] sm:$0xf0]  ;;  %v9469_v11 = vor.u32 %v12577_v62, %v9466_v1  ;;  %v12553_v1 = vld [vmem:[#allocation2 + $0x8b8] sm:$0xf0] }
 0x15a   :  { %3116 = vmatpush.bf16.msrb.mxu0 %v8545_v28  ;;  %v9553_v26 = vor.u32 %v12598_v17, %v9550_v18  ;;  %v8437_v28 = vor.u32 %v12322_v23, %v8436_v22  ;;  %v9662_v17 = vld [vmem:[#allocation2 + $0xb1c] sm:$0xf0]  ;;  %v8324_v18 = vld [vmem:[#allocation2 + $0x88] sm:$0xf] }
 0x15b   :  { %3129 = vmatpush.bf16.msrb.mxu1 %v8769_v32  ;;  %v9522_v32 = vld [vmem:[#allocation2 + $0xa04] sm:$0xf0]  ;;  %v8325_v25 = vor.u32 %v12294_v19, %v8324_v18  ;;  %v9360_v62 = vld [vmem:[#allocation2 + $0x8a0] sm:$0xf]  ;;  %v12490_v19 = vld [vmem:[#allocation2 + $0x6c0] sm:$0xf0] }
 0x15c   :  { %3142 = vmatpush.bf16.msrb.mxu2 %v8993_v34  ;;  %v12647_v34 = vld [vmem:[#allocation2 + $0xbac] sm:$0xf]  ;;  %v9525_v45 = vor.u32 %v12591_v30, %v9522_v32  ;;  %v9634_v32 = vld [vmem:[#allocation2 + $0xae4] sm:$0xf0] }
 0x15d   :  { %3155 = vmatpush.bf16.msrb.mxu3 %v9217_v41  ;;  %v12315_v41 = vld [vmem:[#allocation2 + $0x148] sm:$0xf0]  ;;  %v9749_v46 = vor.u32 %v12647_v34, %v9746_v38  ;;  %v8296_v34 = vld [vmem:[#allocation2 + $0x50] sm:$0xf] }
 0x15e   :  { %3117 = vmatpush.bf16.msrb.mxu0 %v8517_v47  ;;  %v8409_v0 = vor.u32 %v12315_v41, %v8408_v39  ;;  %v12584_v47 = vld [vmem:[#allocation2 + $0x9b4] sm:$0xf]  ;;  %v8520_v38 = vld [vmem:[#allocation2 + $0x210] sm:$0xf]  ;;  %v12343_v39 = vld [vmem:[#allocation2 + $0x228] sm:$0xf0] }
 0x15f   :  { %3130 = vmatpush.bf16.msrb.mxu1 %v8741_v50  ;;  %v8633_v50 = vor.u32 %v12371_v44, %v8632_v42  ;;  %v9497_v57 = vor.u32 %v12584_v47, %v9494_v48  ;;  %v12556_v42 = vld [vmem:[#allocation2 + $0x8d4] sm:$0xf]  ;;  %v9382_v44 = vld [vmem:[#allocation2 + $0x8ec] sm:$0xf0] }
 0x160   :  { %3143 = vmatpush.bf16.msrb.mxu2 %v8965_v51  ;;  %v9718_v51 = vld [vmem:[#allocation2 + $0xb8c] sm:$0xf0]  ;;  %v12612_v48 = vld [vmem:[#allocation2 + $0xa94] sm:$0xf] }
 0x161   :  { %3156 = vmatpush.bf16.msrb.mxu3 %v9189_v55  ;;  %v12364_v55 = vld [vmem:[#allocation2 + $0x2d0] sm:$0xf0]  ;;  %v9721_v59 = vor.u32 %v12640_v49, %v9718_v51  ;;  %v9606_v49 = vld [vmem:[#allocation2 + $0xaac] sm:$0xf0]  ;;  %v8521_v51 = vor.u32 %v12343_v39, %v8520_v38  ;;  %v12539_v39 = vld [vmem:[#allocation2 + $0x848] sm:$0xf0] }
 0x162   :  { %3118 = vmatpush.bf16.msrb.mxu0 %v8489_v3  ;;  %v2912_v56 = vpop.f32.mrf.mxu0  ;;  %v8605_v3 = vor.u32 %v12364_v55, %v8604_v54  ;;  %v12336_v54 = vld [vmem:[#allocation2 + $0x1f0] sm:$0xf0]  ;;  %v9304_v38 = vld [vmem:[#allocation2 + $0x830] sm:$0xf] }
 0x163   :  { %3131 = vmatpush.bf16.msrb.mxu1 %v8713_v8  ;;  %v13705_v58 = vadd.f32 %v2912_v56, %v13698_v40  ;;  %v8576_v8 = vld [vmem:[#allocation2 + $0x280] sm:$0xf]  ;;  %v9693_v40 = vor.u32 %v12633_v2, %v9690_v4  ;;  %v9609_v4 = vor.u32 %v12612_v48, %v9606_v49  ;;  %v8828_v48 = vld [vmem:[#allocation2 + $0x478] sm:$0xf]  ;;  %v12420_v49 = vld [vmem:[#allocation2 + $0x490] sm:$0xf0] }
 0x164   :  { %3144 = vmatpush.bf16.msrb.mxu2 %v8937_v10  ;;  %v12357_v10 = vld [vmem:[#allocation2 + $0x298] sm:$0xf0]  ;;  %v8912_v56 = vld [vmem:[#allocation2 + $0x520] sm:$0xf] }
 0x165   :  { %3157 = vmatpush.bf16.msrb.mxu3 %v9161_v12  ;;  %3119 = vmatmul.bf16.vlgmr.msrb.gmra.mxu0 %v13627_v15  ;;  %v12570_v12 = vld [vmem:[#allocation2 + $0x944] sm:$0xf] }
 0x166   :  { %3163 = vmatpush.bf16.msra.mxu0 %v9581_v13  ;;  %3132 = vmatmul.bf16.vlgmr.msrb.gmra.mxu1 %v13616_v63  ;;  %v9438_v13 = vld [vmem:[#allocation2 + $0x95c] sm:$0xf0] }
 0x167   :  { %3176 = vmatpush.bf16.msra.mxu1 %v9805_v14  ;;  %3145 = vmatmul.bf16.vlgmr.msrb.gmra.mxu2 %v13634_v31  ;;  %v12626_v14 = vld [vmem:[#allocation2 + $0xb04] sm:$0xf]  ;;  %v9441_v23 = vor.u32 %v12570_v12, %v9438_v13  ;;  %v9361_v12 = vor.u32 %v12553_v1, %v9360_v62  ;;  %v8884_v13 = vld [vmem:[#allocation2 + $0x4e8] sm:$0xf]  ;;  %v8800_v62 = vld [vmem:[#allocation2 + $0x440] sm:$0xf] }
 0x168   :  { %3189 = vmatpush.bf16.msra.mxu2 %v8465_v16  ;;  %3158 = vmatmul.bf16.vlgmr.msrb.gmra.mxu3 %v13648_v36  ;;  %v8577_v16 = vor.u32 %v12357_v10, %v8576_v8  ;;  %v9665_v24 = vor.u32 %v12626_v14, %v9662_v17  ;;  %v12609_v8 = vld [vmem:[#allocation2 + $0xa78] sm:$0xf0]  ;;  %v12434_v14 = vld [vmem:[#allocation2 + $0x500] sm:$0xf0] }
 0x169   :  { %3202 = vmatpush.bf16.msra.mxu3 %v8689_v20  ;;  %v8548_v20 = vld [vmem:[#allocation2 + $0x248] sm:$0xf]  ;;  %v9585_v18 = vor.u32 %v12609_v8, %v9584_v6  ;;  %v12413_v1 = vld [vmem:[#allocation2 + $0x458] sm:$0xf0] }
 0x16a   :  { %3164 = vmatpush.bf16.msra.mxu0 %v9553_v26  ;;  %v2914_v22 = vpop.f32.mrf.mxu0  ;;  %v12563_v26 = vld [vmem:[#allocation2 + $0x90c] sm:$0xf]  ;;  %v8549_v30 = vor.u32 %v12350_v21, %v8548_v20  ;;  %v2938_v2 = vpop.f32.mrf.mxu2  ;;  %v9332_v20 = vld [vmem:[#allocation2 + $0x868] sm:$0xf]  ;;  %v12546_v21 = vld [vmem:[#allocation2 + $0x880] sm:$0xf0] }
 0x16b   :  { %3177 = vmatpush.bf16.msra.mxu1 %v9777_v27  ;;  %v9410_v27 = vld [vmem:[#allocation2 + $0x924] sm:$0xf0]  ;;  %v12525_v6 = vld [vmem:[#allocation2 + $0x7d8] sm:$0xf0] }
 0x16c   :  { %3190 = vmatpush.bf16.msra.mxu2 %v8437_v28  ;;  %v12619_v28 = vld [vmem:[#allocation2 + $0xacc] sm:$0xf]  ;;  %v9413_v41 = vor.u32 %v12563_v26, %v9410_v27  ;;  %v9333_v27 = vor.u32 %v12546_v21, %v9332_v20  ;;  %v12518_v20 = vld [vmem:[#allocation2 + $0x7a0] sm:$0xf0] }
 0x16d   :  { %3203 = vmatpush.bf16.msra.mxu3 %v8661_v35  ;;  %v12287_v35 = vld [vmem:[#allocation2 + $0x68] sm:$0xf0] }
 0x16e   :  { %3165 = vmatpush.bf16.msra.mxu0 %v9525_v45  ;;  %v616_v45 = vperm.slane %v13691_v61, 3  ;;  %v8297_v47 = vor.u32 %v12287_v35, %v8296_v34  ;;  %v12497_v61 = vld [vmem:[#allocation2 + $0x6f8] sm:$0xf0]  ;;  %v12483_v35 = vld [vmem:[#allocation2 + $0x688] sm:$0xf0] }
 0x16f   :  { %3178 = vmatpush.bf16.msra.mxu1 %v9749_v46  ;;  %v2925_v46 = vpop.f32.mrf.mxu1 }
 0x170   :  { %3191 = vmatpush.bf16.msra.mxu2 %v8409_v0  ;;  %v9637_v0 = vor.u32 %v12619_v28, %v9634_v32  ;;  %v2926_v55 = vadd.f32 %v2925_v46, %v616_v45  ;;  %v8856_v28 = vld [vmem:[#allocation2 + $0x4b0] sm:$0xf]  ;;  %v12595_v45 = vld [vmem:[#allocation2 + $0xa08] sm:$0xf0] }
 0x171   :  { %3204 = vmatpush.bf16.msra.mxu3 %v8633_v50  ;;  %v8268_v50 = vld [vmem:[#allocation2 + $0x18] sm:$0xf]  ;;  %v9080_v32 = vld [vmem:[#allocation2 + $0x670] sm:$0xf] }
 0x172   :  { %3166 = vmatpush.bf16.msra.mxu0 %v9497_v57  ;;  %v12441_v57 = vld [vmem:[#allocation2 + $0x538] sm:$0xf0]  ;;  %v8269_v5 = vor.u32 %v12280_v52, %v8268_v50  ;;  %v2939_v10 = vadd.f32 %v2938_v2, %v2926_v55  ;;  %v9052_v50 = vld [vmem:[#allocation2 + $0x638] sm:$0xf]  ;;  %v12476_v52 = vld [vmem:[#allocation2 + $0x650] sm:$0xf0] }
 0x173   :  { %3179 = vmatpush.bf16.msra.mxu1 %v9721_v59  ;;  %v9136_v59 = vld [vmem:[#allocation2 + $0x6e0] sm:$0xf]  ;;  %v9500_v55 = vld [vmem:[#allocation2 + $0x9b8] sm:$0xf] }
 0x174   :  { %3192 = vmatpush.bf16.msra.mxu2 %v8381_v60  ;;  %v9385_v60 = vor.u32 %v12556_v42, %v9382_v44  ;;  %v9528_v44 = vld [vmem:[#allocation2 + $0x9f0] sm:$0xf]  ;;  %v9024_v2 = vld [vmem:[#allocation2 + $0x600] sm:$0xf] }
 0x175   :  { %3205 = vmatpush.bf16.msra.mxu3 %v8605_v3  ;;  %v2951_v3 = vpop.f32.mrf.mxu3 }
 0x176   :  { %3167 = vmatpush.bf16.msra.mxu0 %v9469_v11  ;;  %v8493_v11 = vor.u32 %v12336_v54, %v8492_v53  ;;  %v2952_v17 = vadd.f32 %v2951_v3, %v2939_v10  ;;  %v9276_v53 = vld [vmem:[#allocation2 + $0x7f8] sm:$0xf]  ;;  %v12532_v54 = vld [vmem:[#allocation2 + $0x810] sm:$0xf0]  ;;  %v9472_v10 = vld [vmem:[#allocation2 + $0x980] sm:$0xf] }
 0x177   :  { %3180 = vmatpush.bf16.msra.mxu1 %v9693_v40  ;;  %v8913_v40 = vor.u32 %v12441_v57, %v8912_v56  ;;  %v2927_v22 = vpop.f32.mrf.mxu1  ;;  %v12588_v56 = vld [vmem:[#allocation2 + $0x9d0] sm:$0xf0] }
 0x178   :  { %3193 = vmatpush.bf16.msra.mxu2 %v8353_v43  ;;  %v9137_v43 = vor.u32 %v12497_v61, %v9136_v59  ;;  %v9277_v61 = vor.u32 %v12532_v54, %v9276_v53  ;;  %v9501_v3 = vor.u32 %v12588_v56, %v9500_v55  ;;  %v9444_v22 = vld [vmem:[#allocation2 + $0x948] sm:$0xf]  ;;  %v12448_v53 = vld [vmem:[#allocation2 + $0x570] sm:$0xf0]  ;;  %v9164_v54 = vld [vmem:[#allocation2 + $0x718] sm:$0xf] }
 0x179   :  { %3206 = vmatpush.bf16.msra.mxu3 %v8577_v16  ;;  %v9108_v16 = vld [vmem:[#allocation2 + $0x6a8] sm:$0xf]  ;;  %v12504_v56 = vld [vmem:[#allocation2 + $0x730] sm:$0xf0] }
 0x17a   :  { %3168 = vmatpush.bf16.msra.mxu0 %v9441_v23  ;;  %v9556_v23 = vld [vmem:[#allocation2 + $0xa28] sm:$0xf]  ;;  %v9109_v26 = vor.u32 %v12490_v19, %v9108_v16 }
 0x17b   :  { %3181 = vmatpush.bf16.msra.mxu1 %v9665_v24  ;;  %v12602_v24 = vld [vmem:[#allocation2 + $0xa40] sm:$0xf0]  ;;  %v8996_v16 = vld [vmem:[#allocation2 + $0x5c8] sm:$0xf] }
 0x17c   :  { %3194 = vmatpush.bf16.msra.mxu2 %v8325_v25  ;;  %v8885_v25 = vor.u32 %v12434_v14, %v8884_v13  ;;  %v9557_v34 = vor.u32 %v12602_v24, %v9556_v23  ;;  %v8772_v13 = vld [vmem:[#allocation2 + $0x408] sm:$0xf]  ;;  %v12406_v14 = vld [vmem:[#allocation2 + $0x420] sm:$0xf0] }
 0x17d   :  { %3207 = vmatpush.bf16.msra.mxu3 %v8549_v30  ;;  %v12427_v30 = vld [vmem:[#allocation2 + $0x4c8] sm:$0xf0]  ;;  %v2953_v42 = vpop.f32.mrf.mxu3  ;;  %v9220_v19 = vld [vmem:[#allocation2 + $0x788] sm:$0xf]  ;;  %v12574_v23 = vld [vmem:[#allocation2 + $0x960] sm:$0xf0] }
 0x17e   :  { %3169 = vmatpush.bf16.msra.mxu0 %v9413_v41  ;;  %v2940_v41 = vpop.f32.mrf.mxu2  ;;  %v8857_v46 = vor.u32 %v12427_v30, %v8856_v28  ;;  %v12455_v42 = vld [vmem:[#allocation2 + $0x5a8] sm:$0xf0] }
 0x17f   :  { %3182 = vmatpush.bf16.msra.mxu1 %v9637_v0  ;;  %v9081_v0 = vor.u32 %v12483_v35, %v9080_v32  ;;  %v9221_v32 = vor.u32 %v12518_v20, %v9220_v19  ;;  %v12399_v35 = vld [vmem:[#allocation2 + $0x3e8] sm:$0xf0]  ;;  %v9445_v41 = vor.u32 %v12574_v23, %v9444_v22  ;;  %v9924_v19 = vld [vmem:[#allocation6 + $0xe0] sm:$0xf]  ;;  %v12695_v20 = vld [vmem:[#allocation6 + $0xe4] sm:$0xf0] }
 0x180   :  { %3195 = vmatpush.bf16.msra.mxu2 %v8297_v47  ;;  %v9305_v47 = vor.u32 %v12539_v39, %v9304_v38  ;;  %v8968_v38 = vld [vmem:[#allocation2 + $0x590] sm:$0xf] }
 0x181   :  { %3208 = vmatpush.bf16.msra.mxu3 %v8521_v51  ;;  %v9529_v51 = vor.u32 %v12595_v45, %v9528_v44  ;;  %v9192_v44 = vld [vmem:[#allocation2 + $0x750] sm:$0xf]  ;;  %v12511_v45 = vld [vmem:[#allocation2 + $0x768] sm:$0xf0] }
 0x182   :  { %3170 = vmatpush.bf16.msra.mxu0 %v9385_v60  ;;  %v2964_v57 = vpop.f32.mrf.mxu0  ;;  %v12711_v22 = vld [vmem:[#allocation6 + $0x164] sm:$0xf0] }
 0x183   :  { %3183 = vmatpush.bf16.msra.mxu1 %v9609_v4  ;;  %v2965_v59 = vadd.f32 %v2964_v57, %v2952_v17  ;;  %v2977_v60 = vpop.f32.mrf.mxu1  ;;  %v12469_v4 = vld [vmem:[#allocation2 + $0x618] sm:$0xf0]  ;;  %v9388_v57 = vld [vmem:[#allocation2 + $0x8d8] sm:$0xf] }
 0x184   :  { %3196 = vmatpush.bf16.msra.mxu2 %v8269_v5  ;;  %v9248_v5 = vld [vmem:[#allocation2 + $0x7c0] sm:$0xf] }
 0x185   :  { %3209 = vmatpush.bf16.msra.mxu3 %v8493_v11  ;;  %3171 = vmatmul.bf16.vlgmr.msra.gmra.mxu0 %v13650_v37  ;;  %v2978_v8 = vadd.f32 %v2977_v60, %v2965_v59  ;;  %v12581_v11 = vld [vmem:[#allocation2 + $0x998] sm:$0xf0]  ;;  %v9808_v60 = vld [vmem:[#allocation2 + $0xc20] sm:$0xf] }
 0x186   :  { %3215 = vmatpush.bf16.msrb.mxu0 %v8913_v40  ;;  %3184 = vmatmul.bf16.vlgmr.msra.gmra.mxu1 %v13646_v33  ;;  %v8801_v40 = vor.u32 %v12413_v1, %v8800_v62  ;;  %v9473_v17 = vor.u32 %v12581_v11, %v9472_v10  ;;  %v12713_v10 = vld [vmem:[#allocation6 + $0x174] sm:$0xf0] }
 0x187   :  { %3228 = vmatpush.bf16.msrb.mxu1 %v9137_v43  ;;  %3197 = vmatmul.bf16.vlgmr.msra.gmra.mxu2 %v13622_v9  ;;  %v8829_v9 = vor.u32 %v12420_v49, %v8828_v48  ;;  %v9025_v43 = vor.u32 %v12469_v4, %v9024_v2  ;;  %v8716_v48 = vld [vmem:[#allocation2 + $0x398] sm:$0xf]  ;;  %v12392_v49 = vld [vmem:[#allocation2 + $0x3b0] sm:$0xf0]  ;;  %v12681_v2 = vld [vmem:[#allocation6 + $0x74] sm:$0xf0] }
 0x188   :  { %3241 = vmatpush.bf16.msrb.mxu2 %v9361_v12  ;;  %3210 = vmatmul.bf16.vlgmr.msra.gmra.mxu3 %v13627_v15  ;;  %v9053_v15 = vor.u32 %v12476_v52, %v9052_v50  ;;  %v9249_v12 = vor.u32 %v12525_v6, %v9248_v5  ;;  %v8969_v50 = vor.u32 %v12455_v42, %v8968_v38  ;;  %v8940_v52 = vld [vmem:[#allocation2 + $0x558] sm:$0xf]  ;;  %v12697_v4 = vld [vmem:[#allocation6 + $0xf4] sm:$0xf0] }
 0x189   :  { %3254 = vmatpush.bf16.msrb.mxu3 %v9585_v18  ;;  %v12462_v18 = vld [vmem:[#allocation2 + $0x5e0] sm:$0xf0]  ;;  %v8717_v1 = vor.u32 %v12392_v49, %v8716_v48  ;;  %v8941_v5 = vor.u32 %v12448_v53, %v8940_v52  ;;  %v9165_v6 = vor.u32 %v12504_v56, %v9164_v54  ;;  %v9980_v38 = vld [vmem:[#allocation6 + $0x150] sm:$0xf]  ;;  %v12675_v48 = vld [vmem:[#allocation6 + $0x44] sm:$0xf0] }
 0x18a   :  { %3216 = vmatpush.bf16.msrb.mxu0 %v8885_v25  ;;  %v2990_v21 = vpop.f32.mrf.mxu2  ;;  %v2966_v24 = vpop.f32.mrf.mxu0  ;;  %v8997_v30 = vor.u32 %v12462_v18, %v8996_v16  ;;  %v9860_v16 = vld [vmem:[#allocation6 + $0x60] sm:$0xf]  ;;  %v12679_v18 = vld [vmem:[#allocation6 + $0x64] sm:$0xf0]  ;;  %v12637_v56 = vld [vmem:[#allocation2 + $0xb58] sm:$0xf0] }
 0x18b   :  { %3229 = vmatpush.bf16.msrb.mxu1 %v9109_v26  ;;  %v2991_v25 = vadd.f32 %v2990_v21, %v2978_v8  ;;  %v3003_v26 = vpop.f32.mrf.mxu3  ;;  %v2979_v28 = vpop.f32.mrf.mxu1  ;;  %v9996_v8 = vld [vmem:[#allocation6 + $0x170] sm:$0xf]  ;;  %v9988_v21 = vld [vmem:[#allocation6 + $0x160] sm:$0xf]  ;;  %v9861_v24 = vor.u32 %v12679_v18, %v9860_v16 }
 0x18c   :  { %3242 = vmatpush.bf16.msrb.mxu2 %v9333_v27  ;;  %v8773_v27 = vor.u32 %v12406_v14, %v8772_v13  ;;  %v9780_v13 = vld [vmem:[#allocation2 + $0xbe8] sm:$0xf]  ;;  %v12658_v14 = vld [vmem:[#allocation2 + $0xc00] sm:$0xf0]  ;;  %v9852_v28 = vld [vmem:[#allocation6 + $0x50] sm:$0xf] }
 0x18d   :  { %3255 = vmatpush.bf16.msrb.mxu3 %v9557_v34  ;;  %v8744_v34 = vld [vmem:[#allocation2 + $0x3d0] sm:$0xf]  ;;  %v13712_v39 = vadd.f32 %v3003_v26, %v2991_v25  ;;  %v9781_v23 = vor.u32 %v12658_v14, %v9780_v13  ;;  %v9925_v25 = vor.u32 %v12695_v20, %v9924_v19  ;;  %v9908_v49 = vld [vmem:[#allocation6 + $0xc0] sm:$0xf] }
 0x18e   :  { %3217 = vmatpush.bf16.msrb.mxu0 %v8857_v46  ;;  %v9416_v46 = vld [vmem:[#allocation2 + $0x910] sm:$0xf] }
 0x18f   :  { %3230 = vmatpush.bf16.msrb.mxu1 %v9081_v0  ;;  %v12567_v0 = vld [vmem:[#allocation2 + $0x928] sm:$0xf0]  ;;  %v9752_v26 = vld [vmem:[#allocation2 + $0xbb0] sm:$0xf] }
 0x190   :  { %3243 = vmatpush.bf16.msrb.mxu2 %v9305_v47  ;;  %v8745_v47 = vor.u32 %v12399_v35, %v8744_v34  ;;  %v9417_v55 = vor.u32 %v12567_v0, %v9416_v46  ;;  %v9916_v34 = vld [vmem:[#allocation6 + $0xd0] sm:$0xf]  ;;  %v12693_v35 = vld [vmem:[#allocation6 + $0xd4] sm:$0xf0]  ;;  %v12644_v0 = vld [vmem:[#allocation2 + $0xb90] sm:$0xf0] }
 0x191   :  { %3256 = vmatpush.bf16.msrb.mxu3 %v9529_v51  ;;  %v9193_v51 = vor.u32 %v12511_v45, %v9192_v44  ;;  %v9917_v45 = vor.u32 %v12693_v35, %v9916_v34  ;;  %v9724_v46 = vld [vmem:[#allocation2 + $0xb78] sm:$0xf]  ;;  %v12703_v13 = vld [vmem:[#allocation6 + $0x124] sm:$0xf0] }
 0x192   :  { %3218 = vmatpush.bf16.msrb.mxu0 %v8829_v9  ;;  %v12560_v9 = vld [vmem:[#allocation2 + $0x8f0] sm:$0xf0]  ;;  %v2992_v59 = vpop.f32.mrf.mxu2  ;;  %v9612_v34 = vld [vmem:[#allocation2 + $0xa98] sm:$0xf] }
 0x193   :  { %3231 = vmatpush.bf16.msrb.mxu1 %v9053_v15  ;;  %v12665_v15 = vld [vmem:[#allocation2 + $0xc38] sm:$0xf0]  ;;  %v3005_v62 = vpop.f32.mrf.mxu3  ;;  %v9389_v11 = vor.u32 %v12560_v9, %v9388_v57  ;;  %v9836_v57 = vld [vmem:[#allocation6 + $0x30] sm:$0xf]  ;;  %v12673_v59 = vld [vmem:[#allocation6 + $0x34] sm:$0xf0] }
 0x194   :  { %3244 = vmatpush.bf16.msrb.mxu2 %v9277_v61  ;;  %v9868_v61 = vld [vmem:[#allocation6 + $0x70] sm:$0xf]  ;;  %v12705_v62 = vld [vmem:[#allocation6 + $0x134] sm:$0xf0] }
 0x195   :  { %3257 = vmatpush.bf16.msrb.mxu3 %v9501_v3  ;;  %v9932_v3 = vld [vmem:[#allocation6 + $0xf0] sm:$0xf] }
 0x196   :  { %3219 = vmatpush.bf16.msrb.mxu0 %v8801_v40  ;;  %v9809_v40 = vor.u32 %v12665_v15, %v9808_v60  ;;  %v9900_v60 = vld [vmem:[#allocation6 + $0xb0] sm:$0xf]  ;;  %v12689_v15 = vld [vmem:[#allocation6 + $0xb4] sm:$0xf0] }
 0x197   :  { %3232 = vmatpush.bf16.msrb.mxu1 %v9025_v43  ;;  %v9869_v43 = vor.u32 %v12681_v2, %v9868_v61  ;;  %v9964_v61 = vld [vmem:[#allocation6 + $0x130] sm:$0xf]  ;;  %v9837_v2 = vor.u32 %v12673_v59, %v9836_v57  ;;  %v3281_v59 = vmax.f32 %v13689_v7, 0.0 }
 0x198   :  { %3245 = vmatpush.bf16.msrb.mxu2 %v9249_v12  ;;  %v9933_v12 = vor.u32 %v12697_v4, %v9932_v3  ;;  %v9901_v3 = vor.u32 %v12689_v15, %v9900_v60  ;;  %v9668_v4 = vld [vmem:[#allocation2 + $0xb08] sm:$0xf] }
 0x199   :  { %3258 = vmatpush.bf16.msrb.mxu3 %v9473_v17  ;;  %v9997_v17 = vor.u32 %v12713_v10, %v9996_v8  ;;  %v9965_v10 = vor.u32 %v12705_v62, %v9964_v61  ;;  %v3282_v61 = vmax.f32 %v13705_v58, 0.0 }
 0x19a   :  { %3220 = vmatpush.bf16.msrb.mxu0 %v8773_v27  ;;  %v12651_v27 = vld [vmem:[#allocation2 + $0xbc8] sm:$0xf0] }
 0x19b   :  { %3233 = vmatpush.bf16.msrb.mxu1 %v8997_v30  ;;  %v9989_v30 = vor.u32 %v12711_v22, %v9988_v21  ;;  %v9753_v42 = vor.u32 %v12651_v27, %v9752_v26  ;;  %v9640_v21 = vld [vmem:[#allocation2 + $0xad0] sm:$0xf]  ;;  %v12623_v22 = vld [vmem:[#allocation2 + $0xae8] sm:$0xf0]  ;;  %v9884_v26 = vld [vmem:[#allocation6 + $0x90] sm:$0xf]  ;;  %v13737_v58 = vpack.c.bf16 %v3282_v61, %v3282_v61 }
 0x19c   :  { %3246 = vmatpush.bf16.msrb.mxu2 %v9221_v32  ;;  %v12677_v32 = vld [vmem:[#allocation6 + $0x54] sm:$0xf0] }
 0x19d   :  { %3259 = vmatpush.bf16.msrb.mxu3 %v9445_v41  ;;  %v12709_v41 = vld [vmem:[#allocation6 + $0x154] sm:$0xf0]  ;;  %v9853_v44 = vor.u32 %v12677_v32, %v9852_v28  ;;  %v9948_v28 = vld [vmem:[#allocation6 + $0x110] sm:$0xf]  ;;  %v9641_v32 = vor.u32 %v12623_v22, %v9640_v21  ;;  %v10036_v21 = vld [vmem:[#allocation6 + $0x1c0] sm:$0xf] }
 0x19e   :  { %3221 = vmatpush.bf16.msrb.mxu0 %v8745_v47  ;;  %v9981_v47 = vor.u32 %v12709_v41, %v9980_v38  ;;  %v12685_v27 = vld [vmem:[#allocation6 + $0x94] sm:$0xf0]  ;;  %v12616_v41 = vld [vmem:[#allocation2 + $0xab0] sm:$0xf0]  ;;  %v12723_v22 = vld [vmem:[#allocation6 + $0x1c4] sm:$0xf0] }
 0x19f   :  { %3234 = vmatpush.bf16.msrb.mxu1 %v8969_v50  ;;  %v12691_v50 = vld [vmem:[#allocation6 + $0xc4] sm:$0xf0]  ;;  %v9885_v38 = vor.u32 %v12685_v27, %v9884_v26 }
 0x1a0   :  { %3247 = vmatpush.bf16.msrb.mxu2 %v9193_v51  ;;  %v9972_v51 = vld [vmem:[#allocation6 + $0x140] sm:$0xf]  ;;  %v9909_v54 = vor.u32 %v12691_v50, %v9908_v49  ;;  %v10060_v49 = vld [vmem:[#allocation6 + $0x1f0] sm:$0xf]  ;;  %v12729_v50 = vld [vmem:[#allocation6 + $0x1f4] sm:$0xf0] }
 0x1a1   :  { %3260 = vmatpush.bf16.msrb.mxu3 %v9417_v55  ;;  %v9696_v55 = vld [vmem:[#allocation2 + $0xb40] sm:$0xf]  ;;  %v10061_v15 = vor.u32 %v12729_v50, %v10060_v49  ;;  %v12739_v26 = vld [vmem:[#allocation6 + $0x244] sm:$0xf0] }
 0x1a2   :  { %3222 = vmatpush.bf16.msrb.mxu0 %v8717_v1  ;;  %v13718_v52 = vpop.f32.mrf.mxu0  ;;  %v9697_v1 = vor.u32 %v12637_v56, %v9696_v55 }
 0x1a3   :  { %3235 = vmatpush.bf16.msrb.mxu1 %v8941_v5  ;;  %v13720_v53 = vpop.f32.mrf.mxu1  ;;  %v12630_v5 = vld [vmem:[#allocation2 + $0xb20] sm:$0xf0] }
 0x1a4   :  { %3248 = vmatpush.bf16.msrb.mxu2 %v9165_v6  ;;  %v9828_v6 = vld [vmem:[#allocation6 + $0x20] sm:$0xf]  ;;  %v9669_v16 = vor.u32 %v12630_v5, %v9668_v4  ;;  %v12743_v5 = vld [vmem:[#allocation6 + $0x264] sm:$0xf0] }
 0x1a5   :  { %3261 = vmatpush.bf16.msrb.mxu3 %v9389_v11  ;;  %3223 = vmatmul.bf16.vlgmr.msrb.gmra.mxu0 %v13616_v63  ;;  %v9844_v63 = vld [vmem:[#allocation6 + $0x40] sm:$0xf]  ;;  %v12671_v11 = vld [vmem:[#allocation6 + $0x24] sm:$0xf0] }
 0x1a6   :  { %3267 = vmatpush.bf16.msra.mxu0 %v9809_v40  ;;  %3236 = vmatmul.bf16.vlgmr.msrb.gmra.mxu1 %v13634_v31  ;;  %v9725_v31 = vor.u32 %v12644_v0, %v9724_v46  ;;  %v9892_v40 = vld [vmem:[#allocation6 + $0xa0] sm:$0xf]  ;;  %v9829_v19 = vor.u32 %v12671_v11, %v9828_v6  ;;  %v12761_v11 = vld [vmem:[#allocation6 + $0x2f4] sm:$0xf0] }
 0x1a7   :  { %3972 = vmatpush.bf16.msra.mxu1 %v9869_v43  ;;  %3249 = vmatmul.bf16.vlgmr.msrb.gmra.mxu2 %v13648_v36  ;;  %v12707_v36 = vld [vmem:[#allocation6 + $0x144] sm:$0xf0]  ;;  %v9876_v0 = vld [vmem:[#allocation6 + $0x80] sm:$0xf] }
 0x1a8   :  { %3985 = vmatpush.bf16.msra.mxu2 %v9933_v12  ;;  %3262 = vmatmul.bf16.vlgmr.msrb.gmra.mxu3 %v13650_v37  ;;  %v9845_v37 = vor.u32 %v12675_v48, %v9844_v63  ;;  %v9973_v9 = vor.u32 %v12707_v36, %v9972_v51  ;;  %v12687_v43 = vld [vmem:[#allocation6 + $0xa4] sm:$0xf0]  ;;  %v9956_v12 = vld [vmem:[#allocation6 + $0x120] sm:$0xf]  ;;  %v9613_v36 = vor.u32 %v12616_v41, %v9612_v34 }
 0x1a9   :  { %3998 = vmatpush.bf16.msra.mxu3 %v9997_v17  ;;  %v9893_v20 = vor.u32 %v12687_v43, %v9892_v40  ;;  %v12683_v63 = vld [vmem:[#allocation6 + $0x84] sm:$0xf0]  ;;  %v10116_v4 = vld [vmem:[#allocation6 + $0x260] sm:$0xf]  ;;  %v12725_v43 = vld [vmem:[#allocation6 + $0x1d4] sm:$0xf0] }
 0x1aa   :  { %3268 = vmatpush.bf16.msra.mxu0 %v9781_v23  ;;  %v13722_v8 = vpop.f32.mrf.mxu2  ;;  %v3018_v17 = vpop.f32.mrf.mxu0  ;;  %v9820_v23 = vld [vmem:[#allocation6 + $0x10] sm:$0xf]  ;;  %v12699_v48 = vld [vmem:[#allocation6 + $0x104] sm:$0xf0]  ;;  %v9877_v57 = vor.u32 %v12683_v63, %v9876_v0  ;;  %v10117_v40 = vor.u32 %v12743_v5, %v10116_v4  ;;  %v10148_v4 = vld [vmem:[#allocation6 + $0x2a0] sm:$0xf] }
 0x1ab   :  { %3973 = vmatpush.bf16.msra.mxu1 %v9861_v24  ;;  %v13724_v14 = vpop.f32.mrf.mxu3  ;;  %v3031_v18 = vpop.f32.mrf.mxu1  ;;  %v9957_v24 = vor.u32 %v12703_v13, %v9956_v12  ;;  %v12741_v17 = vld [vmem:[#allocation6 + $0x254] sm:$0xf0]  ;;  %v12755_v0 = vld [vmem:[#allocation6 + $0x2c4] sm:$0xf0] }
 0x1ac   :  { %3986 = vmatpush.bf16.msra.mxu2 %v9925_v25  ;;  %v12669_v25 = vld [vmem:[#allocation6 + $0x14] sm:$0xf0]  ;;  %v12751_v5 = vld [vmem:[#allocation6 + $0x2a4] sm:$0xf0] }
 0x1ad   :  { %3999 = vmatpush.bf16.msra.mxu3 %v9989_v30  ;;  %v12701_v30 = vld [vmem:[#allocation6 + $0x114] sm:$0xf0]  ;;  %v9821_v35 = vor.u32 %v12669_v25, %v9820_v23  ;;  %v10100_v25 = vld [vmem:[#allocation6 + $0x240] sm:$0xf] }
 0x1ae   :  { %3269 = vmatpush.bf16.msra.mxu0 %v9753_v42  ;;  %v9812_v42 = vld [vmem:[#allocation6] sm:$0xf]  ;;  %v9949_v46 = vor.u32 %v12701_v30, %v9948_v28  ;;  %v10172_v30 = vld [vmem:[#allocation6 + $0x2d0] sm:$0xf]  ;;  %v10101_v34 = vor.u32 %v12739_v26, %v10100_v25 }
 0x1af   :  { %3974 = vmatpush.bf16.msra.mxu1 %v9853_v44  ;;  %v12667_v44 = vld [vmem:[#allocation6 + $0x4] sm:$0xf0] }
 0x1b0   :  { %3987 = vmatpush.bf16.msra.mxu2 %v9917_v45  ;;  %v9813_v56 = vor.u32 %v12667_v44, %v9812_v42  ;;  %v10092_v44 = vld [vmem:[#allocation6 + $0x230] sm:$0xf] }
 0x1b1   :  { %4000 = vmatpush.bf16.msra.mxu3 %v9981_v47  ;;  %v9940_v47 = vld [vmem:[#allocation6 + $0x100] sm:$0xf] }
 0x1b2   :  { %3270 = vmatpush.bf16.msra.mxu0 %v9725_v31  ;;  %v3044_v45 = vpop.f32.mrf.mxu2  ;;  %v10124_v31 = vld [vmem:[#allocation6 + $0x270] sm:$0xf]  ;;  %v9941_v60 = vor.u32 %v12699_v48, %v9940_v47  ;;  %v10020_v47 = vld [vmem:[#allocation6 + $0x1a0] sm:$0xf]  ;;  %v12719_v48 = vld [vmem:[#allocation6 + $0x1a4] sm:$0xf0] }
 0x1b3   :  { %3975 = vmatpush.bf16.msra.mxu1 %v9845_v37  ;;  %v3057_v51 = vpop.f32.mrf.mxu3  ;;  %v12745_v37 = vld [vmem:[#allocation6 + $0x274] sm:$0xf0] }
 0x1b4   :  { %3988 = vmatpush.bf16.msra.mxu2 %v9909_v54  ;;  %v13726_v54 = vld [vmem:[#allocation4] sm:$0xff]  ;;  %v10125_v62 = vor.u32 %v12745_v37, %v10124_v31  ;;  %v12735_v31 = vld [vmem:[#allocation6 + $0x224] sm:$0xf0]  ;;  %v10021_v37 = vor.u32 %v12719_v48, %v10020_v47  ;;  %v12692_v47 = vld [vmem:[#allocation6 + $0xd4] sm:$0xf] }
 0x1b5   :  { %4001 = vmatpush.bf16.msra.mxu3 %v9973_v9  ;;  %v617_v55 = vperm.slane %v13726_v54, 4  ;;  %v3280_v9 = vmax.f32 %v13675_v29, 0.0  ;;  %v13735_v29 = vpack.c.bf16 %v3281_v59, %v3281_v59  ;;  %v12737_v45 = vld [vmem:[#allocation6 + $0x234] sm:$0xf0]  ;;  %v10012_v59 = vld [vmem:[#allocation6 + $0x190] sm:$0xf] }
 0x1b6   :  { %3271 = vmatpush.bf16.msra.mxu0 %v9697_v1  ;;  %v10052_v1 = vld [vmem:[#allocation6 + $0x1e0] sm:$0xf]  ;;  %v10093_v63 = vor.u32 %v12737_v45, %v10092_v44  ;;  %v9918_v48 = vld [vmem:[#allocation6 + $0xd8] sm:$0xf0] }
 0x1b7   :  { %3976 = vmatpush.bf16.msra.mxu1 %v9837_v2  ;;  %v12727_v2 = vld [vmem:[#allocation6 + $0x1e4] sm:$0xf0]  ;;  %v13733_v6 = vpack.c.bf16 %v3280_v9, %v3280_v9 }
 0x1b8   :  { %3989 = vmatpush.bf16.msra.mxu2 %v9901_v3  ;;  %v3017_v3 = vadd.f32 %v13718_v52, %v617_v55  ;;  %v10053_v7 = vor.u32 %v12727_v2, %v10052_v1  ;;  %v10044_v52 = vld [vmem:[#allocation6 + $0x1d0] sm:$0xf]  ;;  %v12733_v1 = vld [vmem:[#allocation6 + $0x214] sm:$0xf0] }
 0x1b9   :  { %4002 = vmatpush.bf16.msra.mxu3 %v9965_v10  ;;  %v10188_v10 = vld [vmem:[#allocation6 + $0x2f0] sm:$0xf]  ;;  %v10045_v18 = vor.u32 %v12725_v43, %v10044_v52  ;;  %v10149_v52 = vor.u32 %v12751_v5, %v10148_v4  ;;  %v12688_v5 = vld [vmem:[#allocation6 + $0xb4] sm:$0xf] }
 0x1ba   :  { %3272 = vmatpush.bf16.msra.mxu0 %v9669_v16  ;;  %v10189_v12 = vor.u32 %v12761_v11, %v10188_v10  ;;  %v3030_v13 = vadd.f32 %v13720_v53, %v3017_v3  ;;  %v10108_v16 = vld [vmem:[#allocation6 + $0x250] sm:$0xf]  ;;  %v10037_v53 = vor.u32 %v12723_v22, %v10036_v21  ;;  %v10004_v10 = vld [vmem:[#allocation6 + $0x180] sm:$0xf]  ;;  %v12715_v11 = vld [vmem:[#allocation6 + $0x184] sm:$0xf0] }
 0x1bb   :  { %3977 = vmatpush.bf16.msra.mxu1 %v9829_v19  ;;  %v10180_v19 = vld [vmem:[#allocation6 + $0x2e0] sm:$0xf]  ;;  %v12749_v21 = vld [vmem:[#allocation6 + $0x294] sm:$0xf0]  ;;  %v3283_v22 = vmax.f32 %v13712_v39, 0.0 }
 0x1bc   :  { %3990 = vmatpush.bf16.msra.mxu2 %v9893_v20  ;;  %v12759_v20 = vld [vmem:[#allocation6 + $0x2e4] sm:$0xf0] }
 0x1bd   :  { %4003 = vmatpush.bf16.msra.mxu3 %v9957_v24  ;;  %v10181_v23 = vor.u32 %v12759_v20, %v10180_v19  ;;  %v3043_v24 = vadd.f32 %v13722_v8, %v3030_v13  ;;  %v12731_v13 = vld [vmem:[#allocation6 + $0x204] sm:$0xf0]  ;;  %v9934_v19 = vld [vmem:[#allocation6 + $0xf8] sm:$0xf0]  ;;  %v10005_v20 = vor.u32 %v12715_v11, %v10004_v10  ;;  %v12706_v11 = vld [vmem:[#allocation6 + $0x144] sm:$0xf] }
 0x1be   :  { %3273 = vmatpush.bf16.msra.mxu0 %v9641_v32  ;;  %v12757_v32 = vld [vmem:[#allocation6 + $0x2d4] sm:$0xf0] }
 0x1bf   :  { %3978 = vmatpush.bf16.msra.mxu1 %v9821_v35  ;;  %v10028_v35 = vld [vmem:[#allocation6 + $0x1b0] sm:$0xf]  ;;  %v10173_v41 = vor.u32 %v12757_v32, %v10172_v30  ;;  %v3056_v42 = vadd.f32 %v13724_v14, %v3043_v24  ;;  %v12694_v32 = vld [vmem:[#allocation6 + $0xe4] sm:$0xf] }
 0x1c0   :  { %3991 = vmatpush.bf16.msra.mxu2 %v9885_v38  ;;  %v12721_v38 = vld [vmem:[#allocation6 + $0x1b4] sm:$0xf0] }
 0x1c1   :  { %4004 = vmatpush.bf16.msra.mxu3 %v9949_v46  ;;  %v10029_v8 = vor.u32 %v12721_v38, %v10028_v35  ;;  %v10164_v46 = vld [vmem:[#allocation6 + $0x2c0] sm:$0xf]  ;;  %v12747_v38 = vld [vmem:[#allocation6 + $0x284] sm:$0xf0] }
 0x1c2   :  { %3274 = vmatpush.bf16.msra.mxu0 %v9613_v36  ;;  %v3068_v27 = vpop.f32.mrf.mxu0  ;;  %v10165_v50 = vor.u32 %v12755_v0, %v10164_v46  ;;  %v10084_v36 = vld [vmem:[#allocation6 + $0x220] sm:$0xf]  ;;  %v9854_v46 = vld [vmem:[#allocation6 + $0x58] sm:$0xf0]  ;;  %v12712_v0 = vld [vmem:[#allocation6 + $0x174] sm:$0xf] }
 0x1c3   :  { %3979 = vmatpush.bf16.msra.mxu1 %v9813_v56  ;;  %v3081_v28 = vpop.f32.mrf.mxu1  ;;  %v3069_v51 = vadd.f32 %v3068_v27, %v3056_v42  ;;  %v10156_v56 = vld [vmem:[#allocation6 + $0x2b0] sm:$0xf]  ;;  %v10085_v9 = vor.u32 %v12735_v31, %v10084_v36  ;;  %v12678_v27 = vld [vmem:[#allocation6 + $0x64] sm:$0xf]  ;;  %v10132_v35 = vld [vmem:[#allocation6 + $0x280] sm:$0xf]  ;;  %v9921_v31 = vor.u32 %v12692_v47, %v9918_v48 }
 0x1c4   :  { %3992 = vmatpush.bf16.msra.mxu2 %v9877_v57  ;;  %v12753_v57 = vld [vmem:[#allocation6 + $0x2b4] sm:$0xf0]  ;;  %v12676_v42 = vld [vmem:[#allocation6 + $0x54] sm:$0xf]  ;;  %v10133_v44 = vor.u32 %v12747_v38, %v10132_v35  ;;  %v9990_v36 = vld [vmem:[#allocation6 + $0x168] sm:$0xf0] }
 0x1c5   :  { %4005 = vmatpush.bf16.msra.mxu3 %v9941_v60  ;;  %3275 = vmatmul.bf16.vlgmr.msra.gmra.mxu0 %v13646_v33  ;;  %v10109_v33 = vor.u32 %v12741_v17, %v10108_v16  ;;  %v12717_v60 = vld [vmem:[#allocation6 + $0x194] sm:$0xf0]  ;;  %v3082_v61 = vadd.f32 %v3081_v28, %v3069_v51  ;;  %v12680_v16 = vld [vmem:[#allocation6 + $0x74] sm:$0xf]  ;;  %v9870_v17 = vld [vmem:[#allocation6 + $0x78] sm:$0xf0] }
 0x1c6   :  { %4011 = vmatpush.bf16.msrb.mxu0 %v10061_v15  ;;  %3980 = vmatmul.bf16.vlgmr.msra.gmra.mxu1 %v13733_v6  ;;  %v10157_v15 = vor.u32 %v12753_v57, %v10156_v56  ;;  %v10013_v3 = vor.u32 %v12717_v60, %v10012_v59  ;;  %v9873_v24 = vor.u32 %v12680_v16, %v9870_v17  ;;  %v9862_v28 = vld [vmem:[#allocation6 + $0x68] sm:$0xf0]  ;;  %v12710_v51 = vld [vmem:[#allocation6 + $0x164] sm:$0xf]  ;;  %v12708_v60 = vld [vmem:[#allocation6 + $0x154] sm:$0xf] }
 0x1c7   :  { %4024 = vmatpush.bf16.msrb.mxu1 %v10125_v62  ;;  %3993 = vmatmul.bf16.vlgmr.msra.gmra.mxu2 %v13735_v29  ;;  %v10076_v62 = vld [vmem:[#allocation6 + $0x210] sm:$0xf]  ;;  %v9865_v39 = vor.u32 %v12678_v27, %v9862_v28  ;;  %v12690_v56 = vld [vmem:[#allocation6 + $0xc4] sm:$0xf]  ;;  %v9910_v57 = vld [vmem:[#allocation6 + $0xc8] sm:$0xf0] }
 0x1c8   :  { %4006 = vmatmul.bf16.vlgmr.msra.gmra.mxu3 %v13737_v58  ;;  %4037 = vmatpush.bf16.msrb.mxu2 %v10189_v12  ;;  %v12686_v16 = vld [vmem:[#allocation6 + $0xa4] sm:$0xf]  ;;  %v9894_v17 = vld [vmem:[#allocation6 + $0xa8] sm:$0xf0]  ;;  %v12684_v28 = vld [vmem:[#allocation6 + $0x94] sm:$0xf] }
 0x1c9   :  { %v12702_v35 = vld [vmem:[#allocation6 + $0x124] sm:$0xf]  ;;  %v9958_v38 = vld [vmem:[#allocation6 + $0x128] sm:$0xf0]  ;;  %v10126_v47 = vld [vmem:[#allocation6 + $0x278] sm:$0xf0] }
 0x1ca   :  { %4012 = vmatpush.bf16.msrb.mxu0 %v10053_v7  ;;  %v3094_v49 = vpop.f32.mrf.mxu2  ;;  %v3070_v14 = vpop.f32.mrf.mxu0  ;;  %v10077_v7 = vor.u32 %v12733_v1, %v10076_v62  ;;  %v12672_v62 = vld [vmem:[#allocation6 + $0x34] sm:$0xf]  ;;  %v9838_v1 = vld [vmem:[#allocation6 + $0x38] sm:$0xf0] }
 0x1cb   :  { %4025 = vmatpush.bf16.msrb.mxu1 %v10117_v40  ;;  %v3083_v55 = vpop.f32.mrf.mxu1  ;;  %v13746_v2 = vpop.f32.mrf.mxu3  ;;  %v10068_v40 = vld [vmem:[#allocation6 + $0x200] sm:$0xf]  ;;  %v3095_v12 = vadd.f32 %v3094_v49, %v3082_v61  ;;  %v9846_v14 = vld [vmem:[#allocation6 + $0x48] sm:$0xf0]  ;;  %v9913_v61 = vor.u32 %v12690_v56, %v9910_v57  ;;  %v9841_v10 = vor.u32 %v12672_v62, %v9838_v1  ;;  %v10252_v62 = vld [vmem:[#allocation6 + $0x370] sm:$0xf] }
 0x1cc   :  { %4038 = vmatpush.bf16.msrb.mxu2 %v10181_v23  ;;  %v10069_v23 = vor.u32 %v12731_v13, %v10068_v40  ;;  %v9993_v55 = vor.u32 %v12710_v51, %v9990_v36  ;;  %v9974_v40 = vld [vmem:[#allocation6 + $0x148] sm:$0xf0]  ;;  %v12700_v36 = vld [vmem:[#allocation6 + $0x114] sm:$0xf]  ;;  %v12777_v1 = vld [vmem:[#allocation6 + $0x374] sm:$0xf0] }
 0x1cd   :  { %v3284_v26 = vmax.f32 %v3095_v12, 0.0  ;;  %v9830_v12 = vld [vmem:[#allocation6 + $0x28] sm:$0xf0]  ;;  %v9977_v13 = vor.u32 %v12706_v11, %v9974_v40  ;;  %v10244_v40 = vld [vmem:[#allocation6 + $0x360] sm:$0xf] }
 0x1ce   :  { %4013 = vmatpush.bf16.msrb.mxu0 %v10045_v18  ;;  %v12696_v18 = vld [vmem:[#allocation6 + $0xf4] sm:$0xf] }
 0x1cf   :  { %4026 = vmatpush.bf16.msrb.mxu1 %v10109_v33  ;;  %v10140_v33 = vld [vmem:[#allocation6 + $0x290] sm:$0xf]  ;;  %v13751_v45 = vpack.c.bf16 %v3284_v26, %v3284_v26  ;;  %v9822_v26 = vld [vmem:[#allocation6 + $0x18] sm:$0xf0] }
 0x1d0   :  { %4039 = vmatpush.bf16.msrb.mxu2 %v10173_v41  ;;  %v10141_v25 = vor.u32 %v12749_v21, %v10140_v33  ;;  %v13749_v41 = vpack.c.bf16 %v3283_v22, %v3283_v22  ;;  %v12704_v22 = vld [vmem:[#allocation6 + $0x134] sm:$0xf] }
 0x1d2   :  { %4014 = vmatpush.bf16.msrb.mxu0 %v10037_v53  ;;  %v3096_v43 = vpop.f32.mrf.mxu2  ;;  %v9937_v53 = vor.u32 %v12696_v18, %v9934_v19  ;;  %v618_v18 = vperm.slane %v13726_v54, 5 }
 0x1d3   :  { %4027 = vmatpush.bf16.msrb.mxu1 %v10101_v34  ;;  %v3109_v30 = vpop.f32.mrf.mxu3  ;;  %v9926_v34 = vld [vmem:[#allocation6 + $0xe8] sm:$0xf0]  ;;  %v12670_v43 = vld [vmem:[#allocation6 + $0x24] sm:$0xf] }
 0x1d4   :  { %4040 = vmatpush.bf16.msrb.mxu2 %v10165_v50  ;;  %v9857_v50 = vor.u32 %v12676_v42, %v9854_v46  ;;  %v9886_v30 = vld [vmem:[#allocation6 + $0x98] sm:$0xf0]  ;;  %v12666_v42 = vld [vmem:[#allocation6 + $0x4] sm:$0xf]  ;;  %v9961_v46 = vor.u32 %v12702_v35, %v9958_v38  ;;  %v12752_v38 = vld [vmem:[#allocation6 + $0x2b4] sm:$0xf] }
 0x1d5   :  { %v10094_v35 = vld [vmem:[#allocation6 + $0x238] sm:$0xf0] }
 0x1d6   :  { %4015 = vmatpush.bf16.msrb.mxu0 %v10029_v8  ;;  %v9929_v8 = vor.u32 %v12694_v32, %v9926_v34  ;;  %v3108_v32 = vadd.f32 %v13746_v2, %v618_v18  ;;  %v10174_v18 = vld [vmem:[#allocation6 + $0x2d8] sm:$0xf0] }
 0x1d7   :  { %4028 = vmatpush.bf16.msrb.mxu1 %v10093_v63  ;;  %v9998_v63 = vld [vmem:[#allocation6 + $0x178] sm:$0xf0] }
 0x1d8   :  { %4041 = vmatpush.bf16.msrb.mxu2 %v10157_v15  ;;  %v10001_v49 = vor.u32 %v12712_v0, %v9998_v63  ;;  %v9982_v15 = vld [vmem:[#allocation6 + $0x158] sm:$0xf0]  ;;  %v9878_v0 = vld [vmem:[#allocation6 + $0x88] sm:$0xf0]  ;;  %v12744_v63 = vld [vmem:[#allocation6 + $0x274] sm:$0xf] }
 0x1d9   :  { %v9985_v4 = vor.u32 %v12708_v60, %v9982_v15  ;;  %v10118_v60 = vld [vmem:[#allocation6 + $0x268] sm:$0xf0]  ;;  %v12758_v15 = vld [vmem:[#allocation6 + $0x2e4] sm:$0xf] }
 0x1da   :  { %4016 = vmatpush.bf16.msrb.mxu0 %v10021_v37  ;;  %v12674_v37 = vld [vmem:[#allocation6 + $0x44] sm:$0xf] }
 0x1db   :  { %4029 = vmatpush.bf16.msrb.mxu1 %v10085_v9  ;;  %v9849_v9 = vor.u32 %v12674_v37, %v9846_v14 }
 0x1dc   :  { %4042 = vmatpush.bf16.msrb.mxu2 %v10149_v52 }
 0x1de   :  { %4017 = vmatpush.bf16.msrb.mxu0 %v10013_v3 }
 0x1df   :  { %4030 = vmatpush.bf16.msrb.mxu1 %v10077_v7  ;;  %v9902_v7 = vld [vmem:[#allocation6 + $0xb8] sm:$0xf0] }
 0x1e0   :  { %4043 = vmatpush.bf16.msrb.mxu2 %v10141_v25  ;;  %v9905_v52 = vor.u32 %v12688_v5, %v9902_v7  ;;  %v12668_v25 = vld [vmem:[#allocation6 + $0x14] sm:$0xf]  ;;  %v12698_v5 = vld [vmem:[#allocation6 + $0x104] sm:$0xf]  ;;  %v9942_v7 = vld [vmem:[#allocation6 + $0x108] sm:$0xf0] }
 0x1e1   :  { %v9825_v34 = vor.u32 %v12668_v25, %v9822_v26  ;;  %v9945_v11 = vor.u32 %v12698_v5, %v9942_v7  ;;  %v10102_v25 = vld [vmem:[#allocation6 + $0x248] sm:$0xf0]  ;;  %v12754_v26 = vld [vmem:[#allocation6 + $0x2c4] sm:$0xf] }
 0x1e2   :  { %4018 = vmatpush.bf16.msrb.mxu0 %v10005_v20  ;;  %v3120_v59 = vpop.f32.mrf.mxu0  ;;  %v9833_v20 = vor.u32 %v12670_v43, %v9830_v12  ;;  %v12740_v12 = vld [vmem:[#allocation6 + $0x254] sm:$0xf] }
 0x1e3   :  { %4031 = vmatpush.bf16.msrb.mxu1 %v10069_v23  ;;  %v13755_v3 = vpop.f32.mrf.mxu1  ;;  %v9966_v23 = vld [vmem:[#allocation6 + $0x138] sm:$0xf0]  ;;  %v3121_v48 = vadd.f32 %v3120_v59, %v3108_v32  ;;  %v10182_v59 = vld [vmem:[#allocation6 + $0x2e8] sm:$0xf0] }
 0x1e4   :  { %4044 = vmatpush.bf16.msrb.mxu2 %v10133_v44  ;;  %v9969_v27 = vor.u32 %v12704_v22, %v9966_v23  ;;  %v9814_v44 = vld [vmem:[#allocation6 + $0x8] sm:$0xf0]  ;;  %v10185_v43 = vor.u32 %v12758_v15, %v10182_v59  ;;  %v12774_v15 = vld [vmem:[#allocation6 + $0x364] sm:$0xf] }
 0x1e5   :  { %4019 = vmatmul.bf16.vlgmr.msrb.gmra.mxu0 %v13749_v41  ;;  %v9817_v2 = vor.u32 %v12666_v42, %v9814_v44 }
 0x1e6   :  { %4063 = vmatpush.bf16.msra.mxu0 %v9873_v24  ;;  %4032 = vmatmul.bf16.vlgmr.msrb.gmra.mxu1 %v13751_v45  ;;  %v9897_v24 = vor.u32 %v12686_v16, %v9894_v17  ;;  %v12756_v16 = vld [vmem:[#allocation6 + $0x2d4] sm:$0xf] }
 0x1e7   :  { %4076 = vmatpush.bf16.msra.mxu1 %v9937_v53  ;;  %v10177_v23 = vor.u32 %v12756_v16, %v10174_v18  ;;  %v12772_v16 = vld [vmem:[#allocation6 + $0x354] sm:$0xf]  ;;  %v12730_v18 = vld [vmem:[#allocation6 + $0x204] sm:$0xf] }
 0x1e8   :  { %4089 = vmatpush.bf16.msra.mxu2 %v10001_v49  ;;  %v12760_v49 = vld [vmem:[#allocation6 + $0x2f4] sm:$0xf] }
 0x1ea   :  { %4064 = vmatpush.bf16.msra.mxu0 %v9865_v39  ;;  %v13758_v19 = vpop.f32.mrf.mxu2  ;;  %v3122_v33 = vpop.f32.mrf.mxu0  ;;  %v9889_v39 = vor.u32 %v12684_v28, %v9886_v30  ;;  %v10228_v28 = vld [vmem:[#allocation6 + $0x340] sm:$0xf] }
 0x1eb   :  { %4077 = vmatpush.bf16.msra.mxu1 %v9929_v8  ;;  %v13760_v21 = vpop.f32.mrf.mxu3  ;;  %v3135_v53 = vpop.f32.mrf.mxu1  ;;  %v12682_v8 = vld [vmem:[#allocation6 + $0x84] sm:$0xf]  ;;  %v12773_v33 = vld [vmem:[#allocation6 + $0x354] sm:$0xf0] }
 0x1ec   :  { %4090 = vmatpush.bf16.msra.mxu2 %v9993_v55  ;;  %v9881_v14 = vor.u32 %v12682_v8, %v9878_v0  ;;  %v10129_v55 = vor.u32 %v12744_v63, %v10126_v47  ;;  %v10158_v8 = vld [vmem:[#allocation6 + $0x2b8] sm:$0xf0]  ;;  %v12769_v0 = vld [vmem:[#allocation6 + $0x334] sm:$0xf0]  ;;  %v12734_v47 = vld [vmem:[#allocation6 + $0x224] sm:$0xf] }
 0x1ee   :  { %4065 = vmatpush.bf16.msra.mxu0 %v9857_v50  ;;  %v10190_v50 = vld [vmem:[#allocation6 + $0x2f8] sm:$0xf0] }
 0x1ef   :  { %4078 = vmatpush.bf16.msra.mxu1 %v9921_v31  ;;  %v9950_v31 = vld [vmem:[#allocation6 + $0x118] sm:$0xf0]  ;;  %v10193_v57 = vor.u32 %v12760_v49, %v10190_v50  ;;  %v10161_v50 = vor.u32 %v12752_v38, %v10158_v8 }
 0x1f0   :  { %4091 = vmatpush.bf16.msra.mxu2 %v9985_v4  ;;  %v9953_v56 = vor.u32 %v12700_v36, %v9950_v31  ;;  %v10253_v4 = vor.u32 %v12777_v1, %v10252_v62  ;;  %v10254_v49 = vld [vmem:[#allocation6 + $0x378] sm:$0xf0]  ;;  %v10150_v36 = vld [vmem:[#allocation6 + $0x2a8] sm:$0xf0]  ;;  %v12732_v62 = vld [vmem:[#allocation6 + $0x214] sm:$0xf] }
 0x1f1   :  { %v10078_v1 = vld [vmem:[#allocation6 + $0x218] sm:$0xf0] }
 0x1f2   :  { %4066 = vmatpush.bf16.msra.mxu0 %v9849_v9  ;;  %v3148_v51 = vpop.f32.mrf.mxu2  ;;  %v12742_v9 = vld [vmem:[#allocation6 + $0x264] sm:$0xf]  ;;  %4050 = vmatpush.bf16.msrb.mxu3 %v10253_v4  ;;  %v12748_v4 = vld [vmem:[#allocation6 + $0x294] sm:$0xf]  ;;  %v10222_v8 = vld [vmem:[#allocation6 + $0x338] sm:$0xf0] }
 0x1f3   :  { %4079 = vmatpush.bf16.msra.mxu1 %v9913_v61  ;;  %v3161_v37 = vpop.f32.mrf.mxu3  ;;  %v3134_v61 = vadd.f32 %v13755_v3, %v3121_v48  ;;  %v12776_v48 = vld [vmem:[#allocation6 + $0x374] sm:$0xf]  ;;  %v10086_v51 = vld [vmem:[#allocation6 + $0x228] sm:$0xf0] }
 0x1f4   :  { %4092 = vmatpush.bf16.msra.mxu2 %v9977_v13  ;;  %v10110_v13 = vld [vmem:[#allocation6 + $0x258] sm:$0xf0] }
 0x1f5   :  { %v3147_v17 = vadd.f32 %v13758_v19, %v3134_v61  ;;  %v10113_v22 = vor.u32 %v12740_v12, %v10110_v13  ;;  %v12771_v19 = vld [vmem:[#allocation6 + $0x344] sm:$0xf0]  ;;  %v10246_v61 = vld [vmem:[#allocation6 + $0x368] sm:$0xf0]  ;;  %v10081_v13 = vor.u32 %v12732_v62, %v10078_v1  ;;  %v12718_v1 = vld [vmem:[#allocation6 + $0x1a4] sm:$0xf] }
 0x1f6   :  { %4067 = vmatpush.bf16.msra.mxu0 %v9841_v10  ;;  %v10121_v10 = vor.u32 %v12742_v9, %v10118_v60  ;;  %v10089_v9 = vor.u32 %v12734_v47, %v10086_v51  ;;  %v10249_v12 = vor.u32 %v12774_v15, %v10246_v61  ;;  %v12764_v51 = vld [vmem:[#allocation6 + $0x314] sm:$0xf]  ;;  %v10030_v61 = vld [vmem:[#allocation6 + $0x1b8] sm:$0xf0] }
 0x1f7   :  { %4080 = vmatpush.bf16.msra.mxu1 %v9905_v52  ;;  %v12775_v52 = vld [vmem:[#allocation6 + $0x364] sm:$0xf0]  ;;  %v12720_v15 = vld [vmem:[#allocation6 + $0x1b4] sm:$0xf] }
 0x1f8   :  { %4093 = vmatpush.bf16.msra.mxu2 %v9969_v27  ;;  %v10245_v3 = vor.u32 %v12775_v52, %v10244_v40  ;;  %v3160_v27 = vadd.f32 %v13760_v21, %v3147_v17  ;;  %v10204_v52 = vld [vmem:[#allocation6 + $0x310] sm:$0xf] }
 0x1fa   :  { %4068 = vmatpush.bf16.msra.mxu0 %v9833_v20  ;;  %v10236_v20 = vld [vmem:[#allocation6 + $0x350] sm:$0xf]  ;;  %4051 = vmatpush.bf16.msrb.mxu3 %v10245_v3  ;;  %v10238_v3 = vld [vmem:[#allocation6 + $0x358] sm:$0xf0] }
 0x1fb   :  { %4081 = vmatpush.bf16.msra.mxu1 %v9897_v24  ;;  %v12738_v24 = vld [vmem:[#allocation6 + $0x244] sm:$0xf]  ;;  %v10237_v53 = vor.u32 %v12773_v33, %v10236_v20  ;;  %v10070_v20 = vld [vmem:[#allocation6 + $0x208] sm:$0xf0] }
 0x1fc   :  { %4094 = vmatpush.bf16.msra.mxu2 %v9961_v46  ;;  %v10105_v30 = vor.u32 %v12738_v24, %v10102_v25  ;;  %v10220_v46 = vld [vmem:[#allocation6 + $0x330] sm:$0xf]  ;;  %v12746_v33 = vld [vmem:[#allocation6 + $0x284] sm:$0xf]  ;;  %v10196_v24 = vld [vmem:[#allocation6 + $0x300] sm:$0xf] }
 0x1fd   :  { %v10221_v31 = vor.u32 %v12769_v0, %v10220_v46  ;;  %v12763_v25 = vld [vmem:[#allocation6 + $0x304] sm:$0xf0] }
 0x1fe   :  { %4069 = vmatpush.bf16.msra.mxu0 %v9825_v34  ;;  %v12736_v34 = vld [vmem:[#allocation6 + $0x234] sm:$0xf]  ;;  %4052 = vmatpush.bf16.msrb.mxu3 %v10237_v53 }
 0x1ff   :  { %4082 = vmatpush.bf16.msra.mxu1 %v9889_v39  ;;  %v10229_v39 = vor.u32 %v12771_v19, %v10228_v28  ;;  %v10097_v63 = vor.u32 %v12736_v34, %v10094_v35  ;;  %v12728_v53 = vld [vmem:[#allocation6 + $0x1f4] sm:$0xf]  ;;  %v12770_v19 = vld [vmem:[#allocation6 + $0x344] sm:$0xf]  ;;  %v10197_v34 = vor.u32 %v12763_v25, %v10196_v24  ;;  %v3406_v24 = vld [vmem:[#allocation7] sm:$0x3] }
 0x200   :  { %4095 = vmatpush.bf16.msra.mxu2 %v9953_v56  ;;  %v10257_v56 = vor.u32 %v12776_v48, %v10254_v49  ;;  %v12724_v48 = vld [vmem:[#allocation6 + $0x1d4] sm:$0xf]  ;;  %v10046_v49 = vld [vmem:[#allocation6 + $0x1d8] sm:$0xf0] }
 0x202   :  { %4070 = vmatpush.bf16.msra.mxu0 %v9817_v2  ;;  %v3172_v32 = vpop.f32.mrf.mxu0  ;;  %v12750_v2 = vld [vmem:[#allocation6 + $0x2a4] sm:$0xf]  ;;  %4053 = vmatpush.bf16.msrb.mxu3 %v10229_v39 }
 0x203   :  { %4083 = vmatpush.bf16.msra.mxu1 %v9881_v14  ;;  %v3173_v42 = vadd.f32 %v3172_v32, %v3160_v27  ;;  %v3185_v44 = vpop.f32.mrf.mxu1  ;;  %v10212_v14 = vld [vmem:[#allocation6 + $0x320] sm:$0xf]  ;;  %v10153_v59 = vor.u32 %v12750_v2, %v10150_v36  ;;  %v10062_v27 = vld [vmem:[#allocation6 + $0x1f8] sm:$0xf0]  ;;  %v12726_v39 = vld [vmem:[#allocation6 + $0x1e4] sm:$0xf] }
 0x204   :  { %4096 = vmatpush.bf16.msra.mxu2 %v9945_v11  ;;  %v10142_v11 = vld [vmem:[#allocation6 + $0x298] sm:$0xf0]  ;;  %v10065_v35 = vor.u32 %v12728_v53, %v10062_v27  ;;  %v3408_v27 = vperm.slane %v3406_v24, 0 }
 0x205   :  { %4071 = vmatmul.bf16.vlgmr.msra.gmra.mxu0 %v13733_v6  ;;  %v10166_v6 = vld [vmem:[#allocation6 + $0x2c8] sm:$0xf0]  ;;  %v3186_v21 = vadd.f32 %v3185_v44, %v3173_v42  ;;  %v10145_v17 = vor.u32 %v12748_v4, %v10142_v11  ;;  %v12768_v44 = vld [vmem:[#allocation6 + $0x334] sm:$0xf]  ;;  %v10206_v2 = vld [vmem:[#allocation6 + $0x318] sm:$0xf0] }
 0x206   :  { %4115 = vmatpush.bf16.msrb.mxu0 %v10129_v55  ;;  %4084 = vmatmul.bf16.vlgmr.msra.gmra.mxu1 %v13735_v29  ;;  %v10169_v29 = vor.u32 %v12754_v26, %v10166_v6  ;;  %v12767_v55 = vld [vmem:[#allocation6 + $0x324] sm:$0xf0]  ;;  %v10241_v26 = vor.u32 %v12772_v16, %v10238_v3  ;;  %v10073_v6 = vor.u32 %v12730_v18, %v10070_v20  ;;  %v10054_v42 = vld [vmem:[#allocation6 + $0x1e8] sm:$0xf0]  ;;  %v12714_v16 = vld [vmem:[#allocation6 + $0x184] sm:$0xf] }
 0x207   :  { %4128 = vmatpush.bf16.msrb.mxu1 %v10193_v57  ;;  %v3285_v37 = vmax.f32 %v3186_v21, 0.0  ;;  %4054 = vmatpush.bf16.msrb.mxu3 %v10221_v31  ;;  %v10057_v46 = vor.u32 %v12726_v39, %v10054_v42  ;;  %v10225_v0 = vor.u32 %v12768_v44, %v10222_v8  ;;  %v12766_v21 = vld [vmem:[#allocation6 + $0x324] sm:$0xf]  ;;  %v10022_v4 = vld [vmem:[#allocation6 + $0x1a8] sm:$0xf0] }
 0x208   :  { %v12722_v31 = vld [vmem:[#allocation6 + $0x1c4] sm:$0xf]  ;;  %v10006_v3 = vld [vmem:[#allocation6 + $0x188] sm:$0xf0] }
 0x209   :  { %v13768_v57 = vpack.c.bf16 %v3285_v37, %v3285_v37  ;;  %v10038_v37 = vld [vmem:[#allocation6 + $0x1c8] sm:$0xf0]  ;;  %v10009_v18 = vor.u32 %v12714_v16, %v10006_v3 }
 0x20a   :  { %4116 = vmatpush.bf16.msrb.mxu0 %v10121_v10  ;;  %v13770_v60 = vpop.f32.mrf.mxu2  ;;  %v3174_v5 = vpop.f32.mrf.mxu0  ;;  %v10213_v10 = vor.u32 %v12767_v55, %v10212_v14  ;;  %v10041_v55 = vor.u32 %v12722_v31, %v10038_v37  ;;  %v12820_v31 = vld [vmem:[#allocation9 + $0x154] sm:$0xf]  ;;  %v10430_v37 = vld [vmem:[#allocation9 + $0x16c] sm:$0xf0]  ;;  %v12799_v16 = vld [vmem:[#allocation9 + $0xac] sm:$0xf] }
 0x20b   :  { %4129 = vmatpush.bf16.msrb.mxu1 %v10185_v43  ;;  %v13772_v7 = vpop.f32.mrf.mxu3  ;;  %4045 = vmatmul.bf16.vlgmr.msrb.gmra.mxu2 %v13768_v57  ;;  %v3187_v40 = vpop.f32.mrf.mxu1  ;;  %v12765_v43 = vld [vmem:[#allocation6 + $0x314] sm:$0xf0]  ;;  %v10346_v3 = vld [vmem:[#allocation9 + $0xc4] sm:$0xf0] }
 0x20c   :  { %4141 = vmatpush.bf16.msrb.mxu2 %v10257_v56  ;;  %4055 = vmatpush.bf16.msrb.mxu3 %v10213_v10  ;;  %v12762_v56 = vld [vmem:[#allocation6 + $0x304] sm:$0xf]  ;;  %v10025_v40 = vor.u32 %v12718_v1, %v10022_v4 }
 0x20d   :  { %v10372_v4 = vld [vmem:[#allocation9 + $0xe0] sm:$0xf] }
 0x20e   :  { %4117 = vmatpush.bf16.msrb.mxu0 %v10113_v22  ;;  %v10205_v22 = vor.u32 %v12765_v43, %v10204_v52 }
 0x20f   :  { %4130 = vmatpush.bf16.msrb.mxu1 %v10177_v23  ;;  %v10134_v23 = vld [vmem:[#allocation6 + $0x288] sm:$0xf0] }
 0x210   :  { %4142 = vmatpush.bf16.msrb.mxu2 %v10249_v12  ;;  %v10137_v32 = vor.u32 %v12746_v33, %v10134_v23  ;;  %4056 = vmatpush.bf16.msrb.mxu3 %v10205_v22  ;;  %v10014_v12 = vld [vmem:[#allocation6 + $0x198] sm:$0xf0] }
 0x212   :  { %4118 = vmatpush.bf16.msrb.mxu0 %v10105_v30  ;;  %v3200_v28 = vpop.f32.mrf.mxu2  ;;  %v10230_v30 = vld [vmem:[#allocation6 + $0x348] sm:$0xf0] }
 0x213   :  { %4131 = vmatpush.bf16.msrb.mxu1 %v10169_v29  ;;  %v3213_v29 = vpop.f32.mrf.mxu3  ;;  %v10233_v38 = vor.u32 %v12770_v19, %v10230_v30 }
 0x214   :  { %4143 = vmatpush.bf16.msrb.mxu2 %v10241_v26  ;;  %4057 = vmatpush.bf16.msrb.mxu3 %v10197_v34 }
 0x216   :  { %4119 = vmatpush.bf16.msrb.mxu0 %v10097_v63  ;;  %v10214_v63 = vld [vmem:[#allocation6 + $0x328] sm:$0xf0] }
 0x217   :  { %4132 = vmatpush.bf16.msrb.mxu1 %v10161_v50  ;;  %v10217_v47 = vor.u32 %v12766_v21, %v10214_v63  ;;  %v10049_v50 = vor.u32 %v12724_v48, %v10046_v49  ;;  %v10456_v63 = vld [vmem:[#allocation9 + $0x188] sm:$0xf]  ;;  %v12827_v49 = vld [vmem:[#allocation9 + $0x18c] sm:$0xf] }
 0x218   :  { %4102 = vmatpush.bf16.msra.mxu3 %v10065_v35  ;;  %4144 = vmatpush.bf16.msrb.mxu2 %v10233_v38 }
 0x21a   :  { %4120 = vmatpush.bf16.msrb.mxu0 %v10089_v9 }
 0x21b   :  { %4133 = vmatpush.bf16.msrb.mxu1 %v10153_v59  ;;  %4097 = vmatmul.bf16.vlgmr.msra.gmra.mxu2 %v13737_v58  ;;  %v619_v58 = vperm.slane %v13726_v54, 6  ;;  %v10033_v59 = vor.u32 %v12720_v15, %v10030_v61  ;;  %v12716_v54 = vld [vmem:[#allocation6 + $0x194] sm:$0xf] }
 0x21c   :  { %4103 = vmatpush.bf16.msra.mxu3 %v10057_v46  ;;  %4145 = vmatpush.bf16.msrb.mxu2 %v10225_v0  ;;  %v12816_v15 = vld [vmem:[#allocation9 + $0x130] sm:$0xf0] }
 0x21d   :  { %v3199_v5 = vadd.f32 %v13770_v60, %v619_v58 }
 0x21e   :  { %4121 = vmatpush.bf16.msrb.mxu0 %v10081_v13  ;;  %v10017_v13 = vor.u32 %v12716_v54, %v10014_v12  ;;  %v12802_v54 = vld [vmem:[#allocation9 + $0xc0] sm:$0xf0] }
 0x21f   :  { %4134 = vmatpush.bf16.msrb.mxu1 %v10145_v17  ;;  %v3212_v43 = vadd.f32 %v13772_v7, %v3199_v5  ;;  %v12809_v5 = vld [vmem:[#allocation9 + $0xf8] sm:$0xf0] }
 0x220   :  { %4104 = vmatpush.bf16.msra.mxu3 %v10049_v50  ;;  %4146 = vmatpush.bf16.msrb.mxu2 %v10217_v47  ;;  %v12830_v47 = vld [vmem:[#allocation9 + $0x1a0] sm:$0xf0]  ;;  %v10458_v50 = vld [vmem:[#allocation9 + $0x1a4] sm:$0xf0] }
 0x221   :  { %v10457_v48 = vor.u32 %v12830_v47, %v10456_v63  ;;  %v12778_v63 = vld [vmem:[#allocation9 + $0x4] sm:$0xf]  ;;  %v10262_v47 = vld [vmem:[#allocation9 + $0x1c] sm:$0xf0] }
 0x222   :  { %4122 = vmatpush.bf16.msrb.mxu0 %v10073_v6  ;;  %v3224_v36 = vpop.f32.mrf.mxu0 }
 0x223   :  { %4135 = vmatpush.bf16.msrb.mxu1 %v10137_v32  ;;  %v3237_v14 = vpop.f32.mrf.mxu1  ;;  %v3225_v20 = vadd.f32 %v3224_v36, %v3212_v43  ;;  %v10428_v36 = vld [vmem:[#allocation9 + $0x150] sm:$0xf]  ;;  %v10344_v43 = vld [vmem:[#allocation9 + $0xa8] sm:$0xf] }
 0x224   :  { %4105 = vmatpush.bf16.msra.mxu3 %v10041_v55  ;;  %v10433_v55 = vor.u32 %v12820_v31, %v10430_v37  ;;  %v12828_v31 = vld [vmem:[#allocation9 + $0x194] sm:$0xf]  ;;  %v12869_v37 = vld [vmem:[#allocation9 + $0x2dc] sm:$0xf] }
 0x225   :  { %4123 = vmatmul.bf16.vlgmr.msrb.gmra.mxu0 %v13751_v45  ;;  %v10209_v45 = vor.u32 %v12764_v51, %v10206_v2  ;;  %v3238_v60 = vadd.f32 %v3237_v14, %v3225_v20  ;;  %v3409_v51 = vperm.slane %v3406_v24, 1  ;;  %v10461_v2 = vor.u32 %v12827_v49, %v10458_v50  ;;  %v10316_v20 = vld [vmem:[#allocation9 + $0x70] sm:$0xf]  ;;  %v10680_v24 = vld [vmem:[#allocation9 + $0x348] sm:$0xf] }
 0x226   :  { %4136 = vmatmul.bf16.vlgmr.msrb.gmra.mxu1 %v13768_v57  ;;  %v10198_v57 = vld [vmem:[#allocation6 + $0x308] sm:$0xf0]  ;;  %v10624_v50 = vld [vmem:[#allocation9 + $0x2d8] sm:$0xf] }
 0x227   :  { %4147 = vmatpush.bf16.msrb.mxu2 %v10209_v45  ;;  %v10201_v9 = vor.u32 %v12762_v56, %v10198_v57  ;;  %v12823_v45 = vld [vmem:[#allocation9 + $0x168] sm:$0xf0]  ;;  %4904 = vmatpush.bf16.msra.mxu1 %v10461_v2 }
 0x228   :  { %4106 = vmatpush.bf16.msra.mxu3 %v10033_v59  ;;  %v12813_v59 = vld [vmem:[#allocation9 + $0x11c] sm:$0xf]  ;;  %v12831_v49 = vld [vmem:[#allocation9 + $0x1a8] sm:$0xf0] }
 0x22a   :  { %v3250_v62 = vpop.f32.mrf.mxu2  ;;  %v3226_v10 = vpop.f32.mrf.mxu0 }
 0x22b   :  { %v3263_v11 = vpop.f32.mrf.mxu3  ;;  %4148 = vmatpush.bf16.msrb.mxu2 %v10201_v9  ;;  %v3239_v52 = vpop.f32.mrf.mxu1  ;;  %v3251_v22 = vadd.f32 %v3250_v62, %v3238_v60  ;;  %4905 = vmatpush.bf16.msra.mxu1 %v10433_v55  ;;  %v10400_v9 = vld [vmem:[#allocation9 + $0x118] sm:$0xf]  ;;  %v12806_v10 = vld [vmem:[#allocation9 + $0xe4] sm:$0xf]  ;;  %v12792_v60 = vld [vmem:[#allocation9 + $0x74] sm:$0xf] }
 0x22c   :  { %4107 = vmatpush.bf16.msra.mxu3 %v10025_v40  ;;  %v10401_v61 = vor.u32 %v12816_v15, %v10400_v9  ;;  %v10402_v62 = vld [vmem:[#allocation9 + $0x134] sm:$0xf0]  ;;  %v10373_v40 = vor.u32 %v12809_v5, %v10372_v4  ;;  %v10374_v52 = vld [vmem:[#allocation9 + $0xfc] sm:$0xf0]  ;;  %v12824_v9 = vld [vmem:[#allocation9 + $0x170] sm:$0xf0] }
 0x22d   :  { %v3264_v23 = vadd.f32 %v3263_v11, %v3251_v22  ;;  %v10405_v1 = vor.u32 %v12813_v59, %v10402_v62  ;;  %v10596_v59 = vld [vmem:[#allocation9 + $0x2a0] sm:$0xf]  ;;  %v12865_v62 = vld [vmem:[#allocation9 + $0x2b8] sm:$0xf0]  ;;  %v10438_v4 = vld [vmem:[#allocation9 + $0x174] sm:$0xf0] }
 0x22e   :  { %v12862_v5 = vld [vmem:[#allocation9 + $0x2a4] sm:$0xf] }
 0x22f   :  { %4906 = vmatpush.bf16.msra.mxu1 %v10405_v1  ;;  %v12821_v1 = vld [vmem:[#allocation9 + $0x15c] sm:$0xf] }
 0x230   :  { %4108 = vmatpush.bf16.msra.mxu3 %v10017_v13  ;;  %v10377_v13 = vor.u32 %v12806_v10, %v10374_v52  ;;  %v10598_v10 = vld [vmem:[#allocation9 + $0x2bc] sm:$0xf0]  ;;  %v10568_v52 = vld [vmem:[#allocation9 + $0x268] sm:$0xf] }
 0x232   :  { %v3252_v17 = vpop.f32.mrf.mxu2 }
 0x233   :  { %v3265_v33 = vpop.f32.mrf.mxu3  ;;  %v10345_v17 = vor.u32 %v12802_v54, %v10344_v43  ;;  %4907 = vmatpush.bf16.msra.mxu1 %v10377_v13  ;;  %v12858_v43 = vld [vmem:[#allocation9 + $0x280] sm:$0xf0]  ;;  %v10441_v54 = vor.u32 %v12821_v1, %v10438_v4  ;;  %v10408_v13 = vld [vmem:[#allocation9 + $0x120] sm:$0xf]  ;;  %v10688_v4 = vld [vmem:[#allocation9 + $0x350] sm:$0xf] }
 0x234   :  { %4109 = vmatpush.bf16.msra.mxu3 %v10009_v18  ;;  %v10349_v18 = vor.u32 %v12799_v16, %v10346_v3  ;;  %v12795_v33 = vld [vmem:[#allocation9 + $0x88] sm:$0xf0]  ;;  %v12817_v16 = vld [vmem:[#allocation9 + $0x138] sm:$0xf0]  ;;  %v12814_v3 = vld [vmem:[#allocation9 + $0x124] sm:$0xf] }
 0x235   :  { %v10317_v22 = vor.u32 %v12795_v33, %v10316_v20  ;;  %v12855_v20 = vld [vmem:[#allocation9 + $0x26c] sm:$0xf]  ;;  %v10570_v33 = vld [vmem:[#allocation9 + $0x284] sm:$0xf0]  ;;  %v10486_v1 = vld [vmem:[#allocation9 + $0x1dc] sm:$0xf0] }
 0x237   :  { %4908 = vmatpush.bf16.msra.mxu1 %v10349_v18  ;;  %v10410_v18 = vld [vmem:[#allocation9 + $0x13c] sm:$0xf0] }
 0x242   :  { %v3276_v25 = vpop.f32.mrf.mxu0 }
 0x243   :  { %v3277_v26 = vadd.f32 %v3276_v25, %v3264_v23  ;;  %v3981_v53 = vpop.f32.mrf.mxu1  ;;  %v10318_v23 = vld [vmem:[#allocation9 + $0x8c] sm:$0xf0]  ;;  %v12886_v25 = vld [vmem:[#allocation9 + $0x360] sm:$0xf0] }
 0x244   :  { %v3982_v28 = vadd.f32 %v3981_v53, %v3408_v27  ;;  %v10681_v53 = vor.u32 %v12886_v25, %v10680_v24  ;;  %v12883_v27 = vld [vmem:[#allocation9 + $0x34c] sm:$0xf]  ;;  %v10409_v24 = vor.u32 %v12817_v16, %v10408_v13  ;;  %v10540_v25 = vld [vmem:[#allocation9 + $0x230] sm:$0xf]  ;;  %v12786_v16 = vld [vmem:[#allocation9 + $0x44] sm:$0xf] }
 0x245   :  { %v3286_v7 = vmax.f32 %v3277_v26, 0.0  ;;  %v10321_v26 = vor.u32 %v12792_v60, %v10318_v23  ;;  %v10569_v23 = vor.u32 %v12858_v43, %v10568_v52 }
 0x246   :  { %4891 = vmatpush.bf16.msra.mxu0 %v10681_v53  ;;  %v10413_v53 = vor.u32 %v12814_v3, %v10410_v18  ;;  %v10298_v3 = vld [vmem:[#allocation9 + $0x5c] sm:$0xf0] }
 0x247   :  { %v3293_v6 = vpack.c.bf16 %v3286_v7, %v3286_v7  ;;  %v10682_v7 = vld [vmem:[#allocation9 + $0x364] sm:$0xf0]  ;;  %4909 = vmatpush.bf16.msra.mxu1 %v10321_v26  ;;  %v12851_v26 = vld [vmem:[#allocation9 + $0x248] sm:$0xf0]  ;;  %v10301_v18 = vor.u32 %v12786_v16, %v10298_v3  ;;  %v10474_v16 = vld [vmem:[#allocation9 + $0x1b4] sm:$0xf0] }
 0x249   :  { %4058 = vmatmul.bf16.vlgmr.msrb.gmra.mxu3 %v3293_v6  ;;  %4149 = vmatmul.bf16.vlgmr.msrb.gmra.mxu2 %v3293_v6  ;;  %v10288_v6 = vld [vmem:[#allocation9 + $0x38] sm:$0xf] }
 0x24a   :  { %v3994_v19 = vpop.f32.mrf.mxu2  ;;  %v3278_v29 = vpop.f32.mrf.mxu0  ;;  %4878 = vmatpush.bf16.msrb.mxu3 %v10457_v48  ;;  %v10464_v48 = vld [vmem:[#allocation9 + $0x190] sm:$0xf] }
 0x24b   :  { %v3995_v30 = vadd.f32 %v3994_v19, %v3982_v28  ;;  %v4007_v32 = vpop.f32.mrf.mxu3  ;;  %v3983_v34 = vpop.f32.mrf.mxu1  ;;  %v10685_v28 = vor.u32 %v12883_v27, %v10682_v7  ;;  %v12788_v19 = vld [vmem:[#allocation9 + $0x50] sm:$0xf0]  ;;  %v10465_v55 = vor.u32 %v12831_v49, %v10464_v48  ;;  %v10573_v27 = vor.u32 %v12855_v20, %v10570_v33  ;;  %v10380_v7 = vld [vmem:[#allocation9 + $0xe8] sm:$0xf]  ;;  %v10514_v48 = vld [vmem:[#allocation9 + $0x214] sm:$0xf0] }
 0x24c   :  { %v10289_v29 = vor.u32 %v12788_v19, %v10288_v6  ;;  %v10652_v34 = vld [vmem:[#allocation9 + $0x310] sm:$0xf]  ;;  %v12810_v6 = vld [vmem:[#allocation9 + $0x100] sm:$0xf0]  ;;  %v10382_v19 = vld [vmem:[#allocation9 + $0x104] sm:$0xf0] }
 0x24d   :  { %v4008_v35 = vadd.f32 %v4007_v32, %v3995_v30  ;;  %v12785_v30 = vld [vmem:[#allocation9 + $0x3c] sm:$0xf]  ;;  %v10290_v32 = vld [vmem:[#allocation9 + $0x54] sm:$0xf0]  ;;  %4917 = vmatpush.bf16.msra.mxu2 %v10685_v28  ;;  %v12807_v28 = vld [vmem:[#allocation9 + $0xec] sm:$0xf] }
 0x24e   :  { %v10660_v20 = vld [vmem:[#allocation9 + $0x318] sm:$0xf]  ;;  %v12880_v33 = vld [vmem:[#allocation9 + $0x330] sm:$0xf0] }
 0x252   :  { %v3996_v38 = vpop.f32.mrf.mxu2 }
 0x253   :  { %v4009_v39 = vpop.f32.mrf.mxu3  ;;  %v12876_v38 = vld [vmem:[#allocation9 + $0x314] sm:$0xf] }
 0x254   :  { %v10293_v39 = vor.u32 %v12785_v30, %v10290_v32  ;;  %v12848_v30 = vld [vmem:[#allocation9 + $0x234] sm:$0xf]  ;;  %v10542_v32 = vld [vmem:[#allocation9 + $0x24c] sm:$0xf0] }
 0x256   :  { %4910 = vmatpush.bf16.msra.mxu1 %v10293_v39  ;;  %v10385_v39 = vor.u32 %v12807_v28, %v10382_v19  ;;  %v10632_v19 = vld [vmem:[#allocation9 + $0x2e0] sm:$0xf] }
 0x259   :  { %4110 = vmatmul.bf16.vlgmr.msra.gmra.mxu3 %v13749_v41  ;;  %v10429_v41 = vor.u32 %v12823_v45, %v10428_v36 }
 0x25b   :  { %4879 = vmatpush.bf16.msrb.mxu3 %v10429_v41  ;;  %v10466_v41 = vld [vmem:[#allocation9 + $0x1ac] sm:$0xf0] }
 0x25c   :  { %v10469_v15 = vor.u32 %v12828_v31, %v10466_v41  ;;  %v12837_v31 = vld [vmem:[#allocation9 + $0x1d8] sm:$0xf0] }
 0x25f   :  { %4880 = vmatpush.bf16.msrb.mxu3 %v10401_v61 }
 0x262   :  { %v4020_v42 = vpop.f32.mrf.mxu0 }
 0x263   :  { %v4021_v44 = vadd.f32 %v4020_v42, %v4008_v35  ;;  %v4033_v8 = vpop.f32.mrf.mxu1  ;;  %4881 = vmatpush.bf16.msrb.mxu3 %v10373_v40  ;;  %v12879_v35 = vld [vmem:[#allocation9 + $0x328] sm:$0xf0] }
 0x264   :  { %v10653_v42 = vor.u32 %v12879_v35, %v10652_v34  ;;  %v10381_v34 = vor.u32 %v12810_v6, %v10380_v7  ;;  %v10512_v35 = vld [vmem:[#allocation9 + $0x1f8] sm:$0xf]  ;;  %v12779_v7 = vld [vmem:[#allocation9 + $0xc] sm:$0xf]  ;;  %v10270_v6 = vld [vmem:[#allocation9 + $0x24] sm:$0xf0] }
 0x265   :  { %v13782_v46 = vadd.f32 %v4033_v8, %v4021_v44  ;;  %v10654_v44 = vld [vmem:[#allocation9 + $0x32c] sm:$0xf0]  ;;  %v10260_v8 = vld [vmem:[#allocation9] sm:$0xf]  ;;  %v10273_v28 = vor.u32 %v12779_v7, %v10270_v6  ;;  %v12818_v7 = vld [vmem:[#allocation9 + $0x140] sm:$0xf0] }
 0x266   :  { %4892 = vmatpush.bf16.msra.mxu0 %v10653_v42  ;;  %v10545_v42 = vor.u32 %v12848_v30, %v10542_v32  ;;  %v12873_v30 = vld [vmem:[#allocation9 + $0x2f8] sm:$0xf0]  ;;  %v12815_v6 = vld [vmem:[#allocation9 + $0x12c] sm:$0xf] }
 0x267   :  { %4882 = vmatpush.bf16.msrb.mxu3 %v10345_v17  ;;  %v10633_v32 = vor.u32 %v12873_v30, %v10632_v19 }
 0x26a   :  { %v4022_v0 = vpop.f32.mrf.mxu0 }
 0x26b   :  { %v4035_v21 = vpop.f32.mrf.mxu1  ;;  %4883 = vmatpush.bf16.msrb.mxu3 %v10317_v22  ;;  %v12781_v0 = vld [vmem:[#allocation9 + $0x18] sm:$0xf0] }
 0x26c   :  { %v10657_v21 = vor.u32 %v12876_v38, %v10654_v44  ;;  %v10261_v36 = vor.u32 %v12781_v0, %v10260_v8  ;;  %v12844_v38 = vld [vmem:[#allocation9 + $0x210] sm:$0xf0]  ;;  %v10352_v44 = vld [vmem:[#allocation9 + $0xb0] sm:$0xf]  ;;  %v12803_v8 = vld [vmem:[#allocation9 + $0xc8] sm:$0xf0] }
 0x26d   :  { %v12800_v0 = vld [vmem:[#allocation9 + $0xb4] sm:$0xf] }
 0x26e   :  { %4918 = vmatpush.bf16.msra.mxu2 %v10657_v21 }
 0x26f   :  { %4884 = vmatpush.bf16.msrb.mxu3 %v10289_v29  ;;  %v10541_v29 = vor.u32 %v12851_v26, %v10540_v25  ;;  %v10268_v26 = vld [vmem:[#allocation9 + $0x8] sm:$0xf] }
 0x273   :  { %4885 = vmatpush.bf16.msrb.mxu3 %v10261_v36  ;;  %v10353_v36 = vor.u32 %v12803_v8, %v10352_v44  ;;  %v12863_v44 = vld [vmem:[#allocation9 + $0x2ac] sm:$0xf]  ;;  %v10606_v8 = vld [vmem:[#allocation9 + $0x2c4] sm:$0xf0] }
 0x277   :  { %4930 = vmatpush.bf16.msra.mxu3 %v10465_v55  ;;  %v12796_v55 = vld [vmem:[#allocation9 + $0x90] sm:$0xf0] }
 0x282   :  { %v4072_v14 = vpop.f32.mrf.mxu0 }
 0x283   :  { %v4073_v56 = vadd.f32 %v4072_v14, %v3409_v51  ;;  %v4085_v57 = vpop.f32.mrf.mxu1  ;;  %v12872_v51 = vld [vmem:[#allocation9 + $0x2f0] sm:$0xf0]  ;;  %v10265_v14 = vor.u32 %v12778_v63, %v10262_v47  ;;  %v10354_v63 = vld [vmem:[#allocation9 + $0xcc] sm:$0xf0]  ;;  %v12841_v47 = vld [vmem:[#allocation9 + $0x1fc] sm:$0xf] }
 0x284   :  { %v10625_v45 = vor.u32 %v12872_v51, %v10624_v50  ;;  %v10513_v51 = vor.u32 %v12844_v38, %v10512_v35  ;;  %v10357_v41 = vor.u32 %v12800_v0, %v10354_v63  ;;  %v10604_v38 = vld [vmem:[#allocation9 + $0x2a8] sm:$0xf]  ;;  %v10609_v0 = vor.u32 %v12863_v44, %v10606_v8  ;;  %v12859_v63 = vld [vmem:[#allocation9 + $0x288] sm:$0xf0]  ;;  %v10360_v8 = vld [vmem:[#allocation9 + $0xb8] sm:$0xf] }
 0x285   :  { %v13784_v58 = vadd.f32 %v4085_v57, %v4073_v56  ;;  %v10626_v56 = vld [vmem:[#allocation9 + $0x2f4] sm:$0xf0]  ;;  %4911 = vmatpush.bf16.msra.mxu1 %v10265_v14 }
 0x286   :  { %v10436_v57 = vld [vmem:[#allocation9 + $0x158] sm:$0xf]  ;;  %v10629_v61 = vor.u32 %v12869_v37, %v10626_v56  ;;  %4893 = vmatpush.bf16.msra.mxu0 %v10625_v45  ;;  %v10484_v45 = vld [vmem:[#allocation9 + $0x1c0] sm:$0xf]  ;;  %v10517_v37 = vor.u32 %v12841_v47, %v10514_v48  ;;  %v12793_v56 = vld [vmem:[#allocation9 + $0x7c] sm:$0xf] }
 0x287   :  { %v10437_v40 = vor.u32 %v12824_v9, %v10436_v57  ;;  %v10324_v14 = vld [vmem:[#allocation9 + $0x78] sm:$0xf]  ;;  %v10485_v9 = vor.u32 %v12837_v31, %v10484_v45  ;;  %v12856_v48 = vld [vmem:[#allocation9 + $0x274] sm:$0xf] }
 0x288   :  { %4919 = vmatpush.bf16.msra.mxu2 %v10629_v61  ;;  %v10326_v57 = vld [vmem:[#allocation9 + $0x94] sm:$0xf0]  ;;  %v12852_v45 = vld [vmem:[#allocation9 + $0x250] sm:$0xf0] }
 0x289   :  { %4956 = vmatpush.bf16.msrb.mxu1 %v10469_v15  ;;  %4931 = vmatpush.bf16.msra.mxu3 %v10437_v40  ;;  %v10325_v15 = vor.u32 %v12796_v55, %v10324_v14  ;;  %v10329_v61 = vor.u32 %v12793_v56, %v10326_v57  ;;  %v10690_v40 = vld [vmem:[#allocation9 + $0x36c] sm:$0xf0]  ;;  %v10520_v55 = vld [vmem:[#allocation9 + $0x200] sm:$0xf]  ;;  %v12845_v56 = vld [vmem:[#allocation9 + $0x218] sm:$0xf0] }
 0x28a   :  { %v4074_v11 = vpop.f32.mrf.mxu0  ;;  %v10521_v57 = vor.u32 %v12845_v56, %v10520_v55  ;;  %v12885_v55 = vld [vmem:[#allocation9 + $0x35c] sm:$0xf]  ;;  %v10698_v56 = vld [vmem:[#allocation9 + $0x374] sm:$0xf0] }
 0x28b   :  { %v4087_v12 = vpop.f32.mrf.mxu1  ;;  %v10597_v11 = vor.u32 %v12865_v62, %v10596_v59  ;;  %v12834_v62 = vld [vmem:[#allocation9 + $0x1c4] sm:$0xf] }
 0x28c   :  { %v10601_v12 = vor.u32 %v12862_v5, %v10598_v10  ;;  %v10489_v5 = vor.u32 %v12834_v62, %v10486_v1  ;;  %v12887_v10 = vld [vmem:[#allocation9 + $0x368] sm:$0xf0]  ;;  %v12838_v62 = vld [vmem:[#allocation9 + $0x1e0] sm:$0xf0] }
 0x28d   :  { %4894 = vmatpush.bf16.msra.mxu0 %v10597_v11  ;;  %4957 = vmatpush.bf16.msrb.mxu1 %v10441_v54  ;;  %v12884_v11 = vld [vmem:[#allocation9 + $0x354] sm:$0xf]  ;;  %v10689_v52 = vor.u32 %v12887_v10, %v10688_v4  ;;  %v10296_v54 = vld [vmem:[#allocation9 + $0x40] sm:$0xf]  ;;  %v12835_v4 = vld [vmem:[#allocation9 + $0x1cc] sm:$0xf] }
 0x28e   :  { %v13786_v2 = vpop.f32.mrf.mxu2  ;;  %4920 = vmatpush.bf16.msra.mxu2 %v10601_v12  ;;  %4932 = vmatpush.bf16.msra.mxu3 %v10409_v24  ;;  %v10693_v43 = vor.u32 %v12884_v11, %v10690_v40  ;;  %v12789_v12 = vld [vmem:[#allocation9 + $0x58] sm:$0xf0]  ;;  %v10662_v24 = vld [vmem:[#allocation9 + $0x334] sm:$0xf0] }
 0x28f   :  { %v10297_v13 = vor.u32 %v12789_v12, %v10296_v54  ;;  %v4047_v11 = vadd.f32 %v13786_v2, %v13782_v46  ;;  %v12832_v12 = vld [vmem:[#allocation9 + $0x1b0] sm:$0xf0] }
 0x291   :  { %4895 = vmatpush.bf16.msra.mxu0 %v10569_v23  ;;  %4958 = vmatpush.bf16.msrb.mxu1 %v10413_v53  ;;  %v12877_v23 = vld [vmem:[#allocation9 + $0x31c] sm:$0xf]  ;;  %v12782_v53 = vld [vmem:[#allocation9 + $0x20] sm:$0xf0] }
 0x292   :  { %4921 = vmatpush.bf16.msra.mxu2 %v10573_v27  ;;  %4933 = vmatpush.bf16.msra.mxu3 %v10381_v34  ;;  %v10665_v25 = vor.u32 %v12877_v23, %v10662_v24  ;;  %v10269_v27 = vor.u32 %v12782_v53, %v10268_v26  ;;  %v10634_v34 = vld [vmem:[#allocation9 + $0x2fc] sm:$0xf0]  ;;  %v12825_v23 = vld [vmem:[#allocation9 + $0x178] sm:$0xf0]  ;;  %v12822_v24 = vld [vmem:[#allocation9 + $0x164] sm:$0xf] }
 0x295   :  { %4896 = vmatpush.bf16.msra.mxu0 %v10541_v29  ;;  %4959 = vmatpush.bf16.msrb.mxu1 %v10385_v39  ;;  %v12870_v29 = vld [vmem:[#allocation9 + $0x2e4] sm:$0xf] }
 0x296   :  { %v4048_v22 = vpop.f32.mrf.mxu2  ;;  %4922 = vmatpush.bf16.msra.mxu2 %v10545_v42  ;;  %4934 = vmatpush.bf16.msra.mxu3 %v10353_v36  ;;  %v10637_v35 = vor.u32 %v12870_v29, %v10634_v34  ;;  %v12866_v39 = vld [vmem:[#allocation9 + $0x2c0] sm:$0xf0]  ;;  %v10548_v36 = vld [vmem:[#allocation9 + $0x238] sm:$0xf]  ;;  %v12811_v29 = vld [vmem:[#allocation9 + $0x108] sm:$0xf0] }
 0x297   :  { %v10661_v22 = vor.u32 %v12880_v33, %v10660_v20  ;;  %v10605_v42 = vor.u32 %v12866_v39, %v10604_v38  ;;  %v10549_v31 = vor.u32 %v12852_v45, %v10548_v36  ;;  %v10444_v33 = vld [vmem:[#allocation9 + $0x160] sm:$0xf]  ;;  %v12808_v34 = vld [vmem:[#allocation9 + $0xf4] sm:$0xf] }
 0x298   :  { %v10445_v26 = vor.u32 %v12825_v23, %v10444_v33  ;;  %v10332_v36 = vld [vmem:[#allocation9 + $0x80] sm:$0xf]  ;;  %v12833_v23 = vld [vmem:[#allocation9 + $0x1b8] sm:$0xf0] }
 0x299   :  { %4897 = vmatpush.bf16.msra.mxu0 %v10513_v51  ;;  %4960 = vmatpush.bf16.msrb.mxu1 %v10357_v41  ;;  %v12849_v41 = vld [vmem:[#allocation9 + $0x23c] sm:$0xf]  ;;  %v10480_v33 = vld [vmem:[#allocation9 + $0x1a0] sm:$0xf] }
 0x29a   :  { %4923 = vmatpush.bf16.msra.mxu2 %v10517_v37  ;;  %4935 = vmatpush.bf16.msra.mxu3 %v10325_v15  ;;  %v10550_v37 = vld [vmem:[#allocation9 + $0x254] sm:$0xf0]  ;;  %v10522_v15 = vld [vmem:[#allocation9 + $0x21c] sm:$0xf0] }
 0x29b   :  { %v10553_v14 = vor.u32 %v12849_v41, %v10550_v37  ;;  %v10696_v41 = vld [vmem:[#allocation9 + $0x358] sm:$0xf] }
 0x29d   :  { %4898 = vmatpush.bf16.msra.mxu0 %v10485_v9  ;;  %4961 = vmatpush.bf16.msrb.mxu1 %v10329_v61  ;;  %v12842_v9 = vld [vmem:[#allocation9 + $0x204] sm:$0xf] }
 0x29e   :  { %v13792_v50 = vpop.f32.mrf.mxu2  ;;  %4924 = vmatpush.bf16.msra.mxu2 %v10489_v5  ;;  %4936 = vmatpush.bf16.msra.mxu3 %v10297_v13  ;;  %v10525_v61 = vor.u32 %v12842_v9, %v10522_v15  ;;  %v10494_v5 = vld [vmem:[#allocation9 + $0x1e4] sm:$0xf0]  ;;  %v12829_v13 = vld [vmem:[#allocation9 + $0x19c] sm:$0xf] }
 0x29f   :  { %v10497_v10 = vor.u32 %v12835_v4, %v10494_v5  ;;  %v10477_v20 = vor.u32 %v12829_v13, %v10474_v16  ;;  %v4099_v38 = vadd.f32 %v13792_v50, %v13784_v58  ;;  %v12797_v58 = vld [vmem:[#allocation9 + $0x98] sm:$0xf0]  ;;  %v12794_v50 = vld [vmem:[#allocation9 + $0x84] sm:$0xf]  ;;  %v10304_v15 = vld [vmem:[#allocation9 + $0x48] sm:$0xf]  ;;  %v10701_v4 = vor.u32 %v12885_v55, %v10698_v56 }
 0x2a0   :  { %v10668_v5 = vld [vmem:[#allocation9 + $0x320] sm:$0xf]  ;;  %v12783_v13 = vld [vmem:[#allocation9 + $0x28] sm:$0xf0]  ;;  %v12780_v16 = vld [vmem:[#allocation9 + $0x14] sm:$0xf] }
 0x2a1   :  { %4943 = vmatpush.bf16.msrb.mxu0 %v10689_v52  ;;  %4962 = vmatpush.bf16.msrb.mxu1 %v10301_v18  ;;  %v12805_v55 = vld [vmem:[#allocation9 + $0xd8] sm:$0xf0] }
 0x2a2   :  { %v13788_v17 = vpop.f32.mrf.mxu0  ;;  %4969 = vmatpush.bf16.msrb.mxu2 %v10693_v43  ;;  %4937 = vmatpush.bf16.msra.mxu3 %v10269_v27  ;;  %v10472_v43 = vld [vmem:[#allocation9 + $0x198] sm:$0xf]  ;;  %v10416_v27 = vld [vmem:[#allocation9 + $0x128] sm:$0xf] }
 0x2a3   :  { %v13790_v60 = vpop.f32.mrf.mxu1  ;;  %v10473_v18 = vor.u32 %v12832_v12, %v10472_v43  ;;  %v10417_v19 = vor.u32 %v12818_v7, %v10416_v27  ;;  %v10276_v12 = vld [vmem:[#allocation9 + $0x10] sm:$0xf]  ;;  %v10481_v27 = vor.u32 %v12833_v23, %v10480_v33  ;;  %v12882_v33 = vld [vmem:[#allocation9 + $0x340] sm:$0xf0] }
 0x2a5   :  { %4944 = vmatpush.bf16.msrb.mxu0 %v10661_v22  ;;  %4963 = vmatpush.bf16.msrb.mxu1 %v10273_v28  ;;  %v10418_v28 = vld [vmem:[#allocation9 + $0x144] sm:$0xf0] }
 0x2a6   :  { %v4100_v59 = vpop.f32.mrf.mxu2  ;;  %4970 = vmatpush.bf16.msrb.mxu2 %v10665_v25  ;;  %v10446_v25 = vld [vmem:[#allocation9 + $0x17c] sm:$0xf0]  ;;  %v10421_v30 = vor.u32 %v12815_v6, %v10418_v28  ;;  %v10452_v28 = vld [vmem:[#allocation9 + $0x168] sm:$0xf] }
 0x2a7   :  { %v10492_v59 = vld [vmem:[#allocation9 + $0x1c8] sm:$0xf]  ;;  %v10449_v53 = vor.u32 %v12822_v24, %v10446_v25  ;;  %v12874_v25 = vld [vmem:[#allocation9 + $0x300] sm:$0xf0] }
 0x2a8   :  { %v10493_v1 = vor.u32 %v12838_v62, %v10492_v59  ;;  %v12787_v59 = vld [vmem:[#allocation9 + $0x4c] sm:$0xf]  ;;  %v10306_v62 = vld [vmem:[#allocation9 + $0x64] sm:$0xf0] }
 0x2a9   :  { %4945 = vmatpush.bf16.msrb.mxu0 %v10633_v32  ;;  %v10388_v32 = vld [vmem:[#allocation9 + $0xf0] sm:$0xf]  ;;  %v10640_v24 = vld [vmem:[#allocation9 + $0x2e8] sm:$0xf] }
 0x2aa   :  { %v4126_v21 = vpop.f32.mrf.mxu0  ;;  %4971 = vmatpush.bf16.msrb.mxu2 %v10637_v35  ;;  %v10390_v35 = vld [vmem:[#allocation9 + $0x10c] sm:$0xf0]  ;;  %v10641_v7 = vor.u32 %v12874_v25, %v10640_v24  ;;  %v10284_v24 = vld [vmem:[#allocation9 + $0x18] sm:$0xf]  ;;  %v12784_v25 = vld [vmem:[#allocation9 + $0x30] sm:$0xf0] }
 0x2ab   :  { %v4139_v49 = vpop.f32.mrf.mxu1  ;;  %v10576_v21 = vld [vmem:[#allocation9 + $0x270] sm:$0xf]  ;;  %v10393_v44 = vor.u32 %v12808_v34, %v10390_v35 }
 0x2ac   :  { %v10577_v47 = vor.u32 %v12859_v63, %v10576_v21  ;;  %v10578_v49 = vld [vmem:[#allocation9 + $0x28c] sm:$0xf0]  ;;  %v12804_v21 = vld [vmem:[#allocation9 + $0xd0] sm:$0xf0]  ;;  %v12801_v63 = vld [vmem:[#allocation9 + $0xbc] sm:$0xf] }
 0x2ad   :  { %4946 = vmatpush.bf16.msrb.mxu0 %v10605_v42  ;;  %v10581_v51 = vor.u32 %v12856_v48, %v10578_v49  ;;  %v10389_v42 = vor.u32 %v12811_v29, %v10388_v32  ;;  %v10361_v49 = vor.u32 %v12804_v21, %v10360_v8  ;;  %v12867_v32 = vld [vmem:[#allocation9 + $0x2c8] sm:$0xf0]  ;;  %v12864_v29 = vld [vmem:[#allocation9 + $0x2b4] sm:$0xf]  ;;  %v10614_v34 = vld [vmem:[#allocation9 + $0x2cc] sm:$0xf0] }
 0x2ae   :  { %4972 = vmatpush.bf16.msrb.mxu2 %v10609_v0  ;;  %v10584_v8 = vld [vmem:[#allocation9 + $0x278] sm:$0xf]  ;;  %v12857_v21 = vld [vmem:[#allocation9 + $0x27c] sm:$0xf] }
 0x2b1   :  { %4947 = vmatpush.bf16.msrb.mxu0 %v10577_v47  ;;  %v10362_v47 = vld [vmem:[#allocation9 + $0xd4] sm:$0xf0] }
 0x2b2   :  { %4973 = vmatpush.bf16.msrb.mxu2 %v10581_v51  ;;  %v10365_v51 = vor.u32 %v12801_v63, %v10362_v47  ;;  %v10586_v63 = vld [vmem:[#allocation9 + $0x294] sm:$0xf0] }
 0x2b5   :  { %4948 = vmatpush.bf16.msrb.mxu0 %v10549_v31  ;;  %v10334_v31 = vld [vmem:[#allocation9 + $0x9c] sm:$0xf0] }
 0x2b6   :  { %4974 = vmatpush.bf16.msrb.mxu2 %v10553_v14  ;;  %v12888_v14 = vld [vmem:[#allocation9 + $0x370] sm:$0xf0]  ;;  %v10337_v9 = vor.u32 %v12794_v50, %v10334_v31  ;;  %v12850_v50 = vld [vmem:[#allocation9 + $0x244] sm:$0xf]  ;;  %v10558_v31 = vld [vmem:[#allocation9 + $0x25c] sm:$0xf0] }
 0x2b7   :  { %v10561_v56 = vor.u32 %v12850_v50, %v10558_v31  ;;  %v12861_v50 = vld [vmem:[#allocation9 + $0x298] sm:$0xf0]  ;;  %v11044_v31 = vld [vmem:[#allocation12 + $0x2a0] sm:$0xf] }
 0x2b9   :  { %4949 = vmatpush.bf16.msrb.mxu0 %v10521_v57  ;;  %v10333_v57 = vor.u32 %v12797_v58, %v10332_v36  ;;  %v10589_v36 = vor.u32 %v12857_v21, %v10586_v63  ;;  %v12853_v58 = vld [vmem:[#allocation9 + $0x258] sm:$0xf0]  ;;  %v12868_v21 = vld [vmem:[#allocation9 + $0x2d0] sm:$0xf0]  ;;  %v11072_v63 = vld [vmem:[#allocation12 + $0x2d8] sm:$0xf] }
 0x2ba   :  { %4975 = vmatpush.bf16.msrb.mxu2 %v10525_v61  ;;  %v12790_v61 = vld [vmem:[#allocation9 + $0x60] sm:$0xf0] }
 0x2bb   :  { %v10305_v43 = vor.u32 %v12790_v61, %v10304_v15  ;;  %v10530_v15 = vld [vmem:[#allocation9 + $0x224] sm:$0xf0] }
 0x2bd   :  { %4950 = vmatpush.bf16.msrb.mxu0 %v10493_v1  ;;  %v10697_v1 = vor.u32 %v12888_v14, %v10696_v41  ;;  %v10368_v14 = vld [vmem:[#allocation9 + $0xc0] sm:$0xf] }
 0x2be   :  { %4976 = vmatpush.bf16.msrb.mxu2 %v10497_v10  ;;  %v10369_v61 = vor.u32 %v12805_v55, %v10368_v14  ;;  %v10564_v55 = vld [vmem:[#allocation9 + $0x248] sm:$0xf] }
 0x2cc   :  { %v4059_v40 = vpop.f32.mrf.mxu3  ;;  %v4150_v52 = vpop.f32.mrf.mxu2 }
 0x2cd   :  { %v4060_v54 = vadd.f32 %v4059_v40, %v4047_v11  ;;  %v12881_v11 = vld [vmem:[#allocation9 + $0x338] sm:$0xf0]  ;;  %v12878_v40 = vld [vmem:[#allocation9 + $0x324] sm:$0xf] }
 0x2cf   :  { %v4154_v3 = vmax.f32 %v4060_v54, 0.0  ;;  %v10309_v54 = vor.u32 %v12787_v59, %v10306_v62  ;;  %v10340_v59 = vld [vmem:[#allocation9 + $0x88] sm:$0xf]  ;;  %v12798_v62 = vld [vmem:[#allocation9 + $0xa0] sm:$0xf0] }
 0x2d1   :  { %v13796_v22 = vpack.c.bf16 %v4154_v3, %v4154_v3  ;;  %v10278_v3 = vld [vmem:[#allocation9 + $0x2c] sm:$0xf0] }
 0x2d3   :  { %4886 = vmatmul.bf16.vlgmr.msrb.gmra.mxu3 %v13796_v22  ;;  %4912 = vmatmul.bf16.vlgmr.msra.gmra.mxu1 %v13796_v22 }
 0x2d4   :  { %4982 = vmatpush.bf16.msrb.mxu3 %v10473_v18  ;;  %v4061_v46 = vpop.f32.mrf.mxu3  ;;  %v4152_v2 = vpop.f32.mrf.mxu2  ;;  %5008 = vmatpush.bf16.msra.mxu1 %v10477_v20  ;;  %v10669_v18 = vor.u32 %v12881_v11, %v10668_v5  ;;  %v12839_v5 = vld [vmem:[#allocation9 + $0x1e8] sm:$0xf0]  ;;  %v12836_v11 = vld [vmem:[#allocation9 + $0x1d4] sm:$0xf] }
 0x2d5   :  { %v12871_v46 = vld [vmem:[#allocation9 + $0x2ec] sm:$0xf]  ;;  %v10642_v2 = vld [vmem:[#allocation9 + $0x304] sm:$0xf0] }
 0x2d6   :  { %v10645_v6 = vor.u32 %v12871_v46, %v10642_v2  ;;  %v10904_v46 = vld [vmem:[#allocation12 + $0x188] sm:$0xf]  ;;  %v12942_v2 = vld [vmem:[#allocation12 + $0x1a0] sm:$0xf0] }
 0x2d8   :  { %4983 = vmatpush.bf16.msrb.mxu3 %v10445_v26  ;;  %5009 = vmatpush.bf16.msra.mxu1 %v10449_v53  ;;  %v10277_v26 = vor.u32 %v12783_v13, %v10276_v12  ;;  %v10281_v53 = vor.u32 %v12780_v16, %v10278_v3  ;;  %v10312_v13 = vld [vmem:[#allocation9 + $0x50] sm:$0xf]  ;;  %v12791_v16 = vld [vmem:[#allocation9 + $0x68] sm:$0xf0] }
 0x2d9   :  { %v10313_v23 = vor.u32 %v12791_v16, %v10312_v13  ;;  %v11576_v13 = vld [vmem:[#allocation12 + $0x6c8] sm:$0xf]  ;;  %v13110_v16 = vld [vmem:[#allocation12 + $0x6e0] sm:$0xf0] }
 0x2dc   :  { %4984 = vmatpush.bf16.msrb.mxu3 %v10417_v19  ;;  %v4111_v39 = vpop.f32.mrf.mxu3  ;;  %5010 = vmatpush.bf16.msra.mxu1 %v10421_v30  ;;  %v12826_v19 = vld [vmem:[#allocation9 + $0x180] sm:$0xf0]  ;;  %v10612_v30 = vld [vmem:[#allocation9 + $0x2b0] sm:$0xf] }
 0x2dd   :  { %v4112_v0 = vadd.f32 %v4111_v39, %v4099_v38  ;;  %v10453_v35 = vor.u32 %v12826_v19, %v10452_v28  ;;  %v10613_v38 = vor.u32 %v12867_v32, %v10612_v30  ;;  %v10617_v39 = vor.u32 %v12864_v29, %v10614_v34  ;;  %v12998_v28 = vld [vmem:[#allocation12 + $0x360] sm:$0xf0]  ;;  %v10648_v19 = vld [vmem:[#allocation9 + $0x2f0] sm:$0xf]  ;;  %v11100_v29 = vld [vmem:[#allocation12 + $0x310] sm:$0xf] }
 0x2de   :  { %v12875_v30 = vld [vmem:[#allocation9 + $0x308] sm:$0xf0]  ;;  %v10285_v34 = vor.u32 %v12784_v25, %v10284_v24  ;;  %v10988_v25 = vld [vmem:[#allocation12 + $0x230] sm:$0xf] }
 0x2df   :  { %v4125_v48 = vadd.f32 %v13788_v17, %v4112_v0  ;;  %v12860_v0 = vld [vmem:[#allocation9 + $0x290] sm:$0xf0] }
 0x2e0   :  { %4985 = vmatpush.bf16.msrb.mxu3 %v10389_v42  ;;  %5011 = vmatpush.bf16.msra.mxu1 %v10393_v44  ;;  %v10424_v42 = vld [vmem:[#allocation9 + $0x130] sm:$0xf]  ;;  %v12819_v44 = vld [vmem:[#allocation9 + $0x148] sm:$0xf0] }
 0x2e1   :  { %v4138_v45 = vadd.f32 %v13790_v60, %v4125_v48  ;;  %v10425_v47 = vor.u32 %v12819_v44, %v10424_v42  ;;  %v10585_v48 = vor.u32 %v12860_v0, %v10584_v8  ;;  %v10620_v42 = vld [vmem:[#allocation9 + $0x2b8] sm:$0xf]  ;;  %v10848_v44 = vld [vmem:[#allocation12 + $0x118] sm:$0xf]  ;;  %v12928_v8 = vld [vmem:[#allocation12 + $0x130] sm:$0xf0] }
 0x2e3   :  { %v4151_v37 = vadd.f32 %v4150_v52, %v4138_v45  ;;  %4938 = vmatmul.bf16.vlgmr.msra.gmra.mxu3 %v13796_v22  ;;  %4964 = vmatmul.bf16.vlgmr.msrb.gmra.mxu1 %v13796_v22  ;;  %v10670_v52 = vld [vmem:[#allocation9 + $0x33c] sm:$0xf0] }
 0x2e4   :  { %4986 = vmatpush.bf16.msrb.mxu3 %v10361_v49  ;;  %v4113_v17 = vpop.f32.mrf.mxu3  ;;  %5012 = vmatpush.bf16.msra.mxu1 %v10365_v51  ;;  %v10673_v20 = vor.u32 %v12878_v40, %v10670_v52  ;;  %v10396_v49 = vld [vmem:[#allocation9 + $0xf8] sm:$0xf]  ;;  %v12812_v51 = vld [vmem:[#allocation9 + $0x110] sm:$0xf0]  ;;  %v10556_v45 = vld [vmem:[#allocation9 + $0x240] sm:$0xf] }
 0x2e5   :  { %v4155_v60 = vmax.f32 %v4151_v37, 0.0  ;;  %v10397_v41 = vor.u32 %v12812_v51, %v10396_v49  ;;  %v10557_v37 = vor.u32 %v12853_v58, %v10556_v45  ;;  %v10528_v17 = vld [vmem:[#allocation9 + $0x208] sm:$0xf]  ;;  %v10502_v40 = vld [vmem:[#allocation9 + $0x1ec] sm:$0xf0]  ;;  %v10621_v49 = vor.u32 %v12868_v21, %v10620_v42 }
 0x2e6   :  { %v10704_v52 = vld [vmem:[#allocation9 + $0x360] sm:$0xf]  ;;  %v10505_v3 = vor.u32 %v12836_v11, %v10502_v40  ;;  %v12921_v45 = vld [vmem:[#allocation12 + $0xf8] sm:$0xf0]  ;;  %v13047_v21 = vld [vmem:[#allocation12 + $0x4e8] sm:$0xf0] }
 0x2e7   :  { %v13806_v10 = vpack.c.bf16 %v4155_v60, %v4155_v60  ;;  %v10592_v51 = vld [vmem:[#allocation9 + $0x280] sm:$0xf] }
 0x2e8   :  { %4987 = vmatpush.bf16.msrb.mxu3 %v10333_v57  ;;  %5013 = vmatpush.bf16.msra.mxu1 %v10337_v9  ;;  %v12846_v57 = vld [vmem:[#allocation9 + $0x220] sm:$0xf0]  ;;  %v12843_v9 = vld [vmem:[#allocation9 + $0x20c] sm:$0xf]  ;;  %v10593_v14 = vor.u32 %v12861_v50, %v10592_v51  ;;  %v10932_v51 = vld [vmem:[#allocation12 + $0x1c0] sm:$0xf] }
 0x2e9   :  { %4899 = vmatmul.bf16.vlgmr.msra.gmra.mxu0 %v13806_v10  ;;  %4925 = vmatmul.bf16.vlgmr.msra.gmra.mxu2 %v13806_v10  ;;  %v10529_v60 = vor.u32 %v12846_v57, %v10528_v17  ;;  %v12914_v17 = vld [vmem:[#allocation12 + $0xc0] sm:$0xf0] }
 0x2ea   :  { %4995 = vmatpush.bf16.msra.mxu0 %v10697_v1  ;;  %5021 = vmatpush.bf16.msra.mxu2 %v10701_v4  ;;  %v10533_v1 = vor.u32 %v12843_v9, %v10530_v15  ;;  %v10500_v4 = vld [vmem:[#allocation9 + $0x1d0] sm:$0xf]  ;;  %v12854_v9 = vld [vmem:[#allocation9 + $0x260] sm:$0xf0]  ;;  %v13082_v50 = vld [vmem:[#allocation12 + $0x600] sm:$0xf0] }
 0x2eb   :  { %v10501_v12 = vor.u32 %v12839_v5, %v10500_v4  ;;  %v11016_v15 = vld [vmem:[#allocation12 + $0x268] sm:$0xf]  ;;  %v12847_v5 = vld [vmem:[#allocation9 + $0x228] sm:$0xf0] }
 0x2ec   :  { %4988 = vmatpush.bf16.msrb.mxu3 %v10305_v43  ;;  %5014 = vmatpush.bf16.msra.mxu1 %v10309_v54  ;;  %v12889_v43 = vld [vmem:[#allocation9 + $0x378] sm:$0xf0]  ;;  %v10341_v54 = vor.u32 %v12798_v62, %v10340_v59  ;;  %v10565_v59 = vor.u32 %v12854_v9, %v10564_v55  ;;  %v12907_v62 = vld [vmem:[#allocation12 + $0x88] sm:$0xf0]  ;;  %v10536_v4 = vld [vmem:[#allocation9 + $0x210] sm:$0xf] }
 0x2ed   :  { %v10537_v40 = vor.u32 %v12847_v5, %v10536_v4  ;;  %v13040_v55 = vld [vmem:[#allocation12 + $0x4b0] sm:$0xf0]  ;;  %v11268_v4 = vld [vmem:[#allocation12 + $0x460] sm:$0xf]  ;;  %v13033_v5 = vld [vmem:[#allocation12 + $0x478] sm:$0xf0] }
 0x2ee   :  { %4996 = vmatpush.bf16.msra.mxu0 %v10669_v18  ;;  %5022 = vmatpush.bf16.msra.mxu2 %v10673_v20  ;;  %v10705_v18 = vor.u32 %v12889_v43, %v10704_v52  ;;  %v10676_v20 = vld [vmem:[#allocation9 + $0x328] sm:$0xf]  ;;  %v10736_v52 = vld [vmem:[#allocation12 + $0x38] sm:$0xf]  ;;  %v12900_v43 = vld [vmem:[#allocation12 + $0x50] sm:$0xf0] }
 0x2ef   :  { %v13152_v9 = vld [vmem:[#allocation12 + $0x830] sm:$0xf0] }
 0x2f0   :  { %4989 = vmatpush.bf16.msrb.mxu3 %v10277_v26  ;;  %5015 = vmatpush.bf16.msra.mxu1 %v10281_v53  ;;  %v10876_v26 = vld [vmem:[#allocation12 + $0x150] sm:$0xf]  ;;  %v10677_v53 = vor.u32 %v12882_v33, %v10676_v20  ;;  %v11577_v20 = vor.u32 %v13110_v16, %v11576_v13  ;;  %v11968_v13 = vld [vmem:[#allocation12 + $0x9d8] sm:$0xf] }
 0x2f1   :  { %v11548_v33 = vld [vmem:[#allocation12 + $0x690] sm:$0xf] }
 0x2f2   :  { %4997 = vmatpush.bf16.msra.mxu0 %v10641_v7  ;;  %5023 = vmatpush.bf16.msra.mxu2 %v10645_v6  ;;  %v12935_v7 = vld [vmem:[#allocation12 + $0x168] sm:$0xf0]  ;;  %v11128_v6 = vld [vmem:[#allocation12 + $0x348] sm:$0xf] }
 0x2f3   :  { %4990 = vmatmul.bf16.vlgmr.msrb.gmra.mxu3 %v13796_v22  ;;  %5016 = vmatmul.bf16.vlgmr.msra.gmra.mxu1 %v13796_v22  ;;  %v11129_v32 = vor.u32 %v12998_v28, %v11128_v6  ;;  %v12893_v6 = vld [vmem:[#allocation12 + $0x18] sm:$0xf0]  ;;  %v11352_v28 = vld [vmem:[#allocation12 + $0x508] sm:$0xf] }
 0x2f4   :  { %5034 = vmatpush.bf16.msra.mxu3 %v10481_v27  ;;  %v10905_v27 = vor.u32 %v12942_v2, %v10904_v46  ;;  %v12963_v46 = vld [vmem:[#allocation12 + $0x248] sm:$0xf0] }
 0x2f5   :  { %v10989_v2 = vor.u32 %v12963_v46, %v10988_v25  ;;  %v13138_v25 = vld [vmem:[#allocation12 + $0x7c0] sm:$0xf0]  ;;  %v11380_v46 = vld [vmem:[#allocation12 + $0x540] sm:$0xf] }
 0x2f6   :  { %4998 = vmatpush.bf16.msra.mxu0 %v10613_v38  ;;  %5024 = vmatpush.bf16.msra.mxu2 %v10617_v39  ;;  %v10877_v38 = vor.u32 %v12935_v7, %v10876_v26  ;;  %v10649_v39 = vor.u32 %v12875_v30, %v10648_v19  ;;  %v11520_v26 = vld [vmem:[#allocation12 + $0x658] sm:$0xf]  ;;  %v10708_v7 = vld [vmem:[#allocation12] sm:$0xf]  ;;  %v13054_v30 = vld [vmem:[#allocation12 + $0x520] sm:$0xf0] }
 0x2f7   :  { %7554 = vmatpush.bf16.msrb.mxu1 %v10905_v27  ;;  %v10709_v19 = vor.u32 %v12893_v6, %v10708_v7 }
 0x2f8   :  { %5035 = vmatpush.bf16.msra.mxu3 %v10453_v35  ;;  %v12991_v35 = vld [vmem:[#allocation12 + $0x328] sm:$0xf0] }
 0x2f9   :  { %4951 = vmatmul.bf16.vlgmr.msrb.gmra.mxu0 %v13806_v10  ;;  %4977 = vmatmul.bf16.vlgmr.msrb.gmra.mxu2 %v13806_v10  ;;  %v11101_v0 = vor.u32 %v12991_v35, %v11100_v29  ;;  %v13166_v29 = vld [vmem:[#allocation12 + $0x8a0] sm:$0xf0] }
 0x2fa   :  { %4999 = vmatpush.bf16.msra.mxu0 %v10585_v48  ;;  %5025 = vmatpush.bf16.msra.mxu2 %v10589_v36  ;;  %v10849_v48 = vor.u32 %v12928_v8, %v10848_v44  ;;  %v10820_v36 = vld [vmem:[#allocation12 + $0xe0] sm:$0xf]  ;;  %v13089_v44 = vld [vmem:[#allocation12 + $0x638] sm:$0xf0] }
 0x2fb   :  { %7555 = vmatpush.bf16.msrb.mxu1 %v10877_v38  ;;  %v10960_v38 = vld [vmem:[#allocation12 + $0x1f8] sm:$0xf] }
 0x2fc   :  { %5036 = vmatpush.bf16.msra.mxu3 %v10425_v47  ;;  %v12984_v47 = vld [vmem:[#allocation12 + $0x2f0] sm:$0xf0] }
 0x2fd   :  { %v11073_v58 = vor.u32 %v12984_v47, %v11072_v63  ;;  %v11772_v47 = vld [vmem:[#allocation12 + $0x850] sm:$0xf] }
 0x2fe   :  { %5000 = vmatpush.bf16.msra.mxu0 %v10557_v37  ;;  %5026 = vmatpush.bf16.msra.mxu2 %v10561_v56  ;;  %v10821_v37 = vor.u32 %v12921_v45, %v10820_v36  ;;  %v10792_v56 = vld [vmem:[#allocation12 + $0xa8] sm:$0xf]  ;;  %v12949_v36 = vld [vmem:[#allocation12 + $0x1d8] sm:$0xf0] }
 0x2ff   :  { %7556 = vmatpush.bf16.msrb.mxu1 %v10849_v48  ;;  %v13159_v48 = vld [vmem:[#allocation12 + $0x868] sm:$0xf0]  ;;  %v10933_v45 = vor.u32 %v12949_v36, %v10932_v51 }
 0x300   :  { %5037 = vmatpush.bf16.msra.mxu3 %v10397_v41  ;;  %v12977_v41 = vld [vmem:[#allocation12 + $0x2b8] sm:$0xf0] }
 0x301   :  { %v11045_v57 = vor.u32 %v12977_v41, %v11044_v31  ;;  %v12024_v31 = vld [vmem:[#allocation12 + $0xa48] sm:$0xf] }
 0x302   :  { %5001 = vmatpush.bf16.msra.mxu0 %v10529_v60  ;;  %5027 = vmatpush.bf16.msra.mxu2 %v10533_v1  ;;  %v10793_v60 = vor.u32 %v12914_v17, %v10792_v56 }
 0x303   :  { %7557 = vmatpush.bf16.msrb.mxu1 %v10821_v37  ;;  %v13222_v37 = vld [vmem:[#allocation12 + $0xa60] sm:$0xf0] }
 0x304   :  { %5038 = vmatpush.bf16.msra.mxu3 %v10369_v61  ;;  %v12970_v61 = vld [vmem:[#allocation12 + $0x280] sm:$0xf0]  ;;  %v12025_v56 = vor.u32 %v13222_v37, %v12024_v31  ;;  %v11156_v31 = vld [vmem:[#allocation12 + $0x380] sm:$0xf]  ;;  %v12925_v37 = vld [vmem:[#allocation12 + $0x11c] sm:$0xf] }
 0x305   :  { %v11017_v1 = vor.u32 %v12970_v61, %v11016_v15  ;;  %v11436_v15 = vld [vmem:[#allocation12 + $0x5b0] sm:$0xf] }
 0x306   :  { %5002 = vmatpush.bf16.msra.mxu0 %v10501_v12  ;;  %5028 = vmatpush.bf16.msra.mxu2 %v10505_v3  ;;  %v12840_v12 = vld [vmem:[#allocation9 + $0x1f0] sm:$0xf0]  ;;  %v10737_v3 = vor.u32 %v12900_v43, %v10736_v52  ;;  %v13145_v52 = vld [vmem:[#allocation12 + $0x7f8] sm:$0xf0] }
 0x307   :  { %7558 = vmatpush.bf16.msrb.mxu1 %v10793_v60  ;;  %v13075_v60 = vld [vmem:[#allocation12 + $0x5c8] sm:$0xf0] }
 0x308   :  { %5039 = vmatpush.bf16.msra.mxu3 %v10341_v54  ;;  %v10508_v54 = vld [vmem:[#allocation9 + $0x1d8] sm:$0xf] }
 0x309   :  { %5003 = vmatmul.bf16.vlgmr.msra.gmra.mxu0 %v13806_v10  ;;  %5029 = vmatmul.bf16.vlgmr.msra.gmra.mxu2 %v13806_v10 }
 0x30a   :  { %5047 = vmatpush.bf16.msrb.mxu0 %v10705_v18  ;;  %7567 = vmatpush.bf16.msrb.mxu2 %v11129_v32  ;;  %v10509_v18 = vor.u32 %v12840_v12, %v10508_v54  ;;  %v11800_v32 = vld [vmem:[#allocation12 + $0x888] sm:$0xf]  ;;  %v11408_v54 = vld [vmem:[#allocation12 + $0x578] sm:$0xf]  ;;  %v13068_v12 = vld [vmem:[#allocation12 + $0x590] sm:$0xf0] }
 0x30b   :  { %v11801_v35 = vor.u32 %v13166_v29, %v11800_v32  ;;  %v11409_v16 = vor.u32 %v13068_v12, %v11408_v54  ;;  %v10906_v29 = vld [vmem:[#allocation12 + $0x1a4] sm:$0xf0]  ;;  %v11828_v54 = vld [vmem:[#allocation12 + $0x8c0] sm:$0xf]  ;;  %v13173_v12 = vld [vmem:[#allocation12 + $0x8d8] sm:$0xf0] }
 0x30c   :  { %5040 = vmatpush.bf16.msra.mxu3 %v10313_v23  ;;  %v13103_v23 = vld [vmem:[#allocation12 + $0x6a8] sm:$0xf0] }
 0x30d   :  { %v11549_v24 = vor.u32 %v13103_v23, %v11548_v33 }
 0x30e   :  { %5048 = vmatpush.bf16.msrb.mxu0 %v10677_v53  ;;  %7568 = vmatpush.bf16.msrb.mxu2 %v11101_v0  ;;  %v13096_v53 = vld [vmem:[#allocation12 + $0x670] sm:$0xf0]  ;;  %v11324_v0 = vld [vmem:[#allocation12 + $0x4d0] sm:$0xf] }
 0x30f   :  { %v11521_v27 = vor.u32 %v13096_v53, %v11520_v26  ;;  %v11325_v63 = vor.u32 %v13047_v21, %v11324_v0  ;;  %v13061_v26 = vld [vmem:[#allocation12 + $0x558] sm:$0xf0]  ;;  %v11940_v53 = vld [vmem:[#allocation12 + $0x9a0] sm:$0xf]  ;;  %v13012_v0 = vld [vmem:[#allocation12 + $0x3d0] sm:$0xf0] }
 0x310   :  { %5041 = vmatpush.bf16.msra.mxu3 %v10285_v34  ;;  %v11353_v34 = vor.u32 %v13054_v30, %v11352_v28  ;;  %v11381_v7 = vor.u32 %v13061_v26, %v11380_v46  ;;  %v11212_v28 = vld [vmem:[#allocation12 + $0x3f0] sm:$0xf]  ;;  %v12939_v30 = vld [vmem:[#allocation12 + $0x18c] sm:$0xf]  ;;  %v12932_v21 = vld [vmem:[#allocation12 + $0x154] sm:$0xf] }
 0x311   :  { %v12904_v46 = vld [vmem:[#allocation12 + $0x74] sm:$0xf] }
 0x312   :  { %5049 = vmatpush.bf16.msrb.mxu0 %v10649_v39  ;;  %7569 = vmatpush.bf16.msrb.mxu2 %v11073_v58  ;;  %v11492_v39 = vld [vmem:[#allocation12 + $0x620] sm:$0xf]  ;;  %v11464_v58 = vld [vmem:[#allocation12 + $0x5e8] sm:$0xf] }
 0x313   :  { %5042 = vmatmul.bf16.vlgmr.msra.gmra.mxu3 %v13796_v22  ;;  %v10764_v22 = vld [vmem:[#allocation12 + $0x70] sm:$0xf]  ;;  %v11493_v8 = vor.u32 %v13089_v44, %v11492_v39  ;;  %v11465_v41 = vor.u32 %v13082_v50, %v11464_v58  ;;  %v11912_v39 = vld [vmem:[#allocation12 + $0x968] sm:$0xf]  ;;  %v13187_v58 = vld [vmem:[#allocation12 + $0x948] sm:$0xf0] }
 0x314   :  { %v10765_v11 = vor.u32 %v12907_v62, %v10764_v22  ;;  %7580 = vmatpush.bf16.msrb.mxu3 %v11353_v34  ;;  %v13215_v22 = vld [vmem:[#allocation12 + $0xa28] sm:$0xf0]  ;;  %v11437_v62 = vor.u32 %v13075_v60, %v11436_v15  ;;  %v11660_v34 = vld [vmem:[#allocation12 + $0x770] sm:$0xf]  ;;  %v12248_v15 = vld [vmem:[#allocation12 + $0xc08] sm:$0xf] }
 0x316   :  { %5050 = vmatpush.bf16.msrb.mxu0 %v10621_v49  ;;  %7570 = vmatpush.bf16.msrb.mxu2 %v11045_v57  ;;  %v11773_v49 = vor.u32 %v13159_v48, %v11772_v47  ;;  %v11744_v57 = vld [vmem:[#allocation12 + $0x818] sm:$0xf]  ;;  %v10878_v47 = vld [vmem:[#allocation12 + $0x16c] sm:$0xf0] }
 0x317   :  { %7559 = vmatpush.bf16.msrb.mxu1 %v10765_v11  ;;  %v11745_v61 = vor.u32 %v13152_v9, %v11744_v57  ;;  %v11269_v11 = vor.u32 %v13033_v5, %v11268_v4  ;;  %v11632_v48 = vld [vmem:[#allocation12 + $0x738] sm:$0xf]  ;;  %v10881_v51 = vor.u32 %v12932_v21, %v10878_v47  ;;  %v12918_v4 = vld [vmem:[#allocation12 + $0xe4] sm:$0xf]  ;;  %v10822_v5 = vld [vmem:[#allocation12 + $0xfc] sm:$0xf0] }
 0x318   :  { %7581 = vmatpush.bf16.msrb.mxu3 %v11325_v63 }
 0x31a   :  { %5051 = vmatpush.bf16.msrb.mxu0 %v10593_v14  ;;  %7571 = vmatpush.bf16.msrb.mxu2 %v11017_v1  ;;  %v11296_v14 = vld [vmem:[#allocation12 + $0x498] sm:$0xf] }
 0x31b   :  { %7560 = vmatpush.bf16.msrb.mxu1 %v10737_v3  ;;  %v11297_v17 = vor.u32 %v13040_v55, %v11296_v14  ;;  %v13208_v3 = vld [vmem:[#allocation12 + $0x9f0] sm:$0xf0]  ;;  %v10850_v55 = vld [vmem:[#allocation12 + $0x134] sm:$0xf0] }
 0x31c   :  { %v11969_v33 = vor.u32 %v13208_v3, %v11968_v13  ;;  %v10853_v57 = vor.u32 %v12925_v37, %v10850_v55  ;;  %v11829_v13 = vor.u32 %v13173_v12, %v11828_v54  ;;  %v10794_v3 = vld [vmem:[#allocation12 + $0xc4] sm:$0xf0]  ;;  %v12052_v55 = vld [vmem:[#allocation12 + $0xa80] sm:$0xf] }
 0x31d   :  { %7582 = vmatpush.bf16.msrb.mxu3 %v11297_v17  ;;  %v13117_v17 = vld [vmem:[#allocation12 + $0x718] sm:$0xf0] }
 0x31e   :  { %5052 = vmatpush.bf16.msrb.mxu0 %v10565_v59  ;;  %7572 = vmatpush.bf16.msrb.mxu2 %v10989_v2  ;;  %v11996_v59 = vld [vmem:[#allocation12 + $0xa10] sm:$0xf] }
 0x31f   :  { %7561 = vmatpush.bf16.msrb.mxu1 %v10709_v19  ;;  %v11997_v1 = vor.u32 %v13215_v22, %v11996_v59  ;;  %v13019_v19 = vld [vmem:[#allocation12 + $0x408] sm:$0xf0]  ;;  %v11856_v22 = vld [vmem:[#allocation12 + $0x8f8] sm:$0xf] }
 0x320   :  { %v11213_v32 = vor.u32 %v13019_v19, %v11212_v28  ;;  %v10738_v28 = vld [vmem:[#allocation12 + $0x54] sm:$0xf0] }
 0x321   :  { %7583 = vmatpush.bf16.msrb.mxu3 %v11269_v11  ;;  %v10825_v11 = vor.u32 %v12918_v4, %v10822_v5 }
 0x322   :  { %5053 = vmatpush.bf16.msrb.mxu0 %v10537_v40  ;;  %v11716_v40 = vld [vmem:[#allocation12 + $0x7e0] sm:$0xf] }
 0x323   :  { %7606 = vmatpush.bf16.msra.mxu1 %v11801_v35  ;;  %v11717_v43 = vor.u32 %v13145_v52, %v11716_v40  ;;  %v13131_v35 = vld [vmem:[#allocation12 + $0x788] sm:$0xf0]  ;;  %v12220_v40 = vld [vmem:[#allocation12 + $0xbd0] sm:$0xf] }
 0x324   :  { %v13271_v52 = vld [vmem:[#allocation12 + $0xbe8] sm:$0xf0] }
 0x326   :  { %5054 = vmatpush.bf16.msrb.mxu0 %v10509_v18  ;;  %v11240_v18 = vld [vmem:[#allocation12 + $0x428] sm:$0xf] }
 0x327   :  { %7607 = vmatpush.bf16.msra.mxu1 %v11773_v49  ;;  %v13124_v49 = vld [vmem:[#allocation12 + $0x750] sm:$0xf0] }
 0x328   :  { %v11633_v36 = vor.u32 %v13124_v49, %v11632_v48  ;;  %v12080_v49 = vld [vmem:[#allocation12 + $0xab8] sm:$0xf] }
 0x329   :  { %5055 = vmatmul.bf16.vlgmr.msrb.gmra.mxu0 %v13806_v10  ;;  %v12956_v10 = vld [vmem:[#allocation12 + $0x210] sm:$0xf0] }
 0x32a   :  { %7593 = vmatpush.bf16.msra.mxu0 %v11577_v20  ;;  %v10961_v42 = vor.u32 %v12956_v10, %v10960_v38  ;;  %v13026_v20 = vld [vmem:[#allocation12 + $0x440] sm:$0xf0]  ;;  %v10909_v38 = vor.u32 %v12939_v30, %v10906_v29  ;;  %v11661_v10 = vor.u32 %v13131_v35, %v11660_v34  ;;  %v13820_v35 = vld [vmem:[#allocation10] sm:$0xff] }
 0x32b   :  { %7608 = vmatpush.bf16.msra.mxu1 %v11745_v61  ;;  %v11241_v23 = vor.u32 %v13026_v20, %v11240_v18  ;;  %v13278_v61 = vld [vmem:[#allocation12 + $0xc20] sm:$0xf0]  ;;  %v4290_v12 = vperm.slane %v13820_v35, 2 }
 0x32c   :  { %7573 = vmatpush.bf16.msrb.mxu2 %v10961_v42  ;;  %v13194_v42 = vld [vmem:[#allocation12 + $0x980] sm:$0xf0]  ;;  %v12249_v59 = vor.u32 %v13278_v61, %v12248_v15  ;;  %v11102_v15 = vld [vmem:[#allocation12 + $0x32c] sm:$0xf0] }
 0x32d   :  { %7584 = vmatpush.bf16.msrb.mxu3 %v11241_v23  ;;  %v11913_v44 = vor.u32 %v13194_v42, %v11912_v39  ;;  %v13264_v23 = vld [vmem:[#allocation12 + $0xbb0] sm:$0xf0]  ;;  %v13250_v29 = vld [vmem:[#allocation12 + $0xb40] sm:$0xf0]  ;;  %v10710_v42 = vld [vmem:[#allocation12 + $0x1c] sm:$0xf0] }
 0x32e   :  { %7594 = vmatpush.bf16.msra.mxu0 %v11549_v24  ;;  %v11688_v24 = vld [vmem:[#allocation12 + $0x7a8] sm:$0xf]  ;;  %v12890_v39 = vld [vmem:[#allocation12 + $0x4] sm:$0xf] }
 0x32f   :  { %7609 = vmatpush.bf16.msra.mxu1 %v11717_v43  ;;  %v11689_v2 = vor.u32 %v13138_v25, %v11688_v24  ;;  %v12221_v43 = vor.u32 %v13271_v52, %v12220_v40  ;;  %v12981_v52 = vld [vmem:[#allocation12 + $0x2dc] sm:$0xf] }
 0x330   :  { %7574 = vmatpush.bf16.msrb.mxu2 %v10933_v45  ;;  %v11884_v45 = vld [vmem:[#allocation12 + $0x930] sm:$0xf] }
 0x331   :  { %7585 = vmatpush.bf16.msrb.mxu3 %v11213_v32  ;;  %v11885_v50 = vor.u32 %v13187_v58, %v11884_v45  ;;  %v12136_v32 = vld [vmem:[#allocation12 + $0xb28] sm:$0xf]  ;;  %v12995_v58 = vld [vmem:[#allocation12 + $0x34c] sm:$0xf] }
 0x332   :  { %7595 = vmatpush.bf16.msra.mxu0 %v11521_v27  ;;  %v13201_v27 = vld [vmem:[#allocation12 + $0x9b8] sm:$0xf0]  ;;  %v12137_v34 = vor.u32 %v13250_v29, %v12136_v32  ;;  %v4291_v32 = vperm.slane %v13820_v35, 3 }
 0x333   :  { %v11941_v6 = vor.u32 %v13201_v27, %v11940_v53  ;;  %7610 = vmatpush.bf16.msra.mxu1 %v11689_v2  ;;  %v10766_v2 = vld [vmem:[#allocation12 + $0x8c] sm:$0xf0]  ;;  %v12164_v53 = vld [vmem:[#allocation12 + $0xb60] sm:$0xf]  ;;  %v13257_v27 = vld [vmem:[#allocation12 + $0xb78] sm:$0xf0] }
 0x334   :  { %7619 = vmatpush.bf16.msra.mxu2 %v12025_v56  ;;  %v11604_v56 = vld [vmem:[#allocation12 + $0x700] sm:$0xf]  ;;  %v10769_v26 = vor.u32 %v12904_v46, %v10766_v2  ;;  %v13037_v46 = vld [vmem:[#allocation12 + $0x49c] sm:$0xf]  ;;  %v11298_v2 = vld [vmem:[#allocation12 + $0x4b4] sm:$0xf0] }
 0x335   :  { %v11605_v9 = vor.u32 %v13117_v17, %v11604_v56  ;;  %v13229_v56 = vld [vmem:[#allocation12 + $0xa98] sm:$0xf0] }
 0x336   :  { %7596 = vmatpush.bf16.msra.mxu0 %v11493_v8  ;;  %v11184_v8 = vld [vmem:[#allocation12 + $0x3b8] sm:$0xf]  ;;  %v12053_v61 = vor.u32 %v13229_v56, %v12052_v55  ;;  %v12953_v56 = vld [vmem:[#allocation12 + $0x1fc] sm:$0xf] }
 0x337   :  { %7611 = vmatpush.bf16.msra.mxu1 %v11661_v10  ;;  %v11185_v63 = vor.u32 %v13012_v0, %v11184_v8  ;;  %v4288_v10 = vperm.slane %v13820_v35, 0  ;;  %v12108_v8 = vld [vmem:[#allocation12 + $0xaf0] sm:$0xf]  ;;  %v13243_v0 = vld [vmem:[#allocation12 + $0xb08] sm:$0xf0] }
 0x338   :  { %7620 = vmatpush.bf16.msra.mxu2 %v11997_v1  ;;  %v12109_v21 = vor.u32 %v13243_v0, %v12108_v8  ;;  %v12960_v8 = vld [vmem:[#allocation12 + $0x234] sm:$0xf] }
 0x339   :  { %7586 = vmatpush.bf16.msrb.mxu3 %v11185_v63 }
 0x33a   :  { %7597 = vmatpush.bf16.msra.mxu0 %v11465_v41  ;;  %v13005_v41 = vld [vmem:[#allocation12 + $0x398] sm:$0xf0] }
 0x33b   :  { %7612 = vmatpush.bf16.msra.mxu1 %v11633_v36  ;;  %v11157_v14 = vor.u32 %v13005_v41, %v11156_v31  ;;  %v4289_v36 = vperm.slane %v13820_v35, 1 }
 0x33c   :  { %7621 = vmatpush.bf16.msra.mxu2 %v11969_v33  ;;  %v12192_v33 = vld [vmem:[#allocation12 + $0xb98] sm:$0xf] }
 0x33d   :  { %7587 = vmatpush.bf16.msrb.mxu3 %v11157_v14  ;;  %v12193_v24 = vor.u32 %v13264_v23, %v12192_v33  ;;  %v11046_v33 = vld [vmem:[#allocation12 + $0x2bc] sm:$0xf0] }
 0x33e   :  { %7598 = vmatpush.bf16.msra.mxu0 %v11437_v62  ;;  %v13180_v62 = vld [vmem:[#allocation12 + $0x910] sm:$0xf0] }
 0x33f   :  { %v11857_v1 = vor.u32 %v13180_v62, %v11856_v22  ;;  %7613 = vmatpush.bf16.msra.mxu1 %v11605_v9  ;;  %v12988_v9 = vld [vmem:[#allocation12 + $0x314] sm:$0xf]  ;;  %v13051_v62 = vld [vmem:[#allocation12 + $0x50c] sm:$0xf] }
 0x340   :  { %7622 = vmatpush.bf16.msra.mxu2 %v11941_v6  ;;  %v12897_v6 = vld [vmem:[#allocation12 + $0x3c] sm:$0xf] }
 0x341   :  { %7632 = vmatpush.bf16.msra.mxu3 %v12249_v59  ;;  %v10741_v30 = vor.u32 %v12897_v6, %v10738_v28  ;;  %v11018_v28 = vld [vmem:[#allocation12 + $0x284] sm:$0xf0] }
 0x342   :  { %7599 = vmatpush.bf16.msra.mxu0 %v11409_v16  ;;  %v12911_v16 = vld [vmem:[#allocation12 + $0xac] sm:$0xf] }
 0x343   :  { %v10797_v20 = vor.u32 %v12911_v16, %v10794_v3  ;;  %v13044_v16 = vld [vmem:[#allocation12 + $0x4d4] sm:$0xf]  ;;  %v11326_v3 = vld [vmem:[#allocation12 + $0x4ec] sm:$0xf0] }
 0x344   :  { %7623 = vmatpush.bf16.msra.mxu2 %v11913_v44  ;;  %v10713_v44 = vor.u32 %v12890_v39, %v10710_v42  ;;  %v13030_v39 = vld [vmem:[#allocation12 + $0x464] sm:$0xf]  ;;  %v11270_v42 = vld [vmem:[#allocation12 + $0x47c] sm:$0xf0] }
 0x345   :  { %7633 = vmatpush.bf16.msra.mxu3 %v12221_v43  ;;  %v11074_v43 = vld [vmem:[#allocation12 + $0x2f4] sm:$0xf0] }
 0x346   :  { %7600 = vmatpush.bf16.msra.mxu0 %v11381_v7  ;;  %v12165_v7 = vor.u32 %v13257_v27, %v12164_v53 }
 0x348   :  { %7624 = vmatpush.bf16.msra.mxu2 %v11885_v50  ;;  %v11130_v50 = vld [vmem:[#allocation12 + $0x364] sm:$0xf0] }
 0x349   :  { %7634 = vmatpush.bf16.msra.mxu3 %v12193_v24  ;;  %v11133_v14 = vor.u32 %v12995_v58, %v11130_v50  ;;  %v11329_v24 = vor.u32 %v13044_v16, %v11326_v3  ;;  %v11242_v58 = vld [vmem:[#allocation12 + $0x444] sm:$0xf0]  ;;  %v13086_v16 = vld [vmem:[#allocation12 + $0x624] sm:$0xf]  ;;  %v11494_v3 = vld [vmem:[#allocation12 + $0x63c] sm:$0xf0] }
 0x34a   :  { %7645 = vmatpush.bf16.msrb.mxu0 %v10909_v38 }
 0x34c   :  { %7625 = vmatpush.bf16.msra.mxu2 %v11857_v1  ;;  %v11354_v1 = vld [vmem:[#allocation12 + $0x524] sm:$0xf0] }
 0x34d   :  { %7635 = vmatpush.bf16.msra.mxu3 %v12165_v7  ;;  %v11357_v54 = vor.u32 %v13051_v62, %v11354_v1  ;;  %v12967_v7 = vld [vmem:[#allocation12 + $0x26c] sm:$0xf]  ;;  %v13016_v1 = vld [vmem:[#allocation12 + $0x3f4] sm:$0xf] }
 0x34e   :  { %7646 = vmatpush.bf16.msrb.mxu0 %v10881_v51  ;;  %v13236_v51 = vld [vmem:[#allocation12 + $0xad0] sm:$0xf0] }
 0x34f   :  { %v12081_v31 = vor.u32 %v13236_v51, %v12080_v49  ;;  %v11273_v51 = vor.u32 %v13030_v39, %v11270_v42  ;;  %v13002_v39 = vld [vmem:[#allocation12 + $0x384] sm:$0xf]  ;;  %v11158_v42 = vld [vmem:[#allocation12 + $0x39c] sm:$0xf0] }
 0x350   :  { %v13818_v60 = vpop.f32.mrf.mxu1  ;;  %7626 = vmatpush.bf16.msra.mxu2 %v11829_v13 }
 0x351   :  { %7636 = vmatpush.bf16.msra.mxu3 %v12137_v34  ;;  %v4914_v17 = vadd.f32 %v13818_v60, %v4289_v36  ;;  %v11301_v34 = vor.u32 %v13037_v46, %v11298_v2  ;;  %v13149_v2 = vld [vmem:[#allocation12 + $0x81c] sm:$0xf] }
 0x352   :  { %7647 = vmatpush.bf16.msrb.mxu0 %v10853_v57 }
 0x355   :  { %7637 = vmatpush.bf16.msra.mxu3 %v12109_v21 }
 0x356   :  { %7648 = vmatpush.bf16.msrb.mxu0 %v10825_v11  ;;  %v4887_v18 = vpop.f32.mrf.mxu3  ;;  %v11105_v11 = vor.u32 %v12988_v9, %v11102_v15  ;;  %v10962_v9 = vld [vmem:[#allocation12 + $0x214] sm:$0xf0]  ;;  %v13093_v15 = vld [vmem:[#allocation12 + $0x65c] sm:$0xf] }
 0x357   :  { %v4888_v63 = vadd.f32 %v4887_v18, %v4288_v10  ;;  %v11077_v18 = vor.u32 %v12981_v52, %v11074_v43  ;;  %v10965_v52 = vor.u32 %v12953_v56, %v10962_v9  ;;  %v12946_v43 = vld [vmem:[#allocation12 + $0x1c4] sm:$0xf]  ;;  %v12250_v9 = vld [vmem:[#allocation12 + $0xc24] sm:$0xf0] }
 0x358   :  { %v4915_v25 = vpop.f32.mrf.mxu1 }
 0x359   :  { %7638 = vmatpush.bf16.msra.mxu3 %v12081_v31 }
 0x35a   :  { %7649 = vmatpush.bf16.msrb.mxu0 %v10797_v20  ;;  %v12974_v20 = vld [vmem:[#allocation12 + $0x2a4] sm:$0xf] }
 0x35b   :  { %v11049_v27 = vor.u32 %v12974_v20, %v11046_v33 }
 0x35d   :  { %7639 = vmatpush.bf16.msra.mxu3 %v12053_v61 }
 0x35e   :  { %7650 = vmatpush.bf16.msrb.mxu0 %v10769_v26  ;;  %v4889_v19 = vpop.f32.mrf.mxu3 }
 0x35f   :  { %v13107_v19 = vld [vmem:[#allocation12 + $0x6cc] sm:$0xf] }
 0x360   :  { %v13822_v38 = vpop.f32.mrf.mxu1 }
 0x361   :  { %v4966_v49 = vadd.f32 %v13822_v38, %v4291_v32  ;;  %v11522_v38 = vld [vmem:[#allocation12 + $0x674] sm:$0xf0]  ;;  %v11466_v32 = vld [vmem:[#allocation12 + $0x604] sm:$0xf0] }
 0x362   :  { %7651 = vmatpush.bf16.msrb.mxu0 %v10741_v30  ;;  %v11578_v30 = vld [vmem:[#allocation12 + $0x6e4] sm:$0xf0] }
 0x363   :  { %v11581_v0 = vor.u32 %v13107_v19, %v11578_v30  ;;  %v12026_v19 = vld [vmem:[#allocation12 + $0xa64] sm:$0xf0]  ;;  %v13079_v30 = vld [vmem:[#allocation12 + $0x5ec] sm:$0xf] }
 0x366   :  { %7652 = vmatpush.bf16.msrb.mxu0 %v10713_v44  ;;  %v4900_v47 = vpop.f32.mrf.mxu0  ;;  %v4939_v48 = vpop.f32.mrf.mxu3  ;;  %v11021_v44 = vor.u32 %v12967_v7, %v11018_v28  ;;  %v13219_v7 = vld [vmem:[#allocation12 + $0xa4c] sm:$0xf] }
 0x367   :  { %v4901_v45 = vadd.f32 %v4900_v47, %v4888_v63  ;;  %v4940_v25 = vadd.f32 %v4939_v48, %v4290_v12  ;;  %v10990_v63 = vld [vmem:[#allocation12 + $0x24c] sm:$0xf0]  ;;  %v13100_v47 = vld [vmem:[#allocation12 + $0x694] sm:$0xf]  ;;  %v10934_v12 = vld [vmem:[#allocation12 + $0x1dc] sm:$0xf0] }
 0x368   :  { %v4967_v41 = vpop.f32.mrf.mxu1  ;;  %v11550_v48 = vld [vmem:[#allocation12 + $0x6ac] sm:$0xf0]  ;;  %v10993_v55 = vor.u32 %v12960_v8, %v10990_v63  ;;  %v13142_v8 = vld [vmem:[#allocation12 + $0x7e4] sm:$0xf]  ;;  %v13212_v63 = vld [vmem:[#allocation12 + $0xa14] sm:$0xf] }
 0x369   :  { %v5060_v37 = vmax.f32 %v4901_v45, 0.0  ;;  %v13023_v45 = vld [vmem:[#allocation12 + $0x42c] sm:$0xf] }
 0x36b   :  { %v13827_v57 = vpack.c.bf16 %v5060_v37, %v5060_v37  ;;  %v13163_v37 = vld [vmem:[#allocation12 + $0x88c] sm:$0xf] }
 0x36c   :  { %v4926_v59 = vpop.f32.mrf.mxu2 }
 0x36d   :  { %v4927_v22 = vadd.f32 %v4926_v59, %v4914_v17  ;;  %7562 = vmatmul.bf16.vlgmr.msrb.gmra.mxu1 %v13827_v57  ;;  %v11553_v17 = vor.u32 %v13100_v47, %v11550_v48  ;;  %v11245_v59 = vor.u32 %v13023_v45, %v11242_v58  ;;  %v11469_v47 = vor.u32 %v13079_v30, %v11466_v32 }
 0x36e   :  { %v4902_v4 = vpop.f32.mrf.mxu0  ;;  %v4941_v5 = vpop.f32.mrf.mxu3  ;;  %7658 = vmatpush.bf16.msrb.mxu1 %v11133_v14  ;;  %v11802_v14 = vld [vmem:[#allocation12 + $0x8a4] sm:$0xf0]  ;;  %v11161_v58 = vor.u32 %v13002_v39, %v11158_v42 }
 0x36f   :  { %v5061_v40 = vmax.f32 %v4927_v22, 0.0  ;;  %v4292_v22 = vperm.slane %v13820_v35, 4  ;;  %v11805_v62 = vor.u32 %v13163_v37, %v11802_v14  ;;  %v11214_v4 = vld [vmem:[#allocation12 + $0x40c] sm:$0xf0]  ;;  %v11690_v37 = vld [vmem:[#allocation12 + $0x7c4] sm:$0xf0] }
 0x370   :  { %v13830_v60 = vpop.f32.mrf.mxu1 }
 0x371   :  { %v13833_v13 = vpack.c.bf16 %v5061_v40, %v5061_v40  ;;  %v11774_v40 = vld [vmem:[#allocation12 + $0x86c] sm:$0xf0] }
 0x372   :  { %7659 = vmatpush.bf16.msrb.mxu1 %v11105_v11  ;;  %v13156_v11 = vld [vmem:[#allocation12 + $0x854] sm:$0xf] }
 0x373   :  { %7575 = vmatmul.bf16.vlgmr.msrb.gmra.mxu2 %v13833_v13 }
 0x374   :  { %v4928_v23 = vpop.f32.mrf.mxu2  ;;  %7671 = vmatpush.bf16.msrb.mxu2 %v11357_v54  ;;  %v11525_v54 = vor.u32 %v13093_v15, %v11522_v38  ;;  %v13205_v15 = vld [vmem:[#allocation12 + $0x9dc] sm:$0xf] }
 0x375   :  { %v11777_v23 = vor.u32 %v13156_v11, %v11774_v40  ;;  %v11662_v11 = vld [vmem:[#allocation12 + $0x78c] sm:$0xf0] }
 0x376   :  { %v4952_v26 = vpop.f32.mrf.mxu0  ;;  %v13836_v53 = vpop.f32.mrf.mxu3  ;;  %7660 = vmatpush.bf16.msrb.mxu1 %v11077_v18  ;;  %v11217_v18 = vor.u32 %v13016_v1, %v11214_v4  ;;  %v13128_v4 = vld [vmem:[#allocation12 + $0x774] sm:$0xf] }
 0x377   :  { %v4953_v6 = vadd.f32 %v4952_v26, %v4940_v25  ;;  %v4992_v20 = vadd.f32 %v13836_v53, %v4292_v22  ;;  %v11186_v25 = vld [vmem:[#allocation12 + $0x3d4] sm:$0xf0] }
 0x378   :  { %v5019_v29 = vpop.f32.mrf.mxu1  ;;  %7672 = vmatpush.bf16.msrb.mxu2 %v11329_v24  ;;  %v13009_v24 = vld [vmem:[#allocation12 + $0x3bc] sm:$0xf]  ;;  %v11746_v26 = vld [vmem:[#allocation12 + $0x834] sm:$0xf0] }
 0x379   :  { %v5062_v10 = vmax.f32 %v4953_v6, 0.0  ;;  %v11497_v6 = vor.u32 %v13086_v16, %v11494_v3  ;;  %v4293_v29 = vperm.slane %v13820_v35, 5  ;;  %v11189_v53 = vor.u32 %v13009_v24, %v11186_v25 }
 0x37a   :  { %7661 = vmatpush.bf16.msrb.mxu1 %v11049_v27  ;;  %v10937_v27 = vor.u32 %v12946_v43, %v10934_v12  ;;  %v13268_v43 = vld [vmem:[#allocation12 + $0xbd4] sm:$0xf]  ;;  %v13198_v12 = vld [vmem:[#allocation12 + $0x9a4] sm:$0xf]  ;;  %v11665_v24 = vor.u32 %v13128_v4, %v11662_v11  ;;  %v12943_v4 = vld [vmem:[#allocation12 + $0x1a8] sm:$0xf0] }
 0x37b   :  { %v13839_v21 = vpack.c.bf16 %v5062_v10, %v5062_v10  ;;  %v11749_v10 = vor.u32 %v13149_v2, %v11746_v26  ;;  %v5018_v45 = vadd.f32 %v13830_v60, %v4293_v29  ;;  %v13065_v60 = vld [vmem:[#allocation12 + $0x57c] sm:$0xf]  ;;  %v11634_v26 = vld [vmem:[#allocation12 + $0x754] sm:$0xf0]  ;;  %v13114_v29 = vld [vmem:[#allocation12 + $0x704] sm:$0xf] }
 0x37c   :  { %7673 = vmatpush.bf16.msrb.mxu2 %v11301_v34  ;;  %v4978_v36 = vpop.f32.mrf.mxu2 }
 0x37d   :  { %7588 = vmatmul.bf16.vlgmr.msrb.gmra.mxu3 %v13839_v21  ;;  %v4979_v50 = vadd.f32 %v4978_v36, %v4966_v49  ;;  %v11998_v49 = vld [vmem:[#allocation12 + $0xa2c] sm:$0xf0] }
 0x37e   :  { %v4954_v31 = vpop.f32.mrf.mxu0  ;;  %v4993_v41 = vpop.f32.mrf.mxu3  ;;  %7662 = vmatpush.bf16.msrb.mxu1 %v11021_v44  ;;  %7684 = vmatpush.bf16.msrb.mxu3 %v11581_v0  ;;  %v12029_v44 = vor.u32 %v13219_v7, %v12026_v19  ;;  %v11718_v0 = vld [vmem:[#allocation12 + $0x7fc] sm:$0xf0]  ;;  %v11438_v36 = vld [vmem:[#allocation12 + $0x5cc] sm:$0xf0]  ;;  %v12001_v56 = vor.u32 %v13212_v63, %v11998_v49  ;;  %v12194_v7 = vld [vmem:[#allocation12 + $0xbb4] sm:$0xf0] }
 0x37f   :  { %v5063_v61 = vmax.f32 %v4979_v50, 0.0  ;;  %v11721_v31 = vor.u32 %v13142_v8, %v11718_v0  ;;  %v13135_v41 = vld [vmem:[#allocation12 + $0x7ac] sm:$0xf]  ;;  %v11914_v19 = vld [vmem:[#allocation12 + $0x984] sm:$0xf0] }
 0x380   :  { %7674 = vmatpush.bf16.msrb.mxu2 %v11273_v51  ;;  %v13072_v51 = vld [vmem:[#allocation12 + $0x5b4] sm:$0xf]  ;;  %v12999_v8 = vld [vmem:[#allocation12 + $0x368] sm:$0xf0]  ;;  %v11886_v63 = vld [vmem:[#allocation12 + $0x94c] sm:$0xf0] }
 0x381   :  { %v13844_v5 = vpack.c.bf16 %v5063_v61, %v5063_v61  ;;  %v11441_v38 = vor.u32 %v13072_v51, %v11438_v36  ;;  %v11970_v61 = vld [vmem:[#allocation12 + $0x9f4] sm:$0xf0]  ;;  %v13184_v0 = vld [vmem:[#allocation12 + $0x934] sm:$0xf]  ;;  %v4294_v51 = vperm.slane %v13820_v35, 6 }
 0x382   :  { %7663 = vmatpush.bf16.msrb.mxu1 %v10993_v55  ;;  %7685 = vmatpush.bf16.msrb.mxu3 %v11553_v17  ;;  %v13275_v17 = vld [vmem:[#allocation12 + $0xc0c] sm:$0xf] }
 0x383   :  { %7601 = vmatmul.bf16.vlgmr.msra.gmra.mxu0 %v13844_v5  ;;  %v12253_v1 = vor.u32 %v13275_v17, %v12250_v9  ;;  %v13240_v9 = vld [vmem:[#allocation12 + $0xaf4] sm:$0xf] }
 0x384   :  { %7675 = vmatpush.bf16.msrb.mxu2 %v11245_v59  ;;  %7697 = vmatpush.bf16.msra.mxu0 %v11805_v62  ;;  %v4980_v33 = vpop.f32.mrf.mxu2  ;;  %v11410_v59 = vld [vmem:[#allocation12 + $0x594] sm:$0xf0]  ;;  %v11693_v62 = vor.u32 %v13135_v41, %v11690_v37  ;;  %v12992_v41 = vld [vmem:[#allocation12 + $0x330] sm:$0xf0]  ;;  %v13177_v37 = vld [vmem:[#allocation12 + $0x8fc] sm:$0xf] }
 0x385   :  { %v11413_v16 = vor.u32 %v13065_v60, %v11410_v59  ;;  %v11382_v33 = vld [vmem:[#allocation12 + $0x55c] sm:$0xf0]  ;;  %v12985_v60 = vld [vmem:[#allocation12 + $0x2f8] sm:$0xf0]  ;;  %v13170_v59 = vld [vmem:[#allocation12 + $0x8c4] sm:$0xf] }
 0x386   :  { %v5004_v46 = vpop.f32.mrf.mxu0  ;;  %7664 = vmatpush.bf16.msrb.mxu1 %v10965_v52  ;;  %7686 = vmatpush.bf16.msrb.mxu3 %v11525_v54  ;;  %v11973_v52 = vor.u32 %v13205_v15, %v11970_v61  ;;  %v12222_v54 = vld [vmem:[#allocation12 + $0xbec] sm:$0xf0]  ;;  %v11080_v61 = vld [vmem:[#allocation12 + $0x2e0] sm:$0xf] }
 0x387   :  { %v5005_v28 = vadd.f32 %v5004_v46, %v4992_v20  ;;  %v13058_v20 = vld [vmem:[#allocation12 + $0x544] sm:$0xf]  ;;  %v12225_v25 = vor.u32 %v13268_v43, %v12222_v54  ;;  %v13121_v46 = vld [vmem:[#allocation12 + $0x73c] sm:$0xf]  ;;  %v12110_v15 = vld [vmem:[#allocation12 + $0xb0c] sm:$0xf0] }
 0x388   :  { %7676 = vmatpush.bf16.msrb.mxu2 %v11217_v18  ;;  %7698 = vmatpush.bf16.msra.mxu0 %v11777_v23  ;;  %v11942_v18 = vld [vmem:[#allocation12 + $0x9bc] sm:$0xf0]  ;;  %v11637_v30 = vor.u32 %v13121_v46, %v11634_v26  ;;  %v12113_v11 = vor.u32 %v13240_v9, %v12110_v15  ;;  %v13055_v43 = vld [vmem:[#allocation12 + $0x528] sm:$0xf0]  ;;  %v10884_v46 = vld [vmem:[#allocation12 + $0x158] sm:$0xf] }
 0x389   :  { %v5064_v34 = vmax.f32 %v5005_v28, 0.0  ;;  %v11945_v2 = vor.u32 %v13198_v12, %v11942_v18  ;;  %v13191_v28 = vld [vmem:[#allocation12 + $0x96c] sm:$0xf]  ;;  %v11081_v12 = vor.u32 %v12985_v60, %v11080_v61  ;;  %v10968_v9 = vld [vmem:[#allocation12 + $0x200] sm:$0xf] }
 0x38a   :  { %7665 = vmatpush.bf16.msrb.mxu1 %v10937_v27  ;;  %7687 = vmatpush.bf16.msrb.mxu3 %v11497_v6  ;;  %v13261_v27 = vld [vmem:[#allocation12 + $0xb9c] sm:$0xf]  ;;  %v11385_v6 = vor.u32 %v13058_v20, %v11382_v33  ;;  %v11917_v42 = vor.u32 %v13191_v28, %v11914_v19  ;;  %v11052_v33 = vld [vmem:[#allocation12 + $0x2a8] sm:$0xf]  ;;  %v13226_v28 = vld [vmem:[#allocation12 + $0xa84] sm:$0xf] }
 0x38b   :  { %v13849_v48 = vpack.c.bf16 %v5064_v34, %v5064_v34  ;;  %v12197_v32 = vor.u32 %v13261_v27, %v12194_v7  ;;  %v13254_v34 = vld [vmem:[#allocation12 + $0xb64] sm:$0xf]  ;;  %v11332_v27 = vld [vmem:[#allocation12 + $0x4d8] sm:$0xf]  ;;  %v13048_v7 = vld [vmem:[#allocation12 + $0x4f0] sm:$0xf0] }
 0x38c   :  { %7677 = vmatpush.bf16.msrb.mxu2 %v11189_v53  ;;  %7699 = vmatpush.bf16.msra.mxu0 %v11749_v10  ;;  %v5030_v50 = vpop.f32.mrf.mxu2  ;;  %v11606_v53 = vld [vmem:[#allocation12 + $0x71c] sm:$0xf0]  ;;  %v13097_v61 = vld [vmem:[#allocation12 + $0x678] sm:$0xf0] }
 0x38d   :  { %7614 = vmatmul.bf16.vlgmr.msra.gmra.mxu1 %v13849_v48  ;;  %v5031_v14 = vadd.f32 %v5030_v50, %v5018_v45  ;;  %v12166_v10 = vld [vmem:[#allocation12 + $0xb7c] sm:$0xf0]  ;;  %v13247_v45 = vld [vmem:[#allocation12 + $0xb2c] sm:$0xf]  ;;  %v11889_v50 = vor.u32 %v13184_v0, %v11886_v63  ;;  %v13041_v63 = vld [vmem:[#allocation12 + $0x4b8] sm:$0xf0] }
 0x38e   :  { %7710 = vmatpush.bf16.msra.mxu1 %v12029_v44  ;;  %v5006_v55 = vpop.f32.mrf.mxu0  ;;  %7688 = vmatpush.bf16.msrb.mxu3 %v11469_v47  ;;  %v11136_v44 = vld [vmem:[#allocation12 + $0x350] sm:$0xf]  ;;  %v11609_v47 = vor.u32 %v13114_v29, %v11606_v53  ;;  %v12169_v49 = vor.u32 %v13254_v34, %v12166_v10  ;;  %v12054_v19 = vld [vmem:[#allocation12 + $0xa9c] sm:$0xf0]  ;;  %v12971_v53 = vld [vmem:[#allocation12 + $0x288] sm:$0xf0] }
 0x38f   :  { %v5065_v22 = vmax.f32 %v5031_v14, 0.0  ;;  %v11137_v36 = vor.u32 %v12999_v8, %v11136_v44  ;;  %v11858_v14 = vld [vmem:[#allocation12 + $0x914] sm:$0xf0]  ;;  %v11584_v34 = vld [vmem:[#allocation12 + $0x6d0] sm:$0xf]  ;;  %v12057_v8 = vor.u32 %v13226_v28, %v12054_v19 }
 0x390   :  { %7678 = vmatpush.bf16.msrb.mxu2 %v11161_v58  ;;  %7700 = vmatpush.bf16.msra.mxu0 %v11721_v31  ;;  %v12138_v58 = vld [vmem:[#allocation12 + $0xb44] sm:$0xf0]  ;;  %v11108_v31 = vld [vmem:[#allocation12 + $0x318] sm:$0xf]  ;;  %v13111_v10 = vld [vmem:[#allocation12 + $0x6e8] sm:$0xf0] }
 0x391   :  { %v13853_v40 = vpack.c.bf16 %v5065_v22, %v5065_v22  ;;  %v12141_v55 = vor.u32 %v13247_v45, %v12138_v58  ;;  %v11109_v17 = vor.u32 %v12992_v41, %v11108_v31  ;;  %v12929_v44 = vld [vmem:[#allocation12 + $0x138] sm:$0xf0]  ;;  %v11304_v0 = vld [vmem:[#allocation12 + $0x4a0] sm:$0xf]  ;;  %v12964_v45 = vld [vmem:[#allocation12 + $0x250] sm:$0xf0] }
 0x392   :  { %7711 = vmatpush.bf16.msra.mxu1 %v12001_v56  ;;  %7689 = vmatpush.bf16.msrb.mxu3 %v11441_v38  ;;  %v11861_v38 = vor.u32 %v13177_v37, %v11858_v14  ;;  %v11556_v58 = vld [vmem:[#allocation12 + $0x698] sm:$0xf]  ;;  %v11305_v31 = vor.u32 %v13041_v63, %v11304_v0  ;;  %v10828_v41 = vld [vmem:[#allocation12 + $0xe8] sm:$0xf]  ;;  %v12922_v37 = vld [vmem:[#allocation12 + $0x100] sm:$0xf0] }
 0x393   :  { %7627 = vmatmul.bf16.vlgmr.msra.gmra.mxu2 %v13853_v40  ;;  %7653 = vmatmul.bf16.vlgmr.msrb.gmra.mxu0 %v13827_v57  ;;  %v11276_v14 = vld [vmem:[#allocation12 + $0x468] sm:$0xf]  ;;  %v10829_v15 = vor.u32 %v12922_v37, %v10828_v41  ;;  %v13167_v41 = vld [vmem:[#allocation12 + $0x8a8] sm:$0xf0]  ;;  %v12256_v37 = vld [vmem:[#allocation12 + $0xc10] sm:$0xf] }
 0x394   :  { %7701 = vmatpush.bf16.msra.mxu0 %v11693_v62  ;;  %7723 = vmatpush.bf16.msra.mxu2 %v12253_v1  ;;  %v5032_v23 = vpop.f32.mrf.mxu2  ;;  %v11830_v62 = vld [vmem:[#allocation12 + $0x8dc] sm:$0xf0]  ;;  %v10912_v1 = vld [vmem:[#allocation12 + $0x190] sm:$0xf]  ;;  %v10716_v0 = vld [vmem:[#allocation12 + $0x8] sm:$0xf] }
 0x395   :  { %v11833_v18 = vor.u32 %v13170_v59, %v11830_v62  ;;  %v10913_v20 = vor.u32 %v12943_v4, %v10912_v1  ;;  %v12978_v23 = vld [vmem:[#allocation12 + $0x2c0] sm:$0xf0]  ;;  %v10800_v59 = vld [vmem:[#allocation12 + $0xb0] sm:$0xf]  ;;  %v13027_v1 = vld [vmem:[#allocation12 + $0x448] sm:$0xf0] }
 0x396   :  { %v5043_v3 = vpop.f32.mrf.mxu3  ;;  %7712 = vmatpush.bf16.msra.mxu1 %v11973_v52  ;;  %7690 = vmatpush.bf16.msrb.mxu3 %v11413_v16  ;;  %v11360_v52 = vld [vmem:[#allocation12 + $0x510] sm:$0xf]  ;;  %v13233_v16 = vld [vmem:[#allocation12 + $0xabc] sm:$0xf] }
 0x397   :  { %v5044_v56 = vadd.f32 %v5043_v3, %v4294_v51  ;;  %v12082_v3 = vld [vmem:[#allocation12 + $0xad4] sm:$0xf0]  ;;  %v11248_v62 = vld [vmem:[#allocation12 + $0x430] sm:$0xf] }
 0x398   :  { %7702 = vmatpush.bf16.msra.mxu0 %v11665_v24  ;;  %7724 = vmatpush.bf16.msra.mxu2 %v12225_v25  ;;  %v11361_v25 = vor.u32 %v13055_v43, %v11360_v52  ;;  %v12085_v26 = vor.u32 %v13233_v16, %v12082_v3  ;;  %v10996_v51 = vld [vmem:[#allocation12 + $0x238] sm:$0xf]  ;;  %v10940_v52 = vld [vmem:[#allocation12 + $0x1c8] sm:$0xf]  ;;  %v12950_v43 = vld [vmem:[#allocation12 + $0x1e0] sm:$0xf0]  ;;  %v11249_v3 = vor.u32 %v13027_v1, %v11248_v62 }
 0x399   :  { %v13160_v62 = vld [vmem:[#allocation12 + $0x870] sm:$0xf0]  ;;  %v12228_v1 = vld [vmem:[#allocation12 + $0xbd8] sm:$0xf] }
 0x39a   :  { %7713 = vmatpush.bf16.msra.mxu1 %v11945_v2  ;;  %7691 = vmatpush.bf16.msrb.mxu3 %v11385_v6  ;;  %v12936_v2 = vld [vmem:[#allocation12 + $0x170] sm:$0xf0]  ;;  %v11053_v6 = vor.u32 %v12978_v23, %v11052_v33  ;;  %v13223_v33 = vld [vmem:[#allocation12 + $0xa68] sm:$0xf0] }
 0x39b   :  { %v10885_v29 = vor.u32 %v12936_v2, %v10884_v46  ;;  %v12908_v23 = vld [vmem:[#allocation12 + $0x90] sm:$0xf0]  ;;  %v10941_v2 = vor.u32 %v12950_v43, %v10940_v52  ;;  %v13062_v52 = vld [vmem:[#allocation12 + $0x560] sm:$0xf0] }
 0x39c   :  { %7703 = vmatpush.bf16.msra.mxu0 %v11637_v30  ;;  %7725 = vmatpush.bf16.msra.mxu2 %v12197_v32  ;;  %v11024_v30 = vld [vmem:[#allocation12 + $0x270] sm:$0xf]  ;;  %v13020_v46 = vld [vmem:[#allocation12 + $0x410] sm:$0xf0] }
 0x39d   :  { %7666 = vmatmul.bf16.vlgmr.msrb.gmra.mxu1 %v13833_v13 }
 0x39e   :  { %v5045_v39 = vpop.f32.mrf.mxu3  ;;  %7714 = vmatpush.bf16.msra.mxu1 %v11917_v42  ;;  %v10856_v42 = vld [vmem:[#allocation12 + $0x120] sm:$0xf] }
 0x39f   :  { %v11333_v39 = vor.u32 %v13048_v7, %v11332_v27  ;;  %v11472_v7 = vld [vmem:[#allocation12 + $0x5f0] sm:$0xf] }
 0x3a0   :  { %7704 = vmatpush.bf16.msra.mxu0 %v11609_v47  ;;  %7726 = vmatpush.bf16.msra.mxu2 %v12169_v49  ;;  %v11025_v47 = vor.u32 %v12971_v53, %v11024_v30  ;;  %v11585_v49 = vor.u32 %v13111_v10, %v11584_v34  ;;  %v10744_v30 = vld [vmem:[#allocation12 + $0x40] sm:$0xf]  ;;  %v12901_v53 = vld [vmem:[#allocation12 + $0x58] sm:$0xf0] }
 0x3a1   :  { %v11192_v34 = vld [vmem:[#allocation12 + $0x3c0] sm:$0xf]  ;;  %v13013_v10 = vld [vmem:[#allocation12 + $0x3d8] sm:$0xf0]  ;;  %v10745_v63 = vor.u32 %v12901_v53, %v10744_v30  ;;  %v13188_v30 = vld [vmem:[#allocation12 + $0x950] sm:$0xf0] }
 0x3a2   :  { %7715 = vmatpush.bf16.msra.mxu1 %v11889_v50  ;;  %v13104_v50 = vld [vmem:[#allocation12 + $0x6b0] sm:$0xf0]  ;;  %v13146_v53 = vld [vmem:[#allocation12 + $0x800] sm:$0xf0] }
 0x3a3   :  { %7679 = vmatmul.bf16.vlgmr.msrb.gmra.mxu2 %v13839_v21  ;;  %7705 = vmatmul.bf16.vlgmr.msra.gmra.mxu0 %v13849_v48 }
 0x3a4   :  { %7749 = vmatpush.bf16.msrb.mxu0 %v11137_v36  ;;  %7727 = vmatpush.bf16.msra.mxu2 %v12141_v55  ;;  %v10857_v36 = vor.u32 %v12929_v44, %v10856_v42  ;;  %v13034_v55 = vld [vmem:[#allocation12 + $0x480] sm:$0xf0]  ;;  %v11444_v44 = vld [vmem:[#allocation12 + $0x5b8] sm:$0xf] }
 0x3a5   :  { %v11277_v60 = vor.u32 %v13034_v55, %v11276_v14  ;;  %v13279_v14 = vld [vmem:[#allocation12 + $0xc28] sm:$0xf0] }
 0x3a6   :  { %v5056_v35 = vpop.f32.mrf.mxu0  ;;  %7716 = vmatpush.bf16.msra.mxu1 %v11861_v38  ;;  %v11528_v38 = vld [vmem:[#allocation12 + $0x660] sm:$0xf] }
 0x3a7   :  { %v5057_v22 = vadd.f32 %v5056_v35, %v5044_v56  ;;  %v10997_v56 = vor.u32 %v12964_v45, %v10996_v51  ;;  %v12957_v35 = vld [vmem:[#allocation12 + $0x218] sm:$0xf0]  ;;  %v11976_v51 = vld [vmem:[#allocation12 + $0x9e0] sm:$0xf]  ;;  %v11164_v45 = vld [vmem:[#allocation12 + $0x388] sm:$0xf] }
 0x3a8   :  { %7750 = vmatpush.bf16.msrb.mxu0 %v11109_v17  ;;  %7728 = vmatpush.bf16.msra.mxu2 %v12113_v11  ;;  %v11557_v17 = vor.u32 %v13104_v50, %v11556_v58  ;;  %v10969_v4 = vor.u32 %v12957_v35, %v10968_v9  ;;  %v11529_v11 = vor.u32 %v13097_v61, %v11528_v38  ;;  %v13006_v58 = vld [vmem:[#allocation12 + $0x3a0] sm:$0xf0]  ;;  %v11808_v50 = vld [vmem:[#allocation12 + $0x890] sm:$0xf]  ;;  %v11948_v61 = vld [vmem:[#allocation12 + $0x9a8] sm:$0xf] }
 0x3a9   :  { %v5066_v54 = vmax.f32 %v5057_v22, 0.0  ;;  %v12915_v22 = vld [vmem:[#allocation12 + $0xc8] sm:$0xf0]  ;;  %v11809_v35 = vor.u32 %v13167_v41, %v11808_v50  ;;  %v12257_v38 = vor.u32 %v13279_v14, %v12256_v37  ;;  %v10830_v37 = vld [vmem:[#allocation12 + $0x104] sm:$0xf0] }
 0x3aa   :  { %7717 = vmatpush.bf16.msra.mxu1 %v11833_v18  ;;  %v10801_v16 = vor.u32 %v12915_v22, %v10800_v59  ;;  %v10772_v18 = vld [vmem:[#allocation12 + $0x78] sm:$0xf]  ;;  %v13251_v50 = vld [vmem:[#allocation12 + $0xb48] sm:$0xf0] }
 0x3ab   :  { %v13861_v24 = vpack.c.bf16 %v5066_v54, %v5066_v54  ;;  %v11500_v54 = vld [vmem:[#allocation12 + $0x628] sm:$0xf]  ;;  %v10773_v28 = vor.u32 %v12908_v23, %v10772_v18  ;;  %v11780_v59 = vld [vmem:[#allocation12 + $0x858] sm:$0xf]  ;;  %v11920_v18 = vld [vmem:[#allocation12 + $0x970] sm:$0xf] }
 0x3ac   :  { %7751 = vmatpush.bf16.msrb.mxu0 %v11081_v12  ;;  %7729 = vmatpush.bf16.msra.mxu2 %v12085_v26  ;;  %v13090_v12 = vld [vmem:[#allocation12 + $0x640] sm:$0xf0]  ;;  %v11752_v23 = vld [vmem:[#allocation12 + $0x820] sm:$0xf]  ;;  %v12919_v41 = vld [vmem:[#allocation12 + $0xec] sm:$0xf] }
 0x3ad   :  { %7640 = vmatmul.bf16.vlgmr.msra.gmra.mxu3 %v13861_v24  ;;  %7718 = vmatmul.bf16.vlgmr.msra.gmra.mxu1 %v13853_v40  ;;  %v11501_v26 = vor.u32 %v13090_v12, %v11500_v54  ;;  %v12940_v54 = vld [vmem:[#allocation12 + $0x194] sm:$0xf]  ;;  %v10914_v12 = vld [vmem:[#allocation12 + $0x1ac] sm:$0xf0] }
 0x3ae   :  { %7736 = vmatpush.bf16.msra.mxu3 %v10913_v20  ;;  %v5058_v32 = vpop.f32.mrf.mxu0  ;;  %7762 = vmatpush.bf16.msrb.mxu1 %v11361_v25  ;;  %v12032_v20 = vld [vmem:[#allocation12 + $0xa50] sm:$0xf]  ;;  %v11220_v25 = vld [vmem:[#allocation12 + $0x3f8] sm:$0xf] }
 0x3af   :  { %v12033_v27 = vor.u32 %v13223_v33, %v12032_v20  ;;  %v11221_v19 = vor.u32 %v13020_v46, %v11220_v25  ;;  %v12004_v32 = vld [vmem:[#allocation12 + $0xa18] sm:$0xf]  ;;  %v13195_v20 = vld [vmem:[#allocation12 + $0x988] sm:$0xf0]  ;;  %v13153_v25 = vld [vmem:[#allocation12 + $0x838] sm:$0xf0]  ;;  %v10917_v46 = vor.u32 %v12940_v54, %v10914_v12 }
 0x3b0   :  { %7752 = vmatpush.bf16.msrb.mxu0 %v11053_v6  ;;  %7730 = vmatpush.bf16.msra.mxu2 %v12057_v8  ;;  %v13083_v6 = vld [vmem:[#allocation12 + $0x608] sm:$0xf0]  ;;  %v13076_v8 = vld [vmem:[#allocation12 + $0x5d0] sm:$0xf0]  ;;  %v13125_v54 = vld [vmem:[#allocation12 + $0x758] sm:$0xf0] }
 0x3b1   :  { %v13045_v12 = vld [vmem:[#allocation12 + $0x4dc] sm:$0xf] }
 0x3b2   :  { %7737 = vmatpush.bf16.msra.mxu3 %v10885_v29  ;;  %7763 = vmatpush.bf16.msrb.mxu1 %v11333_v39  ;;  %v13216_v29 = vld [vmem:[#allocation12 + $0xa30] sm:$0xf0]  ;;  %v11473_v39 = vor.u32 %v13083_v6, %v11472_v7  ;;  %v12933_v7 = vld [vmem:[#allocation12 + $0x15c] sm:$0xf]  ;;  %v10886_v6 = vld [vmem:[#allocation12 + $0x174] sm:$0xf0] }
 0x3b3   :  { %7731 = vmatmul.bf16.vlgmr.msra.gmra.mxu2 %v13861_v24  ;;  %v12005_v42 = vor.u32 %v13216_v29, %v12004_v32  ;;  %v11724_v29 = vld [vmem:[#allocation12 + $0x7e8] sm:$0xf] }
 0x3b4   :  { %7753 = vmatpush.bf16.msrb.mxu0 %v11025_v47  ;;  %7775 = vmatpush.bf16.msrb.mxu2 %v11585_v49  ;;  %v11193_v47 = vor.u32 %v13013_v10, %v11192_v34  ;;  %v12894_v49 = vld [vmem:[#allocation12 + $0x20] sm:$0xf0]  ;;  %v10889_v34 = vor.u32 %v12933_v7, %v10886_v6  ;;  %v12172_v10 = vld [vmem:[#allocation12 + $0xb68] sm:$0xf]  ;;  %v11306_v6 = vld [vmem:[#allocation12 + $0x4bc] sm:$0xf0] }
 0x3b5   :  { %v10717_v9 = vor.u32 %v12894_v49, %v10716_v0  ;;  %v11725_v0 = vor.u32 %v13146_v53, %v11724_v29  ;;  %v11138_v29 = vld [vmem:[#allocation12 + $0x36c] sm:$0xf0]  ;;  %v13108_v53 = vld [vmem:[#allocation12 + $0x6d4] sm:$0xf] }
 0x3b6   :  { %7738 = vmatpush.bf16.msra.mxu3 %v10857_v36  ;;  %7764 = vmatpush.bf16.msrb.mxu1 %v11305_v31  ;;  %v13209_v36 = vld [vmem:[#allocation12 + $0x9f8] sm:$0xf0]  ;;  %v11445_v31 = vor.u32 %v13076_v8, %v11444_v44  ;;  %v12926_v44 = vld [vmem:[#allocation12 + $0x124] sm:$0xf]  ;;  %v10858_v8 = vld [vmem:[#allocation12 + $0x13c] sm:$0xf0] }
 0x3b7   :  { %v11977_v55 = vor.u32 %v13209_v36, %v11976_v51  ;;  %v11696_v51 = vld [vmem:[#allocation12 + $0x7b0] sm:$0xf]  ;;  %v13139_v36 = vld [vmem:[#allocation12 + $0x7c8] sm:$0xf0] }
 0x3b8   :  { %7754 = vmatpush.bf16.msrb.mxu0 %v10997_v56  ;;  %7776 = vmatpush.bf16.msrb.mxu2 %v11557_v17  ;;  %v11416_v56 = vld [vmem:[#allocation12 + $0x580] sm:$0xf]  ;;  %v13069_v17 = vld [vmem:[#allocation12 + $0x598] sm:$0xf0]  ;;  %v11697_v14 = vor.u32 %v13139_v36, %v11696_v51 }
 0x3b9   :  { %v11417_v22 = vor.u32 %v13069_v17, %v11416_v56  ;;  %v13174_v56 = vld [vmem:[#allocation12 + $0x8e0] sm:$0xf0]  ;;  %v11668_v17 = vld [vmem:[#allocation12 + $0x778] sm:$0xf]  ;;  %v12989_v36 = vld [vmem:[#allocation12 + $0x31c] sm:$0xf] }
 0x3ba   :  { %7739 = vmatpush.bf16.msra.mxu3 %v10829_v15  ;;  %7765 = vmatpush.bf16.msrb.mxu1 %v11277_v60  ;;  %v11165_v15 = vor.u32 %v13006_v58, %v11164_v45  ;;  %v13202_v60 = vld [vmem:[#allocation12 + $0x9c0] sm:$0xf0]  ;;  %v10861_v45 = vor.u32 %v12926_v44, %v10858_v8  ;;  %v12144_v58 = vld [vmem:[#allocation12 + $0xb30] sm:$0xf] }
 0x3bb   :  { %v11949_v43 = vor.u32 %v13202_v60, %v11948_v61  ;;  %v10833_v61 = vor.u32 %v12919_v41, %v10830_v37  ;;  %v12116_v60 = vld [vmem:[#allocation12 + $0xaf8] sm:$0xf]  ;;  %v10718_v41 = vld [vmem:[#allocation12 + $0x24] sm:$0xf0] }
 0x3bc   :  { %7755 = vmatpush.bf16.msrb.mxu0 %v10969_v4  ;;  %7777 = vmatpush.bf16.msrb.mxu2 %v11529_v11  ;;  %v13272_v4 = vld [vmem:[#allocation12 + $0xbf0] sm:$0xf0]  ;;  %v11388_v11 = vld [vmem:[#allocation12 + $0x548] sm:$0xf] }
 0x3bd   :  { %7692 = vmatmul.bf16.vlgmr.msrb.gmra.mxu3 %v13844_v5  ;;  %v11389_v33 = vor.u32 %v13062_v52, %v11388_v11  ;;  %v11640_v52 = vld [vmem:[#allocation12 + $0x740] sm:$0xf] }
 0x3be   :  { %7740 = vmatpush.bf16.msra.mxu3 %v10801_v16  ;;  %7766 = vmatpush.bf16.msrb.mxu1 %v11249_v3  ;;  %v11781_v16 = vor.u32 %v13160_v62, %v11780_v59  ;;  %v12229_v3 = vor.u32 %v13272_v4, %v12228_v1  ;;  %v13244_v59 = vld [vmem:[#allocation12 + $0xb10] sm:$0xf0]  ;;  %v10802_v1 = vld [vmem:[#allocation12 + $0xcc] sm:$0xf0] }
 0x3bf   :  { %v12912_v62 = vld [vmem:[#allocation12 + $0xb4] sm:$0xf] }
 0x3c0   :  { %7756 = vmatpush.bf16.msrb.mxu0 %v10941_v2  ;;  %7778 = vmatpush.bf16.msrb.mxu2 %v11501_v26  ;;  %v12200_v2 = vld [vmem:[#allocation12 + $0xba0] sm:$0xf]  ;;  %v13265_v26 = vld [vmem:[#allocation12 + $0xbb8] sm:$0xf0] }
 0x3c1   :  { %v12201_v32 = vor.u32 %v13265_v26, %v12200_v2  ;;  %v11612_v2 = vld [vmem:[#allocation12 + $0x708] sm:$0xf]  ;;  %v13118_v26 = vld [vmem:[#allocation12 + $0x720] sm:$0xf0] }
 0x3c2   :  { %7741 = vmatpush.bf16.msra.mxu3 %v10773_v28  ;;  %7767 = vmatpush.bf16.msrb.mxu1 %v11221_v19  ;;  %v11753_v28 = vor.u32 %v13153_v25, %v11752_v23  ;;  %v11892_v19 = vld [vmem:[#allocation12 + $0x938] sm:$0xf]  ;;  %v11641_v25 = vor.u32 %v13125_v54, %v11640_v52 }
 0x3c3   :  { %7757 = vmatmul.bf16.vlgmr.msrb.gmra.mxu0 %v13833_v13  ;;  %v10774_v23 = vld [vmem:[#allocation12 + $0x94] sm:$0xf0] }
 0x3c4   :  { %7801 = vmatpush.bf16.msra.mxu0 %v12033_v27  ;;  %7779 = vmatpush.bf16.msrb.mxu2 %v11473_v39  ;;  %v11921_v27 = vor.u32 %v13195_v20, %v11920_v18  ;;  %v13258_v39 = vld [vmem:[#allocation12 + $0xb80] sm:$0xf0]  ;;  %v12088_v18 = vld [vmem:[#allocation12 + $0xac0] sm:$0xf]  ;;  %v13237_v20 = vld [vmem:[#allocation12 + $0xad8] sm:$0xf0] }
 0x3c5   :  { %v12173_v49 = vor.u32 %v13258_v39, %v12172_v10  ;;  %v12089_v7 = vor.u32 %v13237_v20, %v12088_v18  ;;  %v12898_v10 = vld [vmem:[#allocation12 + $0x44] sm:$0xf]  ;;  %v10746_v39 = vld [vmem:[#allocation12 + $0x5c] sm:$0xf0]  ;;  %v11222_v54 = vld [vmem:[#allocation12 + $0x414] sm:$0xf0] }
 0x3c6   :  { %7742 = vmatpush.bf16.msra.mxu3 %v10745_v63  ;;  %7768 = vmatpush.bf16.msrb.mxu1 %v11193_v47  ;;  %v11864_v63 = vld [vmem:[#allocation12 + $0x900] sm:$0xf]  ;;  %v13181_v47 = vld [vmem:[#allocation12 + $0x918] sm:$0xf0]  ;;  %v10749_v51 = vor.u32 %v12898_v10, %v10746_v39  ;;  %v13087_v20 = vld [vmem:[#allocation12 + $0x62c] sm:$0xf] }
 0x3c8   :  { %7802 = vmatpush.bf16.msra.mxu0 %v12005_v42  ;;  %7780 = vmatpush.bf16.msrb.mxu2 %v11445_v31  ;;  %v11893_v42 = vor.u32 %v13188_v30, %v11892_v19  ;;  %v11865_v31 = vor.u32 %v13181_v47, %v11864_v63  ;;  %v13230_v19 = vld [vmem:[#allocation12 + $0xaa0] sm:$0xf0]  ;;  %v13031_v63 = vld [vmem:[#allocation12 + $0x46c] sm:$0xf]  ;;  %v11278_v47 = vld [vmem:[#allocation12 + $0x484] sm:$0xf0] }
 0x3c9   :  { %v11281_v37 = vor.u32 %v13031_v63, %v11278_v47  ;;  %v10998_v63 = vld [vmem:[#allocation12 + $0x254] sm:$0xf0]  ;;  %v13276_v47 = vld [vmem:[#allocation12 + $0xc14] sm:$0xf] }
 0x3ca   :  { %7743 = vmatpush.bf16.msra.mxu3 %v10717_v9  ;;  %7769 = vmatpush.bf16.msrb.mxu1 %v11165_v15  ;;  %v12145_v9 = vor.u32 %v13251_v50, %v12144_v58  ;;  %v13132_v15 = vld [vmem:[#allocation12 + $0x790] sm:$0xf0]  ;;  %v13101_v58 = vld [vmem:[#allocation12 + $0x69c] sm:$0xf]  ;;  %v11558_v50 = vld [vmem:[#allocation12 + $0x6b4] sm:$0xf0] }
 0x3cb   :  { %v11669_v4 = vor.u32 %v13132_v15, %v11668_v17  ;;  %v13024_v17 = vld [vmem:[#allocation12 + $0x434] sm:$0xf]  ;;  %v11561_v15 = vor.u32 %v13101_v58, %v11558_v50 }
 0x3cc   :  { %7803 = vmatpush.bf16.msra.mxu0 %v11977_v55  ;;  %7781 = vmatpush.bf16.msrb.mxu2 %v11417_v22  ;;  %v11836_v55 = vld [vmem:[#allocation12 + $0x8c8] sm:$0xf]  ;;  %v13136_v50 = vld [vmem:[#allocation12 + $0x7b4] sm:$0xf] }
 0x3cd   :  { %7744 = vmatmul.bf16.vlgmr.msra.gmra.mxu3 %v13827_v57  ;;  %7770 = vmatmul.bf16.vlgmr.msrb.gmra.mxu1 %v13839_v21  ;;  %v11837_v22 = vor.u32 %v13174_v56, %v11836_v55  ;;  %v11810_v55 = vld [vmem:[#allocation12 + $0x8ac] sm:$0xf0] }
 0x3ce   :  { %7788 = vmatpush.bf16.msrb.mxu3 %v11809_v35  ;;  %7814 = vmatpush.bf16.msra.mxu1 %v12257_v38  ;;  %v13052_v35 = vld [vmem:[#allocation12 + $0x514] sm:$0xf]  ;;  %v11362_v38 = vld [vmem:[#allocation12 + $0x52c] sm:$0xf0] }
 0x3cf   :  { %v11365_v11 = vor.u32 %v13052_v35, %v11362_v38  ;;  %v12982_v38 = vld [vmem:[#allocation12 + $0x2e4] sm:$0xf] }
 0x3d0   :  { %7804 = vmatpush.bf16.msra.mxu0 %v11949_v43  ;;  %7782 = vmatpush.bf16.msrb.mxu2 %v11389_v33  ;;  %v12117_v43 = vor.u32 %v13244_v59, %v12116_v60  ;;  %v12905_v33 = vld [vmem:[#allocation12 + $0x7c] sm:$0xf]  ;;  %v13094_v59 = vld [vmem:[#allocation12 + $0x664] sm:$0xf] }
 0x3d1   :  { %v10777_v30 = vor.u32 %v12905_v33, %v10774_v23  ;;  %v11502_v33 = vld [vmem:[#allocation12 + $0x644] sm:$0xf0] }
 0x3d2   :  { %7789 = vmatpush.bf16.msrb.mxu3 %v11781_v16  ;;  %7815 = vmatpush.bf16.msra.mxu1 %v12229_v3  ;;  %v11334_v16 = vld [vmem:[#allocation12 + $0x4f4] sm:$0xf0]  ;;  %v10805_v3 = vor.u32 %v12912_v62, %v10802_v1  ;;  %v13157_v1 = vld [vmem:[#allocation12 + $0x85c] sm:$0xf] }
 0x3d3   :  { %7783 = vmatmul.bf16.vlgmr.msrb.gmra.mxu2 %v13844_v5 }
 0x3d4   :  { %7827 = vmatpush.bf16.msra.mxu2 %v10917_v46  ;;  %7805 = vmatpush.bf16.msra.mxu0 %v11921_v27  ;;  %v11337_v46 = vor.u32 %v13045_v12, %v11334_v16  ;;  %v13038_v27 = vld [vmem:[#allocation12 + $0x4a4] sm:$0xf]  ;;  %v12975_v16 = vld [vmem:[#allocation12 + $0x2ac] sm:$0xf] }
 0x3d5   :  { %v11309_v44 = vor.u32 %v13038_v27, %v11306_v6  ;;  %v11194_v27 = vld [vmem:[#allocation12 + $0x3dc] sm:$0xf0]  ;;  %v12968_v6 = vld [vmem:[#allocation12 + $0x274] sm:$0xf] }
 0x3d6   :  { %7790 = vmatpush.bf16.msrb.mxu3 %v11753_v28  ;;  %7816 = vmatpush.bf16.msra.mxu1 %v12201_v32  ;;  %v12060_v28 = vld [vmem:[#allocation12 + $0xa88] sm:$0xf]  ;;  %v12996_v32 = vld [vmem:[#allocation12 + $0x354] sm:$0xf] }
 0x3d7   :  { %v12061_v8 = vor.u32 %v13230_v19, %v12060_v28  ;;  %v11026_v28 = vld [vmem:[#allocation12 + $0x28c] sm:$0xf0] }
 0x3d8   :  { %7828 = vmatpush.bf16.msra.mxu2 %v10889_v34  ;;  %7806 = vmatpush.bf16.msra.mxu0 %v11893_v42  ;;  %v11586_v34 = vld [vmem:[#allocation12 + $0x6ec] sm:$0xf0]  ;;  %v11613_v42 = vor.u32 %v13118_v26, %v11612_v2  ;;  %v13010_v26 = vld [vmem:[#allocation12 + $0x3c4] sm:$0xf]  ;;  %v11029_v39 = vor.u32 %v12968_v6, %v11026_v28  ;;  %v13255_v28 = vld [vmem:[#allocation12 + $0xb6c] sm:$0xf] }
 0x3da   :  { %7791 = vmatpush.bf16.msrb.mxu3 %v11725_v0  ;;  %7817 = vmatpush.bf16.msra.mxu1 %v12173_v49  ;;  %v11141_v0 = vor.u32 %v12996_v32, %v11138_v29  ;;  %v11589_v49 = vor.u32 %v13108_v53, %v11586_v34  ;;  %v11474_v32 = vld [vmem:[#allocation12 + $0x60c] sm:$0xf0]  ;;  %v11197_v29 = vor.u32 %v13010_v26, %v11194_v27  ;;  %v13143_v53 = vld [vmem:[#allocation12 + $0x7ec] sm:$0xf]  ;;  %v11726_v34 = vld [vmem:[#allocation12 + $0x804] sm:$0xf0] }
 0x3dc   :  { %7829 = vmatpush.bf16.msra.mxu2 %v10861_v45  ;;  %7807 = vmatpush.bf16.msra.mxu0 %v11865_v31  ;;  %v11110_v45 = vld [vmem:[#allocation12 + $0x334] sm:$0xf0]  ;;  %v12891_v31 = vld [vmem:[#allocation12 + $0xc] sm:$0xf] }
 0x3dd   :  { %v11113_v56 = vor.u32 %v12989_v36, %v11110_v45  ;;  %v10721_v35 = vor.u32 %v12891_v31, %v10718_v41  ;;  %v13073_v36 = vld [vmem:[#allocation12 + $0x5bc] sm:$0xf]  ;;  %v11446_v45 = vld [vmem:[#allocation12 + $0x5d4] sm:$0xf0]  ;;  %v11698_v31 = vld [vmem:[#allocation12 + $0x7cc] sm:$0xf0] }
 0x3de   :  { %7792 = vmatpush.bf16.msrb.mxu3 %v11697_v14  ;;  %7818 = vmatpush.bf16.msra.mxu1 %v12145_v9  ;;  %v13164_v14 = vld [vmem:[#allocation12 + $0x894] sm:$0xf]  ;;  %v11250_v9 = vld [vmem:[#allocation12 + $0x44c] sm:$0xf0] }
 0x3df   :  { %v11813_v60 = vor.u32 %v13164_v14, %v11810_v55  ;;  %v11253_v62 = vor.u32 %v13024_v17, %v11250_v9  ;;  %v12954_v55 = vld [vmem:[#allocation12 + $0x204] sm:$0xf]  ;;  %v10970_v17 = vld [vmem:[#allocation12 + $0x21c] sm:$0xf0]  ;;  %v13269_v9 = vld [vmem:[#allocation12 + $0xbdc] sm:$0xf] }
 0x3e0   :  { %7830 = vmatpush.bf16.msra.mxu2 %v10833_v61  ;;  %7808 = vmatpush.bf16.msra.mxu0 %v11837_v22  ;;  %v11082_v61 = vld [vmem:[#allocation12 + $0x2fc] sm:$0xf0] }
 0x3e1   :  { %v11530_v22 = vld [vmem:[#allocation12 + $0x67c] sm:$0xf0]  ;;  %v11085_v52 = vor.u32 %v12982_v38, %v11082_v61  ;;  %v13066_v38 = vld [vmem:[#allocation12 + $0x584] sm:$0xf] }
 0x3e2   :  { %7793 = vmatpush.bf16.msrb.mxu3 %v11669_v4  ;;  %7819 = vmatpush.bf16.msra.mxu1 %v12117_v43  ;;  %v11782_v4 = vld [vmem:[#allocation12 + $0x874] sm:$0xf0]  ;;  %v13017_v43 = vld [vmem:[#allocation12 + $0x3fc] sm:$0xf]  ;;  %v11533_v12 = vor.u32 %v13094_v59, %v11530_v22  ;;  %v11418_v61 = vld [vmem:[#allocation12 + $0x59c] sm:$0xf0]  ;;  %v10973_v22 = vor.u32 %v12954_v55, %v10970_v17 }
 0x3e3   :  { %7809 = vmatmul.bf16.vlgmr.msra.gmra.mxu0 %v13853_v40  ;;  %v11785_v18 = vor.u32 %v13157_v1, %v11782_v4  ;;  %v11225_v23 = vor.u32 %v13017_v43, %v11222_v54  ;;  %v11670_v59 = vld [vmem:[#allocation12 + $0x794] sm:$0xf0]  ;;  %v12947_v1 = vld [vmem:[#allocation12 + $0x1cc] sm:$0xf]  ;;  %v10942_v4 = vld [vmem:[#allocation12 + $0x1e4] sm:$0xf0]  ;;  %v11421_v43 = vor.u32 %v13066_v38, %v11418_v61 }
 0x3e4   :  { %7853 = vmatpush.bf16.msrb.mxu0 %v11365_v11  ;;  %7831 = vmatpush.bf16.msra.mxu2 %v10805_v3  ;;  %v11054_v3 = vld [vmem:[#allocation12 + $0x2c4] sm:$0xf0]  ;;  %v12202_v54 = vld [vmem:[#allocation12 + $0xbbc] sm:$0xf0]  ;;  %v10945_v26 = vor.u32 %v12947_v1, %v10942_v4  ;;  %v12930_v55 = vld [vmem:[#allocation12 + $0x140] sm:$0xf0] }
 0x3e5   :  { %v11057_v2 = vor.u32 %v12975_v16, %v11054_v3  ;;  %v11390_v16 = vld [vmem:[#allocation12 + $0x564] sm:$0xf0]  ;;  %v11116_v17 = vld [vmem:[#allocation12 + $0x320] sm:$0xf]  ;;  %v12118_v38 = vld [vmem:[#allocation12 + $0xb14] sm:$0xf0] }
 0x3e6   :  { %7794 = vmatpush.bf16.msrb.mxu3 %v11641_v25  ;;  %7820 = vmatpush.bf16.msra.mxu1 %v12089_v7  ;;  %v13150_v25 = vld [vmem:[#allocation12 + $0x824] sm:$0xf]  ;;  %v11505_v7 = vor.u32 %v13087_v20, %v11502_v33  ;;  %v12034_v20 = vld [vmem:[#allocation12 + $0xa6c] sm:$0xf0]  ;;  %v10920_v33 = vld [vmem:[#allocation12 + $0x198] sm:$0xf] }
 0x3e7   :  { %v10836_v4 = vld [vmem:[#allocation12 + $0xf0] sm:$0xf] }
 0x3e8   :  { %7854 = vmatpush.bf16.msrb.mxu0 %v11337_v46  ;;  %7832 = vmatpush.bf16.msra.mxu2 %v10777_v30  ;;  %v11754_v46 = vld [vmem:[#allocation12 + $0x83c] sm:$0xf0]  ;;  %v13080_v30 = vld [vmem:[#allocation12 + $0x5f4] sm:$0xf] }
 0x3e9   :  { %v11757_v19 = vor.u32 %v13150_v25, %v11754_v46  ;;  %v13122_v25 = vld [vmem:[#allocation12 + $0x744] sm:$0xf]  ;;  %v11642_v46 = vld [vmem:[#allocation12 + $0x75c] sm:$0xf0] }
 0x3ea   :  { %7795 = vmatpush.bf16.msrb.mxu3 %v11613_v42  ;;  %7821 = vmatpush.bf16.msra.mxu1 %v12061_v8  ;;  %v13874_v11 = vpop.f32.mrf.mxu1  ;;  %v13003_v42 = vld [vmem:[#allocation12 + $0x38c] sm:$0xf]  ;;  %v12961_v8 = vld [vmem:[#allocation12 + $0x23c] sm:$0xf] }
 0x3ec   :  { %7855 = vmatpush.bf16.msrb.mxu0 %v11309_v44  ;;  %7833 = vmatpush.bf16.msra.mxu2 %v10749_v51  ;;  %v11166_v44 = vld [vmem:[#allocation12 + $0x3a4] sm:$0xf0]  ;;  %v11729_v51 = vor.u32 %v13143_v53, %v11726_v34  ;;  %v13213_v53 = vld [vmem:[#allocation12 + $0xa1c] sm:$0xf]  ;;  %v12006_v34 = vld [vmem:[#allocation12 + $0xa34] sm:$0xf0] }
 0x3ed   :  { %7796 = vmatmul.bf16.vlgmr.msrb.gmra.mxu3 %v13849_v48  ;;  %7822 = vmatmul.bf16.vlgmr.msra.gmra.mxu1 %v13861_v24  ;;  %v11169_v58 = vor.u32 %v13003_v42, %v11166_v44  ;;  %v12937_v42 = vld [vmem:[#allocation12 + $0x178] sm:$0xf0]  ;;  %v13115_v44 = vld [vmem:[#allocation12 + $0x70c] sm:$0xf] }
 0x3ee   :  { %7840 = vmatpush.bf16.msra.mxu3 %v11141_v0  ;;  %7866 = vmatpush.bf16.msrb.mxu1 %v11589_v49  ;;  %v11477_v0 = vor.u32 %v13080_v30, %v11474_v32  ;;  %v12258_v49 = vld [vmem:[#allocation12 + $0xc2c] sm:$0xf0] }
 0x3ef   :  { %v12261_v14 = vor.u32 %v13276_v47, %v12258_v49  ;;  %v13000_v47 = vld [vmem:[#allocation12 + $0x370] sm:$0xf0]  ;;  %v12009_v49 = vor.u32 %v13213_v53, %v12006_v34  ;;  %v11894_v34 = vld [vmem:[#allocation12 + $0x954] sm:$0xf0] }
 0x3f0   :  { %7856 = vmatpush.bf16.msrb.mxu0 %v11281_v37  ;;  %7834 = vmatpush.bf16.msra.mxu2 %v10721_v35  ;;  %v11001_v37 = vor.u32 %v12961_v8, %v10998_v63  ;;  %v11701_v35 = vor.u32 %v13136_v50, %v11698_v31  ;;  %v11614_v8 = vld [vmem:[#allocation12 + $0x724] sm:$0xf0]  ;;  %v11144_v63 = vld [vmem:[#allocation12 + $0x358] sm:$0xf]  ;;  %v13206_v50 = vld [vmem:[#allocation12 + $0x9e4] sm:$0xf] }
 0x3f1   :  { %v11978_v31 = vld [vmem:[#allocation12 + $0x9fc] sm:$0xf0] }
 0x3f2   :  { %7841 = vmatpush.bf16.msra.mxu3 %v11113_v56  ;;  %7867 = vmatpush.bf16.msrb.mxu1 %v11561_v15  ;;  %v7565_v10 = vpop.f32.mrf.mxu1  ;;  %v11449_v56 = vor.u32 %v13073_v36, %v11446_v45  ;;  %v12230_v15 = vld [vmem:[#allocation12 + $0xbf4] sm:$0xf0]  ;;  %v12146_v36 = vld [vmem:[#allocation12 + $0xb4c] sm:$0xf0] }
 0x3f3   :  { %7835 = vmatmul.bf16.vlgmr.msra.gmra.mxu2 %v13827_v57  ;;  %v10892_v10 = vld [vmem:[#allocation12 + $0x160] sm:$0xf] }
 0x3f4   :  { %7879 = vmatpush.bf16.msrb.mxu2 %v11813_v60  ;;  %7857 = vmatpush.bf16.msrb.mxu0 %v11253_v62  ;;  %v13129_v60 = vld [vmem:[#allocation12 + $0x77c] sm:$0xf]  ;;  %v12233_v62 = vor.u32 %v13269_v9, %v12230_v15  ;;  %v10893_v45 = vor.u32 %v12937_v42, %v10892_v10  ;;  %v11981_v15 = vor.u32 %v13206_v50, %v11978_v31  ;;  %v11592_v10 = vld [vmem:[#allocation12 + $0x6d8] sm:$0xf]  ;;  %v13112_v42 = vld [vmem:[#allocation12 + $0x6f0] sm:$0xf0] }
 0x3f5   :  { %v11673_v3 = vor.u32 %v13129_v60, %v11670_v59  ;;  %v12993_v9 = vld [vmem:[#allocation12 + $0x338] sm:$0xf0]  ;;  %v13199_v59 = vld [vmem:[#allocation12 + $0x9ac] sm:$0xf]  ;;  %v13178_v50 = vld [vmem:[#allocation12 + $0x904] sm:$0xf] }
 0x3f6   :  { %7842 = vmatpush.bf16.msra.mxu3 %v11085_v52  ;;  %7868 = vmatpush.bf16.msrb.mxu1 %v11533_v12  ;;  %v13877_v41 = vpop.f32.mrf.mxu2  ;;  %v13262_v52 = vld [vmem:[#allocation12 + $0xba4] sm:$0xf]  ;;  %v13059_v12 = vld [vmem:[#allocation12 + $0x54c] sm:$0xf]  ;;  %v11117_v1 = vor.u32 %v12993_v9, %v11116_v17  ;;  %v10752_v17 = vld [vmem:[#allocation12 + $0x48] sm:$0xf] }
 0x3f7   :  { %v12205_v27 = vor.u32 %v13262_v52, %v12202_v54  ;;  %v12923_v52 = vld [vmem:[#allocation12 + $0x108] sm:$0xf0]  ;;  %v12902_v9 = vld [vmem:[#allocation12 + $0x60] sm:$0xf0] }
 0x3f8   :  { %7880 = vmatpush.bf16.msrb.mxu2 %v11785_v18  ;;  %7858 = vmatpush.bf16.msrb.mxu0 %v11225_v23  ;;  %v13220_v18 = vld [vmem:[#allocation12 + $0xa54] sm:$0xf] }
 0x3f9   :  { %v12944_v23 = vld [vmem:[#allocation12 + $0x1b0] sm:$0xf0]  ;;  %v12037_v6 = vor.u32 %v13220_v18, %v12034_v20  ;;  %v13234_v18 = vld [vmem:[#allocation12 + $0xac4] sm:$0xf]  ;;  %v12090_v20 = vld [vmem:[#allocation12 + $0xadc] sm:$0xf0] }
 0x3fa   :  { %7843 = vmatpush.bf16.msra.mxu3 %v11057_v2  ;;  %7869 = vmatpush.bf16.msrb.mxu1 %v11505_v7  ;;  %v11393_v7 = vor.u32 %v13059_v12, %v11390_v16  ;;  %v10921_v32 = vor.u32 %v12944_v23, %v10920_v33  ;;  %v11088_v12 = vld [vmem:[#allocation12 + $0x2e8] sm:$0xf]  ;;  %v12986_v16 = vld [vmem:[#allocation12 + $0x300] sm:$0xf0]  ;;  %v10837_v33 = vor.u32 %v12923_v52, %v10836_v4  ;;  %v13192_v23 = vld [vmem:[#allocation12 + $0x974] sm:$0xf] }
 0x3fb   :  { %v10753_v4 = vor.u32 %v12902_v9, %v10752_v17  ;;  %v13098_v52 = vld [vmem:[#allocation12 + $0x680] sm:$0xf0] }
 0x3fc   :  { %7881 = vmatpush.bf16.msrb.mxu2 %v11757_v19  ;;  %7859 = vmatpush.bf16.msrb.mxu0 %v11197_v29  ;;  %v12174_v19 = vld [vmem:[#allocation12 + $0xb84] sm:$0xf0]  ;;  %v11645_v29 = vor.u32 %v13122_v25, %v11642_v46  ;;  %v11922_v25 = vld [vmem:[#allocation12 + $0x98c] sm:$0xf0]  ;;  %v11089_v46 = vor.u32 %v12986_v16, %v11088_v12  ;;  %v12895_v12 = vld [vmem:[#allocation12 + $0x28] sm:$0xf0] }
 0x3fd   :  { %v13042_v17 = vld [vmem:[#allocation12 + $0x4c0] sm:$0xf0] }
 0x3fe   :  { %7844 = vmatpush.bf16.msra.mxu3 %v11029_v39  ;;  %7870 = vmatpush.bf16.msrb.mxu1 %v11477_v0  ;;  %v7578_v2 = vpop.f32.mrf.mxu2  ;;  %v12177_v0 = vor.u32 %v13255_v28, %v12174_v19  ;;  %v11925_v28 = vor.u32 %v13192_v23, %v11922_v25  ;;  %v13227_v19 = vld [vmem:[#allocation12 + $0xa8c] sm:$0xf]  ;;  %v13168_v23 = vld [vmem:[#allocation12 + $0x8b0] sm:$0xf0]  ;;  %v10976_v25 = vld [vmem:[#allocation12 + $0x208] sm:$0xf] }
 0x3ff   :  { %v10808_v2 = vld [vmem:[#allocation12 + $0xb8] sm:$0xf] }
 0x400   :  { %7882 = vmatpush.bf16.msrb.mxu2 %v11729_v51  ;;  %7860 = vmatpush.bf16.msrb.mxu0 %v11169_v58  ;;  %v13880_v30 = vpop.f32.mrf.mxu3  ;;  %v13882_v39 = vpop.f32.mrf.mxu0  ;;  %v13248_v51 = vld [vmem:[#allocation12 + $0xb34] sm:$0xf]  ;;  %v11617_v58 = vor.u32 %v13115_v44, %v11614_v8 }
 0x402   :  { %7845 = vmatpush.bf16.msra.mxu3 %v11001_v37  ;;  %7871 = vmatpush.bf16.msrb.mxu1 %v11449_v56  ;;  %v11145_v37 = vor.u32 %v13000_v47, %v11144_v63  ;;  %v12149_v56 = vor.u32 %v13248_v51, %v12146_v36  ;;  %v12909_v63 = vld [vmem:[#allocation12 + $0x98] sm:$0xf0]  ;;  %v11032_v51 = vld [vmem:[#allocation12 + $0x278] sm:$0xf]  ;;  %v12972_v36 = vld [vmem:[#allocation12 + $0x290] sm:$0xf0] }
 0x403   :  { %7861 = vmatmul.bf16.vlgmr.msrb.gmra.mxu0 %v13839_v21 }
 0x404   :  { %7905 = vmatpush.bf16.msra.mxu0 %v12261_v14  ;;  %7883 = vmatpush.bf16.msrb.mxu2 %v11701_v35  ;;  %v10864_v14 = vld [vmem:[#allocation12 + $0x128] sm:$0xf]  ;;  %v13241_v35 = vld [vmem:[#allocation12 + $0xafc] sm:$0xf] }
 0x405   :  { %v10865_v60 = vor.u32 %v12930_v55, %v10864_v14  ;;  %v12121_v54 = vor.u32 %v13241_v35, %v12118_v38  ;;  %v11564_v14 = vld [vmem:[#allocation12 + $0x6a0] sm:$0xf]  ;;  %v13105_v55 = vld [vmem:[#allocation12 + $0x6b8] sm:$0xf0] }
 0x406   :  { %7846 = vmatpush.bf16.msra.mxu3 %v10973_v22  ;;  %7872 = vmatpush.bf16.msrb.mxu1 %v11421_v43  ;;  %v11950_v22 = vld [vmem:[#allocation12 + $0x9c4] sm:$0xf0]  ;;  %v12965_v35 = vld [vmem:[#allocation12 + $0x258] sm:$0xf0]  ;;  %v13891_v38 = vld [vmem:[#allocation13] sm:$0xff] }
 0x408   :  { %7906 = vmatpush.bf16.msra.mxu0 %v12233_v62  ;;  %7884 = vmatpush.bf16.msrb.mxu2 %v11673_v3  ;;  %v7591_v61 = vpop.f32.mrf.mxu3  ;;  %v7604_v62 = vpop.f32.mrf.mxu0  ;;  %v11953_v3 = vor.u32 %v13199_v59, %v11950_v22  ;;  %v11565_v59 = vor.u32 %v13105_v55, %v11564_v14  ;;  %v13171_v22 = vld [vmem:[#allocation12 + $0x8cc] sm:$0xf] }
 0x409   :  { %v11838_v62 = vld [vmem:[#allocation12 + $0x8e4] sm:$0xf0] }
 0x40a   :  { %7847 = vmatpush.bf16.msra.mxu3 %v10945_v26  ;;  %7873 = vmatpush.bf16.msrb.mxu1 %v11393_v7  ;;  %v13886_v43 = vpop.f32.mrf.mxu1  ;;  %v12916_v26 = vld [vmem:[#allocation12 + $0xd0] sm:$0xf0]  ;;  %v11060_v7 = vld [vmem:[#allocation12 + $0x2b0] sm:$0xf] }
 0x40b   :  { %v10809_v53 = vor.u32 %v12916_v26, %v10808_v2  ;;  %v11841_v26 = vor.u32 %v13171_v22, %v11838_v62  ;;  %v12012_v22 = vld [vmem:[#allocation12 + $0xa20] sm:$0xf]  ;;  %v13217_v62 = vld [vmem:[#allocation12 + $0xa38] sm:$0xf0] }
 0x40c   :  { %7907 = vmatpush.bf16.msra.mxu0 %v12205_v27  ;;  %7885 = vmatpush.bf16.msrb.mxu2 %v11645_v29  ;;  %v12093_v27 = vor.u32 %v13234_v18, %v12090_v20  ;;  %v13185_v29 = vld [vmem:[#allocation12 + $0x93c] sm:$0xf]  ;;  %v11368_v18 = vld [vmem:[#allocation12 + $0x518] sm:$0xf]  ;;  %v13056_v20 = vld [vmem:[#allocation12 + $0x530] sm:$0xf0] }
 0x40d   :  { %7848 = vmatmul.bf16.vlgmr.msra.gmra.mxu3 %v13833_v13  ;;  %7874 = vmatmul.bf16.vlgmr.msrb.gmra.mxu1 %v13844_v5 }
 0x40e   :  { %7892 = vmatpush.bf16.msrb.mxu3 %v12037_v6  ;;  %7918 = vmatpush.bf16.msra.mxu1 %v10921_v32  ;;  %v12979_v6 = vld [vmem:[#allocation12 + $0x2c8] sm:$0xf0]  ;;  %v12062_v32 = vld [vmem:[#allocation12 + $0xaa4] sm:$0xf0] }
 0x40f   :  { %v11061_v8 = vor.u32 %v12979_v6, %v11060_v7  ;;  %v5524_v7 = vperm.slane %v13891_v38, 0 }
 0x410   :  { %7908 = vmatpush.bf16.msra.mxu0 %v12177_v0  ;;  %7886 = vmatpush.bf16.msrb.mxu2 %v11617_v58  ;;  %v13889_v44 = vpop.f32.mrf.mxu0  ;;  %v10780_v0 = vld [vmem:[#allocation12 + $0x80] sm:$0xf]  ;;  %v11593_v58 = vor.u32 %v13112_v42, %v11592_v10  ;;  %v13049_v10 = vld [vmem:[#allocation12 + $0x4f8] sm:$0xf0] }
 0x411   :  { %v10781_v31 = vor.u32 %v12909_v63, %v10780_v0  ;;  %v11788_v42 = vld [vmem:[#allocation12 + $0x860] sm:$0xf]  ;;  %v10948_v0 = vld [vmem:[#allocation12 + $0x1d0] sm:$0xf]  ;;  %v12951_v63 = vld [vmem:[#allocation12 + $0x1e8] sm:$0xf0] }
 0x412   :  { %7893 = vmatpush.bf16.msrb.mxu3 %v12009_v49  ;;  %7919 = vmatpush.bf16.msra.mxu1 %v10893_v45  ;;  %v7617_v47 = vpop.f32.mrf.mxu1  ;;  %v12065_v49 = vor.u32 %v13227_v19, %v12062_v32  ;;  %v11897_v45 = vor.u32 %v13185_v29, %v11894_v34  ;;  %v11508_v19 = vld [vmem:[#allocation12 + $0x630] sm:$0xf]  ;;  %v13091_v32 = vld [vmem:[#allocation12 + $0x648] sm:$0xf0]  ;;  %v11340_v34 = vld [vmem:[#allocation12 + $0x4e0] sm:$0xf]  ;;  %v10949_v55 = vor.u32 %v12951_v63, %v10948_v0 }
 0x413   :  { %7887 = vmatmul.bf16.vlgmr.msrb.gmra.mxu2 %v13849_v48  ;;  %v13203_v0 = vld [vmem:[#allocation12 + $0x9c8] sm:$0xf0] }
 0x414   :  { %7931 = vmatpush.bf16.msra.mxu2 %v11145_v37  ;;  %7909 = vmatpush.bf16.msra.mxu0 %v12149_v56  ;;  %v11866_v37 = vld [vmem:[#allocation12 + $0x91c] sm:$0xf0]  ;;  %v11033_v56 = vor.u32 %v12972_v36, %v11032_v51  ;;  %v12040_v51 = vld [vmem:[#allocation12 + $0xa58] sm:$0xf]  ;;  %v13224_v36 = vld [vmem:[#allocation12 + $0xa70] sm:$0xf0] }
 0x416   :  { %7894 = vmatpush.bf16.msrb.mxu3 %v11981_v15  ;;  %7920 = vmatpush.bf16.msra.mxu1 %v10865_v60  ;;  %v11004_v15 = vld [vmem:[#allocation12 + $0x240] sm:$0xf]  ;;  %v13893_v61 = vpop.f32.mrf.mxu2  ;;  %v11869_v60 = vor.u32 %v13178_v50, %v11866_v37  ;;  %v11480_v50 = vld [vmem:[#allocation12 + $0x5f8] sm:$0xf] }
 0x418   :  { %7932 = vmatpush.bf16.msra.mxu2 %v11117_v1  ;;  %7910 = vmatpush.bf16.msra.mxu0 %v12121_v54  ;;  %v11536_v1 = vld [vmem:[#allocation12 + $0x668] sm:$0xf]  ;;  %v10724_v54 = vld [vmem:[#allocation12 + $0x10] sm:$0xf]  ;;  %v7656_v16 = vpop.f32.mrf.mxu0 }
 0x419   :  { %v10725_v6 = vor.u32 %v12895_v12, %v10724_v54  ;;  %v13077_v54 = vld [vmem:[#allocation12 + $0x5d8] sm:$0xf0]  ;;  %v11284_v12 = vld [vmem:[#allocation12 + $0x470] sm:$0xf]  ;;  %v13035_v16 = vld [vmem:[#allocation12 + $0x488] sm:$0xf0] }
 0x41a   :  { %7895 = vmatpush.bf16.msrb.mxu3 %v11953_v3  ;;  %7921 = vmatpush.bf16.msra.mxu1 %v10837_v33  ;;  %v11005_v3 = vor.u32 %v12965_v35, %v11004_v15  ;;  %v11816_v33 = vld [vmem:[#allocation12 + $0x898] sm:$0xf]  ;;  %v13896_v2 = vpop.f32.mrf.mxu1  ;;  %v12041_v15 = vor.u32 %v13224_v36, %v12040_v51  ;;  %v11760_v35 = vld [vmem:[#allocation12 + $0x828] sm:$0xf]  ;;  %v13063_v51 = vld [vmem:[#allocation12 + $0x568] sm:$0xf0] }
 0x41b   :  { %v11817_v29 = vor.u32 %v13168_v23, %v11816_v33  ;;  %v11228_v36 = vld [vmem:[#allocation12 + $0x400] sm:$0xf] }
 0x41c   :  { %7933 = vmatpush.bf16.msra.mxu2 %v11089_v46  ;;  %7911 = vmatpush.bf16.msra.mxu0 %v12093_v27  ;;  %v12958_v46 = vld [vmem:[#allocation12 + $0x220] sm:$0xf0]  ;;  %v11537_v27 = vor.u32 %v13098_v52, %v11536_v1  ;;  %v11452_v52 = vld [vmem:[#allocation12 + $0x5c0] sm:$0xf] }
 0x41d   :  { %v11453_v23 = vor.u32 %v13077_v54, %v11452_v52  ;;  %v10894_v52 = vld [vmem:[#allocation12 + $0x17c] sm:$0xf0] }
 0x41e   :  { %7896 = vmatpush.bf16.msrb.mxu3 %v11925_v28  ;;  %7922 = vmatpush.bf16.msra.mxu1 %v10809_v53  ;;  %v11369_v28 = vor.u32 %v13056_v20, %v11368_v18  ;;  %v10977_v53 = vor.u32 %v12958_v46, %v10976_v25  ;;  %v7630_v47 = vpop.f32.mrf.mxu2  ;;  %v11732_v18 = vld [vmem:[#allocation12 + $0x7f0] sm:$0xf]  ;;  %v13147_v20 = vld [vmem:[#allocation12 + $0x808] sm:$0xf0]  ;;  %v11984_v25 = vld [vmem:[#allocation12 + $0x9e8] sm:$0xf] }
 0x41f   :  { %v13210_v46 = vld [vmem:[#allocation12 + $0xa00] sm:$0xf0] }
 0x420   :  { %7934 = vmatpush.bf16.msra.mxu2 %v11061_v8  ;;  %7912 = vmatpush.bf16.msra.mxu0 %v12065_v49  ;;  %v13161_v8 = vld [vmem:[#allocation12 + $0x878] sm:$0xf0]  ;;  %v11509_v49 = vor.u32 %v13091_v32, %v11508_v19  ;;  %v13900_v37 = vpop.f32.mrf.mxu0  ;;  %v11256_v19 = vld [vmem:[#allocation12 + $0x438] sm:$0xf]  ;;  %v13028_v32 = vld [vmem:[#allocation12 + $0x450] sm:$0xf0] }
 0x421   :  { %v11789_v14 = vor.u32 %v13161_v8, %v11788_v42  ;;  %v11956_v8 = vld [vmem:[#allocation12 + $0x9b0] sm:$0xf]  ;;  %v11257_v47 = vor.u32 %v13028_v32, %v11256_v19  ;;  %v13119_v32 = vld [vmem:[#allocation12 + $0x728] sm:$0xf0] }
 0x422   :  { %7897 = vmatpush.bf16.msrb.mxu3 %v11897_v45  ;;  %7923 = vmatpush.bf16.msra.mxu1 %v10781_v31  ;;  %v7564_v45 = vadd.f32 %v13874_v11, %v5524_v7  ;;  %v13084_v31 = vld [vmem:[#allocation12 + $0x610] sm:$0xf0]  ;;  %v13154_v11 = vld [vmem:[#allocation12 + $0x840] sm:$0xf0]  ;;  %v11620_v19 = vld [vmem:[#allocation12 + $0x710] sm:$0xf] }
 0x423   :  { %7913 = vmatmul.bf16.vlgmr.msra.gmra.mxu0 %v13861_v24  ;;  %v13070_v7 = vld [vmem:[#allocation12 + $0x5a0] sm:$0xf0] }
 0x424   :  { %7957 = vmatpush.bf16.msrb.mxu0 %v11593_v58  ;;  %7935 = vmatpush.bf16.msra.mxu2 %v11033_v56  ;;  %v11341_v58 = vor.u32 %v13049_v10, %v11340_v34  ;;  %v11312_v56 = vld [vmem:[#allocation12 + $0x4a8] sm:$0xf]  ;;  %v7577_v9 = vadd.f32 %v13877_v41, %v7564_v45  ;;  %v11761_v41 = vor.u32 %v13154_v11, %v11760_v35  ;;  %v11704_v34 = vld [vmem:[#allocation12 + $0x7b8] sm:$0xf]  ;;  %v13140_v10 = vld [vmem:[#allocation12 + $0x7d0] sm:$0xf0] }
 0x425   :  { %v13196_v35 = vld [vmem:[#allocation12 + $0x990] sm:$0xf0] }
 0x426   :  { %7898 = vmatpush.bf16.msrb.mxu3 %v11869_v60  ;;  %7924 = vmatpush.bf16.msra.mxu1 %v10753_v4  ;;  %v7669_v60 = vpop.f32.mrf.mxu1  ;;  %v7590_v1 = vadd.f32 %v13880_v30, %v7577_v9  ;;  %v11313_v4 = vor.u32 %v13042_v17, %v11312_v56  ;;  %v13906_v33 = vpop.f32.mrf.mxu2  ;;  %v11676_v56 = vld [vmem:[#allocation12 + $0x780] sm:$0xf]  ;;  %v13133_v17 = vld [vmem:[#allocation12 + $0x798] sm:$0xf0] }
 0x428   :  { %7958 = vmatpush.bf16.msrb.mxu0 %v11565_v59  ;;  %7936 = vmatpush.bf16.msra.mxu2 %v11005_v3  ;;  %v11481_v59 = vor.u32 %v13084_v31, %v11480_v50  ;;  %v12013_v3 = vor.u32 %v13217_v62, %v12012_v22  ;;  %v7603_v30 = vadd.f32 %v13882_v39, %v7590_v1  ;;  %v12941_v50 = vld [vmem:[#allocation12 + $0x19c] sm:$0xf]  ;;  %v10922_v31 = vld [vmem:[#allocation12 + $0x1b4] sm:$0xf0]  ;;  %v11200_v22 = vld [vmem:[#allocation12 + $0x3c8] sm:$0xf] }
 0x429   :  { %v11677_v62 = vor.u32 %v13133_v17, %v11676_v56  ;;  %v13014_v1 = vld [vmem:[#allocation12 + $0x3e0] sm:$0xf0]  ;;  %v13273_v56 = vld [vmem:[#allocation12 + $0xbf8] sm:$0xf0] }
 0x42a   :  { %7899 = vmatpush.bf16.msrb.mxu3 %v11841_v26  ;;  %7925 = vmatpush.bf16.msra.mxu1 %v10725_v6  ;;  %v11285_v26 = vor.u32 %v13035_v16, %v11284_v12  ;;  %v7708_v6 = vpop.f32.mrf.mxu0  ;;  %v11648_v12 = vld [vmem:[#allocation12 + $0x748] sm:$0xf]  ;;  %v13126_v16 = vld [vmem:[#allocation12 + $0x760] sm:$0xf0] }
 0x42b   :  { %v11649_v6 = vor.u32 %v13126_v16, %v11648_v12  ;;  %v12990_v17 = vld [vmem:[#allocation12 + $0x324] sm:$0xf]  ;;  %v12208_v12 = vld [vmem:[#allocation12 + $0xba8] sm:$0xf] }
 0x42c   :  { %7959 = vmatpush.bf16.msrb.mxu0 %v11537_v27  ;;  %7937 = vmatpush.bf16.msra.mxu2 %v10977_v53  ;;  %v11424_v27 = vld [vmem:[#allocation12 + $0x588] sm:$0xf]  ;;  %v11985_v53 = vor.u32 %v13210_v46, %v11984_v25  ;;  %v11201_v25 = vor.u32 %v13014_v1, %v11200_v22  ;;  %v12913_v1 = vld [vmem:[#allocation12 + $0xbc] sm:$0xf]  ;;  %v13266_v16 = vld [vmem:[#allocation12 + $0xbc0] sm:$0xf0] }
 0x42d   :  { %7900 = vmatmul.bf16.vlgmr.msrb.gmra.mxu3 %v13853_v40  ;;  %7926 = vmatmul.bf16.vlgmr.msra.gmra.mxu1 %v13827_v57  ;;  %v11425_v39 = vor.u32 %v13070_v7, %v11424_v27  ;;  %v12927_v27 = vld [vmem:[#allocation12 + $0x12c] sm:$0xf] }
 0x42e   :  { %7944 = vmatpush.bf16.msra.mxu3 %v11369_v28  ;;  %7970 = vmatpush.bf16.msrb.mxu1 %v11817_v29  ;;  %v11733_v28 = vor.u32 %v13147_v20, %v11732_v18  ;;  %v7616_v29 = vadd.f32 %v13886_v43, %v7603_v30  ;;  %v13911_v42 = vpop.f32.mrf.mxu1  ;;  %v11705_v43 = vor.u32 %v13140_v10, %v11704_v34  ;;  %v7682_v9 = vpop.f32.mrf.mxu2  ;;  %v11900_v20 = vld [vmem:[#allocation12 + $0x940] sm:$0xf]  ;;  %v11172_v30 = vld [vmem:[#allocation12 + $0x390] sm:$0xf]  ;;  %v13280_v34 = vld [vmem:[#allocation12 + $0xc30] sm:$0xf0] }
 0x42f   :  { %v12997_v10 = vld [vmem:[#allocation12 + $0x35c] sm:$0xf]  ;;  %v11118_v9 = vld [vmem:[#allocation12 + $0x33c] sm:$0xf0] }
 0x430   :  { %7960 = vmatpush.bf16.msrb.mxu0 %v11509_v49  ;;  %7938 = vmatpush.bf16.msra.mxu2 %v10949_v55  ;;  %v7629_v63 = vadd.f32 %v13893_v61, %v7616_v29  ;;  %v11396_v49 = vld [vmem:[#allocation12 + $0x550] sm:$0xf]  ;;  %v7641_v45 = vpop.f32.mrf.mxu3  ;;  %v11957_v55 = vor.u32 %v13203_v0, %v11956_v8  ;;  %v11928_v61 = vld [vmem:[#allocation12 + $0x978] sm:$0xf]  ;;  %v11872_v0 = vld [vmem:[#allocation12 + $0x908] sm:$0xf] }
 0x431   :  { %v11146_v8 = vld [vmem:[#allocation12 + $0x374] sm:$0xf0] }
 0x432   :  { %7945 = vmatpush.bf16.msra.mxu3 %v11341_v58  ;;  %7971 = vmatpush.bf16.msrb.mxu1 %v11789_v14  ;;  %v13021_v58 = vld [vmem:[#allocation12 + $0x418] sm:$0xf0]  ;;  %v7642_v14 = vadd.f32 %v7641_v45, %v7629_v63  ;;  %v13182_v63 = vld [vmem:[#allocation12 + $0x920] sm:$0xf0] }
 0x433   :  { %7939 = vmatmul.bf16.vlgmr.msra.gmra.mxu2 %v13833_v13  ;;  %v11229_v60 = vor.u32 %v13021_v58, %v11228_v36  ;;  %v11621_v36 = vor.u32 %v13119_v32, %v11620_v19  ;;  %v10838_v58 = vld [vmem:[#allocation12 + $0x10c] sm:$0xf0]  ;;  %v13259_v32 = vld [vmem:[#allocation12 + $0xb88] sm:$0xf0] }
 0x434   :  { %7983 = vmatpush.bf16.msrb.mxu2 %v12041_v15  ;;  %7961 = vmatpush.bf16.msrb.mxu0 %v11481_v59  ;;  %v11397_v15 = vor.u32 %v13063_v51, %v11396_v49  ;;  %v8191_v11 = vsub.f32 0.0, %v7642_v14  ;;  %v10925_v59 = vor.u32 %v12941_v50, %v10922_v31  ;;  %v12236_v50 = vld [vmem:[#allocation12 + $0xbe0] sm:$0xf]  ;;  %v11149_v14 = vor.u32 %v12997_v10, %v11146_v8  ;;  %v12180_v19 = vld [vmem:[#allocation12 + $0xb70] sm:$0xf] }
 0x435   :  { %v12976_v10 = vld [vmem:[#allocation12 + $0x2b4] sm:$0xf]  ;;  %v11062_v8 = vld [vmem:[#allocation12 + $0x2cc] sm:$0xf0] }
 0x436   :  { %7946 = vmatpush.bf16.msra.mxu3 %v11313_v4  ;;  %7972 = vmatpush.bf16.msrb.mxu1 %v11761_v41  ;;  %v12934_v4 = vld [vmem:[#allocation12 + $0x164] sm:$0xf]  ;;  %v8198_v54 = vmul.f32 1.442695, %v8191_v11  ;;  %v11929_v41 = vor.u32 %v13196_v35, %v11928_v61  ;;  %v7721_v18 = vpop.f32.mrf.mxu1  ;;  %v11844_v35 = vld [vmem:[#allocation12 + $0x8d0] sm:$0xf] }
 0x437   :  { %v10897_v46 = vor.u32 %v12934_v4, %v10894_v52  ;;  %v13175_v11 = vld [vmem:[#allocation12 + $0x8e8] sm:$0xf0]  ;;  %v10810_v4 = vld [vmem:[#allocation12 + $0xd4] sm:$0xf0] }
 0x438   :  { %7984 = vmatpush.bf16.msrb.mxu2 %v12013_v3  ;;  %7962 = vmatpush.bf16.msrb.mxu0 %v11453_v23  ;;  %v5525_v3 = vperm.slane %v13891_v38, 1  ;;  %v13189_v23 = vld [vmem:[#allocation12 + $0x958] sm:$0xf0]  ;;  %13294 = vpow2.f32 %v8198_v54  ;;  %v7643_v7 = vpop.f32.mrf.mxu3 }
 0x439   :  { %v11901_v29 = vor.u32 %v13189_v23, %v11900_v20  ;;  %v12983_v20 = vld [vmem:[#allocation12 + $0x2ec] sm:$0xf]  ;;  %v11090_v23 = vld [vmem:[#allocation12 + $0x304] sm:$0xf0]  ;;  %v12906_v7 = vld [vmem:[#allocation12 + $0x84] sm:$0xf] }
 0x43a   :  { %7947 = vmatpush.bf16.msra.mxu3 %v11285_v26  ;;  %7973 = vmatpush.bf16.msrb.mxu1 %v11733_v28  ;;  %v13007_v26 = vld [vmem:[#allocation12 + $0x3a8] sm:$0xf0]  ;;  %v10866_v28 = vld [vmem:[#allocation12 + $0x144] sm:$0xf0]  ;;  %v7655_v51 = vadd.f32 %v13889_v44, %v5525_v3 }
 0x43b   :  { %v10869_v49 = vor.u32 %v12927_v27, %v10866_v28  ;;  %v12209_v27 = vor.u32 %v13266_v16, %v12208_v12  ;;  %v11093_v28 = vor.u32 %v12983_v20, %v11090_v23  ;;  %v13025_v12 = vld [vmem:[#allocation12 + $0x43c] sm:$0xf]  ;;  %v11258_v16 = vld [vmem:[#allocation12 + $0x454] sm:$0xf0] }
 0x43c   :  { %7985 = vmatpush.bf16.msrb.mxu2 %v11985_v53  ;;  %7963 = vmatpush.bf16.msrb.mxu0 %v11425_v39  ;;  %v12264_v53 = vld [vmem:[#allocation12 + $0xc18] sm:$0xf]  ;;  %v13916_v39 = vpop.f32.mrf.mxu2 }
 0x43d   :  { %v12265_v45 = vor.u32 %v13280_v34, %v12264_v53 }
 0x43e   :  { %7948 = vmatpush.bf16.msra.mxu3 %v11257_v47  ;;  %7974 = vmatpush.bf16.msrb.mxu1 %v11705_v43  ;;  %v11173_v47 = vor.u32 %v13007_v26, %v11172_v30  ;;  %v12920_v43 = vld [vmem:[#allocation12 + $0xf4] sm:$0xf]  ;;  %v13295_v31 = vpop.eup %13294  ;;  %v11342_v30 = vld [vmem:[#allocation12 + $0x4fc] sm:$0xf0] }
 0x43f   :  { %v8212_v61 = vadd.f32 1.0, %v13295_v31  ;;  %v10841_v44 = vor.u32 %v12920_v43, %v10838_v58  ;;  %v11065_v43 = vor.u32 %v12976_v10, %v11062_v8  ;;  %v12152_v58 = vld [vmem:[#allocation12 + $0xb38] sm:$0xf]  ;;  %v13231_v10 = vld [vmem:[#allocation12 + $0xaa8] sm:$0xf0] }
 0x440   :  { %7986 = vmatpush.bf16.msrb.mxu2 %v11957_v55  ;;  %7964 = vmatpush.bf16.msrb.mxu0 %v11397_v15  ;;  %v11873_v55 = vor.u32 %v13182_v63, %v11872_v0  ;;  %v7668_v15 = vadd.f32 %v13896_v2, %v7655_v51  ;;  %v7693_v52 = vpop.f32.mrf.mxu3  ;;  %v13921_v54 = vpop.f32.mrf.mxu0  ;;  %v11121_v2 = vor.u32 %v12990_v17, %v11118_v9  ;;  %v13039_v0 = vld [vmem:[#allocation12 + $0x4ac] sm:$0xf]  ;;  %v11314_v63 = vld [vmem:[#allocation12 + $0x4c4] sm:$0xf0]  ;;  %v12892_v9 = vld [vmem:[#allocation12 + $0x14] sm:$0xf] }
 0x441   :  { %13296 = vrcp.f32 %v8212_v61  ;;  %v12899_v51 = vld [vmem:[#allocation12 + $0x4c] sm:$0xf]  ;;  %v11286_v61 = vld [vmem:[#allocation12 + $0x48c] sm:$0xf0] }
 0x442   :  { %7949 = vmatpush.bf16.msra.mxu3 %v11229_v60  ;;  %7975 = vmatpush.bf16.msrb.mxu1 %v11677_v62  ;;  %v13053_v60 = vld [vmem:[#allocation12 + $0x51c] sm:$0xf]  ;;  %v7681_v22 = vadd.f32 %v13906_v33, %v7668_v15  ;;  %v12237_v62 = vor.u32 %v13273_v56, %v12236_v50  ;;  %v13252_v50 = vld [vmem:[#allocation12 + $0xb50] sm:$0xf0]  ;;  %v11034_v56 = vld [vmem:[#allocation12 + $0x294] sm:$0xf0] }
 0x443   :  { %7965 = vmatmul.bf16.vlgmr.msrb.gmra.mxu0 %v13844_v5  ;;  %v13032_v15 = vld [vmem:[#allocation12 + $0x474] sm:$0xf]  ;;  %v13151_v8 = vld [vmem:[#allocation12 + $0x82c] sm:$0xf] }
 0x444   :  { %8009 = vmatpush.bf16.msra.mxu0 %v10925_v59  ;;  %7987 = vmatpush.bf16.msrb.mxu2 %v11929_v41  ;;  %v11370_v59 = vld [vmem:[#allocation12 + $0x534] sm:$0xf0]  ;;  %v11845_v41 = vor.u32 %v13175_v11, %v11844_v35  ;;  %v7694_v3 = vadd.f32 %v7693_v52, %v7681_v22  ;;  %v7734_v18 = vpop.f32.mrf.mxu2  ;;  %v12153_v11 = vor.u32 %v13252_v50, %v12152_v58  ;;  %v13245_v22 = vld [vmem:[#allocation12 + $0xb18] sm:$0xf0]  ;;  %v12962_v52 = vld [vmem:[#allocation12 + $0x244] sm:$0xf] }
 0x445   :  { %v11373_v33 = vor.u32 %v13053_v60, %v11370_v59  ;;  %v12124_v60 = vld [vmem:[#allocation12 + $0xb00] sm:$0xf]  ;;  %v12042_v58 = vld [vmem:[#allocation12 + $0xa74] sm:$0xf0]  ;;  %v13011_v50 = vld [vmem:[#allocation12 + $0x3cc] sm:$0xf] }
 0x446   :  { %7950 = vmatpush.bf16.msra.mxu3 %v11201_v25  ;;  %7976 = vmatpush.bf16.msrb.mxu1 %v11649_v6  ;;  %v10813_v25 = vor.u32 %v12913_v1, %v10810_v4  ;;  %v7707_v26 = vadd.f32 %v13900_v37, %v7694_v3  ;;  %v10782_v6 = vld [vmem:[#allocation12 + $0x9c] sm:$0xf0]  ;;  %v11818_v1 = vld [vmem:[#allocation12 + $0x8b4] sm:$0xf0]  ;;  %v11289_v4 = vor.u32 %v13032_v15, %v11286_v61  ;;  %v13144_v15 = vld [vmem:[#allocation12 + $0x7f4] sm:$0xf] }
 0x447   :  { %v10785_v37 = vor.u32 %v12906_v7, %v10782_v6  ;;  %v12125_v3 = vor.u32 %v13245_v22, %v12124_v60  ;;  %v10978_v7 = vld [vmem:[#allocation12 + $0x224] sm:$0xf0]  ;;  %v11734_v61 = vld [vmem:[#allocation12 + $0x80c] sm:$0xf0]  ;;  %v11566_v60 = vld [vmem:[#allocation12 + $0x6bc] sm:$0xf0] }
 0x448   :  { %8010 = vmatpush.bf16.msra.mxu0 %v10897_v46  ;;  %7988 = vmatpush.bf16.msrb.mxu2 %v11901_v29  ;;  %v13046_v46 = vld [vmem:[#allocation12 + $0x4e4] sm:$0xf]  ;;  %v13297_v29 = vpop.eup %13296  ;;  %v7720_v53 = vadd.f32 %v13911_v42, %v7707_v26  ;;  %v10754_v42 = vld [vmem:[#allocation12 + $0x64] sm:$0xf0]  ;;  %v11261_v26 = vor.u32 %v13025_v12, %v11258_v16  ;;  %v12014_v22 = vld [vmem:[#allocation12 + $0xa3c] sm:$0xf0] }
 0x449   :  { %v11345_v34 = vor.u32 %v13046_v46, %v11342_v30  ;;  %8226 = vst [vmem:[%s14015_s9] sm:$0xff] %v13297_v29  ;;  %v13158_v46 = vld [vmem:[#allocation12 + $0x864] sm:$0xf]  ;;  %v11790_v30 = vld [vmem:[#allocation12 + $0x87c] sm:$0xf0]  ;;  %v5526_v12 = vperm.slane %v13891_v38, 2 }
 0x44a   :  { %7951 = vmatpush.bf16.msra.mxu3 %v11173_v47  ;;  %7977 = vmatpush.bf16.msrb.mxu1 %v11621_v36  ;;  %v7733_v47 = vadd.f32 %v13916_v39, %v7720_v53  ;;  %v7695_v36 = vpop.f32.mrf.mxu3  ;;  %v13932_v17 = vpop.f32.mrf.mxu1  ;;  %v10757_v39 = vor.u32 %v12899_v51, %v10754_v42  ;;  %v13109_v42 = vld [vmem:[#allocation12 + $0x6dc] sm:$0xf] }
 0x44b   :  { %v11594_v36 = vld [vmem:[#allocation12 + $0x6f4] sm:$0xf0] }
 0x44c   :  { %8011 = vmatpush.bf16.msra.mxu0 %v10869_v49  ;;  %7989 = vmatpush.bf16.msrb.mxu2 %v11873_v55  ;;  %v12181_v49 = vor.u32 %v13259_v32, %v12180_v19  ;;  %v8192_v31 = vsub.f32 0.0, %v7733_v47  ;;  %v12969_v55 = vld [vmem:[#allocation12 + $0x27c] sm:$0xf]  ;;  %v11230_v19 = vld [vmem:[#allocation12 + $0x41c] sm:$0xf0] }
 0x44d   :  { %7952 = vmatmul.bf16.vlgmr.msra.gmra.mxu3 %v13839_v21  ;;  %7978 = vmatmul.bf16.vlgmr.msrb.gmra.mxu1 %v13849_v48  ;;  %v11037_v59 = vor.u32 %v12969_v55, %v11034_v56  ;;  %v12068_v32 = vld [vmem:[#allocation12 + $0xa90] sm:$0xf]  ;;  %v12948_v47 = vld [vmem:[#allocation12 + $0x1d4] sm:$0xf] }
 0x44e   :  { %7996 = vmatpush.bf16.msrb.mxu3 %v12265_v45  ;;  %8022 = vmatpush.bf16.msra.mxu1 %v11149_v14  ;;  %v7760_v45 = vpop.f32.mrf.mxu0  ;;  %v11317_v14 = vor.u32 %v13039_v0, %v11314_v63  ;;  %v8200_v35 = vmul.f32 1.442695, %v8192_v31  ;;  %v11202_v31 = vld [vmem:[#allocation12 + $0x3e4] sm:$0xf0] }
 0x44f   :  { %v13221_v45 = vld [vmem:[#allocation12 + $0xa5c] sm:$0xf] }
 0x450   :  { %8012 = vmatpush.bf16.msra.mxu0 %v10841_v44  ;;  %7990 = vmatpush.bf16.msrb.mxu2 %v11845_v41  ;;  %v10726_v44 = vld [vmem:[#allocation12 + $0x2c] sm:$0xf0]  ;;  %13298 = vpow2.f32 %v8200_v35  ;;  %v12045_v35 = vor.u32 %v13221_v45, %v12042_v58  ;;  %v13123_v45 = vld [vmem:[#allocation12 + $0x74c] sm:$0xf]  ;;  %v11650_v58 = vld [vmem:[#allocation12 + $0x764] sm:$0xf0] }
 0x451   :  { %v10729_v41 = vor.u32 %v12892_v9, %v10726_v44  ;;  %v11597_v9 = vor.u32 %v13109_v42, %v11594_v36  ;;  %v13102_v44 = vld [vmem:[#allocation12 + $0x6a4] sm:$0xf]  ;;  %v12210_v42 = vld [vmem:[#allocation12 + $0xbc4] sm:$0xf0] }
 0x452   :  { %7997 = vmatpush.bf16.msrb.mxu3 %v12237_v62  ;;  %8023 = vmatpush.bf16.msra.mxu1 %v11121_v2  ;;  %v13165_v62 = vld [vmem:[#allocation12 + $0x89c] sm:$0xf]  ;;  %v11006_v2 = vld [vmem:[#allocation12 + $0x25c] sm:$0xf0]  ;;  %v13934_v20 = vpop.f32.mrf.mxu3  ;;  %v7773_v6 = vpop.f32.mrf.mxu1  ;;  %v11569_v16 = vor.u32 %v13102_v44, %v11566_v60  ;;  %v13116_v60 = vld [vmem:[#allocation12 + $0x714] sm:$0xf] }
 0x453   :  { %7991 = vmatmul.bf16.vlgmr.msrb.gmra.mxu2 %v13853_v40  ;;  %v11821_v18 = vor.u32 %v13165_v62, %v11818_v1  ;;  %v11009_v23 = vor.u32 %v12962_v52, %v11006_v2  ;;  %v13004_v62 = vld [vmem:[#allocation12 + $0x394] sm:$0xf]  ;;  %v11174_v1 = vld [vmem:[#allocation12 + $0x3ac] sm:$0xf0]  ;;  %v13277_v52 = vld [vmem:[#allocation12 + $0xc1c] sm:$0xf] }
 0x454   :  { %8035 = vmatpush.bf16.msra.mxu2 %v11373_v33  ;;  %8013 = vmatpush.bf16.msra.mxu0 %v10813_v25  ;;  %v12096_v33 = vld [vmem:[#allocation12 + $0xac8] sm:$0xf]  ;;  %v13238_v25 = vld [vmem:[#allocation12 + $0xae0] sm:$0xf0]  ;;  %v12266_v2 = vld [vmem:[#allocation12 + $0xc34] sm:$0xf0] }
 0x455   :  { %v12097_v53 = vor.u32 %v13238_v25, %v12096_v33  ;;  %v13095_v25 = vld [vmem:[#allocation12 + $0x66c] sm:$0xf] }
 0x456   :  { %7998 = vmatpush.bf16.msrb.mxu3 %v12209_v27  ;;  %8024 = vmatpush.bf16.msra.mxu1 %v11093_v28  ;;  %v12955_v27 = vld [vmem:[#allocation12 + $0x20c] sm:$0xf]  ;;  %v13018_v28 = vld [vmem:[#allocation12 + $0x404] sm:$0xf]  ;;  %v13299_v29 = vpop.eup %13298 }
 0x457   :  { %v8213_v0 = vadd.f32 1.0, %v13299_v29  ;;  %v10981_v63 = vor.u32 %v12955_v27, %v10978_v7  ;;  %v11233_v51 = vor.u32 %v13018_v28, %v11230_v19  ;;  %v13207_v27 = vld [vmem:[#allocation12 + $0x9ec] sm:$0xf]  ;;  %v11986_v7 = vld [vmem:[#allocation12 + $0xa04] sm:$0xf0] }
 0x458   :  { %8036 = vmatpush.bf16.msra.mxu2 %v11345_v34  ;;  %8014 = vmatpush.bf16.msra.mxu0 %v10785_v37  ;;  %v11793_v34 = vor.u32 %v13158_v46, %v11790_v30  ;;  %v11762_v37 = vld [vmem:[#allocation12 + $0x844] sm:$0xf0]  ;;  %v13270_v28 = vld [vmem:[#allocation12 + $0xbe4] sm:$0xf]  ;;  %v12238_v19 = vld [vmem:[#allocation12 + $0xbfc] sm:$0xf0] }
 0x459   :  { %13300 = vrcp.f32 %v8213_v0  ;;  %v11765_v55 = vor.u32 %v13151_v8, %v11762_v37  ;;  %v11538_v46 = vld [vmem:[#allocation12 + $0x684] sm:$0xf0]  ;;  %v13088_v8 = vld [vmem:[#allocation12 + $0x634] sm:$0xf]  ;;  %v11510_v37 = vld [vmem:[#allocation12 + $0x64c] sm:$0xf0]  ;;  %v12241_v0 = vor.u32 %v13270_v28, %v12238_v19 }
 0x45a   :  { %7999 = vmatpush.bf16.msrb.mxu3 %v12181_v49  ;;  %8025 = vmatpush.bf16.msra.mxu1 %v11065_v43  ;;  %v10950_v49 = vld [vmem:[#allocation12 + $0x1ec] sm:$0xf0]  ;;  %v13937_v43 = vpop.f32.mrf.mxu2  ;;  %v7747_v56 = vpop.f32.mrf.mxu3  ;;  %v11541_v29 = vor.u32 %v13095_v25, %v11538_v46  ;;  %v13067_v25 = vld [vmem:[#allocation12 + $0x58c] sm:$0xf] }
 0x45b   :  { %v13179_v19 = vld [vmem:[#allocation12 + $0x90c] sm:$0xf] }
 0x45c   :  { %8037 = vmatpush.bf16.msra.mxu2 %v11317_v14  ;;  %8015 = vmatpush.bf16.msra.mxu0 %v10757_v39  ;;  %v12069_v14 = vor.u32 %v13231_v10, %v12068_v32  ;;  %v10953_v39 = vor.u32 %v12948_v47, %v10950_v49  ;;  %v7746_v32 = vadd.f32 %v13934_v20, %v5526_v12  ;;  %v11958_v47 = vld [vmem:[#allocation12 + $0x9cc] sm:$0xf0]  ;;  %v11902_v12 = vld [vmem:[#allocation12 + $0x95c] sm:$0xf0] }
 0x45d   :  { %v11989_v10 = vor.u32 %v13207_v27, %v11986_v7  ;;  %v11513_v20 = vor.u32 %v13088_v8, %v11510_v37  ;;  %v11124_v27 = vld [vmem:[#allocation12 + $0x328] sm:$0xf]  ;;  %v12994_v7 = vld [vmem:[#allocation12 + $0x340] sm:$0xf0]  ;;  %v13060_v37 = vld [vmem:[#allocation12 + $0x554] sm:$0xf] }
 0x45e   :  { %8000 = vmatpush.bf16.msrb.mxu3 %v12153_v11  ;;  %8026 = vmatpush.bf16.msra.mxu1 %v11037_v59  ;;  %v11205_v11 = vor.u32 %v13011_v50, %v11202_v31  ;;  %v13214_v59 = vld [vmem:[#allocation12 + $0xa24] sm:$0xf]  ;;  %v7759_v36 = vadd.f32 %v13921_v54, %v7746_v32  ;;  %v13081_v31 = vld [vmem:[#allocation12 + $0x5fc] sm:$0xf]  ;;  %v11874_v32 = vld [vmem:[#allocation12 + $0x924] sm:$0xf0]  ;;  %v11125_v8 = vor.u32 %v12994_v7, %v11124_v27 }
 0x45f   :  { %v12017_v33 = vor.u32 %v13214_v59, %v12014_v22  ;;  %v11622_v59 = vld [vmem:[#allocation12 + $0x72c] sm:$0xf0]  ;;  %v13074_v22 = vld [vmem:[#allocation12 + $0x5c4] sm:$0xf] }
 0x460   :  { %8038 = vmatpush.bf16.msra.mxu2 %v11289_v4  ;;  %8016 = vmatpush.bf16.msra.mxu0 %v10729_v41  ;;  %v11737_v4 = vor.u32 %v13144_v15, %v11734_v61  ;;  %v13301_v41 = vpop.eup %13300  ;;  %v13943_v30 = vpop.f32.mrf.mxu0  ;;  %v11653_v15 = vor.u32 %v13123_v45, %v11650_v58  ;;  %v13256_v61 = vld [vmem:[#allocation12 + $0xb74] sm:$0xf]  ;;  %v7772_v54 = vadd.f32 %v13932_v17, %v7759_v36  ;;  %v10928_v45 = vld [vmem:[#allocation12 + $0x1a0] sm:$0xf]  ;;  %v11320_v7 = vld [vmem:[#allocation12 + $0x4b0] sm:$0xf] }
 0x461   :  { %8227 = vst [vmem:[%s14015_s9 + $0x8] sm:$0xff] %v13301_v41  ;;  %v13186_v41 = vld [vmem:[#allocation12 + $0x944] sm:$0xf]  ;;  %v11376_v58 = vld [vmem:[#allocation12 + $0x520] sm:$0xf] }
 0x462   :  { %8001 = vmatpush.bf16.msrb.mxu3 %v12125_v3  ;;  %8027 = vmatpush.bf16.msra.mxu1 %v11009_v23  ;;  %v13137_v3 = vld [vmem:[#allocation12 + $0x7bc] sm:$0xf]  ;;  %v11177_v23 = vor.u32 %v13004_v62, %v11174_v1  ;;  %v7786_v38 = vpop.f32.mrf.mxu2  ;;  %v11454_v1 = vld [vmem:[#allocation12 + $0x5dc] sm:$0xf0]  ;;  %v7785_v17 = vadd.f32 %v13937_v43, %v7772_v54  ;;  %v11068_v54 = vld [vmem:[#allocation12 + $0x2b8] sm:$0xf] }
 0x463   :  { %8017 = vmatmul.bf16.vlgmr.msra.gmra.mxu0 %v13827_v57  ;;  %v11905_v38 = vor.u32 %v13186_v41, %v11902_v12  ;;  %v11600_v12 = vld [vmem:[#allocation12 + $0x6e0] sm:$0xf] }
 0x464   :  { %8061 = vmatpush.bf16.msrb.mxu0 %v11821_v18  ;;  %8039 = vmatpush.bf16.msra.mxu2 %v11261_v26  ;;  %v11706_v18 = vld [vmem:[#allocation12 + $0x7d4] sm:$0xf0]  ;;  %v12269_v26 = vor.u32 %v13277_v52, %v12266_v2  ;;  %v13001_v52 = vld [vmem:[#allocation12 + $0x378] sm:$0xf0] }
 0x465   :  { %v11709_v6 = vor.u32 %v13137_v3, %v11706_v18  ;;  %v13249_v3 = vld [vmem:[#allocation12 + $0xb3c] sm:$0xf]  ;;  %v12154_v18 = vld [vmem:[#allocation12 + $0xb54] sm:$0xf0] }
 0x466   :  { %8002 = vmatpush.bf16.msrb.mxu3 %v12097_v53  ;;  %8028 = vmatpush.bf16.msra.mxu1 %v10981_v63  ;;  %v13130_v53 = vld [vmem:[#allocation12 + $0x784] sm:$0xf]  ;;  %v13200_v63 = vld [vmem:[#allocation12 + $0x9b4] sm:$0xf]  ;;  %v12157_v28 = vor.u32 %v13249_v3, %v12154_v18  ;;  %v11040_v18 = vld [vmem:[#allocation12 + $0x280] sm:$0xf] }
 0x467   :  { %v11961_v50 = vor.u32 %v13200_v63, %v11958_v47  ;;  %v11096_v63 = vld [vmem:[#allocation12 + $0x2f0] sm:$0xf]  ;;  %v11877_v47 = vor.u32 %v13179_v19, %v11874_v32  ;;  %v11572_v19 = vld [vmem:[#allocation12 + $0x6a8] sm:$0xf]  ;;  %v13106_v32 = vld [vmem:[#allocation12 + $0x6c0] sm:$0xf0] }
 0x468   :  { %8062 = vmatpush.bf16.msrb.mxu0 %v11793_v34  ;;  %8040 = vmatpush.bf16.msra.mxu2 %v11233_v51  ;;  %v11678_v34 = vld [vmem:[#allocation12 + $0x79c] sm:$0xf0]  ;;  %v13263_v51 = vld [vmem:[#allocation12 + $0xbac] sm:$0xf] }
 0x469   :  { %v11681_v49 = vor.u32 %v13130_v53, %v11678_v34  ;;  %v12213_v56 = vor.u32 %v13263_v51, %v12210_v42  ;;  %v12126_v53 = vld [vmem:[#allocation12 + $0xb1c] sm:$0xf0]  ;;  %v13172_v51 = vld [vmem:[#allocation12 + $0x8d4] sm:$0xf]  ;;  %v11846_v42 = vld [vmem:[#allocation12 + $0x8ec] sm:$0xf0] }
 0x46a   :  { %8003 = vmatpush.bf16.msrb.mxu3 %v12069_v14  ;;  %8029 = vmatpush.bf16.msra.mxu1 %v10953_v39  ;;  %v11482_v14 = vld [vmem:[#allocation12 + $0x614] sm:$0xf0]  ;;  %v13193_v39 = vld [vmem:[#allocation12 + $0x97c] sm:$0xf] }
 0x46b   :  { %v11485_v44 = vor.u32 %v13081_v31, %v11482_v14  ;;  %v13057_v31 = vld [vmem:[#allocation12 + $0x538] sm:$0xf0]  ;;  %v13235_v14 = vld [vmem:[#allocation12 + $0xacc] sm:$0xf] }
 0x46c   :  { %8063 = vmatpush.bf16.msrb.mxu0 %v11765_v55  ;;  %8041 = vmatpush.bf16.msra.mxu2 %v11205_v11  ;;  %v7812_v55 = vpop.f32.mrf.mxu0  ;;  %v7823_v11 = vpop.f32.mrf.mxu1 }
 0x46d   :  { %8004 = vmatmul.bf16.vlgmr.msrb.gmra.mxu3 %v13861_v24  ;;  %8030 = vmatmul.bf16.vlgmr.msra.gmra.mxu1 %v13833_v13  ;;  %v12098_v55 = vld [vmem:[#allocation12 + $0xae4] sm:$0xf0] }
 0x46e   :  { %8048 = vmatpush.bf16.msra.mxu3 %v11597_v9  ;;  %8074 = vmatpush.bf16.msrb.mxu1 %v12045_v35  ;;  %v11930_v9 = vld [vmem:[#allocation12 + $0x994] sm:$0xf0]  ;;  %v12182_v35 = vld [vmem:[#allocation12 + $0xb8c] sm:$0xf0] }
 0x46f   :  { %v11933_v62 = vor.u32 %v13193_v39, %v11930_v9  ;;  %v12185_v2 = vor.u32 %v13256_v61, %v12182_v35  ;;  %v11849_v61 = vor.u32 %v13172_v51, %v11846_v42  ;;  %v11544_v42 = vld [vmem:[#allocation12 + $0x670] sm:$0xf] }
 0x470   :  { %8064 = vmatpush.bf16.msrb.mxu0 %v11737_v4  ;;  %8042 = vmatpush.bf16.msra.mxu2 %v11177_v23  ;;  %v11152_v4 = vld [vmem:[#allocation12 + $0x360] sm:$0xf]  ;;  %v7797_v46 = vpop.f32.mrf.mxu3 }
 0x471   :  { %v11153_v23 = vor.u32 %v13001_v52, %v11152_v4  ;;  %v13050_v4 = vld [vmem:[#allocation12 + $0x500] sm:$0xf0]  ;;  %v13228_v52 = vld [vmem:[#allocation12 + $0xa94] sm:$0xf] }
 0x472   :  { %8049 = vmatpush.bf16.msra.mxu3 %v11569_v16  ;;  %8075 = vmatpush.bf16.msrb.mxu1 %v12017_v33  ;;  %v11625_v16 = vor.u32 %v13116_v60, %v11622_v59  ;;  %v11457_v33 = vor.u32 %v13074_v22, %v11454_v1  ;;  %v11377_v59 = vor.u32 %v13057_v31, %v11376_v58  ;;  %v11348_v1 = vld [vmem:[#allocation12 + $0x4e8] sm:$0xf]  ;;  %v10816_v31 = vld [vmem:[#allocation12 + $0xc0] sm:$0xf] }
 0x473   :  { %8043 = vmatmul.bf16.vlgmr.msra.gmra.mxu2 %v13839_v21  ;;  %v12101_v22 = vor.u32 %v13235_v14, %v12098_v55  ;;  %v12917_v14 = vld [vmem:[#allocation12 + $0xd8] sm:$0xf0] }
 0x474   :  { %8087 = vmatpush.bf16.msrb.mxu2 %v12269_v26  ;;  %8065 = vmatpush.bf16.msrb.mxu0 %v11709_v6  ;;  %v11426_v26 = vld [vmem:[#allocation12 + $0x5a4] sm:$0xf0]  ;;  %v7798_v6 = vadd.f32 %v7797_v46, %v7785_v17  ;;  %v7825_v34 = vpop.f32.mrf.mxu1  ;;  %v12973_v17 = vld [vmem:[#allocation12 + $0x298] sm:$0xf0]  ;;  %v12931_v46 = vld [vmem:[#allocation12 + $0x148] sm:$0xf0] }
 0x476   :  { %8050 = vmatpush.bf16.msra.mxu3 %v11541_v29  ;;  %8076 = vmatpush.bf16.msrb.mxu1 %v11989_v10  ;;  %v13242_v29 = vld [vmem:[#allocation12 + $0xb04] sm:$0xf]  ;;  %v7811_v43 = vadd.f32 %v13943_v30, %v7798_v6  ;;  %v11429_v10 = vor.u32 %v13067_v25, %v11426_v26  ;;  %v12945_v30 = vld [vmem:[#allocation12 + $0x1b8] sm:$0xf0]  ;;  %v10872_v25 = vld [vmem:[#allocation12 + $0x130] sm:$0xf] }
 0x477   :  { %v10929_v35 = vor.u32 %v12945_v30, %v10928_v45  ;;  %v13043_v6 = vld [vmem:[#allocation12 + $0x4c8] sm:$0xf0]  ;;  %v10984_v45 = vld [vmem:[#allocation12 + $0x210] sm:$0xf] }
 0x478   :  { %8088 = vmatpush.bf16.msrb.mxu2 %v12241_v0  ;;  %8066 = vmatpush.bf16.msrb.mxu0 %v11681_v49  ;;  %v11398_v0 = vld [vmem:[#allocation12 + $0x56c] sm:$0xf0]  ;;  %v12987_v49 = vld [vmem:[#allocation12 + $0x308] sm:$0xf0]  ;;  %v7824_v36 = vadd.f32 %v7823_v11, %v7811_v43  ;;  %v12980_v11 = vld [vmem:[#allocation12 + $0x2d0] sm:$0xf0] }
 0x479   :  { %v11401_v39 = vor.u32 %v13060_v37, %v11398_v0  ;;  %v11097_v9 = vor.u32 %v12987_v49, %v11096_v63  ;;  %v11069_v41 = vor.u32 %v12980_v11, %v11068_v54  ;;  %v12966_v43 = vld [vmem:[#allocation12 + $0x260] sm:$0xf0]  ;;  %v12924_v37 = vld [vmem:[#allocation12 + $0x110] sm:$0xf0]  ;;  %v11573_v63 = vor.u32 %v13106_v32, %v11572_v19  ;;  %v12959_v30 = vld [vmem:[#allocation12 + $0x228] sm:$0xf0] }
 0x47a   :  { %8051 = vmatpush.bf16.msra.mxu3 %v11513_v20  ;;  %8077 = vmatpush.bf16.msrb.mxu1 %v11961_v50  ;;  %v12129_v20 = vor.u32 %v13242_v29, %v12126_v53  ;;  %v13954_v50 = vpop.f32.mrf.mxu2  ;;  %v10873_v29 = vor.u32 %v12931_v46, %v10872_v25  ;;  %v11012_v53 = vld [vmem:[#allocation12 + $0x248] sm:$0xf]  ;;  %v13036_v49 = vld [vmem:[#allocation12 + $0x490] sm:$0xf0]  ;;  %v10817_v11 = vor.u32 %v12917_v14, %v10816_v31  ;;  %v13015_v19 = vld [vmem:[#allocation12 + $0x3e8] sm:$0xf0] }
 0x47b   :  { %v11013_v51 = vor.u32 %v12966_v43, %v11012_v53  ;;  %v11460_v32 = vld [vmem:[#allocation12 + $0x5c8] sm:$0xf]  ;;  %v13071_v31 = vld [vmem:[#allocation12 + $0x5a8] sm:$0xf0] }
 0x47c   :  { %8089 = vmatpush.bf16.msrb.mxu2 %v12213_v56  ;;  %8067 = vmatpush.bf16.msrb.mxu0 %v11653_v15  ;;  %v8193_v56 = vsub.f32 0.0, %v7824_v36  ;;  %v7799_v15 = vpop.f32.mrf.mxu3  ;;  %v13099_v36 = vld [vmem:[#allocation12 + $0x688] sm:$0xf0] }
 0x47d   :  { %v10985_v15 = vor.u32 %v12959_v30, %v10984_v45  ;;  %v13281_v30 = vld [vmem:[#allocation12 + $0xc38] sm:$0xf0] }
 0x47e   :  { %8052 = vmatpush.bf16.msra.mxu3 %v11485_v44  ;;  %8078 = vmatpush.bf16.msrb.mxu1 %v11933_v62  ;;  %v10900_v44 = vld [vmem:[#allocation12 + $0x168] sm:$0xf]  ;;  %v8202_v60 = vmul.f32 1.442695, %v8193_v56  ;;  %v12938_v62 = vld [vmem:[#allocation12 + $0x180] sm:$0xf0]  ;;  %v11545_v56 = vor.u32 %v13099_v36, %v11544_v42 }
 0x47f   :  { %v10901_v3 = vor.u32 %v12938_v62, %v10900_v44  ;;  %v10956_v44 = vld [vmem:[#allocation12 + $0x1d8] sm:$0xf]  ;;  %v12910_v62 = vld [vmem:[#allocation12 + $0xa0] sm:$0xf0]  ;;  %v11824_v42 = vld [vmem:[#allocation12 + $0x8a0] sm:$0xf] }
 0x480   :  { %8090 = vmatpush.bf16.msrb.mxu2 %v12185_v2  ;;  %8068 = vmatpush.bf16.msrb.mxu0 %v11625_v16  ;;  %v12070_v2 = vld [vmem:[#allocation12 + $0xaac] sm:$0xf0]  ;;  %13302 = vpow2.f32 %v8202_v60  ;;  %v13113_v16 = vld [vmem:[#allocation12 + $0x6f8] sm:$0xf0]  ;;  %v12952_v60 = vld [vmem:[#allocation12 + $0x1f0] sm:$0xf0] }
 0x481   :  { %v11601_v27 = vor.u32 %v13113_v16, %v11600_v12  ;;  %v13022_v12 = vld [vmem:[#allocation12 + $0x420] sm:$0xf0]  ;;  %v10957_v16 = vor.u32 %v12952_v60, %v10956_v44  ;;  %v13169_v36 = vld [vmem:[#allocation12 + $0x8b8] sm:$0xf0]  ;;  %v11796_v60 = vld [vmem:[#allocation12 + $0x868] sm:$0xf] }
 0x482   :  { %8053 = vmatpush.bf16.msra.mxu3 %v11457_v33  ;;  %8079 = vmatpush.bf16.msrb.mxu1 %v11905_v38  ;;  %v11349_v33 = vor.u32 %v13050_v4, %v11348_v1  ;;  %v13956_v38 = vpop.f32.mrf.mxu0  ;;  %v7838_v26 = vpop.f32.mrf.mxu2  ;;  %v12048_v1 = vld [vmem:[#allocation12 + $0xa60] sm:$0xf]  ;;  %v13225_v4 = vld [vmem:[#allocation12 + $0xa78] sm:$0xf0] }
 0x483   :  { %8069 = vmatmul.bf16.vlgmr.msrb.gmra.mxu0 %v13849_v48  ;;  %v12903_v26 = vld [vmem:[#allocation12 + $0x68] sm:$0xf0] }
 0x484   :  { %8113 = vmatpush.bf16.msra.mxu0 %v11153_v23  ;;  %8091 = vmatpush.bf16.msrb.mxu2 %v12157_v28  ;;  %v12073_v23 = vor.u32 %v13228_v52, %v12070_v2  ;;  %v11041_v28 = vor.u32 %v12973_v17, %v11040_v18  ;;  %v13085_v18 = vld [vmem:[#allocation12 + $0x618] sm:$0xf0] }
 0x486   :  { %8054 = vmatpush.bf16.msra.mxu3 %v11429_v10  ;;  %8080 = vmatpush.bf16.msrb.mxu1 %v11877_v47  ;;  %v13303_v34 = vpop.eup %13302  ;;  %v11321_v10 = vor.u32 %v13043_v6, %v11320_v7  ;;  %v11292_v47 = vld [vmem:[#allocation12 + $0x478] sm:$0xf]  ;;  %v13218_v7 = vld [vmem:[#allocation12 + $0xa40] sm:$0xf0] }
 0x487   :  { %v8214_v0 = vadd.f32 1.0, %v13303_v34  ;;  %v11293_v58 = vor.u32 %v13036_v49, %v11292_v47  ;;  %v11180_v47 = vld [vmem:[#allocation12 + $0x398] sm:$0xf]  ;;  %v13008_v49 = vld [vmem:[#allocation12 + $0x3b0] sm:$0xf0] }
 0x488   :  { %8114 = vmatpush.bf16.msra.mxu0 %v11125_v8  ;;  %8092 = vmatpush.bf16.msrb.mxu2 %v12129_v20  ;;  %v10844_v8 = vld [vmem:[#allocation12 + $0xf8] sm:$0xf] }
 0x489   :  { %13304 = vrcp.f32 %v8214_v0  ;;  %v10845_v20 = vor.u32 %v12924_v37, %v10844_v8  ;;  %v12896_v8 = vld [vmem:[#allocation12 + $0x30] sm:$0xf0]  ;;  %v11992_v37 = vld [vmem:[#allocation12 + $0x9f0] sm:$0xf] }
 0x48a   :  { %8055 = vmatpush.bf16.msra.mxu3 %v11401_v39  ;;  %8081 = vmatpush.bf16.msrb.mxu1 %v11849_v61  ;;  %v7864_v55 = vpop.f32.mrf.mxu0  ;;  %v11264_v39 = vld [vmem:[#allocation12 + $0x440] sm:$0xf]  ;;  %v11516_v61 = vld [vmem:[#allocation12 + $0x638] sm:$0xf]  ;;  %v13961_v54 = vpop.f32.mrf.mxu1 }
 0x48c   :  { %8115 = vmatpush.bf16.msra.mxu0 %v11097_v9  ;;  %8093 = vmatpush.bf16.msrb.mxu2 %v12101_v22  ;;  %v13029_v9 = vld [vmem:[#allocation12 + $0x458] sm:$0xf0] }
 0x48d   :  { %8056 = vmatmul.bf16.vlgmr.msra.gmra.mxu3 %v13844_v5  ;;  %8082 = vmatmul.bf16.vlgmr.msrb.gmra.mxu1 %v13853_v40  ;;  %v11265_v22 = vor.u32 %v13029_v9, %v11264_v39 }
 0x48e   :  { %8100 = vmatpush.bf16.msrb.mxu3 %v10929_v35  ;;  %8126 = vmatpush.bf16.msra.mxu1 %v11377_v59  ;;  %v13092_v35 = vld [vmem:[#allocation12 + $0x650] sm:$0xf0]  ;;  %v10788_v59 = vld [vmem:[#allocation12 + $0x88] sm:$0xf] }
 0x48f   :  { %v13305_v52 = vpop.eup %13304  ;;  %v11517_v2 = vor.u32 %v13092_v35, %v11516_v61  ;;  %v10789_v17 = vor.u32 %v12910_v62, %v10788_v59  ;;  %v11964_v61 = vld [vmem:[#allocation12 + $0x9b8] sm:$0xf]  ;;  %v13204_v35 = vld [vmem:[#allocation12 + $0x9d0] sm:$0xf0]  ;;  %v13162_v59 = vld [vmem:[#allocation12 + $0x880] sm:$0xf0] }
 0x490   :  { %8116 = vmatpush.bf16.msra.mxu0 %v11069_v41  ;;  %8094 = vmatpush.bf16.msrb.mxu2 %v12073_v23  ;;  %v11236_v41 = vld [vmem:[#allocation12 + $0x408] sm:$0xf]  ;;  %8228 = vst [vmem:[%s14015_s9 + $0x10] sm:$0xff] %v13305_v52  ;;  %v10760_v23 = vld [vmem:[#allocation12 + $0x50] sm:$0xf]  ;;  %v13966_v25 = vpop.f32.mrf.mxu3  ;;  %v11965_v52 = vor.u32 %v13204_v35, %v11964_v61 }
 0x491   :  { %v11237_v46 = vor.u32 %v13022_v12, %v11236_v41  ;;  %v10761_v43 = vor.u32 %v12903_v26, %v10760_v23  ;;  %v13274_v62 = vld [vmem:[#allocation12 + $0xc00] sm:$0xf0]  ;;  %v11936_v41 = vld [vmem:[#allocation12 + $0x980] sm:$0xf]  ;;  %v13197_v12 = vld [vmem:[#allocation12 + $0x998] sm:$0xf0] }
 0x492   :  { %8101 = vmatpush.bf16.msrb.mxu3 %v10901_v3  ;;  %8127 = vmatpush.bf16.msra.mxu1 %v11349_v33  ;;  %v11488_v3 = vld [vmem:[#allocation12 + $0x600] sm:$0xf]  ;;  %v12049_v33 = vor.u32 %v13225_v4, %v12048_v1  ;;  %v7877_v53 = vpop.f32.mrf.mxu1  ;;  %v11404_v1 = vld [vmem:[#allocation12 + $0x558] sm:$0xf]  ;;  %v13064_v4 = vld [vmem:[#allocation12 + $0x570] sm:$0xf0] }
 0x493   :  { %8095 = vmatmul.bf16.vlgmr.msrb.gmra.mxu2 %v13861_v24  ;;  %v11489_v6 = vor.u32 %v13085_v18, %v11488_v3  ;;  %v11405_v3 = vor.u32 %v13064_v4, %v11404_v1  ;;  %v11768_v18 = vld [vmem:[#allocation12 + $0x830] sm:$0xf]  ;;  %v13148_v53 = vld [vmem:[#allocation12 + $0x810] sm:$0xf0] }
 0x494   :  { %8139 = vmatpush.bf16.msra.mxu2 %v11601_v27  ;;  %8117 = vmatpush.bf16.msra.mxu0 %v11041_v28  ;;  %v12020_v27 = vld [vmem:[#allocation12 + $0xa28] sm:$0xf]  ;;  %v11208_v28 = vld [vmem:[#allocation12 + $0x3d0] sm:$0xf] }
 0x495   :  { %v12021_v34 = vor.u32 %v13218_v7, %v12020_v27  ;;  %v11209_v0 = vor.u32 %v13015_v19, %v11208_v28  ;;  %v12216_v26 = vld [vmem:[#allocation12 + $0xbb0] sm:$0xf]  ;;  %v13267_v27 = vld [vmem:[#allocation12 + $0xbc8] sm:$0xf0]  ;;  %v11937_v7 = vor.u32 %v13197_v12, %v11936_v41  ;;  %v11908_v19 = vld [vmem:[#allocation12 + $0x948] sm:$0xf] }
 0x496   :  { %8102 = vmatpush.bf16.msrb.mxu3 %v10873_v29  ;;  %8128 = vmatpush.bf16.msra.mxu1 %v11321_v10  ;;  %v13078_v29 = vld [vmem:[#allocation12 + $0x5e0] sm:$0xf0]  ;;  %v10732_v10 = vld [vmem:[#allocation12 + $0x18] sm:$0xf]  ;;  %v13969_v45 = vpop.f32.mrf.mxu2  ;;  %v11656_v35 = vld [vmem:[#allocation12 + $0x750] sm:$0xf] }
 0x497   :  { %v10733_v14 = vor.u32 %v12896_v8, %v10732_v10  ;;  %v13183_v8 = vld [vmem:[#allocation12 + $0x928] sm:$0xf0]  ;;  %v12076_v41 = vld [vmem:[#allocation12 + $0xa98] sm:$0xf]  ;;  %v13232_v12 = vld [vmem:[#allocation12 + $0xab0] sm:$0xf0] }
 0x498   :  { %8140 = vmatpush.bf16.msra.mxu2 %v11573_v63  ;;  %8118 = vmatpush.bf16.msra.mxu0 %v11013_v51  ;;  %v13211_v63 = vld [vmem:[#allocation12 + $0xa08] sm:$0xf0]  ;;  %v11461_v51 = vor.u32 %v13078_v29, %v11460_v32  ;;  %v7851_v9 = vpop.f32.mrf.mxu3  ;;  %v13190_v32 = vld [vmem:[#allocation12 + $0x960] sm:$0xf0]  ;;  %v11740_v29 = vld [vmem:[#allocation12 + $0x7f8] sm:$0xf] }
 0x499   :  { %v11993_v55 = vor.u32 %v13211_v63, %v11992_v37  ;;  %v13141_v63 = vld [vmem:[#allocation12 + $0x7d8] sm:$0xf0] }
 0x49a   :  { %8103 = vmatpush.bf16.msrb.mxu3 %v10845_v20  ;;  %8129 = vmatpush.bf16.msra.mxu1 %v11293_v58  ;;  %v12272_v20 = vld [vmem:[#allocation12 + $0xc20] sm:$0xf]  ;;  %v11432_v58 = vld [vmem:[#allocation12 + $0x590] sm:$0xf] }
 0x49b   :  { %v11433_v44 = vor.u32 %v13071_v31, %v11432_v58  ;;  %v11684_v31 = vld [vmem:[#allocation12 + $0x788] sm:$0xf] }
 0x49c   :  { %8141 = vmatpush.bf16.msra.mxu2 %v11545_v56  ;;  %8119 = vmatpush.bf16.msra.mxu0 %v10985_v15  ;;  %v13971_v56 = vld [vmem:[#allocation13] sm:$0xff]  ;;  %v11825_v15 = vor.u32 %v13169_v36, %v11824_v42 }
 0x49d   :  { %v5527_v39 = vperm.slane %v13971_v56, 3 }
 0x49e   :  { %8104 = vmatpush.bf16.msrb.mxu3 %v10817_v11  ;;  %8130 = vmatpush.bf16.msra.mxu1 %v11265_v22  ;;  %v12273_v11 = vor.u32 %v13281_v30, %v12272_v20  ;;  %v12244_v22 = vld [vmem:[#allocation12 + $0xbe8] sm:$0xf]  ;;  %v11852_v30 = vld [vmem:[#allocation12 + $0x8d8] sm:$0xf] }
 0x4a0   :  { %8142 = vmatpush.bf16.msra.mxu2 %v11517_v2  ;;  %8120 = vmatpush.bf16.msra.mxu0 %v10957_v16  ;;  %v11797_v2 = vor.u32 %v13162_v59, %v11796_v60  ;;  %v12245_v16 = vor.u32 %v13274_v62, %v12244_v22  ;;  %v13975_v23 = vpop.f32.mrf.mxu0  ;;  %v12104_v60 = vld [vmem:[#allocation12 + $0xad0] sm:$0xf]  ;;  %v13239_v59 = vld [vmem:[#allocation12 + $0xae8] sm:$0xf0] }
 0x4a1   :  { %v12105_v4 = vor.u32 %v13239_v59, %v12104_v60 }
 0x4a2   :  { %8105 = vmatpush.bf16.msrb.mxu3 %v10789_v17  ;;  %8131 = vmatpush.bf16.msra.mxu1 %v11237_v46  ;;  %v13155_v17 = vld [vmem:[#allocation12 + $0x848] sm:$0xf0]  ;;  %v7890_v46 = vpop.f32.mrf.mxu2 }
 0x4a3   :  { %8121 = vmatmul.bf16.vlgmr.msra.gmra.mxu0 %v13833_v13  ;;  %v11181_v13 = vor.u32 %v13008_v49, %v11180_v47  ;;  %v11769_v28 = vor.u32 %v13155_v17, %v11768_v18  ;;  %v12160_v49 = vld [vmem:[#allocation12 + $0xb40] sm:$0xf] }
 0x4a4   :  { %8165 = vmatpush.bf16.msrb.mxu0 %v12049_v33  ;;  %8143 = vmatpush.bf16.msra.mxu2 %v11489_v6  ;;  %v7837_v33 = vadd.f32 %v13954_v50, %v5527_v39  ;;  %v12217_v50 = vor.u32 %v13267_v27, %v12216_v26  ;;  %v13246_v39 = vld [vmem:[#allocation12 + $0xb20] sm:$0xf0] }
 0x4a6   :  { %8106 = vmatpush.bf16.msrb.mxu3 %v10761_v43  ;;  %8132 = vmatpush.bf16.msra.mxu1 %v11209_v0  ;;  %v7850_v6 = vadd.f32 %v13966_v25, %v7837_v33  ;;  %v12188_v43 = vld [vmem:[#allocation12 + $0xb78] sm:$0xf]  ;;  %v11880_v25 = vld [vmem:[#allocation12 + $0x910] sm:$0xf]  ;;  %v11712_v0 = vld [vmem:[#allocation12 + $0x7c0] sm:$0xf]  ;;  %v12077_v33 = vor.u32 %v13232_v12, %v12076_v41 }
 0x4a7   :  { %v11881_v42 = vor.u32 %v13183_v8, %v11880_v25 }
 0x4a8   :  { %8166 = vmatpush.bf16.msrb.mxu0 %v12021_v34  ;;  %8144 = vmatpush.bf16.msra.mxu2 %v11461_v51  ;;  %v11909_v34 = vor.u32 %v13190_v32, %v11908_v19  ;;  %v7863_v10 = vadd.f32 %v13956_v38, %v7850_v6  ;;  %v7916_v47 = vpop.f32.mrf.mxu0  ;;  %v13253_v51 = vld [vmem:[#allocation12 + $0xb58] sm:$0xf0]  ;;  %v11713_v38 = vor.u32 %v13141_v63, %v11712_v0 }
 0x4a9   :  { %v12161_v58 = vor.u32 %v13253_v51, %v12160_v49 }
 0x4aa   :  { %8107 = vmatpush.bf16.msrb.mxu3 %v10733_v14  ;;  %8133 = vmatpush.bf16.msra.mxu1 %v11181_v13  ;;  %v7876_v36 = vadd.f32 %v13961_v54, %v7863_v10  ;;  %v13983_v20 = vpop.f32.mrf.mxu1  ;;  %v13134_v14 = vld [vmem:[#allocation12 + $0x7a0] sm:$0xf0] }
 0x4ac   :  { %8167 = vmatpush.bf16.msrb.mxu0 %v11993_v55  ;;  %8145 = vmatpush.bf16.msra.mxu2 %v11433_v44  ;;  %v12132_v55 = vld [vmem:[#allocation12 + $0xb08] sm:$0xf]  ;;  %v7889_v13 = vadd.f32 %v13969_v45, %v7876_v36  ;;  %v13120_v45 = vld [vmem:[#allocation12 + $0x730] sm:$0xf0] }
 0x4ad   :  { %8108 = vmatmul.bf16.vlgmr.msrb.gmra.mxu3 %v13827_v57  ;;  %8134 = vmatmul.bf16.vlgmr.msra.gmra.mxu1 %v13839_v21  ;;  %v13260_v57 = vld [vmem:[#allocation12 + $0xb90] sm:$0xf0]  ;;  %v11741_v21 = vor.u32 %v13148_v53, %v11740_v29  ;;  %v12133_v54 = vor.u32 %v13246_v39, %v12132_v55 }
 0x4ae   :  { %8152 = vmatpush.bf16.msra.mxu3 %v11825_v15  ;;  %8178 = vmatpush.bf16.msrb.mxu1 %v12273_v11  ;;  %v12189_v37 = vor.u32 %v13260_v57, %v12188_v43  ;;  %v11685_v15 = vor.u32 %v13134_v14, %v11684_v31  ;;  %v13127_v11 = vld [vmem:[#allocation12 + $0x768] sm:$0xf0] }
 0x4af   :  { %v11657_v1 = vor.u32 %v13127_v11, %v11656_v35 }
 0x4b0   :  { %8168 = vmatpush.bf16.msrb.mxu0 %v11965_v52  ;;  %8146 = vmatpush.bf16.msra.mxu2 %v11405_v3  ;;  %v7901_v61 = vpop.f32.mrf.mxu3  ;;  %v11628_v52 = vld [vmem:[#allocation12 + $0x718] sm:$0xf] }
 0x4b1   :  { %v7902_v44 = vadd.f32 %v7901_v61, %v7889_v13  ;;  %v11629_v18 = vor.u32 %v13120_v45, %v11628_v52 }
 0x4b2   :  { %8153 = vmatpush.bf16.msra.mxu3 %v11797_v2  ;;  %8179 = vmatpush.bf16.msrb.mxu1 %v12245_v16  ;;  %v7929_v62 = vpop.f32.mrf.mxu1 }
 0x4b3   :  { %8147 = vmatmul.bf16.vlgmr.msra.gmra.mxu2 %v13844_v5  ;;  %v13176_v5 = vld [vmem:[#allocation12 + $0x8f0] sm:$0xf0]  ;;  %v7915_v22 = vadd.f32 %v13975_v23, %v7902_v44 }
 0x4b4   :  { %8169 = vmatpush.bf16.msrb.mxu0 %v11937_v7  ;;  %v11853_v9 = vor.u32 %v13176_v5, %v11852_v30  ;;  %v5529_v5 = vperm.slane %v13971_v56, 5 }
 0x4b5   :  { %v8194_v2 = vsub.f32 0.0, %v7915_v22 }
 0x4b6   :  { %8154 = vmatpush.bf16.msra.mxu3 %v11769_v28  ;;  %8180 = vmatpush.bf16.msrb.mxu1 %v12217_v50  ;;  %v7940_v16 = vpop.f32.mrf.mxu2  ;;  %v5528_v50 = vperm.slane %v13971_v56, 4 }
 0x4b7   :  { %v8204_v3 = vmul.f32 1.442695, %v8194_v2 }
 0x4b8   :  { %8170 = vmatpush.bf16.msrb.mxu0 %v11909_v34  ;;  %v7903_v17 = vpop.f32.mrf.mxu3 }
 0x4b9   :  { %13306 = vpow2.f32 %v8204_v3  ;;  %v5530_v17 = vperm.slane %v13971_v56, 6 }
 0x4ba   :  { %8155 = vmatpush.bf16.msra.mxu3 %v11741_v21  ;;  %8181 = vmatpush.bf16.msrb.mxu1 %v12189_v37 }
 0x4bc   :  { %8171 = vmatpush.bf16.msrb.mxu0 %v11881_v42 }
 0x4be   :  { %8156 = vmatpush.bf16.msra.mxu3 %v11713_v38  ;;  %8182 = vmatpush.bf16.msrb.mxu1 %v12161_v58  ;;  %v7942_v46 = vpop.f32.mrf.mxu2 }
 0x4bf   :  { %v13307_v26 = vpop.eup %13306 }
 0x4c0   :  { %8172 = vmatpush.bf16.msrb.mxu0 %v11853_v9  ;;  %v7966_v23 = vpop.f32.mrf.mxu0 }
 0x4c2   :  { %8157 = vmatpush.bf16.msra.mxu3 %v11685_v15  ;;  %8183 = vmatpush.bf16.msrb.mxu1 %v12133_v54 }
 0x4c3   :  { %8173 = vmatmul.bf16.vlgmr.msrb.gmra.mxu0 %v13853_v40  ;;  %v8215_v40 = vadd.f32 1.0, %v13307_v26 }
 0x4c5   :  { %13308 = vrcp.f32 %v8215_v40 }
 0x4c6   :  { %8158 = vmatpush.bf16.msra.mxu3 %v11657_v1  ;;  %8184 = vmatpush.bf16.msrb.mxu1 %v12105_v4 }
 0x4c8   :  { %v7968_v27 = vpop.f32.mrf.mxu0 }
 0x4ca   :  { %8159 = vmatpush.bf16.msra.mxu3 %v11629_v18  ;;  %8185 = vmatpush.bf16.msrb.mxu1 %v12077_v33  ;;  %v7979_v6 = vpop.f32.mrf.mxu1 }
 0x4cb   :  { %v13309_v7 = vpop.eup %13308 }
 0x4cc   :  { %8229 = vst [vmem:[%s14015_s9 + $0x18] sm:$0xff] %v13309_v7 }
 0x4cd   :  { %8160 = vmatmul.bf16.vlgmr.msra.gmra.mxu3 %v13849_v48  ;;  %8186 = vmatmul.bf16.vlgmr.msrb.gmra.mxu1 %v13861_v24  ;;  %v7928_v48 = vadd.f32 %v13983_v20, %v5528_v50 }
 0x4cf   :  { %v7941_v53 = vadd.f32 %v7940_v16, %v7928_v48 }
 0x4d0   :  { %v7953_v28 = vpop.f32.mrf.mxu3 }
 0x4d1   :  { %v7954_v57 = vadd.f32 %v7953_v28, %v7941_v53 }
 0x4d2   :  { %v7981_v19 = vpop.f32.mrf.mxu1 }
 0x4d3   :  { %v7967_v34 = vadd.f32 %v7966_v23, %v7954_v57 }
 0x4d5   :  { %v7980_v21 = vadd.f32 %v7979_v6, %v7967_v34 }
 0x4d6   :  { %v7992_v32 = vpop.f32.mrf.mxu2 }
 0x4d7   :  { %v7993_v8 = vadd.f32 %v7992_v32, %v7980_v21 }
 0x4d8   :  { %v7955_v29 = vpop.f32.mrf.mxu3 }
 0x4de   :  { %v7994_v24 = vpop.f32.mrf.mxu2 }
 0x4e0   :  { %v8018_v43 = vpop.f32.mrf.mxu0 }
 0x4e1   :  { %v8019_v14 = vadd.f32 %v8018_v43, %v5529_v5 }
 0x4e8   :  { %v8020_v10 = vpop.f32.mrf.mxu0 }
 0x4ea   :  { %v8031_v25 = vpop.f32.mrf.mxu1 }
 0x4eb   :  { %v8032_v39 = vadd.f32 %v8031_v25, %v8019_v14 }
 0x4f0   :  { %v8005_v37 = vpop.f32.mrf.mxu3 }
 0x4f1   :  { %v8006_v0 = vadd.f32 %v8005_v37, %v7993_v8 }
 0x4f2   :  { %v8033_v47 = vpop.f32.mrf.mxu1 }
 0x4f3   :  { %v8195_v63 = vsub.f32 0.0, %v8006_v0 }
 0x4f5   :  { %v8206_v49 = vmul.f32 1.442695, %v8195_v63 }
 0x4f6   :  { %v8044_v51 = vpop.f32.mrf.mxu2 }
 0x4f7   :  { %13310 = vpow2.f32 %v8206_v49  ;;  %v8045_v9 = vadd.f32 %v8044_v51, %v8032_v39 }
 0x4f8   :  { %v8007_v42 = vpop.f32.mrf.mxu3 }
 0x4fd   :  { %v13311_v36 = vpop.eup %13310 }
 0x4fe   :  { %v8216_v38 = vadd.f32 1.0, %v13311_v36  ;;  %v8046_v30 = vpop.f32.mrf.mxu2 }
 0x500   :  { %v8070_v20 = vpop.f32.mrf.mxu0  ;;  %13312 = vrcp.f32 %v8216_v38 }
 0x506   :  { %v13313_v58 = vpop.eup %13312 }
 0x507   :  { %8230 = vst [vmem:[%s14015_s9 + $0x20] sm:$0xff] %v13313_v58 }
 0x508   :  { %v8072_v31 = vpop.f32.mrf.mxu0 }
 0x50a   :  { %v8083_v55 = vpop.f32.mrf.mxu1 }
 0x510   :  { %v8057_v13 = vpop.f32.mrf.mxu3 }
 0x511   :  { %v8058_v15 = vadd.f32 %v8057_v13, %v8045_v9 }
 0x512   :  { %v8085_v54 = vpop.f32.mrf.mxu1 }
 0x513   :  { %v8071_v61 = vadd.f32 %v8070_v20, %v8058_v15 }
 0x515   :  { %v8084_v35 = vadd.f32 %v8083_v55, %v8071_v61 }
 0x516   :  { %v8096_v11 = vpop.f32.mrf.mxu2 }
 0x517   :  { %v8097_v44 = vadd.f32 %v8096_v11, %v8084_v35 }
 0x518   :  { %v8059_v60 = vpop.f32.mrf.mxu3 }
 0x519   :  { %v8196_v59 = vsub.f32 0.0, %v8097_v44 }
 0x51b   :  { %v8208_v22 = vmul.f32 1.442695, %v8196_v59 }
 0x51d   :  { %13314 = vpow2.f32 %v8208_v22 }
 0x51e   :  { %v8098_v1 = vpop.f32.mrf.mxu2 }
 0x520   :  { %v8122_v62 = vpop.f32.mrf.mxu0 }
 0x523   :  { %v13315_v4 = vpop.eup %13314 }
 0x524   :  { %v8217_v52 = vadd.f32 1.0, %v13315_v4 }
 0x526   :  { %13316 = vrcp.f32 %v8217_v52 }
 0x528   :  { %v8124_v45 = vpop.f32.mrf.mxu0 }
 0x52a   :  { %v8135_v2 = vpop.f32.mrf.mxu1 }
 0x52c   :  { %v13317_v41 = vpop.eup %13316 }
 0x52d   :  { %8231 = vst [vmem:[%s14015_s9 + $0x28] sm:$0xff] %v13317_v41 }
 0x530   :  { %v8109_v12 = vpop.f32.mrf.mxu3 }
 0x531   :  { %v8110_v46 = vadd.f32 %v8109_v12, %v5530_v17 }
 0x532   :  { %v8137_v16 = vpop.f32.mrf.mxu1 }
 0x533   :  { %v8123_v26 = vadd.f32 %v8122_v62, %v8110_v46 }
 0x535   :  { %v8136_v27 = vadd.f32 %v8135_v2, %v8123_v26 }
 0x536   :  { %v8148_v3 = vpop.f32.mrf.mxu2 }
 0x537   :  { %v8149_v6 = vadd.f32 %v8148_v3, %v8136_v27 }
 0x538   :  { %v8111_v18 = vpop.f32.mrf.mxu3 }
 0x53e   :  { %v8150_v23 = vpop.f32.mrf.mxu2 }
 0x540   :  { %v8174_v33 = vpop.f32.mrf.mxu0 }
 0x548   :  { %v8176_v40 = vpop.f32.mrf.mxu0 }
 0x54a   :  { %v8187_v7 = vpop.f32.mrf.mxu1 }
 0x550   :  { %v8161_v28 = vpop.f32.mrf.mxu3 }
 0x551   :  { %v8162_v19 = vadd.f32 %v8161_v28, %v8149_v6 }
 0x552   :  { %v8189_v50 = vpop.f32.mrf.mxu1 }
 0x553   :  { %v8175_v32 = vadd.f32 %v8174_v33, %v8162_v19 }
 0x555   :  { %v8188_v29 = vadd.f32 %v8187_v7, %v8175_v32 }
 0x557   :  { %v8197_v48 = vsub.f32 0.0, %v8188_v29 }
 0x558   :  { %v8163_v53 = vpop.f32.mrf.mxu3 }
 0x559   :  { %v8210_v43 = vmul.f32 1.442695, %v8197_v48 }
 0x55b   :  { %13318 = vpow2.f32 %v8210_v43 }
 0x561   :  { %v13319_v24 = vpop.eup %13318 }
 0x562   :  { %v8218_v57 = vadd.f32 1.0, %v13319_v24 }
 0x564   :  { %13320 = vrcp.f32 %v8218_v57 }
 0x56a   :  { %v13321_v56 = vpop.eup %13320 }
 0x56b   :  { %8232 = vst [vmem:[%s14015_s9 + $0x30] sm:$0xff] %v13321_v56 }
 0x56c   :  { %8237 = vsyncpa [#allocation3], 1 }
 0x56d   :  { %8238 = vsyncpa [#allocation5], 1 }
 0x56e   :  { %8239 = vsyncpa [#allocation8], 1 }
 0x56f   :  { %8240 = vsyncpa [#allocation11], 1 }
 0x570   :  { %8241 = vsyncpa [#allocation14], 1 }

</bundles_post_ra>
